<compile_context>
chip_gen: v7x
topology: tpu7x:2x2x1
jax: 0.10.0
libtpu: 0.0.40
codegen_flags: <defaults>
</compile_context>

<pallas_src>
import functools
import math

import jax
import jax.numpy as jnp
from jax.experimental import pallas as pl
from jax.experimental.pallas import tpu as pltpu


# ----------------------------- Pallas kernels ------------------------------

def _fused_gemm_kernel(*refs, relu, has_res):
    """Tiled GEMM with fused BatchNorm affine (+ optional residual, + ReLU).

    refs = (a, b, scale, bias, [residual], out, acc_scratch)
      a: (tm, tk) bf16   b: (tk, tn) bf16   scale/bias: (1, tn) f32
      residual: (tm, tn) bf16   out: (tm, tn) bf16   acc: (tm, tn) f32
    """
    if has_res:
        a_ref, b_ref, s_ref, bias_ref, r_ref, o_ref, acc_ref = refs
    else:
        a_ref, b_ref, s_ref, bias_ref, o_ref, acc_ref = refs

    k = pl.program_id(2)

    @pl.when(k == 0)
    def _():
        acc_ref[...] = jnp.zeros_like(acc_ref)

    acc_ref[...] += jnp.dot(a_ref[...], b_ref[...],
                            preferred_element_type=jnp.float32)

    @pl.when(k == pl.num_programs(2) - 1)
    def _():
        y = acc_ref[...] * s_ref[...] + bias_ref[...]
        if has_res:
            y = y + r_ref[...].astype(jnp.float32)
        if relu:
            y = jnp.maximum(y, 0.0)
        o_ref[...] = y.astype(o_ref.dtype)


def _scale_bias_kernel(x_ref, s_ref, b_ref, o_ref):
    # y = x * scale + bias  (per-row scale/bias) -- used for (in_f - mean)/std.
    o_ref[...] = x_ref[...] * s_ref[...] + b_ref[...]


def _maxpool_kernel(p_ref, o_ref):
    # p_ref: (9, tr, lanes) -- the 9 taps of the 3x3 pool; elementwise max (VPU).
    acc = p_ref[0]
    for i in range(1, 9):
        acc = jnp.maximum(acc, p_ref[i])
    o_ref[...] = acc


# ----------------------------- tiling helpers -------------------------------

def _pick_tile(dim, pref, align):
    """Largest tile <= pref that is a multiple of `align` and divides `dim`.
    Returns `dim` itself (single full block) when dim <= pref or no divisor."""
    if dim <= pref:
        return dim
    t = (pref // align) * align
    while t >= align:
        if dim % t == 0:
            return t
        t -= align
    return dim


def _tile_m(m, pref=256, align=8):
    """Tile for the GEMM M axis; pads M when no clean divisor exists."""
    if m <= pref:
        return m, m
    t = (pref // align) * align
    while t >= align:
        if m % t == 0:
            return t, m
        t -= align
    tm = (pref // align) * align
    return tm, -(-m // tm) * tm


# ----------------------------- Pallas wrappers -----------------------------

def fused_gemm_bn(a, b, scale, bias, *, relu, residual=None,
                  out_dtype=jnp.bfloat16):
    """out = act( (a @ b) * scale + bias [+ residual] ), tiled + pipelined."""
    m, kdim = a.shape
    n = b.shape[1]

    tm, mp = _tile_m(m, 256, 8)
    tn = _pick_tile(n, 256, 128)
    tk = _pick_tile(kdim, 512, 128)

    if mp != m:
        a = jnp.pad(a, ((0, mp - m), (0, 0)))
        if residual is not None:
            residual = jnp.pad(residual, ((0, mp - m), (0, 0)))

    grid = (mp // tm, n // tn, kdim // tk)
    in_specs = [
        pl.BlockSpec((tm, tk), lambda i, j, k: (i, k)),
        pl.BlockSpec((tk, tn), lambda i, j, k: (k, j)),
        pl.BlockSpec((1, tn), lambda i, j, k: (0, j)),
        pl.BlockSpec((1, tn), lambda i, j, k: (0, j)),
    ]
    args = [a, b, scale, bias]
    has_res = residual is not None
    if has_res:
        # same (i, j) block across the k axis -> fetched once, stays resident.
        in_specs.append(pl.BlockSpec((tm, tn), lambda i, j, k: (i, j)))
        args.append(residual)

    out = pl.pallas_call(
        functools.partial(_fused_gemm_kernel, relu=relu, has_res=has_res),
        out_shape=jax.ShapeDtypeStruct((mp, n), out_dtype),
        grid_spec=pltpu.PrefetchScalarGridSpec(
            num_scalar_prefetch=0,
            grid=grid,
            in_specs=in_specs,
            out_specs=pl.BlockSpec((tm, tn), lambda i, j, k: (i, j)),
            scratch_shapes=[pltpu.VMEM((tm, tn), jnp.float32)],
        ),
        compiler_params=pltpu.CompilerParams(
            dimension_semantics=("parallel", "parallel", "arbitrary")),
    )(*args)
    return out[:m] if mp != m else out


def _im2col(x, k, stride, pad):
    # x: NHWC (bf16) -> (N*Ho*Wo, k*k*C); row order matches HWIO weight reshape.
    # TODO(synk): replace with in-kernel tap accumulation so the k*k-expanded
    # patch matrix never hits HBM (only affects the 3x3 and the 7x7 stem conv).
    n, h, w, c = x.shape
    xp = jnp.pad(x, ((0, 0), (pad, pad), (pad, pad), (0, 0)))
    ho = (h + 2 * pad - k) // stride + 1
    wo = (w + 2 * pad - k) // stride + 1
    cols = []
    for i in range(k):
        for j in range(k):
            cols.append(xp[:, i:i + stride * (ho - 1) + 1:stride,
                           j:j + stride * (wo - 1) + 1:stride, :])
    a = jnp.concatenate(cols, axis=-1).reshape(n * ho * wo, k * k * c)
    return a, ho, wo


def conv_bn(x, w_flat, kern, stride, pad, scale, bias, *, relu, residual=None):
    """conv(k x k, no bias) -> BN affine -> (+residual) -> (ReLU), fused GEMM."""
    n, h, w, cin = x.shape
    cout = w_flat.shape[1]
    if kern == 1:
        if stride != 1:
            x = x[:, ::stride, ::stride, :]
        ho, wo = x.shape[1], x.shape[2]
        a = x.reshape(-1, cin)                      # 1x1 conv == plain GEMM
    else:
        a, ho, wo = _im2col(x, kern, stride, pad)
    res_flat = None if residual is None else residual.reshape(-1, cout)
    out = fused_gemm_bn(a, w_flat, scale, bias, relu=relu, residual=res_flat)
    return out.reshape(n, ho, wo, cout)


def normalize_nchw(x, mean, std):
    """f = (in_f - mean) / std, computed lane-dense in NCHW -> (N*C, H*W)."""
    n, c, h, w = x.shape
    rows, cols = n * c, h * w
    xf = x.reshape(rows, cols).astype(jnp.float32)
    s = jnp.tile(1.0 / std, (n,)).reshape(rows, 1)
    b = jnp.tile(-mean / std, (n,)).reshape(rows, 1)
    tc = _pick_tile(cols, 2048, 128)
    out = pl.pallas_call(
        _scale_bias_kernel,
        out_shape=jax.ShapeDtypeStruct((rows, cols), jnp.float32),
        grid_spec=pltpu.PrefetchScalarGridSpec(
            num_scalar_prefetch=0,
            grid=(cols // tc,),
            in_specs=[pl.BlockSpec((rows, tc), lambda j: (0, j)),
                      pl.BlockSpec((rows, 1), lambda j: (0, 0)),
                      pl.BlockSpec((rows, 1), lambda j: (0, 0))],
            out_specs=pl.BlockSpec((rows, tc), lambda j: (0, j)),
        ),
        compiler_params=pltpu.CompilerParams(dimension_semantics=("parallel",)),
    )(xf, s, b)
    return out.reshape(n, c, h, w)


def maxpool_3x3_s2(x):
    """nn.MaxPool2d(kernel_size=3, stride=2, padding=1) on NHWC bf16."""
    n, h, w, c = x.shape
    neg = float(jnp.finfo(x.dtype).min)
    xp = jnp.pad(x, ((0, 0), (1, 1), (1, 1), (0, 0)), constant_values=neg)
    ho = (h + 2 - 3) // 2 + 1
    wo = (w + 2 - 3) // 2 + 1
    taps = [xp[:, i:i + 2 * (ho - 1) + 1:2, j:j + 2 * (wo - 1) + 1:2, :]
            .reshape(-1)
            for i in range(3) for j in range(3)]
    total = n * ho * wo * c
    lanew = 512 if total % 512 == 0 else c          # lane-dense when possible
    rows = total // lanew
    p = jnp.stack(taps, axis=0).reshape(9, rows, lanew)
    tr = _pick_tile(rows, 512, 8)
    # TODO(synk): read the padded input once inside the kernel (strided taps in
    # VMEM) instead of materializing the 9-tap stack in HBM.
    out = pl.pallas_call(
        _maxpool_kernel,
        out_shape=jax.ShapeDtypeStruct((rows, lanew), x.dtype),
        grid_spec=pltpu.PrefetchScalarGridSpec(
            num_scalar_prefetch=0,
            grid=(rows // tr,),
            in_specs=[pl.BlockSpec((9, tr, lanew), lambda r: (0, r, 0))],
            out_specs=pl.BlockSpec((tr, lanew), lambda r: (r, 0)),
        ),
        compiler_params=pltpu.CompilerParams(dimension_semantics=("parallel",)),
    )(p)
    return out.reshape(n, ho, wo, c)


# ----------------------------- parameters ----------------------------------

class _ParamGen:
    def __init__(self, seed=0):
        self._key = jax.random.PRNGKey(seed)

    def normal(self, shape, scale=0.05):
        self._key, sub = jax.random.split(self._key)
        return scale * jax.random.normal(sub, shape, dtype=jnp.float32)


def _conv_w_flat(pg, k, cin, cout):
    w = pg.normal((k, k, cin, cout), scale=1.0 / math.sqrt(k * k * cin))
    return w.reshape(k * k * cin, cout).astype(jnp.bfloat16)


def _bn_affine(pg, c, eps=1e-5):
    gamma = 1.0 + pg.normal((c,), 0.05)
    beta = pg.normal((c,), 0.05)
    mean = pg.normal((c,), 0.05)
    var = 1.0 + jnp.abs(pg.normal((c,), 0.05))
    scale = gamma / jnp.sqrt(var + eps)
    bias = beta - mean * scale
    return scale.reshape(1, c), bias.reshape(1, c)


def _make_layer(pg, inplanes, planes, blocks, stride):
    layer = []
    for b in range(blocks):
        s = stride if b == 0 else 1
        blk = {
            "w1": _conv_w_flat(pg, 1, inplanes, planes),
            "bn1": _bn_affine(pg, planes),
            "w2": _conv_w_flat(pg, 3, planes, planes),
            "bn2": _bn_affine(pg, planes),
            "w3": _conv_w_flat(pg, 1, planes, planes * 4),
            "bn3": _bn_affine(pg, planes * 4),
        }
        if b == 0 and (s != 1 or inplanes != planes * 4):
            blk["wd"] = _conv_w_flat(pg, 1, inplanes, planes * 4)
            blk["bnd"] = _bn_affine(pg, planes * 4)
        layer.append(blk)
        inplanes = planes * 4
    return layer, inplanes


def init_params(seed=0):
    pg = _ParamGen(seed)
    # resnet.conv1 (7x7, 3->64) and conv1_m (7x7, 1->64) fused into one weight
    # (concatenated along the input-channel axis) so x = conv1(f)+conv1_m(m)
    # is a single GEMM.
    conv1_w = pg.normal((7, 7, 3, 64), scale=1.0 / math.sqrt(49 * 3))
    conv1m_w = pg.normal((7, 7, 1, 64), scale=1.0 / math.sqrt(49))
    w_cat = jnp.concatenate([conv1_w, conv1m_w], axis=2)       # (7,7,4,64)
    p = {
        "mean": jnp.array([0.485, 0.456, 0.406], jnp.float32),
        "std": jnp.array([0.229, 0.224, 0.225], jnp.float32),
        "conv1_w": w_cat.reshape(49 * 4, 64).astype(jnp.bfloat16),
        "bn1": _bn_affine(pg, 64),
    }
    inplanes = 64
    p["layer1"], inplanes = _make_layer(pg, inplanes, 64, 3, 1)    # res2
    p["layer2"], inplanes = _make_layer(pg, inplanes, 128, 4, 2)   # res3
    p["layer3"], inplanes = _make_layer(pg, inplanes, 256, 6, 2)   # res4
    return p


# ----------------------------- forward pass --------------------------------

def _bottleneck(x, blk, stride):
    if "wd" in blk:
        identity = conv_bn(x, blk["wd"], 1, stride, 0, *blk["bnd"], relu=False)
    else:
        identity = x
    out = conv_bn(x, blk["w1"], 1, 1, 0, *blk["bn1"], relu=True)
    out = conv_bn(out, blk["w2"], 3, stride, 1, *blk["bn2"], relu=True)
    # conv3 + bn3 + residual add + ReLU all fused in one GEMM epilogue.
    out = conv_bn(out, blk["w3"], 1, 1, 0, *blk["bn3"], relu=True,
                  residual=identity)
    return out


def _run_layer(x, blocks, first_stride):
    for i, blk in enumerate(blocks):
        x = _bottleneck(x, blk, first_stride if i == 0 else 1)
    return x


def encoder_m_forward(params, in_f, in_m):
    # in_f: (N, 3, H, W), in_m: (N, 1, H, W)  -- NCHW like PyTorch.
    # f = (in_f - mean) / std  (returned output, computed lane-dense in NCHW)
    f_nchw = normalize_nchw(in_f.astype(jnp.float32),
                            params["mean"], params["std"])

    # `o = torch.zeros_like(in_m).float()` in the reference forward is dead
    # code (never used) and is intentionally skipped; conv1_o is unused too.

    f_nhwc = jnp.transpose(f_nchw, (0, 2, 3, 1)).astype(jnp.bfloat16)
    m_nhwc = jnp.transpose(in_m, (0, 2, 3, 1)).astype(jnp.bfloat16)
    fm = jnp.concatenate([f_nhwc, m_nhwc], axis=-1)            # (N,H,W,4)

    # x = conv1(f) + conv1_m(in_m); bn1 + ReLU fused into the GEMM epilogue.
    c1 = conv_bn(fm, params["conv1_w"], 7, 2, 3, *params["bn1"], relu=True)

    x_mp = maxpool_3x3_s2(c1)                                  # maxpool
    r2 = _run_layer(x_mp, params["layer1"], 1)                 # res2
    r3 = _run_layer(r2, params["layer2"], 2)                   # res3
    r4 = _run_layer(r3, params["layer3"], 2)                   # res4

    to_nchw = lambda t: jnp.transpose(t, (0, 3, 1, 2)).astype(jnp.float32)
    return (to_nchw(r4), to_nchw(r3), to_nchw(r2), to_nchw(c1),
            f_nchw, to_nchw(x_mp))


# ----------------------------- main -----------------------------------------

if __name__ == "__main__":
    key = jax.random.PRNGKey(0)
    k1, k2 = jax.random.split(key)
    in_f = jax.random.normal(k1, (2, 3, 16, 16), dtype=jnp.float32)
    in_m = jax.random.normal(k2, (2, 1, 16, 16), dtype=jnp.float32)

    params = init_params(seed=0)
    fwd = jax.jit(encoder_m_forward)
    r4, r3, r2, c1, f, x = fwd(params, in_f, in_m)
    jax.block_until_ready((r4, r3, r2, c1, f, x))

    assert r4.shape == (2, 1024, 1, 1), r4.shape
    assert r3.shape == (2, 512, 2, 2), r3.shape
    assert r2.shape == (2, 256, 4, 4), r2.shape
    assert c1.shape == (2, 64, 8, 8), c1.shape
    assert f.shape == (2, 3, 16, 16), f.shape
    assert x.shape == (2, 64, 4, 4), x.shape
    print("KERNEL_OK")
</pallas_src>

<mosaic_0001>
module attributes {stable_mosaic.version = 11 : i64} {
  func.func @_scale_bias_kernel(%arg0: i32, %arg1: memref<6x256xf32, #tpu.memory_space<vmem>>, %arg2: memref<6x1xf32, #tpu.memory_space<vmem>>, %arg3: memref<6x1xf32, #tpu.memory_space<vmem>>, %arg4: memref<6x256xf32, #tpu.memory_space<vmem>>) attributes {dimension_semantics = [#tpu.dimension_semantics<parallel>], iteration_bounds = array<i64: 1>, scalar_prefetch = 0 : i64, scratch_operands = 0 : i64, tpu.core_type = #tpu.core_type<tc>, window_params = [{transform_indices = @transform_0, window_bounds = array<i64: 6, 256>}, {pipeline_mode = #tpu.pipeline_mode<synchronous>, transform_indices = @transform_1, window_bounds = array<i64: 6, 1>}, {pipeline_mode = #tpu.pipeline_mode<synchronous>, transform_indices = @transform_2, window_bounds = array<i64: 6, 1>}, {transform_indices = @transform_3, window_bounds = array<i64: 6, 256>}]} {
    %c0 = arith.constant 0 : index
    %c0_0 = arith.constant 0 : index
    %0 = vector.load %arg1[%c0, %c0_0] : memref<6x256xf32, #tpu.memory_space<vmem>>, vector<6x256xf32>
    %c0_1 = arith.constant 0 : index
    %c0_2 = arith.constant 0 : index
    %1 = vector.load %arg2[%c0_1, %c0_2] : memref<6x1xf32, #tpu.memory_space<vmem>>, vector<6x1xf32>
    %2 = vector.broadcast %1 : vector<6x1xf32> to vector<6x256xf32>
    %3 = arith.mulf %0, %2 : vector<6x256xf32>
    %c0_3 = arith.constant 0 : index
    %c0_4 = arith.constant 0 : index
    %4 = vector.load %arg3[%c0_3, %c0_4] : memref<6x1xf32, #tpu.memory_space<vmem>>, vector<6x1xf32>
    %5 = vector.broadcast %4 : vector<6x1xf32> to vector<6x256xf32>
    %6 = arith.addf %3, %5 : vector<6x256xf32>
    %c0_5 = arith.constant 0 : index
    %c0_6 = arith.constant 0 : index
    %7 = vector.load %arg4[%c0_5, %c0_6] : memref<6x256xf32, #tpu.memory_space<vmem>>, vector<6x256xf32>
    tpu.vector_store %arg4[%c0_5, %c0_6], %6 {strides = array<i32>} : memref<6x256xf32, #tpu.memory_space<vmem>>, vector<6x256xf32>,
    return
  }
  func.func @transform_0(%arg0: i32) -> (i32, i32) {
    %c0_i32 = arith.constant 0 : i32
    %c0_i32_0 = arith.constant 0 : i32
    return %c0_i32, %arg0 : i32, i32
  }
  func.func @transform_1(%arg0: i32) -> (i32, i32) {
    %c0_i32 = arith.constant 0 : i32
    %c0_i32_0 = arith.constant 0 : i32
    %c0_i32_1 = arith.constant 0 : i32
    return %c0_i32, %c0_i32_0 : i32, i32
  }
  func.func @transform_2(%arg0: i32) -> (i32, i32) {
    %c0_i32 = arith.constant 0 : i32
    %c0_i32_0 = arith.constant 0 : i32
    %c0_i32_1 = arith.constant 0 : i32
    return %c0_i32, %c0_i32_0 : i32, i32
  }
  func.func @transform_3(%arg0: i32) -> (i32, i32) {
    %c0_i32 = arith.constant 0 : i32
    %c0_i32_0 = arith.constant 0 : i32
    return %c0_i32, %arg0 : i32, i32
  }
}

module attributes {stable_mosaic.version = 11 : i64} {
  func.func @_fused_gemm_kernel(%arg0: i32, %arg1: i32, %arg2: i32, %arg3: memref<128x196xbf16, #tpu.memory_space<vmem>>, %arg4: memref<196x64xbf16, #tpu.memory_space<vmem>>, %arg5: memref<1x64xf32, #tpu.memory_space<vmem>>, %arg6: memref<1x64xf32, #tpu.memory_space<vmem>>, %arg7: memref<128x64xbf16, #tpu.memory_space<vmem>>, %arg8: memref<128x64xf32, #tpu.memory_space<vmem>>) attributes {dimension_semantics = [#tpu.dimension_semantics<parallel>, #tpu.dimension_semantics<parallel>, #tpu.dimension_semantics<arbitrary>], iteration_bounds = array<i64: 1, 1, 1>, scalar_prefetch = 0 : i64, scratch_operands = 1 : i64, tpu.core_type = #tpu.core_type<tc>, window_params = [{transform_indices = @transform_0, window_bounds = array<i64: 128, 196>}, {transform_indices = @transform_1, window_bounds = array<i64: 196, 64>}, {transform_indices = @transform_2, window_bounds = array<i64: 1, 64>}, {transform_indices = @transform_3, window_bounds = array<i64: 1, 64>}, {transform_indices = @transform_4, window_bounds = array<i64: 128, 64>}]} {
    %c0_i32 = arith.constant 0 : i32
    %0 = arith.cmpi eq, %arg2, %c0_i32 : i32
    %1 = arith.extui %0 : i1 to i32
    %c0_i32_0 = arith.constant 0 : i32
    %2 = arith.cmpi ne, %1, %c0_i32_0 : i32
    scf.if %2 {
      %cst_10 = arith.constant 0.000000e+00 : f32
      %12 = vector.broadcast %cst_10 : f32 to vector<128x64xf32>
      %c0_11 = arith.constant 0 : index
      %c0_12 = arith.constant 0 : index
      %13 = vector.load %arg8[%c0_11, %c0_12] : memref<128x64xf32, #tpu.memory_space<vmem>>, vector<128x64xf32>
      tpu.vector_store %arg8[%c0_11, %c0_12], %12 {strides = array<i32>} : memref<128x64xf32, #tpu.memory_space<vmem>>, vector<128x64xf32>,
    } else {
    }
    %c0 = arith.constant 0 : index
    %c0_1 = arith.constant 0 : index
    %3 = vector.load %arg8[%c0, %c0_1] : memref<128x64xf32, #tpu.memory_space<vmem>>, vector<128x64xf32>
    %c0_2 = arith.constant 0 : index
    %c0_3 = arith.constant 0 : index
    %4 = vector.load %arg3[%c0_2, %c0_3] : memref<128x196xbf16, #tpu.memory_space<vmem>>, vector<128x196xbf16>
    %c0_4 = arith.constant 0 : index
    %c0_5 = arith.constant 0 : index
    %5 = vector.load %arg4[%c0_4, %c0_5] : memref<196x64xbf16, #tpu.memory_space<vmem>>, vector<196x64xbf16>
    %cst = arith.constant dense<0.000000e+00> : vector<128x64xf32>
    %6 = tpu.matmul %4, %5, %cst {dimension_numbers = #tpu.dot_dimension_numbers<[1], [0], [0], [1], [0, 0, 1, 1], [], []>} : vector<128x196xbf16>, vector<196x64xbf16>, vector<128x64xf32> -> vector<128x64xf32>
    %7 = arith.addf %3, %6 : vector<128x64xf32>
    %c0_6 = arith.constant 0 : index
    %c0_7 = arith.constant 0 : index
    %8 = vector.load %arg8[%c0_6, %c0_7] : memref<128x64xf32, #tpu.memory_space<vmem>>, vector<128x64xf32>
    tpu.vector_store %arg8[%c0_6, %c0_7], %7 {strides = array<i32>} : memref<128x64xf32, #tpu.memory_space<vmem>>, vector<128x64xf32>,
    %c0_i32_8 = arith.constant 0 : i32
    %9 = arith.cmpi eq, %arg2, %c0_i32_8 : i32
    %10 = arith.extui %9 : i1 to i32
    %c0_i32_9 = arith.constant 0 : i32
    %11 = arith.cmpi ne, %10, %c0_i32_9 : i32
    scf.if %11 {
      %c0_10 = arith.constant 0 : index
      %c0_11 = arith.constant 0 : index
      %12 = vector.load %arg8[%c0_10, %c0_11] : memref<128x64xf32, #tpu.memory_space<vmem>>, vector<128x64xf32>
      %c0_12 = arith.constant 0 : index
      %c0_13 = arith.constant 0 : index
      %13 = vector.load %arg5[%c0_12, %c0_13] : memref<1x64xf32, #tpu.memory_space<vmem>>, vector<1x64xf32>
      %14 = vector.broadcast %13 : vector<1x64xf32> to vector<128x64xf32>
      %15 = arith.mulf %12, %14 : vector<128x64xf32>
      %c0_14 = arith.constant 0 : index
      %c0_15 = arith.constant 0 : index
      %16 = vector.load %arg6[%c0_14, %c0_15] : memref<1x64xf32, #tpu.memory_space<vmem>>, vector<1x64xf32>
      %17 = vector.broadcast %16 : vector<1x64xf32> to vector<128x64xf32>
      %18 = arith.addf %15, %17 : vector<128x64xf32>
      %cst_16 = arith.constant 0.000000e+00 : f32
      %19 = vector.broadcast %cst_16 : f32 to vector<128x64xf32>
      %20 = arith.maximumf %18, %19 : vector<128x64xf32>
      %21 = arith.truncf %20 : vector<128x64xf32> to vector<128x64xbf16>
      %c0_17 = arith.constant 0 : index
      %c0_18 = arith.constant 0 : index
      %22 = vector.load %arg7[%c0_17, %c0_18] : memref<128x64xbf16, #tpu.memory_space<vmem>>, vector<128x64xbf16>
      tpu.vector_store %arg7[%c0_17, %c0_18], %21 {strides = array<i32>} : memref<128x64xbf16, #tpu.memory_space<vmem>>, vector<128x64xbf16>,
    } else {
    }
    return
  }
  func.func @transform_0(%arg0: i32, %arg1: i32, %arg2: i32) -> (i32, i32) {
    %c0_i32 = arith.constant 0 : i32
    return %arg0, %arg2 : i32, i32
  }
  func.func @transform_1(%arg0: i32, %arg1: i32, %arg2: i32) -> (i32, i32) {
    %c0_i32 = arith.constant 0 : i32
    return %arg2, %arg1 : i32, i32
  }
  func.func @transform_2(%arg0: i32, %arg1: i32, %arg2: i32) -> (i32, i32) {
    %c0_i32 = arith.constant 0 : i32
    %c0_i32_0 = arith.constant 0 : i32
    return %c0_i32, %arg1 : i32, i32
  }
  func.func @transform_3(%arg0: i32, %arg1: i32, %arg2: i32) -> (i32, i32) {
    %c0_i32 = arith.constant 0 : i32
    %c0_i32_0 = arith.constant 0 : i32
    return %c0_i32, %arg1 : i32, i32
  }
  func.func @transform_4(%arg0: i32, %arg1: i32, %arg2: i32) -> (i32, i32) {
    %c0_i32 = arith.constant 0 : i32
    return %arg0, %arg1 : i32, i32
  }
}

module attributes {stable_mosaic.version = 11 : i64} {
  func.func @_maxpool_kernel(%arg0: i32, %arg1: memref<9x4x512xbf16, #tpu.memory_space<vmem>>, %arg2: memref<4x512xbf16, #tpu.memory_space<vmem>>) attributes {dimension_semantics = [#tpu.dimension_semantics<parallel>], iteration_bounds = array<i64: 1>, scalar_prefetch = 0 : i64, scratch_operands = 0 : i64, tpu.core_type = #tpu.core_type<tc>, window_params = [{transform_indices = @transform_0, window_bounds = array<i64: 9, 4, 512>}, {transform_indices = @transform_1, window_bounds = array<i64: 4, 512>}]} {
    %c0 = arith.constant 0 : index
    %c0_0 = arith.constant 0 : index
    %c0_1 = arith.constant 0 : index
    %0 = vector.load %arg1[%c0, %c0_0, %c0_1] : memref<9x4x512xbf16, #tpu.memory_space<vmem>>, vector<1x4x512xbf16>
    %1 = vector.shape_cast %0 : vector<1x4x512xbf16> to vector<4x512xbf16>
    %c1 = arith.constant 1 : index
    %c0_2 = arith.constant 0 : index
    %c0_3 = arith.constant 0 : index
    %2 = vector.load %arg1[%c1, %c0_2, %c0_3] : memref<9x4x512xbf16, #tpu.memory_space<vmem>>, vector<1x4x512xbf16>
    %3 = vector.shape_cast %2 : vector<1x4x512xbf16> to vector<4x512xbf16>
    %4 = arith.maximumf %1, %3 : vector<4x512xbf16>
    %c2 = arith.constant 2 : index
    %c0_4 = arith.constant 0 : index
    %c0_5 = arith.constant 0 : index
    %5 = vector.load %arg1[%c2, %c0_4, %c0_5] : memref<9x4x512xbf16, #tpu.memory_space<vmem>>, vector<1x4x512xbf16>
    %6 = vector.shape_cast %5 : vector<1x4x512xbf16> to vector<4x512xbf16>
    %7 = arith.maximumf %4, %6 : vector<4x512xbf16>
    %c3 = arith.constant 3 : index
    %c0_6 = arith.constant 0 : index
    %c0_7 = arith.constant 0 : index
    %8 = vector.load %arg1[%c3, %c0_6, %c0_7] : memref<9x4x512xbf16, #tpu.memory_space<vmem>>, vector<1x4x512xbf16>
    %9 = vector.shape_cast %8 : vector<1x4x512xbf16> to vector<4x512xbf16>
    %10 = arith.maximumf %7, %9 : vector<4x512xbf16>
    %c4 = arith.constant 4 : index
    %c0_8 = arith.constant 0 : index
    %c0_9 = arith.constant 0 : index
    %11 = vector.load %arg1[%c4, %c0_8, %c0_9] : memref<9x4x512xbf16, #tpu.memory_space<vmem>>, vector<1x4x512xbf16>
    %12 = vector.shape_cast %11 : vector<1x4x512xbf16> to vector<4x512xbf16>
    %13 = arith.maximumf %10, %12 : vector<4x512xbf16>
    %c5 = arith.constant 5 : index
    %c0_10 = arith.constant 0 : index
    %c0_11 = arith.constant 0 : index
    %14 = vector.load %arg1[%c5, %c0_10, %c0_11] : memref<9x4x512xbf16, #tpu.memory_space<vmem>>, vector<1x4x512xbf16>
    %15 = vector.shape_cast %14 : vector<1x4x512xbf16> to vector<4x512xbf16>
    %16 = arith.maximumf %13, %15 : vector<4x512xbf16>
    %c6 = arith.constant 6 : index
    %c0_12 = arith.constant 0 : index
    %c0_13 = arith.constant 0 : index
    %17 = vector.load %arg1[%c6, %c0_12, %c0_13] : memref<9x4x512xbf16, #tpu.memory_space<vmem>>, vector<1x4x512xbf16>
    %18 = vector.shape_cast %17 : vector<1x4x512xbf16> to vector<4x512xbf16>
    %19 = arith.maximumf %16, %18 : vector<4x512xbf16>
    %c7 = arith.constant 7 : index
    %c0_14 = arith.constant 0 : index
    %c0_15 = arith.constant 0 : index
    %20 = vector.load %arg1[%c7, %c0_14, %c0_15] : memref<9x4x512xbf16, #tpu.memory_space<vmem>>, vector<1x4x512xbf16>
    %21 = vector.shape_cast %20 : vector<1x4x512xbf16> to vector<4x512xbf16>
    %22 = arith.maximumf %19, %21 : vector<4x512xbf16>
    %c8 = arith.constant 8 : index
    %c0_16 = arith.constant 0 : index
    %c0_17 = arith.constant 0 : index
    %23 = vector.load %arg1[%c8, %c0_16, %c0_17] : memref<9x4x512xbf16, #tpu.memory_space<vmem>>, vector<1x4x512xbf16>
    %24 = vector.shape_cast %23 : vector<1x4x512xbf16> to vector<4x512xbf16>
    %25 = arith.maximumf %22, %24 : vector<4x512xbf16>
    %c0_18 = arith.constant 0 : index
    %c0_19 = arith.constant 0 : index
    %26 = vector.load %arg2[%c0_18, %c0_19] : memref<4x512xbf16, #tpu.memory_space<vmem>>, vector<4x512xbf16>
    tpu.vector_store %arg2[%c0_18, %c0_19], %25 {strides = array<i32>} : memref<4x512xbf16, #tpu.memory_space<vmem>>, vector<4x512xbf16>,
    return
  }
  func.func @transform_0(%arg0: i32) -> (i32, i32, i32) {
    %c0_i32 = arith.constant 0 : i32
    %c0_i32_0 = arith.constant 0 : i32
    %c0_i32_1 = arith.constant 0 : i32
    return %c0_i32, %arg0, %c0_i32_0 : i32, i32, i32
  }
  func.func @transform_1(%arg0: i32) -> (i32, i32) {
    %c0_i32 = arith.constant 0 : i32
    %c0_i32_0 = arith.constant 0 : i32
    return %arg0, %c0_i32 : i32, i32
  }
}

module attributes {stable_mosaic.version = 11 : i64} {
  func.func @_fused_gemm_kernel(%arg0: i32, %arg1: i32, %arg2: i32, %arg3: memref<32x64xbf16, #tpu.memory_space<vmem>>, %arg4: memref<64x64xbf16, #tpu.memory_space<vmem>>, %arg5: memref<1x64xf32, #tpu.memory_space<vmem>>, %arg6: memref<1x64xf32, #tpu.memory_space<vmem>>, %arg7: memref<32x64xbf16, #tpu.memory_space<vmem>>, %arg8: memref<32x64xf32, #tpu.memory_space<vmem>>) attributes {dimension_semantics = [#tpu.dimension_semantics<parallel>, #tpu.dimension_semantics<parallel>, #tpu.dimension_semantics<arbitrary>], iteration_bounds = array<i64: 1, 1, 1>, scalar_prefetch = 0 : i64, scratch_operands = 1 : i64, tpu.core_type = #tpu.core_type<tc>, window_params = [{transform_indices = @transform_0, window_bounds = array<i64: 32, 64>}, {transform_indices = @transform_1, window_bounds = array<i64: 64, 64>}, {transform_indices = @transform_2, window_bounds = array<i64: 1, 64>}, {transform_indices = @transform_3, window_bounds = array<i64: 1, 64>}, {transform_indices = @transform_4, window_bounds = array<i64: 32, 64>}]} {
    %c0_i32 = arith.constant 0 : i32
    %0 = arith.cmpi eq, %arg2, %c0_i32 : i32
    %1 = arith.extui %0 : i1 to i32
    %c0_i32_0 = arith.constant 0 : i32
    %2 = arith.cmpi ne, %1, %c0_i32_0 : i32
    scf.if %2 {
      %cst_10 = arith.constant 0.000000e+00 : f32
      %12 = vector.broadcast %cst_10 : f32 to vector<32x64xf32>
      %c0_11 = arith.constant 0 : index
      %c0_12 = arith.constant 0 : index
      %13 = vector.load %arg8[%c0_11, %c0_12] : memref<32x64xf32, #tpu.memory_space<vmem>>, vector<32x64xf32>
      tpu.vector_store %arg8[%c0_11, %c0_12], %12 {strides = array<i32>} : memref<32x64xf32, #tpu.memory_space<vmem>>, vector<32x64xf32>,
    } else {
    }
    %c0 = arith.constant 0 : index
    %c0_1 = arith.constant 0 : index
    %3 = vector.load %arg8[%c0, %c0_1] : memref<32x64xf32, #tpu.memory_space<vmem>>, vector<32x64xf32>
    %c0_2 = arith.constant 0 : index
    %c0_3 = arith.constant 0 : index
    %4 = vector.load %arg3[%c0_2, %c0_3] : memref<32x64xbf16, #tpu.memory_space<vmem>>, vector<32x64xbf16>
    %c0_4 = arith.constant 0 : index
    %c0_5 = arith.constant 0 : index
    %5 = vector.load %arg4[%c0_4, %c0_5] : memref<64x64xbf16, #tpu.memory_space<vmem>>, vector<64x64xbf16>
    %cst = arith.constant dense<0.000000e+00> : vector<32x64xf32>
    %6 = tpu.matmul %4, %5, %cst {dimension_numbers = #tpu.dot_dimension_numbers<[1], [0], [0], [1], [0, 0, 1, 1], [], []>} : vector<32x64xbf16>, vector<64x64xbf16>, vector<32x64xf32> -> vector<32x64xf32>
    %7 = arith.addf %3, %6 : vector<32x64xf32>
    %c0_6 = arith.constant 0 : index
    %c0_7 = arith.constant 0 : index
    %8 = vector.load %arg8[%c0_6, %c0_7] : memref<32x64xf32, #tpu.memory_space<vmem>>, vector<32x64xf32>
    tpu.vector_store %arg8[%c0_6, %c0_7], %7 {strides = array<i32>} : memref<32x64xf32, #tpu.memory_space<vmem>>, vector<32x64xf32>,
    %c0_i32_8 = arith.constant 0 : i32
    %9 = arith.cmpi eq, %arg2, %c0_i32_8 : i32
    %10 = arith.extui %9 : i1 to i32
    %c0_i32_9 = arith.constant 0 : i32
    %11 = arith.cmpi ne, %10, %c0_i32_9 : i32
    scf.if %11 {
      %c0_10 = arith.constant 0 : index
      %c0_11 = arith.constant 0 : index
      %12 = vector.load %arg8[%c0_10, %c0_11] : memref<32x64xf32, #tpu.memory_space<vmem>>, vector<32x64xf32>
      %c0_12 = arith.constant 0 : index
      %c0_13 = arith.constant 0 : index
      %13 = vector.load %arg5[%c0_12, %c0_13] : memref<1x64xf32, #tpu.memory_space<vmem>>, vector<1x64xf32>
      %14 = vector.broadcast %13 : vector<1x64xf32> to vector<32x64xf32>
      %15 = arith.mulf %12, %14 : vector<32x64xf32>
      %c0_14 = arith.constant 0 : index
      %c0_15 = arith.constant 0 : index
      %16 = vector.load %arg6[%c0_14, %c0_15] : memref<1x64xf32, #tpu.memory_space<vmem>>, vector<1x64xf32>
      %17 = vector.broadcast %16 : vector<1x64xf32> to vector<32x64xf32>
      %18 = arith.addf %15, %17 : vector<32x64xf32>
      %cst_16 = arith.constant 0.000000e+00 : f32
      %19 = vector.broadcast %cst_16 : f32 to vector<32x64xf32>
      %20 = arith.maximumf %18, %19 : vector<32x64xf32>
      %21 = arith.truncf %20 : vector<32x64xf32> to vector<32x64xbf16>
      %c0_17 = arith.constant 0 : index
      %c0_18 = arith.constant 0 : index
      %22 = vector.load %arg7[%c0_17, %c0_18] : memref<32x64xbf16, #tpu.memory_space<vmem>>, vector<32x64xbf16>
      tpu.vector_store %arg7[%c0_17, %c0_18], %21 {strides = array<i32>} : memref<32x64xbf16, #tpu.memory_space<vmem>>, vector<32x64xbf16>,
    } else {
    }
    return
  }
  func.func @transform_0(%arg0: i32, %arg1: i32, %arg2: i32) -> (i32, i32) {
    %c0_i32 = arith.constant 0 : i32
    return %arg0, %arg2 : i32, i32
  }
  func.func @transform_1(%arg0: i32, %arg1: i32, %arg2: i32) -> (i32, i32) {
    %c0_i32 = arith.constant 0 : i32
    return %arg2, %arg1 : i32, i32
  }
  func.func @transform_2(%arg0: i32, %arg1: i32, %arg2: i32) -> (i32, i32) {
    %c0_i32 = arith.constant 0 : i32
    %c0_i32_0 = arith.constant 0 : i32
    return %c0_i32, %arg1 : i32, i32
  }
  func.func @transform_3(%arg0: i32, %arg1: i32, %arg2: i32) -> (i32, i32) {
    %c0_i32 = arith.constant 0 : i32
    %c0_i32_0 = arith.constant 0 : i32
    return %c0_i32, %arg1 : i32, i32
  }
  func.func @transform_4(%arg0: i32, %arg1: i32, %arg2: i32) -> (i32, i32) {
    %c0_i32 = arith.constant 0 : i32
    return %arg0, %arg1 : i32, i32
  }
}

module attributes {stable_mosaic.version = 11 : i64} {
  func.func @_fused_gemm_kernel(%arg0: i32, %arg1: i32, %arg2: i32, %arg3: memref<32x576xbf16, #tpu.memory_space<vmem>>, %arg4: memref<576x64xbf16, #tpu.memory_space<vmem>>, %arg5: memref<1x64xf32, #tpu.memory_space<vmem>>, %arg6: memref<1x64xf32, #tpu.memory_space<vmem>>, %arg7: memref<32x64xbf16, #tpu.memory_space<vmem>>, %arg8: memref<32x64xf32, #tpu.memory_space<vmem>>) attributes {dimension_semantics = [#tpu.dimension_semantics<parallel>, #tpu.dimension_semantics<parallel>, #tpu.dimension_semantics<arbitrary>], iteration_bounds = array<i64: 1, 1, 1>, scalar_prefetch = 0 : i64, scratch_operands = 1 : i64, tpu.core_type = #tpu.core_type<tc>, window_params = [{transform_indices = @transform_0, window_bounds = array<i64: 32, 576>}, {transform_indices = @transform_1, window_bounds = array<i64: 576, 64>}, {transform_indices = @transform_2, window_bounds = array<i64: 1, 64>}, {transform_indices = @transform_3, window_bounds = array<i64: 1, 64>}, {transform_indices = @transform_4, window_bounds = array<i64: 32, 64>}]} {
    %c0_i32 = arith.constant 0 : i32
    %0 = arith.cmpi eq, %arg2, %c0_i32 : i32
    %1 = arith.extui %0 : i1 to i32
    %c0_i32_0 = arith.constant 0 : i32
    %2 = arith.cmpi ne, %1, %c0_i32_0 : i32
    scf.if %2 {
      %cst_10 = arith.constant 0.000000e+00 : f32
      %12 = vector.broadcast %cst_10 : f32 to vector<32x64xf32>
      %c0_11 = arith.constant 0 : index
      %c0_12 = arith.constant 0 : index
      %13 = vector.load %arg8[%c0_11, %c0_12] : memref<32x64xf32, #tpu.memory_space<vmem>>, vector<32x64xf32>
      tpu.vector_store %arg8[%c0_11, %c0_12], %12 {strides = array<i32>} : memref<32x64xf32, #tpu.memory_space<vmem>>, vector<32x64xf32>,
    } else {
    }
    %c0 = arith.constant 0 : index
    %c0_1 = arith.constant 0 : index
    %3 = vector.load %arg8[%c0, %c0_1] : memref<32x64xf32, #tpu.memory_space<vmem>>, vector<32x64xf32>
    %c0_2 = arith.constant 0 : index
    %c0_3 = arith.constant 0 : index
    %4 = vector.load %arg3[%c0_2, %c0_3] : memref<32x576xbf16, #tpu.memory_space<vmem>>, vector<32x576xbf16>
    %c0_4 = arith.constant 0 : index
    %c0_5 = arith.constant 0 : index
    %5 = vector.load %arg4[%c0_4, %c0_5] : memref<576x64xbf16, #tpu.memory_space<vmem>>, vector<576x64xbf16>
    %cst = arith.constant dense<0.000000e+00> : vector<32x64xf32>
    %6 = tpu.matmul %4, %5, %cst {dimension_numbers = #tpu.dot_dimension_numbers<[1], [0], [0], [1], [0, 0, 1, 1], [], []>} : vector<32x576xbf16>, vector<576x64xbf16>, vector<32x64xf32> -> vector<32x64xf32>
    %7 = arith.addf %3, %6 : vector<32x64xf32>
    %c0_6 = arith.constant 0 : index
    %c0_7 = arith.constant 0 : index
    %8 = vector.load %arg8[%c0_6, %c0_7] : memref<32x64xf32, #tpu.memory_space<vmem>>, vector<32x64xf32>
    tpu.vector_store %arg8[%c0_6, %c0_7], %7 {strides = array<i32>} : memref<32x64xf32, #tpu.memory_space<vmem>>, vector<32x64xf32>,
    %c0_i32_8 = arith.constant 0 : i32
    %9 = arith.cmpi eq, %arg2, %c0_i32_8 : i32
    %10 = arith.extui %9 : i1 to i32
    %c0_i32_9 = arith.constant 0 : i32
    %11 = arith.cmpi ne, %10, %c0_i32_9 : i32
    scf.if %11 {
      %c0_10 = arith.constant 0 : index
      %c0_11 = arith.constant 0 : index
      %12 = vector.load %arg8[%c0_10, %c0_11] : memref<32x64xf32, #tpu.memory_space<vmem>>, vector<32x64xf32>
      %c0_12 = arith.constant 0 : index
      %c0_13 = arith.constant 0 : index
      %13 = vector.load %arg5[%c0_12, %c0_13] : memref<1x64xf32, #tpu.memory_space<vmem>>, vector<1x64xf32>
      %14 = vector.broadcast %13 : vector<1x64xf32> to vector<32x64xf32>
      %15 = arith.mulf %12, %14 : vector<32x64xf32>
      %c0_14 = arith.constant 0 : index
      %c0_15 = arith.constant 0 : index
      %16 = vector.load %arg6[%c0_14, %c0_15] : memref<1x64xf32, #tpu.memory_space<vmem>>, vector<1x64xf32>
      %17 = vector.broadcast %16 : vector<1x64xf32> to vector<32x64xf32>
      %18 = arith.addf %15, %17 : vector<32x64xf32>
      %cst_16 = arith.constant 0.000000e+00 : f32
      %19 = vector.broadcast %cst_16 : f32 to vector<32x64xf32>
      %20 = arith.maximumf %18, %19 : vector<32x64xf32>
      %21 = arith.truncf %20 : vector<32x64xf32> to vector<32x64xbf16>
      %c0_17 = arith.constant 0 : index
      %c0_18 = arith.constant 0 : index
      %22 = vector.load %arg7[%c0_17, %c0_18] : memref<32x64xbf16, #tpu.memory_space<vmem>>, vector<32x64xbf16>
      tpu.vector_store %arg7[%c0_17, %c0_18], %21 {strides = array<i32>} : memref<32x64xbf16, #tpu.memory_space<vmem>>, vector<32x64xbf16>,
    } else {
    }
    return
  }
  func.func @transform_0(%arg0: i32, %arg1: i32, %arg2: i32) -> (i32, i32) {
    %c0_i32 = arith.constant 0 : i32
    return %arg0, %arg2 : i32, i32
  }
  func.func @transform_1(%arg0: i32, %arg1: i32, %arg2: i32) -> (i32, i32) {
    %c0_i32 = arith.constant 0 : i32
    return %arg2, %arg1 : i32, i32
  }
  func.func @transform_2(%arg0: i32, %arg1: i32, %arg2: i32) -> (i32, i32) {
    %c0_i32 = arith.constant 0 : i32
    %c0_i32_0 = arith.constant 0 : i32
    return %c0_i32, %arg1 : i32, i32
  }
  func.func @transform_3(%arg0: i32, %arg1: i32, %arg2: i32) -> (i32, i32) {
    %c0_i32 = arith.constant 0 : i32
    %c0_i32_0 = arith.constant 0 : i32
    return %c0_i32, %arg1 : i32, i32
  }
  func.func @transform_4(%arg0: i32, %arg1: i32, %arg2: i32) -> (i32, i32) {
    %c0_i32 = arith.constant 0 : i32
    return %arg0, %arg1 : i32, i32
  }
}

module attributes {stable_mosaic.version = 11 : i64} {
  func.func @_fused_gemm_kernel(%arg0: i32, %arg1: i32, %arg2: i32, %arg3: memref<32x64xbf16, #tpu.memory_space<vmem>>, %arg4: memref<64x256xbf16, #tpu.memory_space<vmem>>, %arg5: memref<1x256xf32, #tpu.memory_space<vmem>>, %arg6: memref<1x256xf32, #tpu.memory_space<vmem>>, %arg7: memref<32x256xbf16, #tpu.memory_space<vmem>>, %arg8: memref<32x256xf32, #tpu.memory_space<vmem>>) attributes {dimension_semantics = [#tpu.dimension_semantics<parallel>, #tpu.dimension_semantics<parallel>, #tpu.dimension_semantics<arbitrary>], iteration_bounds = array<i64: 1, 1, 1>, scalar_prefetch = 0 : i64, scratch_operands = 1 : i64, tpu.core_type = #tpu.core_type<tc>, window_params = [{transform_indices = @transform_0, window_bounds = array<i64: 32, 64>}, {transform_indices = @transform_1, window_bounds = array<i64: 64, 256>}, {transform_indices = @transform_2, window_bounds = array<i64: 1, 256>}, {transform_indices = @transform_3, window_bounds = array<i64: 1, 256>}, {transform_indices = @transform_4, window_bounds = array<i64: 32, 256>}]} {
    %c0_i32 = arith.constant 0 : i32
    %0 = arith.cmpi eq, %arg2, %c0_i32 : i32
    %1 = arith.extui %0 : i1 to i32
    %c0_i32_0 = arith.constant 0 : i32
    %2 = arith.cmpi ne, %1, %c0_i32_0 : i32
    scf.if %2 {
      %cst_10 = arith.constant 0.000000e+00 : f32
      %12 = vector.broadcast %cst_10 : f32 to vector<32x256xf32>
      %c0_11 = arith.constant 0 : index
      %c0_12 = arith.constant 0 : index
      %13 = vector.load %arg8[%c0_11, %c0_12] : memref<32x256xf32, #tpu.memory_space<vmem>>, vector<32x256xf32>
      tpu.vector_store %arg8[%c0_11, %c0_12], %12 {strides = array<i32>} : memref<32x256xf32, #tpu.memory_space<vmem>>, vector<32x256xf32>,
    } else {
    }
    %c0 = arith.constant 0 : index
    %c0_1 = arith.constant 0 : index
    %3 = vector.load %arg8[%c0, %c0_1] : memref<32x256xf32, #tpu.memory_space<vmem>>, vector<32x256xf32>
    %c0_2 = arith.constant 0 : index
    %c0_3 = arith.constant 0 : index
    %4 = vector.load %arg3[%c0_2, %c0_3] : memref<32x64xbf16, #tpu.memory_space<vmem>>, vector<32x64xbf16>
    %c0_4 = arith.constant 0 : index
    %c0_5 = arith.constant 0 : index
    %5 = vector.load %arg4[%c0_4, %c0_5] : memref<64x256xbf16, #tpu.memory_space<vmem>>, vector<64x256xbf16>
    %cst = arith.constant dense<0.000000e+00> : vector<32x256xf32>
    %6 = tpu.matmul %4, %5, %cst {dimension_numbers = #tpu.dot_dimension_numbers<[1], [0], [0], [1], [0, 0, 1, 1], [], []>} : vector<32x64xbf16>, vector<64x256xbf16>, vector<32x256xf32> -> vector<32x256xf32>
    %7 = arith.addf %3, %6 : vector<32x256xf32>
    %c0_6 = arith.constant 0 : index
    %c0_7 = arith.constant 0 : index
    %8 = vector.load %arg8[%c0_6, %c0_7] : memref<32x256xf32, #tpu.memory_space<vmem>>, vector<32x256xf32>
    tpu.vector_store %arg8[%c0_6, %c0_7], %7 {strides = array<i32>} : memref<32x256xf32, #tpu.memory_space<vmem>>, vector<32x256xf32>,
    %c0_i32_8 = arith.constant 0 : i32
    %9 = arith.cmpi eq, %arg2, %c0_i32_8 : i32
    %10 = arith.extui %9 : i1 to i32
    %c0_i32_9 = arith.constant 0 : i32
    %11 = arith.cmpi ne, %10, %c0_i32_9 : i32
    scf.if %11 {
      %c0_10 = arith.constant 0 : index
      %c0_11 = arith.constant 0 : index
      %12 = vector.load %arg8[%c0_10, %c0_11] : memref<32x256xf32, #tpu.memory_space<vmem>>, vector<32x256xf32>
      %c0_12 = arith.constant 0 : index
      %c0_13 = arith.constant 0 : index
      %13 = vector.load %arg5[%c0_12, %c0_13] : memref<1x256xf32, #tpu.memory_space<vmem>>, vector<1x256xf32>
      %14 = vector.broadcast %13 : vector<1x256xf32> to vector<32x256xf32>
      %15 = arith.mulf %12, %14 : vector<32x256xf32>
      %c0_14 = arith.constant 0 : index
      %c0_15 = arith.constant 0 : index
      %16 = vector.load %arg6[%c0_14, %c0_15] : memref<1x256xf32, #tpu.memory_space<vmem>>, vector<1x256xf32>
      %17 = vector.broadcast %16 : vector<1x256xf32> to vector<32x256xf32>
      %18 = arith.addf %15, %17 : vector<32x256xf32>
      %19 = arith.truncf %18 : vector<32x256xf32> to vector<32x256xbf16>
      %c0_16 = arith.constant 0 : index
      %c0_17 = arith.constant 0 : index
      %20 = vector.load %arg7[%c0_16, %c0_17] : memref<32x256xbf16, #tpu.memory_space<vmem>>, vector<32x256xbf16>
      tpu.vector_store %arg7[%c0_16, %c0_17], %19 {strides = array<i32>} : memref<32x256xbf16, #tpu.memory_space<vmem>>, vector<32x256xbf16>,
    } else {
    }
    return
  }
  func.func @transform_0(%arg0: i32, %arg1: i32, %arg2: i32) -> (i32, i32) {
    %c0_i32 = arith.constant 0 : i32
    return %arg0, %arg2 : i32, i32
  }
  func.func @transform_1(%arg0: i32, %arg1: i32, %arg2: i32) -> (i32, i32) {
    %c0_i32 = arith.constant 0 : i32
    return %arg2, %arg1 : i32, i32
  }
  func.func @transform_2(%arg0: i32, %arg1: i32, %arg2: i32) -> (i32, i32) {
    %c0_i32 = arith.constant 0 : i32
    %c0_i32_0 = arith.constant 0 : i32
    return %c0_i32, %arg1 : i32, i32
  }
  func.func @transform_3(%arg0: i32, %arg1: i32, %arg2: i32) -> (i32, i32) {
    %c0_i32 = arith.constant 0 : i32
    %c0_i32_0 = arith.constant 0 : i32
    return %c0_i32, %arg1 : i32, i32
  }
  func.func @transform_4(%arg0: i32, %arg1: i32, %arg2: i32) -> (i32, i32) {
    %c0_i32 = arith.constant 0 : i32
    return %arg0, %arg1 : i32, i32
  }
}

module attributes {stable_mosaic.version = 11 : i64} {
  func.func @_fused_gemm_kernel(%arg0: i32, %arg1: i32, %arg2: i32, %arg3: memref<32x64xbf16, #tpu.memory_space<vmem>>, %arg4: memref<64x256xbf16, #tpu.memory_space<vmem>>, %arg5: memref<1x256xf32, #tpu.memory_space<vmem>>, %arg6: memref<1x256xf32, #tpu.memory_space<vmem>>, %arg7: memref<32x256xbf16, #tpu.memory_space<vmem>>, %arg8: memref<32x256xbf16, #tpu.memory_space<vmem>>, %arg9: memref<32x256xf32, #tpu.memory_space<vmem>>) attributes {dimension_semantics = [#tpu.dimension_semantics<parallel>, #tpu.dimension_semantics<parallel>, #tpu.dimension_semantics<arbitrary>], iteration_bounds = array<i64: 1, 1, 1>, scalar_prefetch = 0 : i64, scratch_operands = 1 : i64, tpu.core_type = #tpu.core_type<tc>, window_params = [{transform_indices = @transform_0, window_bounds = array<i64: 32, 64>}, {transform_indices = @transform_1, window_bounds = array<i64: 64, 256>}, {transform_indices = @transform_2, window_bounds = array<i64: 1, 256>}, {transform_indices = @transform_3, window_bounds = array<i64: 1, 256>}, {transform_indices = @transform_4, window_bounds = array<i64: 32, 256>}, {transform_indices = @transform_5, window_bounds = array<i64: 32, 256>}]} {
    %c0_i32 = arith.constant 0 : i32
    %0 = arith.cmpi eq, %arg2, %c0_i32 : i32
    %1 = arith.extui %0 : i1 to i32
    %c0_i32_0 = arith.constant 0 : i32
    %2 = arith.cmpi ne, %1, %c0_i32_0 : i32
    scf.if %2 {
      %cst_10 = arith.constant 0.000000e+00 : f32
      %12 = vector.broadcast %cst_10 : f32 to vector<32x256xf32>
      %c0_11 = arith.constant 0 : index
      %c0_12 = arith.constant 0 : index
      %13 = vector.load %arg9[%c0_11, %c0_12] : memref<32x256xf32, #tpu.memory_space<vmem>>, vector<32x256xf32>
      tpu.vector_store %arg9[%c0_11, %c0_12], %12 {strides = array<i32>} : memref<32x256xf32, #tpu.memory_space<vmem>>, vector<32x256xf32>,
    } else {
    }
    %c0 = arith.constant 0 : index
    %c0_1 = arith.constant 0 : index
    %3 = vector.load %arg9[%c0, %c0_1] : memref<32x256xf32, #tpu.memory_space<vmem>>, vector<32x256xf32>
    %c0_2 = arith.constant 0 : index
    %c0_3 = arith.constant 0 : index
    %4 = vector.load %arg3[%c0_2, %c0_3] : memref<32x64xbf16, #tpu.memory_space<vmem>>, vector<32x64xbf16>
    %c0_4 = arith.constant 0 : index
    %c0_5 = arith.constant 0 : index
    %5 = vector.load %arg4[%c0_4, %c0_5] : memref<64x256xbf16, #tpu.memory_space<vmem>>, vector<64x256xbf16>
    %cst = arith.constant dense<0.000000e+00> : vector<32x256xf32>
    %6 = tpu.matmul %4, %5, %cst {dimension_numbers = #tpu.dot_dimension_numbers<[1], [0], [0], [1], [0, 0, 1, 1], [], []>} : vector<32x64xbf16>, vector<64x256xbf16>, vector<32x256xf32> -> vector<32x256xf32>
    %7 = arith.addf %3, %6 : vector<32x256xf32>
    %c0_6 = arith.constant 0 : index
    %c0_7 = arith.constant 0 : index
    %8 = vector.load %arg9[%c0_6, %c0_7] : memref<32x256xf32, #tpu.memory_space<vmem>>, vector<32x256xf32>
    tpu.vector_store %arg9[%c0_6, %c0_7], %7 {strides = array<i32>} : memref<32x256xf32, #tpu.memory_space<vmem>>, vector<32x256xf32>,
    %c0_i32_8 = arith.constant 0 : i32
    %9 = arith.cmpi eq, %arg2, %c0_i32_8 : i32
    %10 = arith.extui %9 : i1 to i32
    %c0_i32_9 = arith.constant 0 : i32
    %11 = arith.cmpi ne, %10, %c0_i32_9 : i32
    scf.if %11 {
      %c0_10 = arith.constant 0 : index
      %c0_11 = arith.constant 0 : index
      %12 = vector.load %arg9[%c0_10, %c0_11] : memref<32x256xf32, #tpu.memory_space<vmem>>, vector<32x256xf32>
      %c0_12 = arith.constant 0 : index
      %c0_13 = arith.constant 0 : index
      %13 = vector.load %arg5[%c0_12, %c0_13] : memref<1x256xf32, #tpu.memory_space<vmem>>, vector<1x256xf32>
      %14 = vector.broadcast %13 : vector<1x256xf32> to vector<32x256xf32>
      %15 = arith.mulf %12, %14 : vector<32x256xf32>
      %c0_14 = arith.constant 0 : index
      %c0_15 = arith.constant 0 : index
      %16 = vector.load %arg6[%c0_14, %c0_15] : memref<1x256xf32, #tpu.memory_space<vmem>>, vector<1x256xf32>
      %17 = vector.broadcast %16 : vector<1x256xf32> to vector<32x256xf32>
      %18 = arith.addf %15, %17 : vector<32x256xf32>
      %c0_16 = arith.constant 0 : index
      %c0_17 = arith.constant 0 : index
      %19 = vector.load %arg7[%c0_16, %c0_17] : memref<32x256xbf16, #tpu.memory_space<vmem>>, vector<32x256xbf16>
      %20 = arith.extf %19 : vector<32x256xbf16> to vector<32x256xf32>
      %21 = arith.addf %18, %20 : vector<32x256xf32>
      %cst_18 = arith.constant 0.000000e+00 : f32
      %22 = vector.broadcast %cst_18 : f32 to vector<32x256xf32>
      %23 = arith.maximumf %21, %22 : vector<32x256xf32>
      %24 = arith.truncf %23 : vector<32x256xf32> to vector<32x256xbf16>
      %c0_19 = arith.constant 0 : index
      %c0_20 = arith.constant 0 : index
      %25 = vector.load %arg8[%c0_19, %c0_20] : memref<32x256xbf16, #tpu.memory_space<vmem>>, vector<32x256xbf16>
      tpu.vector_store %arg8[%c0_19, %c0_20], %24 {strides = array<i32>} : memref<32x256xbf16, #tpu.memory_space<vmem>>, vector<32x256xbf16>,
    } else {
    }
    return
  }
  func.func @transform_0(%arg0: i32, %arg1: i32, %arg2: i32) -> (i32, i32) {
    %c0_i32 = arith.constant 0 : i32
    return %arg0, %arg2 : i32, i32
  }
  func.func @transform_1(%arg0: i32, %arg1: i32, %arg2: i32) -> (i32, i32) {
    %c0_i32 = arith.constant 0 : i32
    return %arg2, %arg1 : i32, i32
  }
  func.func @transform_2(%arg0: i32, %arg1: i32, %arg2: i32) -> (i32, i32) {
    %c0_i32 = arith.constant 0 : i32
    %c0_i32_0 = arith.constant 0 : i32
    return %c0_i32, %arg1 : i32, i32
  }
  func.func @transform_3(%arg0: i32, %arg1: i32, %arg2: i32) -> (i32, i32) {
    %c0_i32 = arith.constant 0 : i32
    %c0_i32_0 = arith.constant 0 : i32
    return %c0_i32, %arg1 : i32, i32
  }
  func.func @transform_4(%arg0: i32, %arg1: i32, %arg2: i32) -> (i32, i32) {
    %c0_i32 = arith.constant 0 : i32
    return %arg0, %arg1 : i32, i32
  }
  func.func @transform_5(%arg0: i32, %arg1: i32, %arg2: i32) -> (i32, i32) {
    %c0_i32 = arith.constant 0 : i32
    return %arg0, %arg1 : i32, i32
  }
}

module attributes {stable_mosaic.version = 11 : i64} {
  func.func @_fused_gemm_kernel(%arg0: i32, %arg1: i32, %arg2: i32, %arg3: memref<32x256xbf16, #tpu.memory_space<vmem>>, %arg4: memref<256x64xbf16, #tpu.memory_space<vmem>>, %arg5: memref<1x64xf32, #tpu.memory_space<vmem>>, %arg6: memref<1x64xf32, #tpu.memory_space<vmem>>, %arg7: memref<32x64xbf16, #tpu.memory_space<vmem>>, %arg8: memref<32x64xf32, #tpu.memory_space<vmem>>) attributes {dimension_semantics = [#tpu.dimension_semantics<parallel>, #tpu.dimension_semantics<parallel>, #tpu.dimension_semantics<arbitrary>], iteration_bounds = array<i64: 1, 1, 1>, scalar_prefetch = 0 : i64, scratch_operands = 1 : i64, tpu.core_type = #tpu.core_type<tc>, window_params = [{transform_indices = @transform_0, window_bounds = array<i64: 32, 256>}, {transform_indices = @transform_1, window_bounds = array<i64: 256, 64>}, {transform_indices = @transform_2, window_bounds = array<i64: 1, 64>}, {transform_indices = @transform_3, window_bounds = array<i64: 1, 64>}, {transform_indices = @transform_4, window_bounds = array<i64: 32, 64>}]} {
    %c0_i32 = arith.constant 0 : i32
    %0 = arith.cmpi eq, %arg2, %c0_i32 : i32
    %1 = arith.extui %0 : i1 to i32
    %c0_i32_0 = arith.constant 0 : i32
    %2 = arith.cmpi ne, %1, %c0_i32_0 : i32
    scf.if %2 {
      %cst_10 = arith.constant 0.000000e+00 : f32
      %12 = vector.broadcast %cst_10 : f32 to vector<32x64xf32>
      %c0_11 = arith.constant 0 : index
      %c0_12 = arith.constant 0 : index
      %13 = vector.load %arg8[%c0_11, %c0_12] : memref<32x64xf32, #tpu.memory_space<vmem>>, vector<32x64xf32>
      tpu.vector_store %arg8[%c0_11, %c0_12], %12 {strides = array<i32>} : memref<32x64xf32, #tpu.memory_space<vmem>>, vector<32x64xf32>,
    } else {
    }
    %c0 = arith.constant 0 : index
    %c0_1 = arith.constant 0 : index
    %3 = vector.load %arg8[%c0, %c0_1] : memref<32x64xf32, #tpu.memory_space<vmem>>, vector<32x64xf32>
    %c0_2 = arith.constant 0 : index
    %c0_3 = arith.constant 0 : index
    %4 = vector.load %arg3[%c0_2, %c0_3] : memref<32x256xbf16, #tpu.memory_space<vmem>>, vector<32x256xbf16>
    %c0_4 = arith.constant 0 : index
    %c0_5 = arith.constant 0 : index
    %5 = vector.load %arg4[%c0_4, %c0_5] : memref<256x64xbf16, #tpu.memory_space<vmem>>, vector<256x64xbf16>
    %cst = arith.constant dense<0.000000e+00> : vector<32x64xf32>
    %6 = tpu.matmul %4, %5, %cst {dimension_numbers = #tpu.dot_dimension_numbers<[1], [0], [0], [1], [0, 0, 1, 1], [], []>} : vector<32x256xbf16>, vector<256x64xbf16>, vector<32x64xf32> -> vector<32x64xf32>
    %7 = arith.addf %3, %6 : vector<32x64xf32>
    %c0_6 = arith.constant 0 : index
    %c0_7 = arith.constant 0 : index
    %8 = vector.load %arg8[%c0_6, %c0_7] : memref<32x64xf32, #tpu.memory_space<vmem>>, vector<32x64xf32>
    tpu.vector_store %arg8[%c0_6, %c0_7], %7 {strides = array<i32>} : memref<32x64xf32, #tpu.memory_space<vmem>>, vector<32x64xf32>,
    %c0_i32_8 = arith.constant 0 : i32
    %9 = arith.cmpi eq, %arg2, %c0_i32_8 : i32
    %10 = arith.extui %9 : i1 to i32
    %c0_i32_9 = arith.constant 0 : i32
    %11 = arith.cmpi ne, %10, %c0_i32_9 : i32
    scf.if %11 {
      %c0_10 = arith.constant 0 : index
      %c0_11 = arith.constant 0 : index
      %12 = vector.load %arg8[%c0_10, %c0_11] : memref<32x64xf32, #tpu.memory_space<vmem>>, vector<32x64xf32>
      %c0_12 = arith.constant 0 : index
      %c0_13 = arith.constant 0 : index
      %13 = vector.load %arg5[%c0_12, %c0_13] : memref<1x64xf32, #tpu.memory_space<vmem>>, vector<1x64xf32>
      %14 = vector.broadcast %13 : vector<1x64xf32> to vector<32x64xf32>
      %15 = arith.mulf %12, %14 : vector<32x64xf32>
      %c0_14 = arith.constant 0 : index
      %c0_15 = arith.constant 0 : index
      %16 = vector.load %arg6[%c0_14, %c0_15] : memref<1x64xf32, #tpu.memory_space<vmem>>, vector<1x64xf32>
      %17 = vector.broadcast %16 : vector<1x64xf32> to vector<32x64xf32>
      %18 = arith.addf %15, %17 : vector<32x64xf32>
      %cst_16 = arith.constant 0.000000e+00 : f32
      %19 = vector.broadcast %cst_16 : f32 to vector<32x64xf32>
      %20 = arith.maximumf %18, %19 : vector<32x64xf32>
      %21 = arith.truncf %20 : vector<32x64xf32> to vector<32x64xbf16>
      %c0_17 = arith.constant 0 : index
      %c0_18 = arith.constant 0 : index
      %22 = vector.load %arg7[%c0_17, %c0_18] : memref<32x64xbf16, #tpu.memory_space<vmem>>, vector<32x64xbf16>
      tpu.vector_store %arg7[%c0_17, %c0_18], %21 {strides = array<i32>} : memref<32x64xbf16, #tpu.memory_space<vmem>>, vector<32x64xbf16>,
    } else {
    }
    return
  }
  func.func @transform_0(%arg0: i32, %arg1: i32, %arg2: i32) -> (i32, i32) {
    %c0_i32 = arith.constant 0 : i32
    return %arg0, %arg2 : i32, i32
  }
  func.func @transform_1(%arg0: i32, %arg1: i32, %arg2: i32) -> (i32, i32) {
    %c0_i32 = arith.constant 0 : i32
    return %arg2, %arg1 : i32, i32
  }
  func.func @transform_2(%arg0: i32, %arg1: i32, %arg2: i32) -> (i32, i32) {
    %c0_i32 = arith.constant 0 : i32
    %c0_i32_0 = arith.constant 0 : i32
    return %c0_i32, %arg1 : i32, i32
  }
  func.func @transform_3(%arg0: i32, %arg1: i32, %arg2: i32) -> (i32, i32) {
    %c0_i32 = arith.constant 0 : i32
    %c0_i32_0 = arith.constant 0 : i32
    return %c0_i32, %arg1 : i32, i32
  }
  func.func @transform_4(%arg0: i32, %arg1: i32, %arg2: i32) -> (i32, i32) {
    %c0_i32 = arith.constant 0 : i32
    return %arg0, %arg1 : i32, i32
  }
}

module attributes {stable_mosaic.version = 11 : i64} {
  func.func @_fused_gemm_kernel(%arg0: i32, %arg1: i32, %arg2: i32, %arg3: memref<32x256xbf16, #tpu.memory_space<vmem>>, %arg4: memref<256x128xbf16, #tpu.memory_space<vmem>>, %arg5: memref<1x128xf32, #tpu.memory_space<vmem>>, %arg6: memref<1x128xf32, #tpu.memory_space<vmem>>, %arg7: memref<32x128xbf16, #tpu.memory_space<vmem>>, %arg8: memref<32x128xf32, #tpu.memory_space<vmem>>) attributes {dimension_semantics = [#tpu.dimension_semantics<parallel>, #tpu.dimension_semantics<parallel>, #tpu.dimension_semantics<arbitrary>], iteration_bounds = array<i64: 1, 1, 1>, scalar_prefetch = 0 : i64, scratch_operands = 1 : i64, tpu.core_type = #tpu.core_type<tc>, window_params = [{transform_indices = @transform_0, window_bounds = array<i64: 32, 256>}, {transform_indices = @transform_1, window_bounds = array<i64: 256, 128>}, {transform_indices = @transform_2, window_bounds = array<i64: 1, 128>}, {transform_indices = @transform_3, window_bounds = array<i64: 1, 128>}, {transform_indices = @transform_4, window_bounds = array<i64: 32, 128>}]} {
    %c0_i32 = arith.constant 0 : i32
    %0 = arith.cmpi eq, %arg2, %c0_i32 : i32
    %1 = arith.extui %0 : i1 to i32
    %c0_i32_0 = arith.constant 0 : i32
    %2 = arith.cmpi ne, %1, %c0_i32_0 : i32
    scf.if %2 {
      %cst_10 = arith.constant 0.000000e+00 : f32
      %12 = vector.broadcast %cst_10 : f32 to vector<32x128xf32>
      %c0_11 = arith.constant 0 : index
      %c0_12 = arith.constant 0 : index
      %13 = vector.load %arg8[%c0_11, %c0_12] : memref<32x128xf32, #tpu.memory_space<vmem>>, vector<32x128xf32>
      tpu.vector_store %arg8[%c0_11, %c0_12], %12 {strides = array<i32>} : memref<32x128xf32, #tpu.memory_space<vmem>>, vector<32x128xf32>,
    } else {
    }
    %c0 = arith.constant 0 : index
    %c0_1 = arith.constant 0 : index
    %3 = vector.load %arg8[%c0, %c0_1] : memref<32x128xf32, #tpu.memory_space<vmem>>, vector<32x128xf32>
    %c0_2 = arith.constant 0 : index
    %c0_3 = arith.constant 0 : index
    %4 = vector.load %arg3[%c0_2, %c0_3] : memref<32x256xbf16, #tpu.memory_space<vmem>>, vector<32x256xbf16>
    %c0_4 = arith.constant 0 : index
    %c0_5 = arith.constant 0 : index
    %5 = vector.load %arg4[%c0_4, %c0_5] : memref<256x128xbf16, #tpu.memory_space<vmem>>, vector<256x128xbf16>
    %cst = arith.constant dense<0.000000e+00> : vector<32x128xf32>
    %6 = tpu.matmul %4, %5, %cst {dimension_numbers = #tpu.dot_dimension_numbers<[1], [0], [0], [1], [0, 0, 1, 1], [], []>} : vector<32x256xbf16>, vector<256x128xbf16>, vector<32x128xf32> -> vector<32x128xf32>
    %7 = arith.addf %3, %6 : vector<32x128xf32>
    %c0_6 = arith.constant 0 : index
    %c0_7 = arith.constant 0 : index
    %8 = vector.load %arg8[%c0_6, %c0_7] : memref<32x128xf32, #tpu.memory_space<vmem>>, vector<32x128xf32>
    tpu.vector_store %arg8[%c0_6, %c0_7], %7 {strides = array<i32>} : memref<32x128xf32, #tpu.memory_space<vmem>>, vector<32x128xf32>,
    %c0_i32_8 = arith.constant 0 : i32
    %9 = arith.cmpi eq, %arg2, %c0_i32_8 : i32
    %10 = arith.extui %9 : i1 to i32
    %c0_i32_9 = arith.constant 0 : i32
    %11 = arith.cmpi ne, %10, %c0_i32_9 : i32
    scf.if %11 {
      %c0_10 = arith.constant 0 : index
      %c0_11 = arith.constant 0 : index
      %12 = vector.load %arg8[%c0_10, %c0_11] : memref<32x128xf32, #tpu.memory_space<vmem>>, vector<32x128xf32>
      %c0_12 = arith.constant 0 : index
      %c0_13 = arith.constant 0 : index
      %13 = vector.load %arg5[%c0_12, %c0_13] : memref<1x128xf32, #tpu.memory_space<vmem>>, vector<1x128xf32>
      %14 = vector.broadcast %13 : vector<1x128xf32> to vector<32x128xf32>
      %15 = arith.mulf %12, %14 : vector<32x128xf32>
      %c0_14 = arith.constant 0 : index
      %c0_15 = arith.constant 0 : index
      %16 = vector.load %arg6[%c0_14, %c0_15] : memref<1x128xf32, #tpu.memory_space<vmem>>, vector<1x128xf32>
      %17 = vector.broadcast %16 : vector<1x128xf32> to vector<32x128xf32>
      %18 = arith.addf %15, %17 : vector<32x128xf32>
      %cst_16 = arith.constant 0.000000e+00 : f32
      %19 = vector.broadcast %cst_16 : f32 to vector<32x128xf32>
      %20 = arith.maximumf %18, %19 : vector<32x128xf32>
      %21 = arith.truncf %20 : vector<32x128xf32> to vector<32x128xbf16>
      %c0_17 = arith.constant 0 : index
      %c0_18 = arith.constant 0 : index
      %22 = vector.load %arg7[%c0_17, %c0_18] : memref<32x128xbf16, #tpu.memory_space<vmem>>, vector<32x128xbf16>
      tpu.vector_store %arg7[%c0_17, %c0_18], %21 {strides = array<i32>} : memref<32x128xbf16, #tpu.memory_space<vmem>>, vector<32x128xbf16>,
    } else {
    }
    return
  }
  func.func @transform_0(%arg0: i32, %arg1: i32, %arg2: i32) -> (i32, i32) {
    %c0_i32 = arith.constant 0 : i32
    return %arg0, %arg2 : i32, i32
  }
  func.func @transform_1(%arg0: i32, %arg1: i32, %arg2: i32) -> (i32, i32) {
    %c0_i32 = arith.constant 0 : i32
    return %arg2, %arg1 : i32, i32
  }
  func.func @transform_2(%arg0: i32, %arg1: i32, %arg2: i32) -> (i32, i32) {
    %c0_i32 = arith.constant 0 : i32
    %c0_i32_0 = arith.constant 0 : i32
    return %c0_i32, %arg1 : i32, i32
  }
  func.func @transform_3(%arg0: i32, %arg1: i32, %arg2: i32) -> (i32, i32) {
    %c0_i32 = arith.constant 0 : i32
    %c0_i32_0 = arith.constant 0 : i32
    return %c0_i32, %arg1 : i32, i32
  }
  func.func @transform_4(%arg0: i32, %arg1: i32, %arg2: i32) -> (i32, i32) {
    %c0_i32 = arith.constant 0 : i32
    return %arg0, %arg1 : i32, i32
  }
}

module attributes {stable_mosaic.version = 11 : i64} {
  func.func @_fused_gemm_kernel(%arg0: i32, %arg1: i32, %arg2: i32, %arg3: memref<8x384xbf16, #tpu.memory_space<vmem>>, %arg4: memref<384x128xbf16, #tpu.memory_space<vmem>>, %arg5: memref<1x128xf32, #tpu.memory_space<vmem>>, %arg6: memref<1x128xf32, #tpu.memory_space<vmem>>, %arg7: memref<8x128xbf16, #tpu.memory_space<vmem>>, %arg8: memref<8x128xf32, #tpu.memory_space<vmem>>) attributes {dimension_semantics = [#tpu.dimension_semantics<parallel>, #tpu.dimension_semantics<parallel>, #tpu.dimension_semantics<arbitrary>], iteration_bounds = array<i64: 1, 1, 3>, scalar_prefetch = 0 : i64, scratch_operands = 1 : i64, tpu.core_type = #tpu.core_type<tc>, window_params = [{transform_indices = @transform_0, window_bounds = array<i64: 8, 384>}, {transform_indices = @transform_1, window_bounds = array<i64: 384, 128>}, {transform_indices = @transform_2, window_bounds = array<i64: 1, 128>}, {transform_indices = @transform_3, window_bounds = array<i64: 1, 128>}, {transform_indices = @transform_4, window_bounds = array<i64: 8, 128>}]} {
    %c0_i32 = arith.constant 0 : i32
    %0 = arith.cmpi eq, %arg2, %c0_i32 : i32
    %1 = arith.extui %0 : i1 to i32
    %c0_i32_0 = arith.constant 0 : i32
    %2 = arith.cmpi ne, %1, %c0_i32_0 : i32
    scf.if %2 {
      %cst_9 = arith.constant 0.000000e+00 : f32
      %12 = vector.broadcast %cst_9 : f32 to vector<8x128xf32>
      %c0_10 = arith.constant 0 : index
      %c0_11 = arith.constant 0 : index
      %13 = vector.load %arg8[%c0_10, %c0_11] : memref<8x128xf32, #tpu.memory_space<vmem>>, vector<8x128xf32>
      tpu.vector_store %arg8[%c0_10, %c0_11], %12 {strides = array<i32>} : memref<8x128xf32, #tpu.memory_space<vmem>>, vector<8x128xf32>,
    } else {
    }
    %c0 = arith.constant 0 : index
    %c0_1 = arith.constant 0 : index
    %3 = vector.load %arg8[%c0, %c0_1] : memref<8x128xf32, #tpu.memory_space<vmem>>, vector<8x128xf32>
    %c0_2 = arith.constant 0 : index
    %c0_3 = arith.constant 0 : index
    %4 = vector.load %arg3[%c0_2, %c0_3] : memref<8x384xbf16, #tpu.memory_space<vmem>>, vector<8x384xbf16>
    %c0_4 = arith.constant 0 : index
    %c0_5 = arith.constant 0 : index
    %5 = vector.load %arg4[%c0_4, %c0_5] : memref<384x128xbf16, #tpu.memory_space<vmem>>, vector<384x128xbf16>
    %cst = arith.constant dense<0.000000e+00> : vector<8x128xf32>
    %6 = tpu.matmul %4, %5, %cst {dimension_numbers = #tpu.dot_dimension_numbers<[1], [0], [0], [1], [0, 0, 1, 1], [], []>} : vector<8x384xbf16>, vector<384x128xbf16>, vector<8x128xf32> -> vector<8x128xf32>
    %7 = arith.addf %3, %6 : vector<8x128xf32>
    %c0_6 = arith.constant 0 : index
    %c0_7 = arith.constant 0 : index
    %8 = vector.load %arg8[%c0_6, %c0_7] : memref<8x128xf32, #tpu.memory_space<vmem>>, vector<8x128xf32>
    tpu.vector_store %arg8[%c0_6, %c0_7], %7 {strides = array<i32>} : memref<8x128xf32, #tpu.memory_space<vmem>>, vector<8x128xf32>,
    %c2_i32 = arith.constant 2 : i32
    %9 = arith.cmpi eq, %arg2, %c2_i32 : i32
    %10 = arith.extui %9 : i1 to i32
    %c0_i32_8 = arith.constant 0 : i32
    %11 = arith.cmpi ne, %10, %c0_i32_8 : i32
    scf.if %11 {
      %c0_9 = arith.constant 0 : index
      %c0_10 = arith.constant 0 : index
      %12 = vector.load %arg8[%c0_9, %c0_10] : memref<8x128xf32, #tpu.memory_space<vmem>>, vector<8x128xf32>
      %c0_11 = arith.constant 0 : index
      %c0_12 = arith.constant 0 : index
      %13 = vector.load %arg5[%c0_11, %c0_12] : memref<1x128xf32, #tpu.memory_space<vmem>>, vector<1x128xf32>
      %14 = vector.broadcast %13 : vector<1x128xf32> to vector<8x128xf32>
      %15 = arith.mulf %12, %14 : vector<8x128xf32>
      %c0_13 = arith.constant 0 : index
      %c0_14 = arith.constant 0 : index
      %16 = vector.load %arg6[%c0_13, %c0_14] : memref<1x128xf32, #tpu.memory_space<vmem>>, vector<1x128xf32>
      %17 = vector.broadcast %16 : vector<1x128xf32> to vector<8x128xf32>
      %18 = arith.addf %15, %17 : vector<8x128xf32>
      %cst_15 = arith.constant 0.000000e+00 : f32
      %19 = vector.broadcast %cst_15 : f32 to vector<8x128xf32>
      %20 = arith.maximumf %18, %19 : vector<8x128xf32>
      %21 = arith.truncf %20 : vector<8x128xf32> to vector<8x128xbf16>
      %c0_16 = arith.constant 0 : index
      %c0_17 = arith.constant 0 : index
      %22 = vector.load %arg7[%c0_16, %c0_17] : memref<8x128xbf16, #tpu.memory_space<vmem>>, vector<8x128xbf16>
      tpu.vector_store %arg7[%c0_16, %c0_17], %21 {strides = array<i32>} : memref<8x128xbf16, #tpu.memory_space<vmem>>, vector<8x128xbf16>,
    } else {
    }
    return
  }
  func.func @transform_0(%arg0: i32, %arg1: i32, %arg2: i32) -> (i32, i32) {
    %c0_i32 = arith.constant 0 : i32
    return %arg0, %arg2 : i32, i32
  }
  func.func @transform_1(%arg0: i32, %arg1: i32, %arg2: i32) -> (i32, i32) {
    %c0_i32 = arith.constant 0 : i32
    return %arg2, %arg1 : i32, i32
  }
  func.func @transform_2(%arg0: i32, %arg1: i32, %arg2: i32) -> (i32, i32) {
    %c0_i32 = arith.constant 0 : i32
    %c0_i32_0 = arith.constant 0 : i32
    return %c0_i32, %arg1 : i32, i32
  }
  func.func @transform_3(%arg0: i32, %arg1: i32, %arg2: i32) -> (i32, i32) {
    %c0_i32 = arith.constant 0 : i32
    %c0_i32_0 = arith.constant 0 : i32
    return %c0_i32, %arg1 : i32, i32
  }
  func.func @transform_4(%arg0: i32, %arg1: i32, %arg2: i32) -> (i32, i32) {
    %c0_i32 = arith.constant 0 : i32
    return %arg0, %arg1 : i32, i32
  }
}

module attributes {stable_mosaic.version = 11 : i64} {
  func.func @_fused_gemm_kernel(%arg0: i32, %arg1: i32, %arg2: i32, %arg3: memref<8x128xbf16, #tpu.memory_space<vmem>>, %arg4: memref<128x256xbf16, #tpu.memory_space<vmem>>, %arg5: memref<1x256xf32, #tpu.memory_space<vmem>>, %arg6: memref<1x256xf32, #tpu.memory_space<vmem>>, %arg7: memref<8x256xbf16, #tpu.memory_space<vmem>>, %arg8: memref<8x256xbf16, #tpu.memory_space<vmem>>, %arg9: memref<8x256xf32, #tpu.memory_space<vmem>>) attributes {dimension_semantics = [#tpu.dimension_semantics<parallel>, #tpu.dimension_semantics<parallel>, #tpu.dimension_semantics<arbitrary>], iteration_bounds = array<i64: 1, 2, 1>, scalar_prefetch = 0 : i64, scratch_operands = 1 : i64, tpu.core_type = #tpu.core_type<tc>, window_params = [{transform_indices = @transform_0, window_bounds = array<i64: 8, 128>}, {transform_indices = @transform_1, window_bounds = array<i64: 128, 256>}, {transform_indices = @transform_2, window_bounds = array<i64: 1, 256>}, {transform_indices = @transform_3, window_bounds = array<i64: 1, 256>}, {transform_indices = @transform_4, window_bounds = array<i64: 8, 256>}, {transform_indices = @transform_5, window_bounds = array<i64: 8, 256>}]} {
    %c0_i32 = arith.constant 0 : i32
    %0 = arith.cmpi eq, %arg2, %c0_i32 : i32
    %1 = arith.extui %0 : i1 to i32
    %c0_i32_0 = arith.constant 0 : i32
    %2 = arith.cmpi ne, %1, %c0_i32_0 : i32
    scf.if %2 {
      %cst_10 = arith.constant 0.000000e+00 : f32
      %12 = vector.broadcast %cst_10 : f32 to vector<8x256xf32>
      %c0_11 = arith.constant 0 : index
      %c0_12 = arith.constant 0 : index
      %13 = vector.load %arg9[%c0_11, %c0_12] : memref<8x256xf32, #tpu.memory_space<vmem>>, vector<8x256xf32>
      tpu.vector_store %arg9[%c0_11, %c0_12], %12 {strides = array<i32>} : memref<8x256xf32, #tpu.memory_space<vmem>>, vector<8x256xf32>,
    } else {
    }
    %c0 = arith.constant 0 : index
    %c0_1 = arith.constant 0 : index
    %3 = vector.load %arg9[%c0, %c0_1] : memref<8x256xf32, #tpu.memory_space<vmem>>, vector<8x256xf32>
    %c0_2 = arith.constant 0 : index
    %c0_3 = arith.constant 0 : index
    %4 = vector.load %arg3[%c0_2, %c0_3] : memref<8x128xbf16, #tpu.memory_space<vmem>>, vector<8x128xbf16>
    %c0_4 = arith.constant 0 : index
    %c0_5 = arith.constant 0 : index
    %5 = vector.load %arg4[%c0_4, %c0_5] : memref<128x256xbf16, #tpu.memory_space<vmem>>, vector<128x256xbf16>
    %cst = arith.constant dense<0.000000e+00> : vector<8x256xf32>
    %6 = tpu.matmul %4, %5, %cst {dimension_numbers = #tpu.dot_dimension_numbers<[1], [0], [0], [1], [0, 0, 1, 1], [], []>} : vector<8x128xbf16>, vector<128x256xbf16>, vector<8x256xf32> -> vector<8x256xf32>
    %7 = arith.addf %3, %6 : vector<8x256xf32>
    %c0_6 = arith.constant 0 : index
    %c0_7 = arith.constant 0 : index
    %8 = vector.load %arg9[%c0_6, %c0_7] : memref<8x256xf32, #tpu.memory_space<vmem>>, vector<8x256xf32>
    tpu.vector_store %arg9[%c0_6, %c0_7], %7 {strides = array<i32>} : memref<8x256xf32, #tpu.memory_space<vmem>>, vector<8x256xf32>,
    %c0_i32_8 = arith.constant 0 : i32
    %9 = arith.cmpi eq, %arg2, %c0_i32_8 : i32
    %10 = arith.extui %9 : i1 to i32
    %c0_i32_9 = arith.constant 0 : i32
    %11 = arith.cmpi ne, %10, %c0_i32_9 : i32
    scf.if %11 {
      %c0_10 = arith.constant 0 : index
      %c0_11 = arith.constant 0 : index
      %12 = vector.load %arg9[%c0_10, %c0_11] : memref<8x256xf32, #tpu.memory_space<vmem>>, vector<8x256xf32>
      %c0_12 = arith.constant 0 : index
      %c0_13 = arith.constant 0 : index
      %13 = vector.load %arg5[%c0_12, %c0_13] : memref<1x256xf32, #tpu.memory_space<vmem>>, vector<1x256xf32>
      %14 = vector.broadcast %13 : vector<1x256xf32> to vector<8x256xf32>
      %15 = arith.mulf %12, %14 : vector<8x256xf32>
      %c0_14 = arith.constant 0 : index
      %c0_15 = arith.constant 0 : index
      %16 = vector.load %arg6[%c0_14, %c0_15] : memref<1x256xf32, #tpu.memory_space<vmem>>, vector<1x256xf32>
      %17 = vector.broadcast %16 : vector<1x256xf32> to vector<8x256xf32>
      %18 = arith.addf %15, %17 : vector<8x256xf32>
      %c0_16 = arith.constant 0 : index
      %c0_17 = arith.constant 0 : index
      %19 = vector.load %arg7[%c0_16, %c0_17] : memref<8x256xbf16, #tpu.memory_space<vmem>>, vector<8x256xbf16>
      %20 = arith.extf %19 : vector<8x256xbf16> to vector<8x256xf32>
      %21 = arith.addf %18, %20 : vector<8x256xf32>
      %cst_18 = arith.constant 0.000000e+00 : f32
      %22 = vector.broadcast %cst_18 : f32 to vector<8x256xf32>
      %23 = arith.maximumf %21, %22 : vector<8x256xf32>
      %24 = arith.truncf %23 : vector<8x256xf32> to vector<8x256xbf16>
      %c0_19 = arith.constant 0 : index
      %c0_20 = arith.constant 0 : index
      %25 = vector.load %arg8[%c0_19, %c0_20] : memref<8x256xbf16, #tpu.memory_space<vmem>>, vector<8x256xbf16>
      tpu.vector_store %arg8[%c0_19, %c0_20], %24 {strides = array<i32>} : memref<8x256xbf16, #tpu.memory_space<vmem>>, vector<8x256xbf16>,
    } else {
    }
    return
  }
  func.func @transform_0(%arg0: i32, %arg1: i32, %arg2: i32) -> (i32, i32) {
    %c0_i32 = arith.constant 0 : i32
    return %arg0, %arg2 : i32, i32
  }
  func.func @transform_1(%arg0: i32, %arg1: i32, %arg2: i32) -> (i32, i32) {
    %c0_i32 = arith.constant 0 : i32
    return %arg2, %arg1 : i32, i32
  }
  func.func @transform_2(%arg0: i32, %arg1: i32, %arg2: i32) -> (i32, i32) {
    %c0_i32 = arith.constant 0 : i32
    %c0_i32_0 = arith.constant 0 : i32
    return %c0_i32, %arg1 : i32, i32
  }
  func.func @transform_3(%arg0: i32, %arg1: i32, %arg2: i32) -> (i32, i32) {
    %c0_i32 = arith.constant 0 : i32
    %c0_i32_0 = arith.constant 0 : i32
    return %c0_i32, %arg1 : i32, i32
  }
  func.func @transform_4(%arg0: i32, %arg1: i32, %arg2: i32) -> (i32, i32) {
    %c0_i32 = arith.constant 0 : i32
    return %arg0, %arg1 : i32, i32
  }
  func.func @transform_5(%arg0: i32, %arg1: i32, %arg2: i32) -> (i32, i32) {
    %c0_i32 = arith.constant 0 : i32
    return %arg0, %arg1 : i32, i32
  }
}

module attributes {stable_mosaic.version = 11 : i64} {
  func.func @_fused_gemm_kernel(%arg0: i32, %arg1: i32, %arg2: i32, %arg3: memref<8x256xbf16, #tpu.memory_space<vmem>>, %arg4: memref<256x256xbf16, #tpu.memory_space<vmem>>, %arg5: memref<1x256xf32, #tpu.memory_space<vmem>>, %arg6: memref<1x256xf32, #tpu.memory_space<vmem>>, %arg7: memref<8x256xbf16, #tpu.memory_space<vmem>>, %arg8: memref<8x256xf32, #tpu.memory_space<vmem>>) attributes {dimension_semantics = [#tpu.dimension_semantics<parallel>, #tpu.dimension_semantics<parallel>, #tpu.dimension_semantics<arbitrary>], iteration_bounds = array<i64: 1, 2, 1>, scalar_prefetch = 0 : i64, scratch_operands = 1 : i64, tpu.core_type = #tpu.core_type<tc>, window_params = [{transform_indices = @transform_0, window_bounds = array<i64: 8, 256>}, {transform_indices = @transform_1, window_bounds = array<i64: 256, 256>}, {transform_indices = @transform_2, window_bounds = array<i64: 1, 256>}, {transform_indices = @transform_3, window_bounds = array<i64: 1, 256>}, {transform_indices = @transform_4, window_bounds = array<i64: 8, 256>}]} {
    %c0_i32 = arith.constant 0 : i32
    %0 = arith.cmpi eq, %arg2, %c0_i32 : i32
    %1 = arith.extui %0 : i1 to i32
    %c0_i32_0 = arith.constant 0 : i32
    %2 = arith.cmpi ne, %1, %c0_i32_0 : i32
    scf.if %2 {
      %cst_10 = arith.constant 0.000000e+00 : f32
      %12 = vector.broadcast %cst_10 : f32 to vector<8x256xf32>
      %c0_11 = arith.constant 0 : index
      %c0_12 = arith.constant 0 : index
      %13 = vector.load %arg8[%c0_11, %c0_12] : memref<8x256xf32, #tpu.memory_space<vmem>>, vector<8x256xf32>
      tpu.vector_store %arg8[%c0_11, %c0_12], %12 {strides = array<i32>} : memref<8x256xf32, #tpu.memory_space<vmem>>, vector<8x256xf32>,
    } else {
    }
    %c0 = arith.constant 0 : index
    %c0_1 = arith.constant 0 : index
    %3 = vector.load %arg8[%c0, %c0_1] : memref<8x256xf32, #tpu.memory_space<vmem>>, vector<8x256xf32>
    %c0_2 = arith.constant 0 : index
    %c0_3 = arith.constant 0 : index
    %4 = vector.load %arg3[%c0_2, %c0_3] : memref<8x256xbf16, #tpu.memory_space<vmem>>, vector<8x256xbf16>
    %c0_4 = arith.constant 0 : index
    %c0_5 = arith.constant 0 : index
    %5 = vector.load %arg4[%c0_4, %c0_5] : memref<256x256xbf16, #tpu.memory_space<vmem>>, vector<256x256xbf16>
    %cst = arith.constant dense<0.000000e+00> : vector<8x256xf32>
    %6 = tpu.matmul %4, %5, %cst {dimension_numbers = #tpu.dot_dimension_numbers<[1], [0], [0], [1], [0, 0, 1, 1], [], []>} : vector<8x256xbf16>, vector<256x256xbf16>, vector<8x256xf32> -> vector<8x256xf32>
    %7 = arith.addf %3, %6 : vector<8x256xf32>
    %c0_6 = arith.constant 0 : index
    %c0_7 = arith.constant 0 : index
    %8 = vector.load %arg8[%c0_6, %c0_7] : memref<8x256xf32, #tpu.memory_space<vmem>>, vector<8x256xf32>
    tpu.vector_store %arg8[%c0_6, %c0_7], %7 {strides = array<i32>} : memref<8x256xf32, #tpu.memory_space<vmem>>, vector<8x256xf32>,
    %c0_i32_8 = arith.constant 0 : i32
    %9 = arith.cmpi eq, %arg2, %c0_i32_8 : i32
    %10 = arith.extui %9 : i1 to i32
    %c0_i32_9 = arith.constant 0 : i32
    %11 = arith.cmpi ne, %10, %c0_i32_9 : i32
    scf.if %11 {
      %c0_10 = arith.constant 0 : index
      %c0_11 = arith.constant 0 : index
      %12 = vector.load %arg8[%c0_10, %c0_11] : memref<8x256xf32, #tpu.memory_space<vmem>>, vector<8x256xf32>
      %c0_12 = arith.constant 0 : index
      %c0_13 = arith.constant 0 : index
      %13 = vector.load %arg5[%c0_12, %c0_13] : memref<1x256xf32, #tpu.memory_space<vmem>>, vector<1x256xf32>
      %14 = vector.broadcast %13 : vector<1x256xf32> to vector<8x256xf32>
      %15 = arith.mulf %12, %14 : vector<8x256xf32>
      %c0_14 = arith.constant 0 : index
      %c0_15 = arith.constant 0 : index
      %16 = vector.load %arg6[%c0_14, %c0_15] : memref<1x256xf32, #tpu.memory_space<vmem>>, vector<1x256xf32>
      %17 = vector.broadcast %16 : vector<1x256xf32> to vector<8x256xf32>
      %18 = arith.addf %15, %17 : vector<8x256xf32>
      %19 = arith.truncf %18 : vector<8x256xf32> to vector<8x256xbf16>
      %c0_16 = arith.constant 0 : index
      %c0_17 = arith.constant 0 : index
      %20 = vector.load %arg7[%c0_16, %c0_17] : memref<8x256xbf16, #tpu.memory_space<vmem>>, vector<8x256xbf16>
      tpu.vector_store %arg7[%c0_16, %c0_17], %19 {strides = array<i32>} : memref<8x256xbf16, #tpu.memory_space<vmem>>, vector<8x256xbf16>,
    } else {
    }
    return
  }
  func.func @transform_0(%arg0: i32, %arg1: i32, %arg2: i32) -> (i32, i32) {
    %c0_i32 = arith.constant 0 : i32
    return %arg0, %arg2 : i32, i32
  }
  func.func @transform_1(%arg0: i32, %arg1: i32, %arg2: i32) -> (i32, i32) {
    %c0_i32 = arith.constant 0 : i32
    return %arg2, %arg1 : i32, i32
  }
  func.func @transform_2(%arg0: i32, %arg1: i32, %arg2: i32) -> (i32, i32) {
    %c0_i32 = arith.constant 0 : i32
    %c0_i32_0 = arith.constant 0 : i32
    return %c0_i32, %arg1 : i32, i32
  }
  func.func @transform_3(%arg0: i32, %arg1: i32, %arg2: i32) -> (i32, i32) {
    %c0_i32 = arith.constant 0 : i32
    %c0_i32_0 = arith.constant 0 : i32
    return %c0_i32, %arg1 : i32, i32
  }
  func.func @transform_4(%arg0: i32, %arg1: i32, %arg2: i32) -> (i32, i32) {
    %c0_i32 = arith.constant 0 : i32
    return %arg0, %arg1 : i32, i32
  }
}

module attributes {stable_mosaic.version = 11 : i64} {
  func.func @_fused_gemm_kernel(%arg0: i32, %arg1: i32, %arg2: i32, %arg3: memref<8x512xbf16, #tpu.memory_space<vmem>>, %arg4: memref<512x128xbf16, #tpu.memory_space<vmem>>, %arg5: memref<1x128xf32, #tpu.memory_space<vmem>>, %arg6: memref<1x128xf32, #tpu.memory_space<vmem>>, %arg7: memref<8x128xbf16, #tpu.memory_space<vmem>>, %arg8: memref<8x128xf32, #tpu.memory_space<vmem>>) attributes {dimension_semantics = [#tpu.dimension_semantics<parallel>, #tpu.dimension_semantics<parallel>, #tpu.dimension_semantics<arbitrary>], iteration_bounds = array<i64: 1, 1, 1>, scalar_prefetch = 0 : i64, scratch_operands = 1 : i64, tpu.core_type = #tpu.core_type<tc>, window_params = [{transform_indices = @transform_0, window_bounds = array<i64: 8, 512>}, {transform_indices = @transform_1, window_bounds = array<i64: 512, 128>}, {transform_indices = @transform_2, window_bounds = array<i64: 1, 128>}, {transform_indices = @transform_3, window_bounds = array<i64: 1, 128>}, {transform_indices = @transform_4, window_bounds = array<i64: 8, 128>}]} {
    %c0_i32 = arith.constant 0 : i32
    %0 = arith.cmpi eq, %arg2, %c0_i32 : i32
    %1 = arith.extui %0 : i1 to i32
    %c0_i32_0 = arith.constant 0 : i32
    %2 = arith.cmpi ne, %1, %c0_i32_0 : i32
    scf.if %2 {
      %cst_10 = arith.constant 0.000000e+00 : f32
      %12 = vector.broadcast %cst_10 : f32 to vector<8x128xf32>
      %c0_11 = arith.constant 0 : index
      %c0_12 = arith.constant 0 : index
      %13 = vector.load %arg8[%c0_11, %c0_12] : memref<8x128xf32, #tpu.memory_space<vmem>>, vector<8x128xf32>
      tpu.vector_store %arg8[%c0_11, %c0_12], %12 {strides = array<i32>} : memref<8x128xf32, #tpu.memory_space<vmem>>, vector<8x128xf32>,
    } else {
    }
    %c0 = arith.constant 0 : index
    %c0_1 = arith.constant 0 : index
    %3 = vector.load %arg8[%c0, %c0_1] : memref<8x128xf32, #tpu.memory_space<vmem>>, vector<8x128xf32>
    %c0_2 = arith.constant 0 : index
    %c0_3 = arith.constant 0 : index
    %4 = vector.load %arg3[%c0_2, %c0_3] : memref<8x512xbf16, #tpu.memory_space<vmem>>, vector<8x512xbf16>
    %c0_4 = arith.constant 0 : index
    %c0_5 = arith.constant 0 : index
    %5 = vector.load %arg4[%c0_4, %c0_5] : memref<512x128xbf16, #tpu.memory_space<vmem>>, vector<512x128xbf16>
    %cst = arith.constant dense<0.000000e+00> : vector<8x128xf32>
    %6 = tpu.matmul %4, %5, %cst {dimension_numbers = #tpu.dot_dimension_numbers<[1], [0], [0], [1], [0, 0, 1, 1], [], []>} : vector<8x512xbf16>, vector<512x128xbf16>, vector<8x128xf32> -> vector<8x128xf32>
    %7 = arith.addf %3, %6 : vector<8x128xf32>
    %c0_6 = arith.constant 0 : index
    %c0_7 = arith.constant 0 : index
    %8 = vector.load %arg8[%c0_6, %c0_7] : memref<8x128xf32, #tpu.memory_space<vmem>>, vector<8x128xf32>
    tpu.vector_store %arg8[%c0_6, %c0_7], %7 {strides = array<i32>} : memref<8x128xf32, #tpu.memory_space<vmem>>, vector<8x128xf32>,
    %c0_i32_8 = arith.constant 0 : i32
    %9 = arith.cmpi eq, %arg2, %c0_i32_8 : i32
    %10 = arith.extui %9 : i1 to i32
    %c0_i32_9 = arith.constant 0 : i32
    %11 = arith.cmpi ne, %10, %c0_i32_9 : i32
    scf.if %11 {
      %c0_10 = arith.constant 0 : index
      %c0_11 = arith.constant 0 : index
      %12 = vector.load %arg8[%c0_10, %c0_11] : memref<8x128xf32, #tpu.memory_space<vmem>>, vector<8x128xf32>
      %c0_12 = arith.constant 0 : index
      %c0_13 = arith.constant 0 : index
      %13 = vector.load %arg5[%c0_12, %c0_13] : memref<1x128xf32, #tpu.memory_space<vmem>>, vector<1x128xf32>
      %14 = vector.broadcast %13 : vector<1x128xf32> to vector<8x128xf32>
      %15 = arith.mulf %12, %14 : vector<8x128xf32>
      %c0_14 = arith.constant 0 : index
      %c0_15 = arith.constant 0 : index
      %16 = vector.load %arg6[%c0_14, %c0_15] : memref<1x128xf32, #tpu.memory_space<vmem>>, vector<1x128xf32>
      %17 = vector.broadcast %16 : vector<1x128xf32> to vector<8x128xf32>
      %18 = arith.addf %15, %17 : vector<8x128xf32>
      %cst_16 = arith.constant 0.000000e+00 : f32
      %19 = vector.broadcast %cst_16 : f32 to vector<8x128xf32>
      %20 = arith.maximumf %18, %19 : vector<8x128xf32>
      %21 = arith.truncf %20 : vector<8x128xf32> to vector<8x128xbf16>
      %c0_17 = arith.constant 0 : index
      %c0_18 = arith.constant 0 : index
      %22 = vector.load %arg7[%c0_17, %c0_18] : memref<8x128xbf16, #tpu.memory_space<vmem>>, vector<8x128xbf16>
      tpu.vector_store %arg7[%c0_17, %c0_18], %21 {strides = array<i32>} : memref<8x128xbf16, #tpu.memory_space<vmem>>, vector<8x128xbf16>,
    } else {
    }
    return
  }
  func.func @transform_0(%arg0: i32, %arg1: i32, %arg2: i32) -> (i32, i32) {
    %c0_i32 = arith.constant 0 : i32
    return %arg0, %arg2 : i32, i32
  }
  func.func @transform_1(%arg0: i32, %arg1: i32, %arg2: i32) -> (i32, i32) {
    %c0_i32 = arith.constant 0 : i32
    return %arg2, %arg1 : i32, i32
  }
  func.func @transform_2(%arg0: i32, %arg1: i32, %arg2: i32) -> (i32, i32) {
    %c0_i32 = arith.constant 0 : i32
    %c0_i32_0 = arith.constant 0 : i32
    return %c0_i32, %arg1 : i32, i32
  }
  func.func @transform_3(%arg0: i32, %arg1: i32, %arg2: i32) -> (i32, i32) {
    %c0_i32 = arith.constant 0 : i32
    %c0_i32_0 = arith.constant 0 : i32
    return %c0_i32, %arg1 : i32, i32
  }
  func.func @transform_4(%arg0: i32, %arg1: i32, %arg2: i32) -> (i32, i32) {
    %c0_i32 = arith.constant 0 : i32
    return %arg0, %arg1 : i32, i32
  }
}

module attributes {stable_mosaic.version = 11 : i64} {
  func.func @_fused_gemm_kernel(%arg0: i32, %arg1: i32, %arg2: i32, %arg3: memref<8x512xbf16, #tpu.memory_space<vmem>>, %arg4: memref<512x256xbf16, #tpu.memory_space<vmem>>, %arg5: memref<1x256xf32, #tpu.memory_space<vmem>>, %arg6: memref<1x256xf32, #tpu.memory_space<vmem>>, %arg7: memref<8x256xbf16, #tpu.memory_space<vmem>>, %arg8: memref<8x256xf32, #tpu.memory_space<vmem>>) attributes {dimension_semantics = [#tpu.dimension_semantics<parallel>, #tpu.dimension_semantics<parallel>, #tpu.dimension_semantics<arbitrary>], iteration_bounds = array<i64: 1, 1, 1>, scalar_prefetch = 0 : i64, scratch_operands = 1 : i64, tpu.core_type = #tpu.core_type<tc>, window_params = [{transform_indices = @transform_0, window_bounds = array<i64: 8, 512>}, {transform_indices = @transform_1, window_bounds = array<i64: 512, 256>}, {transform_indices = @transform_2, window_bounds = array<i64: 1, 256>}, {transform_indices = @transform_3, window_bounds = array<i64: 1, 256>}, {transform_indices = @transform_4, window_bounds = array<i64: 8, 256>}]} {
    %c0_i32 = arith.constant 0 : i32
    %0 = arith.cmpi eq, %arg2, %c0_i32 : i32
    %1 = arith.extui %0 : i1 to i32
    %c0_i32_0 = arith.constant 0 : i32
    %2 = arith.cmpi ne, %1, %c0_i32_0 : i32
    scf.if %2 {
      %cst_10 = arith.constant 0.000000e+00 : f32
      %12 = vector.broadcast %cst_10 : f32 to vector<8x256xf32>
      %c0_11 = arith.constant 0 : index
      %c0_12 = arith.constant 0 : index
      %13 = vector.load %arg8[%c0_11, %c0_12] : memref<8x256xf32, #tpu.memory_space<vmem>>, vector<8x256xf32>
      tpu.vector_store %arg8[%c0_11, %c0_12], %12 {strides = array<i32>} : memref<8x256xf32, #tpu.memory_space<vmem>>, vector<8x256xf32>,
    } else {
    }
    %c0 = arith.constant 0 : index
    %c0_1 = arith.constant 0 : index
    %3 = vector.load %arg8[%c0, %c0_1] : memref<8x256xf32, #tpu.memory_space<vmem>>, vector<8x256xf32>
    %c0_2 = arith.constant 0 : index
    %c0_3 = arith.constant 0 : index
    %4 = vector.load %arg3[%c0_2, %c0_3] : memref<8x512xbf16, #tpu.memory_space<vmem>>, vector<8x512xbf16>
    %c0_4 = arith.constant 0 : index
    %c0_5 = arith.constant 0 : index
    %5 = vector.load %arg4[%c0_4, %c0_5] : memref<512x256xbf16, #tpu.memory_space<vmem>>, vector<512x256xbf16>
    %cst = arith.constant dense<0.000000e+00> : vector<8x256xf32>
    %6 = tpu.matmul %4, %5, %cst {dimension_numbers = #tpu.dot_dimension_numbers<[1], [0], [0], [1], [0, 0, 1, 1], [], []>} : vector<8x512xbf16>, vector<512x256xbf16>, vector<8x256xf32> -> vector<8x256xf32>
    %7 = arith.addf %3, %6 : vector<8x256xf32>
    %c0_6 = arith.constant 0 : index
    %c0_7 = arith.constant 0 : index
    %8 = vector.load %arg8[%c0_6, %c0_7] : memref<8x256xf32, #tpu.memory_space<vmem>>, vector<8x256xf32>
    tpu.vector_store %arg8[%c0_6, %c0_7], %7 {strides = array<i32>} : memref<8x256xf32, #tpu.memory_space<vmem>>, vector<8x256xf32>,
    %c0_i32_8 = arith.constant 0 : i32
    %9 = arith.cmpi eq, %arg2, %c0_i32_8 : i32
    %10 = arith.extui %9 : i1 to i32
    %c0_i32_9 = arith.constant 0 : i32
    %11 = arith.cmpi ne, %10, %c0_i32_9 : i32
    scf.if %11 {
      %c0_10 = arith.constant 0 : index
      %c0_11 = arith.constant 0 : index
      %12 = vector.load %arg8[%c0_10, %c0_11] : memref<8x256xf32, #tpu.memory_space<vmem>>, vector<8x256xf32>
      %c0_12 = arith.constant 0 : index
      %c0_13 = arith.constant 0 : index
      %13 = vector.load %arg5[%c0_12, %c0_13] : memref<1x256xf32, #tpu.memory_space<vmem>>, vector<1x256xf32>
      %14 = vector.broadcast %13 : vector<1x256xf32> to vector<8x256xf32>
      %15 = arith.mulf %12, %14 : vector<8x256xf32>
      %c0_14 = arith.constant 0 : index
      %c0_15 = arith.constant 0 : index
      %16 = vector.load %arg6[%c0_14, %c0_15] : memref<1x256xf32, #tpu.memory_space<vmem>>, vector<1x256xf32>
      %17 = vector.broadcast %16 : vector<1x256xf32> to vector<8x256xf32>
      %18 = arith.addf %15, %17 : vector<8x256xf32>
      %cst_16 = arith.constant 0.000000e+00 : f32
      %19 = vector.broadcast %cst_16 : f32 to vector<8x256xf32>
      %20 = arith.maximumf %18, %19 : vector<8x256xf32>
      %21 = arith.truncf %20 : vector<8x256xf32> to vector<8x256xbf16>
      %c0_17 = arith.constant 0 : index
      %c0_18 = arith.constant 0 : index
      %22 = vector.load %arg7[%c0_17, %c0_18] : memref<8x256xbf16, #tpu.memory_space<vmem>>, vector<8x256xbf16>
      tpu.vector_store %arg7[%c0_17, %c0_18], %21 {strides = array<i32>} : memref<8x256xbf16, #tpu.memory_space<vmem>>, vector<8x256xbf16>,
    } else {
    }
    return
  }
  func.func @transform_0(%arg0: i32, %arg1: i32, %arg2: i32) -> (i32, i32) {
    %c0_i32 = arith.constant 0 : i32
    return %arg0, %arg2 : i32, i32
  }
  func.func @transform_1(%arg0: i32, %arg1: i32, %arg2: i32) -> (i32, i32) {
    %c0_i32 = arith.constant 0 : i32
    return %arg2, %arg1 : i32, i32
  }
  func.func @transform_2(%arg0: i32, %arg1: i32, %arg2: i32) -> (i32, i32) {
    %c0_i32 = arith.constant 0 : i32
    %c0_i32_0 = arith.constant 0 : i32
    return %c0_i32, %arg1 : i32, i32
  }
  func.func @transform_3(%arg0: i32, %arg1: i32, %arg2: i32) -> (i32, i32) {
    %c0_i32 = arith.constant 0 : i32
    %c0_i32_0 = arith.constant 0 : i32
    return %c0_i32, %arg1 : i32, i32
  }
  func.func @transform_4(%arg0: i32, %arg1: i32, %arg2: i32) -> (i32, i32) {
    %c0_i32 = arith.constant 0 : i32
    return %arg0, %arg1 : i32, i32
  }
}

module attributes {stable_mosaic.version = 11 : i64} {
  func.func @_fused_gemm_kernel(%arg0: i32, %arg1: i32, %arg2: i32, %arg3: memref<2x384xbf16, #tpu.memory_space<vmem>>, %arg4: memref<384x256xbf16, #tpu.memory_space<vmem>>, %arg5: memref<1x256xf32, #tpu.memory_space<vmem>>, %arg6: memref<1x256xf32, #tpu.memory_space<vmem>>, %arg7: memref<2x256xbf16, #tpu.memory_space<vmem>>, %arg8: memref<2x256xf32, #tpu.memory_space<vmem>>) attributes {dimension_semantics = [#tpu.dimension_semantics<parallel>, #tpu.dimension_semantics<parallel>, #tpu.dimension_semantics<arbitrary>], iteration_bounds = array<i64: 1, 1, 6>, scalar_prefetch = 0 : i64, scratch_operands = 1 : i64, tpu.core_type = #tpu.core_type<tc>, window_params = [{transform_indices = @transform_0, window_bounds = array<i64: 2, 384>}, {transform_indices = @transform_1, window_bounds = array<i64: 384, 256>}, {transform_indices = @transform_2, window_bounds = array<i64: 1, 256>}, {transform_indices = @transform_3, window_bounds = array<i64: 1, 256>}, {transform_indices = @transform_4, window_bounds = array<i64: 2, 256>}]} {
    %c0_i32 = arith.constant 0 : i32
    %0 = arith.cmpi eq, %arg2, %c0_i32 : i32
    %1 = arith.extui %0 : i1 to i32
    %c0_i32_0 = arith.constant 0 : i32
    %2 = arith.cmpi ne, %1, %c0_i32_0 : i32
    scf.if %2 {
      %cst_9 = arith.constant 0.000000e+00 : f32
      %12 = vector.broadcast %cst_9 : f32 to vector<2x256xf32>
      %c0_10 = arith.constant 0 : index
      %c0_11 = arith.constant 0 : index
      %13 = vector.load %arg8[%c0_10, %c0_11] : memref<2x256xf32, #tpu.memory_space<vmem>>, vector<2x256xf32>
      tpu.vector_store %arg8[%c0_10, %c0_11], %12 {strides = array<i32>} : memref<2x256xf32, #tpu.memory_space<vmem>>, vector<2x256xf32>,
    } else {
    }
    %c0 = arith.constant 0 : index
    %c0_1 = arith.constant 0 : index
    %3 = vector.load %arg8[%c0, %c0_1] : memref<2x256xf32, #tpu.memory_space<vmem>>, vector<2x256xf32>
    %c0_2 = arith.constant 0 : index
    %c0_3 = arith.constant 0 : index
    %4 = vector.load %arg3[%c0_2, %c0_3] : memref<2x384xbf16, #tpu.memory_space<vmem>>, vector<2x384xbf16>
    %c0_4 = arith.constant 0 : index
    %c0_5 = arith.constant 0 : index
    %5 = vector.load %arg4[%c0_4, %c0_5] : memref<384x256xbf16, #tpu.memory_space<vmem>>, vector<384x256xbf16>
    %cst = arith.constant dense<0.000000e+00> : vector<2x256xf32>
    %6 = tpu.matmul %4, %5, %cst {dimension_numbers = #tpu.dot_dimension_numbers<[1], [0], [0], [1], [0, 0, 1, 1], [], []>} : vector<2x384xbf16>, vector<384x256xbf16>, vector<2x256xf32> -> vector<2x256xf32>
    %7 = arith.addf %3, %6 : vector<2x256xf32>
    %c0_6 = arith.constant 0 : index
    %c0_7 = arith.constant 0 : index
    %8 = vector.load %arg8[%c0_6, %c0_7] : memref<2x256xf32, #tpu.memory_space<vmem>>, vector<2x256xf32>
    tpu.vector_store %arg8[%c0_6, %c0_7], %7 {strides = array<i32>} : memref<2x256xf32, #tpu.memory_space<vmem>>, vector<2x256xf32>,
    %c5_i32 = arith.constant 5 : i32
    %9 = arith.cmpi eq, %arg2, %c5_i32 : i32
    %10 = arith.extui %9 : i1 to i32
    %c0_i32_8 = arith.constant 0 : i32
    %11 = arith.cmpi ne, %10, %c0_i32_8 : i32
    scf.if %11 {
      %c0_9 = arith.constant 0 : index
      %c0_10 = arith.constant 0 : index
      %12 = vector.load %arg8[%c0_9, %c0_10] : memref<2x256xf32, #tpu.memory_space<vmem>>, vector<2x256xf32>
      %c0_11 = arith.constant 0 : index
      %c0_12 = arith.constant 0 : index
      %13 = vector.load %arg5[%c0_11, %c0_12] : memref<1x256xf32, #tpu.memory_space<vmem>>, vector<1x256xf32>
      %14 = vector.broadcast %13 : vector<1x256xf32> to vector<2x256xf32>
      %15 = arith.mulf %12, %14 : vector<2x256xf32>
      %c0_13 = arith.constant 0 : index
      %c0_14 = arith.constant 0 : index
      %16 = vector.load %arg6[%c0_13, %c0_14] : memref<1x256xf32, #tpu.memory_space<vmem>>, vector<1x256xf32>
      %17 = vector.broadcast %16 : vector<1x256xf32> to vector<2x256xf32>
      %18 = arith.addf %15, %17 : vector<2x256xf32>
      %cst_15 = arith.constant 0.000000e+00 : f32
      %19 = vector.broadcast %cst_15 : f32 to vector<2x256xf32>
      %20 = arith.maximumf %18, %19 : vector<2x256xf32>
      %21 = arith.truncf %20 : vector<2x256xf32> to vector<2x256xbf16>
      %c0_16 = arith.constant 0 : index
      %c0_17 = arith.constant 0 : index
      %22 = vector.load %arg7[%c0_16, %c0_17] : memref<2x256xbf16, #tpu.memory_space<vmem>>, vector<2x256xbf16>
      tpu.vector_store %arg7[%c0_16, %c0_17], %21 {strides = array<i32>} : memref<2x256xbf16, #tpu.memory_space<vmem>>, vector<2x256xbf16>,
    } else {
    }
    return
  }
  func.func @transform_0(%arg0: i32, %arg1: i32, %arg2: i32) -> (i32, i32) {
    %c0_i32 = arith.constant 0 : i32
    return %arg0, %arg2 : i32, i32
  }
  func.func @transform_1(%arg0: i32, %arg1: i32, %arg2: i32) -> (i32, i32) {
    %c0_i32 = arith.constant 0 : i32
    return %arg2, %arg1 : i32, i32
  }
  func.func @transform_2(%arg0: i32, %arg1: i32, %arg2: i32) -> (i32, i32) {
    %c0_i32 = arith.constant 0 : i32
    %c0_i32_0 = arith.constant 0 : i32
    return %c0_i32, %arg1 : i32, i32
  }
  func.func @transform_3(%arg0: i32, %arg1: i32, %arg2: i32) -> (i32, i32) {
    %c0_i32 = arith.constant 0 : i32
    %c0_i32_0 = arith.constant 0 : i32
    return %c0_i32, %arg1 : i32, i32
  }
  func.func @transform_4(%arg0: i32, %arg1: i32, %arg2: i32) -> (i32, i32) {
    %c0_i32 = arith.constant 0 : i32
    return %arg0, %arg1 : i32, i32
  }
}

module attributes {stable_mosaic.version = 11 : i64} {
  func.func @_fused_gemm_kernel(%arg0: i32, %arg1: i32, %arg2: i32, %arg3: memref<2x512xbf16, #tpu.memory_space<vmem>>, %arg4: memref<512x256xbf16, #tpu.memory_space<vmem>>, %arg5: memref<1x256xf32, #tpu.memory_space<vmem>>, %arg6: memref<1x256xf32, #tpu.memory_space<vmem>>, %arg7: memref<2x256xbf16, #tpu.memory_space<vmem>>, %arg8: memref<2x256xf32, #tpu.memory_space<vmem>>) attributes {dimension_semantics = [#tpu.dimension_semantics<parallel>, #tpu.dimension_semantics<parallel>, #tpu.dimension_semantics<arbitrary>], iteration_bounds = array<i64: 1, 4, 1>, scalar_prefetch = 0 : i64, scratch_operands = 1 : i64, tpu.core_type = #tpu.core_type<tc>, window_params = [{transform_indices = @transform_0, window_bounds = array<i64: 2, 512>}, {transform_indices = @transform_1, window_bounds = array<i64: 512, 256>}, {transform_indices = @transform_2, window_bounds = array<i64: 1, 256>}, {transform_indices = @transform_3, window_bounds = array<i64: 1, 256>}, {transform_indices = @transform_4, window_bounds = array<i64: 2, 256>}]} {
    %c0_i32 = arith.constant 0 : i32
    %0 = arith.cmpi eq, %arg2, %c0_i32 : i32
    %1 = arith.extui %0 : i1 to i32
    %c0_i32_0 = arith.constant 0 : i32
    %2 = arith.cmpi ne, %1, %c0_i32_0 : i32
    scf.if %2 {
      %cst_10 = arith.constant 0.000000e+00 : f32
      %12 = vector.broadcast %cst_10 : f32 to vector<2x256xf32>
      %c0_11 = arith.constant 0 : index
      %c0_12 = arith.constant 0 : index
      %13 = vector.load %arg8[%c0_11, %c0_12] : memref<2x256xf32, #tpu.memory_space<vmem>>, vector<2x256xf32>
      tpu.vector_store %arg8[%c0_11, %c0_12], %12 {strides = array<i32>} : memref<2x256xf32, #tpu.memory_space<vmem>>, vector<2x256xf32>,
    } else {
    }
    %c0 = arith.constant 0 : index
    %c0_1 = arith.constant 0 : index
    %3 = vector.load %arg8[%c0, %c0_1] : memref<2x256xf32, #tpu.memory_space<vmem>>, vector<2x256xf32>
    %c0_2 = arith.constant 0 : index
    %c0_3 = arith.constant 0 : index
    %4 = vector.load %arg3[%c0_2, %c0_3] : memref<2x512xbf16, #tpu.memory_space<vmem>>, vector<2x512xbf16>
    %c0_4 = arith.constant 0 : index
    %c0_5 = arith.constant 0 : index
    %5 = vector.load %arg4[%c0_4, %c0_5] : memref<512x256xbf16, #tpu.memory_space<vmem>>, vector<512x256xbf16>
    %cst = arith.constant dense<0.000000e+00> : vector<2x256xf32>
    %6 = tpu.matmul %4, %5, %cst {dimension_numbers = #tpu.dot_dimension_numbers<[1], [0], [0], [1], [0, 0, 1, 1], [], []>} : vector<2x512xbf16>, vector<512x256xbf16>, vector<2x256xf32> -> vector<2x256xf32>
    %7 = arith.addf %3, %6 : vector<2x256xf32>
    %c0_6 = arith.constant 0 : index
    %c0_7 = arith.constant 0 : index
    %8 = vector.load %arg8[%c0_6, %c0_7] : memref<2x256xf32, #tpu.memory_space<vmem>>, vector<2x256xf32>
    tpu.vector_store %arg8[%c0_6, %c0_7], %7 {strides = array<i32>} : memref<2x256xf32, #tpu.memory_space<vmem>>, vector<2x256xf32>,
    %c0_i32_8 = arith.constant 0 : i32
    %9 = arith.cmpi eq, %arg2, %c0_i32_8 : i32
    %10 = arith.extui %9 : i1 to i32
    %c0_i32_9 = arith.constant 0 : i32
    %11 = arith.cmpi ne, %10, %c0_i32_9 : i32
    scf.if %11 {
      %c0_10 = arith.constant 0 : index
      %c0_11 = arith.constant 0 : index
      %12 = vector.load %arg8[%c0_10, %c0_11] : memref<2x256xf32, #tpu.memory_space<vmem>>, vector<2x256xf32>
      %c0_12 = arith.constant 0 : index
      %c0_13 = arith.constant 0 : index
      %13 = vector.load %arg5[%c0_12, %c0_13] : memref<1x256xf32, #tpu.memory_space<vmem>>, vector<1x256xf32>
      %14 = vector.broadcast %13 : vector<1x256xf32> to vector<2x256xf32>
      %15 = arith.mulf %12, %14 : vector<2x256xf32>
      %c0_14 = arith.constant 0 : index
      %c0_15 = arith.constant 0 : index
      %16 = vector.load %arg6[%c0_14, %c0_15] : memref<1x256xf32, #tpu.memory_space<vmem>>, vector<1x256xf32>
      %17 = vector.broadcast %16 : vector<1x256xf32> to vector<2x256xf32>
      %18 = arith.addf %15, %17 : vector<2x256xf32>
      %19 = arith.truncf %18 : vector<2x256xf32> to vector<2x256xbf16>
      %c0_16 = arith.constant 0 : index
      %c0_17 = arith.constant 0 : index
      %20 = vector.load %arg7[%c0_16, %c0_17] : memref<2x256xbf16, #tpu.memory_space<vmem>>, vector<2x256xbf16>
      tpu.vector_store %arg7[%c0_16, %c0_17], %19 {strides = array<i32>} : memref<2x256xbf16, #tpu.memory_space<vmem>>, vector<2x256xbf16>,
    } else {
    }
    return
  }
  func.func @transform_0(%arg0: i32, %arg1: i32, %arg2: i32) -> (i32, i32) {
    %c0_i32 = arith.constant 0 : i32
    return %arg0, %arg2 : i32, i32
  }
  func.func @transform_1(%arg0: i32, %arg1: i32, %arg2: i32) -> (i32, i32) {
    %c0_i32 = arith.constant 0 : i32
    return %arg2, %arg1 : i32, i32
  }
  func.func @transform_2(%arg0: i32, %arg1: i32, %arg2: i32) -> (i32, i32) {
    %c0_i32 = arith.constant 0 : i32
    %c0_i32_0 = arith.constant 0 : i32
    return %c0_i32, %arg1 : i32, i32
  }
  func.func @transform_3(%arg0: i32, %arg1: i32, %arg2: i32) -> (i32, i32) {
    %c0_i32 = arith.constant 0 : i32
    %c0_i32_0 = arith.constant 0 : i32
    return %c0_i32, %arg1 : i32, i32
  }
  func.func @transform_4(%arg0: i32, %arg1: i32, %arg2: i32) -> (i32, i32) {
    %c0_i32 = arith.constant 0 : i32
    return %arg0, %arg1 : i32, i32
  }
}

module attributes {stable_mosaic.version = 11 : i64} {
  func.func @_fused_gemm_kernel(%arg0: i32, %arg1: i32, %arg2: i32, %arg3: memref<2x256xbf16, #tpu.memory_space<vmem>>, %arg4: memref<256x256xbf16, #tpu.memory_space<vmem>>, %arg5: memref<1x256xf32, #tpu.memory_space<vmem>>, %arg6: memref<1x256xf32, #tpu.memory_space<vmem>>, %arg7: memref<2x256xbf16, #tpu.memory_space<vmem>>, %arg8: memref<2x256xbf16, #tpu.memory_space<vmem>>, %arg9: memref<2x256xf32, #tpu.memory_space<vmem>>) attributes {dimension_semantics = [#tpu.dimension_semantics<parallel>, #tpu.dimension_semantics<parallel>, #tpu.dimension_semantics<arbitrary>], iteration_bounds = array<i64: 1, 4, 1>, scalar_prefetch = 0 : i64, scratch_operands = 1 : i64, tpu.core_type = #tpu.core_type<tc>, window_params = [{transform_indices = @transform_0, window_bounds = array<i64: 2, 256>}, {transform_indices = @transform_1, window_bounds = array<i64: 256, 256>}, {transform_indices = @transform_2, window_bounds = array<i64: 1, 256>}, {transform_indices = @transform_3, window_bounds = array<i64: 1, 256>}, {transform_indices = @transform_4, window_bounds = array<i64: 2, 256>}, {transform_indices = @transform_5, window_bounds = array<i64: 2, 256>}]} {
    %c0_i32 = arith.constant 0 : i32
    %0 = arith.cmpi eq, %arg2, %c0_i32 : i32
    %1 = arith.extui %0 : i1 to i32
    %c0_i32_0 = arith.constant 0 : i32
    %2 = arith.cmpi ne, %1, %c0_i32_0 : i32
    scf.if %2 {
      %cst_10 = arith.constant 0.000000e+00 : f32
      %12 = vector.broadcast %cst_10 : f32 to vector<2x256xf32>
      %c0_11 = arith.constant 0 : index
      %c0_12 = arith.constant 0 : index
      %13 = vector.load %arg9[%c0_11, %c0_12] : memref<2x256xf32, #tpu.memory_space<vmem>>, vector<2x256xf32>
      tpu.vector_store %arg9[%c0_11, %c0_12], %12 {strides = array<i32>} : memref<2x256xf32, #tpu.memory_space<vmem>>, vector<2x256xf32>,
    } else {
    }
    %c0 = arith.constant 0 : index
    %c0_1 = arith.constant 0 : index
    %3 = vector.load %arg9[%c0, %c0_1] : memref<2x256xf32, #tpu.memory_space<vmem>>, vector<2x256xf32>
    %c0_2 = arith.constant 0 : index
    %c0_3 = arith.constant 0 : index
    %4 = vector.load %arg3[%c0_2, %c0_3] : memref<2x256xbf16, #tpu.memory_space<vmem>>, vector<2x256xbf16>
    %c0_4 = arith.constant 0 : index
    %c0_5 = arith.constant 0 : index
    %5 = vector.load %arg4[%c0_4, %c0_5] : memref<256x256xbf16, #tpu.memory_space<vmem>>, vector<256x256xbf16>
    %cst = arith.constant dense<0.000000e+00> : vector<2x256xf32>
    %6 = tpu.matmul %4, %5, %cst {dimension_numbers = #tpu.dot_dimension_numbers<[1], [0], [0], [1], [0, 0, 1, 1], [], []>} : vector<2x256xbf16>, vector<256x256xbf16>, vector<2x256xf32> -> vector<2x256xf32>
    %7 = arith.addf %3, %6 : vector<2x256xf32>
    %c0_6 = arith.constant 0 : index
    %c0_7 = arith.constant 0 : index
    %8 = vector.load %arg9[%c0_6, %c0_7] : memref<2x256xf32, #tpu.memory_space<vmem>>, vector<2x256xf32>
    tpu.vector_store %arg9[%c0_6, %c0_7], %7 {strides = array<i32>} : memref<2x256xf32, #tpu.memory_space<vmem>>, vector<2x256xf32>,
    %c0_i32_8 = arith.constant 0 : i32
    %9 = arith.cmpi eq, %arg2, %c0_i32_8 : i32
    %10 = arith.extui %9 : i1 to i32
    %c0_i32_9 = arith.constant 0 : i32
    %11 = arith.cmpi ne, %10, %c0_i32_9 : i32
    scf.if %11 {
      %c0_10 = arith.constant 0 : index
      %c0_11 = arith.constant 0 : index
      %12 = vector.load %arg9[%c0_10, %c0_11] : memref<2x256xf32, #tpu.memory_space<vmem>>, vector<2x256xf32>
      %c0_12 = arith.constant 0 : index
      %c0_13 = arith.constant 0 : index
      %13 = vector.load %arg5[%c0_12, %c0_13] : memref<1x256xf32, #tpu.memory_space<vmem>>, vector<1x256xf32>
      %14 = vector.broadcast %13 : vector<1x256xf32> to vector<2x256xf32>
      %15 = arith.mulf %12, %14 : vector<2x256xf32>
      %c0_14 = arith.constant 0 : index
      %c0_15 = arith.constant 0 : index
      %16 = vector.load %arg6[%c0_14, %c0_15] : memref<1x256xf32, #tpu.memory_space<vmem>>, vector<1x256xf32>
      %17 = vector.broadcast %16 : vector<1x256xf32> to vector<2x256xf32>
      %18 = arith.addf %15, %17 : vector<2x256xf32>
      %c0_16 = arith.constant 0 : index
      %c0_17 = arith.constant 0 : index
      %19 = vector.load %arg7[%c0_16, %c0_17] : memref<2x256xbf16, #tpu.memory_space<vmem>>, vector<2x256xbf16>
      %20 = arith.extf %19 : vector<2x256xbf16> to vector<2x256xf32>
      %21 = arith.addf %18, %20 : vector<2x256xf32>
      %cst_18 = arith.constant 0.000000e+00 : f32
      %22 = vector.broadcast %cst_18 : f32 to vector<2x256xf32>
      %23 = arith.maximumf %21, %22 : vector<2x256xf32>
      %24 = arith.truncf %23 : vector<2x256xf32> to vector<2x256xbf16>
      %c0_19 = arith.constant 0 : index
      %c0_20 = arith.constant 0 : index
      %25 = vector.load %arg8[%c0_19, %c0_20] : memref<2x256xbf16, #tpu.memory_space<vmem>>, vector<2x256xbf16>
      tpu.vector_store %arg8[%c0_19, %c0_20], %24 {strides = array<i32>} : memref<2x256xbf16, #tpu.memory_space<vmem>>, vector<2x256xbf16>,
    } else {
    }
    return
  }
  func.func @transform_0(%arg0: i32, %arg1: i32, %arg2: i32) -> (i32, i32) {
    %c0_i32 = arith.constant 0 : i32
    return %arg0, %arg2 : i32, i32
  }
  func.func @transform_1(%arg0: i32, %arg1: i32, %arg2: i32) -> (i32, i32) {
    %c0_i32 = arith.constant 0 : i32
    return %arg2, %arg1 : i32, i32
  }
  func.func @transform_2(%arg0: i32, %arg1: i32, %arg2: i32) -> (i32, i32) {
    %c0_i32 = arith.constant 0 : i32
    %c0_i32_0 = arith.constant 0 : i32
    return %c0_i32, %arg1 : i32, i32
  }
  func.func @transform_3(%arg0: i32, %arg1: i32, %arg2: i32) -> (i32, i32) {
    %c0_i32 = arith.constant 0 : i32
    %c0_i32_0 = arith.constant 0 : i32
    return %c0_i32, %arg1 : i32, i32
  }
  func.func @transform_4(%arg0: i32, %arg1: i32, %arg2: i32) -> (i32, i32) {
    %c0_i32 = arith.constant 0 : i32
    return %arg0, %arg1 : i32, i32
  }
  func.func @transform_5(%arg0: i32, %arg1: i32, %arg2: i32) -> (i32, i32) {
    %c0_i32 = arith.constant 0 : i32
    return %arg0, %arg1 : i32, i32
  }
}

module attributes {stable_mosaic.version = 11 : i64} {
  func.func @_fused_gemm_kernel(%arg0: i32, %arg1: i32, %arg2: i32, %arg3: memref<2x512xbf16, #tpu.memory_space<vmem>>, %arg4: memref<512x256xbf16, #tpu.memory_space<vmem>>, %arg5: memref<1x256xf32, #tpu.memory_space<vmem>>, %arg6: memref<1x256xf32, #tpu.memory_space<vmem>>, %arg7: memref<2x256xbf16, #tpu.memory_space<vmem>>, %arg8: memref<2x256xf32, #tpu.memory_space<vmem>>) attributes {dimension_semantics = [#tpu.dimension_semantics<parallel>, #tpu.dimension_semantics<parallel>, #tpu.dimension_semantics<arbitrary>], iteration_bounds = array<i64: 1, 1, 2>, scalar_prefetch = 0 : i64, scratch_operands = 1 : i64, tpu.core_type = #tpu.core_type<tc>, window_params = [{transform_indices = @transform_0, window_bounds = array<i64: 2, 512>}, {transform_indices = @transform_1, window_bounds = array<i64: 512, 256>}, {transform_indices = @transform_2, window_bounds = array<i64: 1, 256>}, {transform_indices = @transform_3, window_bounds = array<i64: 1, 256>}, {transform_indices = @transform_4, window_bounds = array<i64: 2, 256>}]} {
    %c0_i32 = arith.constant 0 : i32
    %0 = arith.cmpi eq, %arg2, %c0_i32 : i32
    %1 = arith.extui %0 : i1 to i32
    %c0_i32_0 = arith.constant 0 : i32
    %2 = arith.cmpi ne, %1, %c0_i32_0 : i32
    scf.if %2 {
      %cst_9 = arith.constant 0.000000e+00 : f32
      %12 = vector.broadcast %cst_9 : f32 to vector<2x256xf32>
      %c0_10 = arith.constant 0 : index
      %c0_11 = arith.constant 0 : index
      %13 = vector.load %arg8[%c0_10, %c0_11] : memref<2x256xf32, #tpu.memory_space<vmem>>, vector<2x256xf32>
      tpu.vector_store %arg8[%c0_10, %c0_11], %12 {strides = array<i32>} : memref<2x256xf32, #tpu.memory_space<vmem>>, vector<2x256xf32>,
    } else {
    }
    %c0 = arith.constant 0 : index
    %c0_1 = arith.constant 0 : index
    %3 = vector.load %arg8[%c0, %c0_1] : memref<2x256xf32, #tpu.memory_space<vmem>>, vector<2x256xf32>
    %c0_2 = arith.constant 0 : index
    %c0_3 = arith.constant 0 : index
    %4 = vector.load %arg3[%c0_2, %c0_3] : memref<2x512xbf16, #tpu.memory_space<vmem>>, vector<2x512xbf16>
    %c0_4 = arith.constant 0 : index
    %c0_5 = arith.constant 0 : index
    %5 = vector.load %arg4[%c0_4, %c0_5] : memref<512x256xbf16, #tpu.memory_space<vmem>>, vector<512x256xbf16>
    %cst = arith.constant dense<0.000000e+00> : vector<2x256xf32>
    %6 = tpu.matmul %4, %5, %cst {dimension_numbers = #tpu.dot_dimension_numbers<[1], [0], [0], [1], [0, 0, 1, 1], [], []>} : vector<2x512xbf16>, vector<512x256xbf16>, vector<2x256xf32> -> vector<2x256xf32>
    %7 = arith.addf %3, %6 : vector<2x256xf32>
    %c0_6 = arith.constant 0 : index
    %c0_7 = arith.constant 0 : index
    %8 = vector.load %arg8[%c0_6, %c0_7] : memref<2x256xf32, #tpu.memory_space<vmem>>, vector<2x256xf32>
    tpu.vector_store %arg8[%c0_6, %c0_7], %7 {strides = array<i32>} : memref<2x256xf32, #tpu.memory_space<vmem>>, vector<2x256xf32>,
    %c1_i32 = arith.constant 1 : i32
    %9 = arith.cmpi eq, %arg2, %c1_i32 : i32
    %10 = arith.extui %9 : i1 to i32
    %c0_i32_8 = arith.constant 0 : i32
    %11 = arith.cmpi ne, %10, %c0_i32_8 : i32
    scf.if %11 {
      %c0_9 = arith.constant 0 : index
      %c0_10 = arith.constant 0 : index
      %12 = vector.load %arg8[%c0_9, %c0_10] : memref<2x256xf32, #tpu.memory_space<vmem>>, vector<2x256xf32>
      %c0_11 = arith.constant 0 : index
      %c0_12 = arith.constant 0 : index
      %13 = vector.load %arg5[%c0_11, %c0_12] : memref<1x256xf32, #tpu.memory_space<vmem>>, vector<1x256xf32>
      %14 = vector.broadcast %13 : vector<1x256xf32> to vector<2x256xf32>
      %15 = arith.mulf %12, %14 : vector<2x256xf32>
      %c0_13 = arith.constant 0 : index
      %c0_14 = arith.constant 0 : index
      %16 = vector.load %arg6[%c0_13, %c0_14] : memref<1x256xf32, #tpu.memory_space<vmem>>, vector<1x256xf32>
      %17 = vector.broadcast %16 : vector<1x256xf32> to vector<2x256xf32>
      %18 = arith.addf %15, %17 : vector<2x256xf32>
      %cst_15 = arith.constant 0.000000e+00 : f32
      %19 = vector.broadcast %cst_15 : f32 to vector<2x256xf32>
      %20 = arith.maximumf %18, %19 : vector<2x256xf32>
      %21 = arith.truncf %20 : vector<2x256xf32> to vector<2x256xbf16>
      %c0_16 = arith.constant 0 : index
      %c0_17 = arith.constant 0 : index
      %22 = vector.load %arg7[%c0_16, %c0_17] : memref<2x256xbf16, #tpu.memory_space<vmem>>, vector<2x256xbf16>
      tpu.vector_store %arg7[%c0_16, %c0_17], %21 {strides = array<i32>} : memref<2x256xbf16, #tpu.memory_space<vmem>>, vector<2x256xbf16>,
    } else {
    }
    return
  }
  func.func @transform_0(%arg0: i32, %arg1: i32, %arg2: i32) -> (i32, i32) {
    %c0_i32 = arith.constant 0 : i32
    return %arg0, %arg2 : i32, i32
  }
  func.func @transform_1(%arg0: i32, %arg1: i32, %arg2: i32) -> (i32, i32) {
    %c0_i32 = arith.constant 0 : i32
    return %arg2, %arg1 : i32, i32
  }
  func.func @transform_2(%arg0: i32, %arg1: i32, %arg2: i32) -> (i32, i32) {
    %c0_i32 = arith.constant 0 : i32
    %c0_i32_0 = arith.constant 0 : i32
    return %c0_i32, %arg1 : i32, i32
  }
  func.func @transform_3(%arg0: i32, %arg1: i32, %arg2: i32) -> (i32, i32) {
    %c0_i32 = arith.constant 0 : i32
    %c0_i32_0 = arith.constant 0 : i32
    return %c0_i32, %arg1 : i32, i32
  }
  func.func @transform_4(%arg0: i32, %arg1: i32, %arg2: i32) -> (i32, i32) {
    %c0_i32 = arith.constant 0 : i32
    return %arg0, %arg1 : i32, i32
  }
}

</mosaic_0001>

<bundles_post_ra>
// kernel: tile.0
= control target key start
LH: loop header
LB: loop body
LE: loop exit
PB: predicated region body
PF: predicated region fallthrough
CT: control target
= control target key end

     0   :  { %vm7_vm0 = vcmask 7168   ;;  %s26_s10 = smov 126   ;;  %s49_s0 = inlined_call_operand.vmem [shape: f32[2,3], index: 0, kind: input, shape index: {}]   ;;  %s50_s1 = inlined_call_operand.vmem [shape: f32[6,1], index: 1, kind: output, shape index: {}]  }
   0x1   :  { %v4_v0 = vld [vmem:[%s49_s0] sm:$0x3]  ;;  %s25_s0 = smov 127  }
   0x2   :  { %5 = vst [vmem:[#allocation0] sm:$0x3] %v4_v0 }
   0x9   :  { %v9_v1 = vld [vmem:[#allocation0] sm:$0x3]  }
   0xa   :  { %v6_v2 = vld [vmem:[#allocation0] sm:$0x3]   ;;  %10 = vrot.lane.b32.xlu0 %v9_v1, %s25_s0 }
   0xb   :  { %8 = vst.msk [vmem:[%s50_s1] ss:$3 sm:$0x3] %vm7_vm0, %v6_v2   ;;  %v15_v3 = vld [vmem:[#allocation0] sm:$0x3]  }
   0xe   :  { %16 = vrot.lane.b32.xlu0 %v15_v3, %s26_s10 }
  0x7c   :  { %v11_v4 = vpop.permute.xlu0 %10  }
  0x7d   :  { %21 = vst.msk [vmem:[%s50_s1 + $0x1] ss:$3 sm:$0x3] %vm7_vm0, %v11_v4  }
  0x80   :  { %v17_v5 = vpop.permute.xlu0 %16  }
  0x81   :  { %22 = vst.msk [vmem:[%s50_s1 + $0x2] ss:$3 sm:$0x3] %vm7_vm0, %v17_v5  }

// kernel: tile.13
= control target key start
LH: loop header
LB: loop body
LE: loop exit
PB: predicated region body
PF: predicated region fallthrough
CT: control target
= control target key end

     0   :  { %s22_s0 = inlined_call_operand.vmem [shape: f32[3], index: 0, kind: input, shape index: {}]   ;;  %s23_s1 = inlined_call_operand.vmem [shape: f32[2,3], index: 1, kind: output, shape index: {}]  }
   0x1   :  { %v4_v0 = vld [vmem:[%s22_s0] ss:$0 sm:$0xff] }
   0x2   :  { %5 = vst [vmem:[%s23_s1] sm:$0x3] %v4_v0 }

// kernel: encoder_m_forward.45
= control target key start
LH: loop header
LB: loop body
LE: loop exit
PB: predicated region body
PF: predicated region fallthrough
CT: control target
= control target key end

     0   :  { %v40_v0 = vmov 0   ;;  %s79_s1 = inlined_call_operand.vmem [shape: f32[6,1], index: 1, kind: input, shape index: {}]   ;;  %s80_s2 = inlined_call_operand.vmem [shape: f32[6,1], index: 2, kind: input, shape index: {}]   ;;  %s81_s0 = inlined_call_operand.vmem [shape: f32[6,256], index: 0, kind: input, shape index: {}]   ;;  %s82_s3 = inlined_call_operand.vmem [shape: f32[6,256], index: 3, kind: output, shape index: {}]  }
   0x1   :  { %39 = vset.pattern.permute.xlu0 %v40_v0  ;;  %v16_v1 = vld [vmem:[%s79_s1] sm:$0x3f]  ;;  %v15_v5 = vld [vmem:[%s81_s0 + $0x8] sm:$0x3f] }
   0x2   :  { %19 = vperm.xlu0 %39, %v16_v1   ;;  %v24_v2 = vld [vmem:[%s80_s2] sm:$0x3f] }
   0x3   :  { %v14_v4 = vld [vmem:[%s81_s0] sm:$0x3f] }
   0x6   :  { %27 = vperm.xlu0 %39, %v24_v2  }
  0x81   :  { %v20_v3 = vpop.permute.xlu0 %19 }
  0x82   :  { %v22_v6 = vmul.f32 %v20_v3, %v14_v4  ;;  %v23_v7 = vmul.f32 %v20_v3, %v15_v5 }
  0x85   :  { %v28_v8 = vpop.permute.xlu0 %27 }
  0x86   :  { %v30_v9 = vadd.f32 %v28_v8, %v22_v6  ;;  %v31_v10 = vadd.f32 %v28_v8, %v23_v7 }
  0x88   :  { %32 = vst [vmem:[%s82_s3] sm:$0x3f] %v30_v9  ;;  %33 = vst [vmem:[%s82_s3 + $0x8] sm:$0x3f] %v31_v10 }

// kernel: encoder_m_forward.46
= control target key start
LH: loop header
LB: loop body
LE: loop exit
PB: predicated region body
PF: predicated region fallthrough
CT: control target
= control target key end

     0   :  { %vm22_vm0 = vcmask 523264   ;;  %v704_v0 = vmov 0   ;;  %v705_v2 = vmov 0.0   ;;  %vm243_vm1 = vcmask 556032   ;;  %s990_s1 = inlined_call_operand.vmem [shape: bf16[196,64], index: 1, kind: input, shape index: {}]   ;;  %s991_s0 = inlined_call_operand.vmem [shape: bf16[128,196], index: 0, kind: input, shape index: {}]   ;;  %s992_s2 = inlined_call_operand.vmem [shape: f32[1,64], index: 2, kind: input, shape index: {}]   ;;  %s993_s3 = inlined_call_operand.vmem [shape: f32[1,64], index: 3, kind: input, shape index: {}]   ;;  %s994_s4 = inlined_call_operand.vmem [shape: bf16[128,64], index: 4, kind: output, shape index: {}]  }
   0x1   :  { %272 = vmatprep.subr.bf16.mxu0 %v704_v0  ;;  %639 = vmatprep.subr.bf16.mxu1 %v704_v0  ;;  %v667_v1 = vld [vmem:[%s990_s1] sm:$0xff]   ;;  %23 = vst.msk [vmem:[#allocation2] sm:$0xff] %vm22_vm0, %v705_v2  ;;  %24 = vst.msk [vmem:[#allocation2 + $0x8] sm:$0xff] %vm22_vm0, %v705_v2  ;;  %v668_v3 = vld [vmem:[%s990_s1 + $0x8] sm:$0xff]   ;;  %vm268_vm2 = vcmask 1041408   ;;  %vm547_vm3 = vcmask 519168  }
   0x2   :  { %25 = vst.msk [vmem:[#allocation2 + $0x10] sm:$0xff] %vm22_vm0, %v705_v2  ;;  %26 = vst.msk [vmem:[#allocation2 + $0x18] sm:$0xff] %vm22_vm0, %v705_v2  ;;  %273 = vmatpush1.bf16.msra.mxu0 %v667_v1  ;;  %652 = vmatpush1.bf16.msra.mxu1 %v667_v1  ;;  %v669_v4 = vld [vmem:[%s990_s1 + $0x10] sm:$0xff]   ;;  %v670_v5 = vld [vmem:[%s990_s1 + $0x18] sm:$0xff]  }
   0x3   :  { %27 = vst.msk [vmem:[#allocation2 + $0x20] sm:$0xff] %vm22_vm0, %v705_v2  ;;  %28 = vst.msk [vmem:[#allocation2 + $0x28] sm:$0xff] %vm22_vm0, %v705_v2  ;;  %274 = vmatprep.subr.bf16.mxu0 %v704_v0  ;;  %640 = vmatprep.subr.bf16.mxu1 %v704_v0  ;;  %v682_v6 = vld [vmem:[%s991_s0 + $0x4] ss:$8 sps:$4 sm:$0xff]   ;;  %v673_v10 = vld [vmem:[%s990_s1 + $0x30] sm:$0xff]  }
   0x4   :  { %29 = vst.msk [vmem:[#allocation2 + $0x30] sm:$0xff] %vm22_vm0, %v705_v2  ;;  %30 = vst.msk [vmem:[#allocation2 + $0x38] sm:$0xff] %vm22_vm0, %v705_v2  ;;  %v671_v7 = vld [vmem:[%s990_s1 + $0x20] sm:$0xff]   ;;  %597 = vmatprep.mubr.msk.bf16.mxu0 %vm243_vm1, %v682_v6  ;;  %v672_v9 = vld [vmem:[%s990_s1 + $0x28] sm:$0xff]  }
   0x5   :  { %31 = vst.msk [vmem:[#allocation2 + $0x40] sm:$0xff] %vm22_vm0, %v705_v2  ;;  %32 = vst.msk [vmem:[#allocation2 + $0x48] sm:$0xff] %vm22_vm0, %v705_v2  ;;  %v685_v8 = vld [vmem:[%s991_s0 + $0x44] ss:$8 sps:$4 sm:$0xff]   ;;  %v674_v11 = vld [vmem:[%s990_s1 + $0x38] sm:$0xff]  }
   0x6   :  { %33 = vst.msk [vmem:[#allocation2 + $0x50] sm:$0xff] %vm22_vm0, %v705_v2  ;;  %34 = vst.msk [vmem:[#allocation2 + $0x58] sm:$0xff] %vm22_vm0, %v705_v2  ;;  %275 = vmatpush1.bf16.msra.mxu0 %v668_v3  ;;  %653 = vmatpush1.bf16.msra.mxu1 %v668_v3  ;;  %v675_v12 = vld [vmem:[%s990_s1 + $0x40] sm:$0xff]   ;;  %v676_v13 = vld [vmem:[%s990_s1 + $0x48] sm:$0xff]  }
   0x7   :  { %35 = vst.msk [vmem:[#allocation2 + $0x60] sm:$0xff] %vm22_vm0, %v705_v2  ;;  %36 = vst.msk [vmem:[#allocation2 + $0x68] sm:$0xff] %vm22_vm0, %v705_v2  ;;  %276 = vmatprep.subr.bf16.mxu0 %v704_v0  ;;  %641 = vmatprep.subr.bf16.mxu1 %v704_v0  ;;  %v677_v14 = vld [vmem:[%s990_s1 + $0x50] sm:$0xff]   ;;  %v678_v15 = vld [vmem:[%s990_s1 + $0x58] sm:$0xff]  }
   0x8   :  { %37 = vst.msk [vmem:[#allocation2 + $0x70] sm:$0xff] %vm22_vm0, %v705_v2  ;;  %38 = vst.msk [vmem:[#allocation2 + $0x78] sm:$0xff] %vm22_vm0, %v705_v2  ;;  %601 = vmatprep.mubr.msk.bf16.mxu1 %vm243_vm1, %v685_v8  ;;  %v679_v16 = vld [vmem:[%s990_s1 + $0x60] ss:$0 sps:$4 sm:$0x33]   ;;  %v40_v36 = vld [vmem:[#allocation2 + $0x8] sm:$0xff] }
   0x9   :  { %v270_v17 = vsel %vm268_vm2, %v679_v16, 0  ;;  %v680_v18 = vld [vmem:[%s991_s0] ss:$8 sps:$4 sm:$0xff]   ;;  %v686_v20 = vld [vmem:[%s991_s0 + $0x14] ss:$8 sps:$4 sm:$0xff]  }
   0xa   :  { %277 = vmatpush1.bf16.msra.mxu0 %v669_v4  ;;  %654 = vmatpush1.bf16.msra.mxu1 %v669_v4  ;;  %v683_v19 = vld [vmem:[%s991_s0 + $0x40] ss:$8 sps:$4 sm:$0xff]   ;;  %v688_v21 = vld [vmem:[%s991_s0 + $0x54] ss:$8 sps:$4 sm:$0xff]   ;;  %v690_v22 = vld [vmem:[%s991_s0 + $0x10] ss:$8 sps:$4 sm:$0xff]  }
   0xb   :  { %278 = vmatprep.subr.bf16.mxu0 %v704_v0  ;;  %642 = vmatprep.subr.bf16.mxu1 %v704_v0  ;;  %v691_v23 = vld [vmem:[%s991_s0 + $0x50] ss:$8 sps:$4 sm:$0xff]   ;;  %v692_v24 = vld [vmem:[%s991_s0 + $0x24] ss:$8 sps:$4 sm:$0xff]   ;;  %v696_v26 = vld [vmem:[%s991_s0 + $0x20] ss:$8 sps:$4 sm:$0xff]  }
   0xc   :  { %v694_v25 = vld [vmem:[%s991_s0 + $0x64] ss:$8 sps:$4 sm:$0xff]   ;;  %v697_v27 = vld [vmem:[%s991_s0 + $0x60] ss:$8 sps:$4 sm:$0xff]   ;;  %v698_v28 = vld [vmem:[%s991_s0 + $0x34] ss:$8 sps:$4 sm:$0xff]  }
   0xd   :  { %v700_v29 = vld [vmem:[%s991_s0 + $0x74] ss:$8 sps:$4 sm:$0xff]   ;;  %v702_v30 = vld [vmem:[%s991_s0 + $0x30] ss:$8 sps:$4 sm:$0xff]   ;;  %v39_v32 = vld [vmem:[#allocation2] sm:$0xff] }
   0xe   :  { %279 = vmatpush1.bf16.msra.mxu0 %v670_v5  ;;  %655 = vmatpush1.bf16.msra.mxu1 %v670_v5  ;;  %v703_v31 = vld [vmem:[%s991_s0 + $0x70] ss:$8 sps:$4 sm:$0xff]   ;;  %v47_v33 = vld [vmem:[#allocation2 + $0x40] sm:$0xff]  ;;  %v48_v37 = vld [vmem:[#allocation2 + $0x48] sm:$0xff] }
   0xf   :  { %280 = vmatprep.subr.bf16.mxu0 %v704_v0  ;;  %643 = vmatprep.subr.bf16.mxu1 %v704_v0  ;;  %v41_v48 = vld [vmem:[#allocation2 + $0x10] sm:$0xff]  ;;  %v875_v50 = vld [vmem:[%s992_s2] ss:$0 sm:$0xff]  ;;  %v42_v53 = vld [vmem:[#allocation2 + $0x18] sm:$0xff] }
  0x10   :  { %v49_v49 = vld [vmem:[#allocation2 + $0x50] sm:$0xff]  ;;  %v50_v54 = vld [vmem:[#allocation2 + $0x58] sm:$0xff]  ;;  %v880_v60 = vld [vmem:[%s993_s3] ss:$0 sm:$0xff] }
  0x11   :  { %v43_v16 = vld [vmem:[#allocation2 + $0x20] sm:$0xff] }
  0x12   :  { %281 = vmatpush1.bf16.msra.mxu0 %v671_v7  ;;  %656 = vmatpush1.bf16.msra.mxu1 %v671_v7 }
  0x13   :  { %282 = vmatprep.subr.bf16.mxu0 %v704_v0  ;;  %644 = vmatprep.subr.bf16.mxu1 %v704_v0 }
  0x16   :  { %283 = vmatpush1.bf16.msra.mxu0 %v672_v9  ;;  %657 = vmatpush1.bf16.msra.mxu1 %v672_v9 }
  0x17   :  { %284 = vmatprep.subr.bf16.mxu0 %v704_v0  ;;  %645 = vmatprep.subr.bf16.mxu1 %v704_v0 }
  0x1a   :  { %285 = vmatpush1.bf16.msra.mxu0 %v673_v10  ;;  %658 = vmatpush1.bf16.msra.mxu1 %v673_v10 }
  0x1b   :  { %286 = vmatprep.subr.bf16.mxu0 %v704_v0  ;;  %646 = vmatprep.subr.bf16.mxu1 %v704_v0 }
  0x1e   :  { %287 = vmatpush1.bf16.msra.mxu0 %v674_v11  ;;  %659 = vmatpush1.bf16.msra.mxu1 %v674_v11 }
  0x1f   :  { %288 = vmatprep.subr.bf16.mxu0 %v704_v0  ;;  %647 = vmatprep.subr.bf16.mxu1 %v704_v0 }
  0x22   :  { %289 = vmatpush1.bf16.msra.mxu0 %v675_v12  ;;  %660 = vmatpush1.bf16.msra.mxu1 %v675_v12 }
  0x23   :  { %290 = vmatprep.subr.bf16.mxu0 %v704_v0  ;;  %648 = vmatprep.subr.bf16.mxu1 %v704_v0 }
  0x26   :  { %291 = vmatpush1.bf16.msra.mxu0 %v676_v13  ;;  %661 = vmatpush1.bf16.msra.mxu1 %v676_v13 }
  0x27   :  { %292 = vmatprep.subr.bf16.mxu0 %v704_v0  ;;  %649 = vmatprep.subr.bf16.mxu1 %v704_v0 }
  0x2a   :  { %293 = vmatpush1.bf16.msra.mxu0 %v677_v14  ;;  %662 = vmatpush1.bf16.msra.mxu1 %v677_v14 }
  0x2b   :  { %294 = vmatprep.subr.bf16.mxu0 %v704_v0  ;;  %650 = vmatprep.subr.bf16.mxu1 %v704_v0 }
  0x2e   :  { %295 = vmatpush1.bf16.msra.mxu0 %v678_v15  ;;  %663 = vmatpush1.bf16.msra.mxu1 %v678_v15 }
  0x2f   :  { %296 = vmatprep.subr.bf16.mxu0 %v704_v0  ;;  %651 = vmatprep.subr.bf16.mxu1 %v704_v0 }
  0x32   :  { %297 = vmatpush1.bf16.msra.mxu0 %v270_v17  ;;  %664 = vmatpush1.bf16.msra.mxu1 %v270_v17  ;;  %v51_v17 = vld [vmem:[#allocation2 + $0x60] sm:$0xff] }
  0x35   :  { %305 = vmatmul.mubr.bf16.vlgmr.msra.gmra.mrb[0].mxu0 %v680_v18  ;;  %337 = vmatmul.mubr.bf16.vlgmr.msra.gmra.mrb[0].mxu1 %v683_v19 }
  0x36   :  { %598 = vmatprep.mubr.msk.bf16.mxu0 %vm243_vm1, %v686_v20  ;;  %602 = vmatprep.mubr.msk.bf16.mxu1 %vm243_vm1, %v688_v21 }
  0x3d   :  { %313 = vmatmul.mubr.bf16.gmra.mrb[4].mxu0 %v690_v22  ;;  %345 = vmatmul.mubr.bf16.gmra.mrb[4].mxu1 %v691_v23 }
  0x3e   :  { %599 = vmatprep.mubr.msk.bf16.mxu0 %vm243_vm1, %v692_v24  ;;  %603 = vmatprep.mubr.msk.bf16.mxu1 %vm243_vm1, %v694_v25 }
  0x45   :  { %321 = vmatmul.mubr.bf16.gmra.mrb[8].mxu0 %v696_v26  ;;  %353 = vmatmul.mubr.bf16.gmra.mrb[8].mxu1 %v697_v27  ;;  %v44_v26 = vld [vmem:[#allocation2 + $0x28] sm:$0xff] }
  0x46   :  { %600 = vmatprep.mubr.msk.bf16.mxu0 %vm243_vm1, %v698_v28  ;;  %604 = vmatprep.mubr.msk.bf16.mxu1 %vm243_vm1, %v700_v29  ;;  %v52_v27 = vld [vmem:[#allocation2 + $0x68] sm:$0xff] }
  0x4d   :  { %329 = vmatmul.mubr.bf16.gmra.mrb[12].mxu0 %v702_v30  ;;  %361 = vmatmul.mubr.bf16.gmra.mrb[12].mxu1 %v703_v31 }
 0x108   :  { %v306_v34 = vpop.f32.mrb[0].mxu0  ;;  %v338_v35 = vpop.f32.mrb[0].mxu1 }
 0x109   :  { %v369_v38 = vadd.f32 %v306_v34, %v39_v32  ;;  %v377_v39 = vadd.f32 %v338_v35, %v47_v33  ;;  %v308_v40 = vpop.f32.mrb[1].mxu0  ;;  %v340_v41 = vpop.f32.mrb[1].mxu1 }
 0x10a   :  { %v309_v42 = vpop.f32.mrb[2].mxu0  ;;  %v341_v43 = vpop.f32.mrb[2].mxu1 }
 0x10b   :  { %386 = vst.msk [vmem:[#allocation2] sm:$0xff] %vm22_vm0, %v369_v38  ;;  %394 = vst.msk [vmem:[#allocation2 + $0x40] sm:$0xff] %vm22_vm0, %v377_v39  ;;  %v370_v44 = vadd.f32 %v309_v42, %v40_v36  ;;  %v378_v45 = vadd.f32 %v341_v43, %v48_v37  ;;  %v311_v46 = vpop.f32.mrb[3].mxu0  ;;  %v343_v47 = vpop.f32.mrb[3].mxu1 }
 0x10d   :  { %387 = vst.msk [vmem:[#allocation2 + $0x8] sm:$0xff] %vm22_vm0, %v370_v44  ;;  %395 = vst.msk [vmem:[#allocation2 + $0x48] sm:$0xff] %vm22_vm0, %v378_v45 }
 0x110   :  { %v314_v51 = vpop.f32.mrb[4].mxu0  ;;  %v346_v52 = vpop.f32.mrb[4].mxu1 }
 0x111   :  { %v371_v55 = vadd.f32 %v314_v51, %v41_v48  ;;  %v379_v56 = vadd.f32 %v346_v52, %v49_v49  ;;  %v316_v57 = vpop.f32.mrb[5].mxu0  ;;  %v348_v58 = vpop.f32.mrb[5].mxu1 }
 0x112   :  { %v405_v59 = vld [vmem:[#allocation2] sm:$0xff]  ;;  %v317_v62 = vpop.f32.mrb[6].mxu0  ;;  %v349_v63 = vpop.f32.mrb[6].mxu1  ;;  %v46_v57 = vld [vmem:[#allocation2 + $0x38] sm:$0xff] }
 0x113   :  { %v413_v61 = vld [vmem:[#allocation2 + $0x40] sm:$0xff]  ;;  %v428_v0 = vmul.f32 %v875_v50, %v405_v59  ;;  %388 = vst.msk [vmem:[#allocation2 + $0x10] sm:$0xff] %vm22_vm0, %v371_v55  ;;  %396 = vst.msk [vmem:[#allocation2 + $0x50] sm:$0xff] %vm22_vm0, %v379_v56  ;;  %v372_v2 = vadd.f32 %v317_v62, %v42_v53  ;;  %v380_v3 = vadd.f32 %v349_v63, %v50_v54  ;;  %v319_v4 = vpop.f32.mrb[7].mxu0  ;;  %v351_v5 = vpop.f32.mrb[7].mxu1  ;;  %v45_v53 = vld [vmem:[#allocation2 + $0x30] sm:$0xff] }
 0x114   :  { %v436_v1 = vmul.f32 %v875_v50, %v413_v61  ;;  %v406_v6 = vld [vmem:[#allocation2 + $0x8] sm:$0xff]  ;;  %v53_v54 = vld [vmem:[#allocation2 + $0x70] sm:$0xff]  ;;  %v54_v58 = vld [vmem:[#allocation2 + $0x78] sm:$0xff] }
 0x115   :  { %v414_v7 = vld [vmem:[#allocation2 + $0x48] sm:$0xff]  ;;  %v451_v8 = vadd.f32 %v880_v60, %v428_v0  ;;  %v429_v10 = vmul.f32 %v875_v50, %v406_v6  ;;  %389 = vst.msk [vmem:[#allocation2 + $0x18] sm:$0xff] %vm22_vm0, %v372_v2  ;;  %397 = vst.msk [vmem:[#allocation2 + $0x58] sm:$0xff] %vm22_vm0, %v380_v3 }
 0x116   :  { %v459_v9 = vadd.f32 %v880_v60, %v436_v1  ;;  %v437_v11 = vmul.f32 %v875_v50, %v414_v7 }
 0x117   :  { %v467_v12 = vmax.f32 %v451_v8, 0.0  ;;  %v452_v14 = vadd.f32 %v880_v60, %v429_v10 }
 0x118   :  { %v475_v13 = vmax.f32 %v459_v9, 0.0  ;;  %v460_v15 = vadd.f32 %v880_v60, %v437_v11  ;;  %v322_v18 = vpop.f32.mrb[8].mxu0  ;;  %v354_v19 = vpop.f32.mrb[8].mxu1 }
 0x119   :  { %v623_v20 = vpack.c.bf16 %v467_v12, %v467_v12  ;;  %v468_v22 = vmax.f32 %v452_v14, 0.0  ;;  %v324_v24 = vpop.f32.mrb[9].mxu0  ;;  %v356_v25 = vpop.f32.mrb[9].mxu1  ;;  %v373_v30 = vadd.f32 %v322_v18, %v43_v16  ;;  %v381_v31 = vadd.f32 %v354_v19, %v51_v17 }
 0x11a   :  { %v631_v21 = vpack.c.bf16 %v475_v13, %v475_v13  ;;  %v476_v23 = vmax.f32 %v460_v15, 0.0  ;;  %v407_v28 = vld [vmem:[#allocation2 + $0x10] sm:$0xff]  ;;  %v325_v32 = vpop.f32.mrb[10].mxu0  ;;  %v357_v33 = vpop.f32.mrb[10].mxu1 }
 0x11b   :  { %v415_v29 = vld [vmem:[#allocation2 + $0x50] sm:$0xff]  ;;  %548 = vst.msk [vmem:[%s994_s4] sm:$0xf] %vm547_vm3, %v623_v20  ;;  %v624_v34 = vpack.c.bf16 %v468_v22, %v468_v22  ;;  %v430_v36 = vmul.f32 %v875_v50, %v407_v28  ;;  %v327_v38 = vpop.f32.mrb[11].mxu0  ;;  %v359_v39 = vpop.f32.mrb[11].mxu1  ;;  %v374_v42 = vadd.f32 %v325_v32, %v44_v26  ;;  %v382_v43 = vadd.f32 %v357_v33, %v52_v27 }
 0x11c   :  { %556 = vst.msk [vmem:[%s994_s4 + $0x20] sm:$0xf] %vm547_vm3, %v631_v21  ;;  %v632_v35 = vpack.c.bf16 %v476_v23, %v476_v23  ;;  %v438_v37 = vmul.f32 %v875_v50, %v415_v29  ;;  %v408_v40 = vld [vmem:[#allocation2 + $0x18] sm:$0xff] }
 0x11d   :  { %v416_v41 = vld [vmem:[#allocation2 + $0x58] sm:$0xff]  ;;  %390 = vst.msk [vmem:[#allocation2 + $0x20] sm:$0xff] %vm22_vm0, %v373_v30  ;;  %398 = vst.msk [vmem:[#allocation2 + $0x60] sm:$0xff] %vm22_vm0, %v381_v31  ;;  %v453_v44 = vadd.f32 %v880_v60, %v430_v36  ;;  %v431_v46 = vmul.f32 %v875_v50, %v408_v40 }
 0x11e   :  { %549 = vst.msk [vmem:[%s994_s4 + $0x4] sm:$0xf] %vm547_vm3, %v624_v34  ;;  %557 = vst.msk [vmem:[%s994_s4 + $0x24] sm:$0xf] %vm547_vm3, %v632_v35  ;;  %v461_v45 = vadd.f32 %v880_v60, %v438_v37  ;;  %v439_v47 = vmul.f32 %v875_v50, %v416_v41 }
 0x11f   :  { %391 = vst.msk [vmem:[#allocation2 + $0x28] sm:$0xff] %vm22_vm0, %v374_v42  ;;  %399 = vst.msk [vmem:[#allocation2 + $0x68] sm:$0xff] %vm22_vm0, %v382_v43  ;;  %v469_v48 = vmax.f32 %v453_v44, 0.0  ;;  %v454_v51 = vadd.f32 %v880_v60, %v431_v46 }
 0x120   :  { %v477_v49 = vmax.f32 %v461_v45, 0.0  ;;  %v462_v52 = vadd.f32 %v880_v60, %v439_v47  ;;  %v330_v55 = vpop.f32.mrb[12].mxu0  ;;  %v362_v56 = vpop.f32.mrb[12].mxu1 }
 0x121   :  { %v625_v59 = vpack.c.bf16 %v469_v48, %v469_v48  ;;  %v470_v62 = vmax.f32 %v454_v51, 0.0  ;;  %v332_v0 = vpop.f32.mrb[13].mxu0  ;;  %v364_v1 = vpop.f32.mrb[13].mxu1  ;;  %v375_v2 = vadd.f32 %v330_v55, %v45_v53  ;;  %v383_v3 = vadd.f32 %v362_v56, %v53_v54 }
 0x122   :  { %v633_v61 = vpack.c.bf16 %v477_v49, %v477_v49  ;;  %v478_v63 = vmax.f32 %v462_v52, 0.0  ;;  %v333_v4 = vpop.f32.mrb[14].mxu0  ;;  %v365_v5 = vpop.f32.mrb[14].mxu1 }
 0x123   :  { %550 = vst.msk [vmem:[%s994_s4 + $0x8] sm:$0xf] %vm547_vm3, %v625_v59  ;;  %v626_v6 = vpack.c.bf16 %v470_v62, %v470_v62  ;;  %v376_v10 = vadd.f32 %v333_v4, %v46_v57  ;;  %v384_v11 = vadd.f32 %v365_v5, %v54_v58  ;;  %v335_v12 = vpop.f32.mrb[15].mxu0  ;;  %v367_v13 = vpop.f32.mrb[15].mxu1 }
 0x124   :  { %558 = vst.msk [vmem:[%s994_s4 + $0x28] sm:$0xf] %vm547_vm3, %v633_v61  ;;  %v634_v7 = vpack.c.bf16 %v478_v63, %v478_v63  ;;  %v409_v8 = vld [vmem:[#allocation2 + $0x20] sm:$0xff] }
 0x125   :  { %v417_v9 = vld [vmem:[#allocation2 + $0x60] sm:$0xff]  ;;  %v432_v14 = vmul.f32 %v875_v50, %v409_v8  ;;  %392 = vst.msk [vmem:[#allocation2 + $0x30] sm:$0xff] %vm22_vm0, %v375_v2  ;;  %400 = vst.msk [vmem:[#allocation2 + $0x70] sm:$0xff] %vm22_vm0, %v383_v3 }
 0x126   :  { %v440_v15 = vmul.f32 %v875_v50, %v417_v9  ;;  %551 = vst.msk [vmem:[%s994_s4 + $0xc] sm:$0xf] %vm547_vm3, %v626_v6  ;;  %559 = vst.msk [vmem:[%s994_s4 + $0x2c] sm:$0xf] %vm547_vm3, %v634_v7  ;;  %v410_v16 = vld [vmem:[#allocation2 + $0x28] sm:$0xff] }
 0x127   :  { %v418_v17 = vld [vmem:[#allocation2 + $0x68] sm:$0xff]  ;;  %393 = vst.msk [vmem:[#allocation2 + $0x38] sm:$0xff] %vm22_vm0, %v376_v10  ;;  %401 = vst.msk [vmem:[#allocation2 + $0x78] sm:$0xff] %vm22_vm0, %v384_v11  ;;  %v455_v18 = vadd.f32 %v880_v60, %v432_v14  ;;  %v433_v20 = vmul.f32 %v875_v50, %v410_v16 }
 0x128   :  { %v463_v19 = vadd.f32 %v880_v60, %v440_v15  ;;  %v441_v21 = vmul.f32 %v875_v50, %v418_v17 }
 0x129   :  { %v471_v22 = vmax.f32 %v455_v18, 0.0  ;;  %v456_v24 = vadd.f32 %v880_v60, %v433_v20 }
 0x12a   :  { %v479_v23 = vmax.f32 %v463_v19, 0.0  ;;  %v464_v25 = vadd.f32 %v880_v60, %v441_v21 }
 0x12b   :  { %v627_v26 = vpack.c.bf16 %v471_v22, %v471_v22  ;;  %v472_v28 = vmax.f32 %v456_v24, 0.0 }
 0x12c   :  { %v635_v27 = vpack.c.bf16 %v479_v23, %v479_v23  ;;  %v480_v29 = vmax.f32 %v464_v25, 0.0  ;;  %v411_v30 = vld [vmem:[#allocation2 + $0x30] sm:$0xff] }
 0x12d   :  { %v419_v31 = vld [vmem:[#allocation2 + $0x70] sm:$0xff]  ;;  %552 = vst.msk [vmem:[%s994_s4 + $0x10] sm:$0xf] %vm547_vm3, %v627_v26  ;;  %v628_v32 = vpack.c.bf16 %v472_v28, %v472_v28  ;;  %v434_v34 = vmul.f32 %v875_v50, %v411_v30 }
 0x12e   :  { %560 = vst.msk [vmem:[%s994_s4 + $0x30] sm:$0xf] %vm547_vm3, %v635_v27  ;;  %v636_v33 = vpack.c.bf16 %v480_v29, %v480_v29  ;;  %v442_v35 = vmul.f32 %v875_v50, %v419_v31  ;;  %v412_v36 = vld [vmem:[#allocation2 + $0x38] sm:$0xff] }
 0x12f   :  { %v420_v37 = vld [vmem:[#allocation2 + $0x78] sm:$0xff]  ;;  %v435_v38 = vmul.f32 %v875_v50, %v412_v36  ;;  %553 = vst.msk [vmem:[%s994_s4 + $0x14] sm:$0xf] %vm547_vm3, %v628_v32  ;;  %v457_v40 = vadd.f32 %v880_v60, %v434_v34 }
 0x130   :  { %v443_v39 = vmul.f32 %v875_v50, %v420_v37  ;;  %561 = vst.msk [vmem:[%s994_s4 + $0x34] sm:$0xf] %vm547_vm3, %v636_v33  ;;  %v465_v41 = vadd.f32 %v880_v60, %v442_v35 }
 0x131   :  { %v458_v42 = vadd.f32 %v880_v60, %v435_v38  ;;  %v473_v44 = vmax.f32 %v457_v40, 0.0 }
 0x132   :  { %v466_v43 = vadd.f32 %v880_v60, %v443_v39  ;;  %v481_v50 = vmax.f32 %v465_v41, 0.0 }
 0x133   :  { %v474_v45 = vmax.f32 %v458_v42, 0.0  ;;  %v629_v47 = vpack.c.bf16 %v473_v44, %v473_v44 }
 0x134   :  { %v482_v46 = vmax.f32 %v466_v43, 0.0  ;;  %v637_v48 = vpack.c.bf16 %v481_v50, %v481_v50 }
 0x135   :  { %v630_v49 = vpack.c.bf16 %v474_v45, %v474_v45  ;;  %554 = vst.msk [vmem:[%s994_s4 + $0x18] sm:$0xf] %vm547_vm3, %v629_v47 }
 0x136   :  { %v638_v51 = vpack.c.bf16 %v482_v46, %v482_v46  ;;  %562 = vst.msk [vmem:[%s994_s4 + $0x38] sm:$0xf] %vm547_vm3, %v637_v48 }
 0x137   :  { %555 = vst.msk [vmem:[%s994_s4 + $0x1c] sm:$0xf] %vm547_vm3, %v630_v49 }
 0x138   :  { %563 = vst.msk [vmem:[%s994_s4 + $0x3c] sm:$0xf] %vm547_vm3, %v638_v51 }

// kernel: encoder_m_forward.47
= control target key start
LH: loop header
LB: loop body
LE: loop exit
PB: predicated region body
PF: predicated region fallthrough
CT: control target
= control target key end

     0   :  { %s86_s0 = inlined_call_operand.vmem [shape: bf16[9,4,512], index: 0, kind: input, shape index: {}]   ;;  %s87_s1 = inlined_call_operand.vmem [shape: bf16[4,512], index: 1, kind: output, shape index: {}]  }
   0x1   :  { %v8_v0 = vld [vmem:[%s86_s0] sm:$0xff]  ;;  %v38_v1 = vld [vmem:[%s86_s0 + $0x8] sm:$0xff]  ;;  %v39_v2 = vld [vmem:[%s86_s0 + $0x10] sm:$0xff] }
   0x2   :  { %v11_v3 = vmax.bf16 %v38_v1, %v8_v0  ;;  %v40_v4 = vld [vmem:[%s86_s0 + $0x18] sm:$0xff]  ;;  %v41_v6 = vld [vmem:[%s86_s0 + $0x20] sm:$0xff]  ;;  %v42_v8 = vld [vmem:[%s86_s0 + $0x28] sm:$0xff] }
   0x3   :  { %v43_v10 = vld [vmem:[%s86_s0 + $0x30] sm:$0xff]  ;;  %v44_v12 = vld [vmem:[%s86_s0 + $0x38] sm:$0xff]  ;;  %v45_v14 = vld [vmem:[%s86_s0 + $0x40] sm:$0xff] }
   0x4   :  { %v14_v5 = vmax.bf16 %v39_v2, %v11_v3 }
   0x6   :  { %v17_v7 = vmax.bf16 %v40_v4, %v14_v5 }
   0x8   :  { %v20_v9 = vmax.bf16 %v41_v6, %v17_v7 }
   0xa   :  { %v23_v11 = vmax.bf16 %v42_v8, %v20_v9 }
   0xc   :  { %v26_v13 = vmax.bf16 %v43_v10, %v23_v11 }
   0xe   :  { %v29_v15 = vmax.bf16 %v44_v12, %v26_v13 }
  0x10   :  { %v32_v16 = vmax.bf16 %v45_v14, %v29_v15 }
  0x12   :  { %33 = vst [vmem:[%s87_s1] sm:$0xff] %v32_v16 }

// kernel: encoder_m_forward.49
= control target key start
LH: loop header
LB: loop body
LE: loop exit
PB: predicated region body
PF: predicated region fallthrough
CT: control target
= control target key end

     0   :  { %vm22_vm0 = vcmask 523264   ;;  %v242_v1 = vmov 0.0   ;;  %vm190_vm1 = vcmask 519168   ;;  %s314_s1 = inlined_call_operand.vmem [shape: bf16[64,64], index: 1, kind: input, shape index: {}]   ;;  %s315_s0 = inlined_call_operand.vmem [shape: bf16[32,64], index: 0, kind: input, shape index: {}]   ;;  %s316_s2 = inlined_call_operand.vmem [shape: f32[1,64], index: 2, kind: input, shape index: {}]   ;;  %s317_s3 = inlined_call_operand.vmem [shape: f32[1,64], index: 3, kind: input, shape index: {}]   ;;  %s318_s4 = inlined_call_operand.vmem [shape: bf16[32,64], index: 4, kind: output, shape index: {}]  }
   0x1   :  { %v236_v0 = vld [vmem:[%s314_s1] sm:$0xff]   ;;  %25 = vst.msk [vmem:[#allocation2 + $0x10] sm:$0xff] %vm22_vm0, %v242_v1  ;;  %23 = vst.msk [vmem:[#allocation2] sm:$0xff] %vm22_vm0, %v242_v1  ;;  %v237_v2 = vld [vmem:[%s314_s1 + $0x8] sm:$0xff]  }
   0x2   :  { %24 = vst.msk [vmem:[#allocation2 + $0x8] sm:$0xff] %vm22_vm0, %v242_v1  ;;  %26 = vst.msk [vmem:[#allocation2 + $0x18] sm:$0xff] %vm22_vm0, %v242_v1  ;;  %223 = vmatprep.subr.bf16.mxu0 %v236_v0  ;;  %v238_v3 = vld [vmem:[%s314_s1 + $0x10] sm:$0xff]   ;;  %v240_v4 = vld [vmem:[%s315_s0] sm:$0xff]  }
   0x3   :  { %224 = vmatpush3.bf16.msra.mxu0 %v236_v0  ;;  %231 = vmatprep.mubr.msk.bf16.mxu0 %vm22_vm0, %v240_v4  ;;  %v239_v5 = vld [vmem:[%s314_s1 + $0x18] sm:$0xff]   ;;  %v241_v6 = vld [vmem:[%s315_s0 + $0x8] sm:$0xff]   ;;  %v207_v19 = vld [vmem:[%s316_s2] ss:$0 sm:$0xff] }
   0x4   :  { %225 = vmatprep.subr.bf16.mxu0 %v237_v2  ;;  %v208_v21 = vld [vmem:[%s317_s3] ss:$0 sm:$0xff] }
   0x7   :  { %226 = vmatpush3.bf16.msra.mxu0 %v237_v2 }
   0x8   :  { %227 = vmatprep.subr.bf16.mxu0 %v238_v3  ;;  %v29_v7 = vld [vmem:[#allocation2 + $0x10] sm:$0xff]  ;;  %v27_v8 = vld [vmem:[#allocation2] sm:$0xff] }
   0x9   :  { %v30_v10 = vld [vmem:[#allocation2 + $0x18] sm:$0xff]  ;;  %v28_v13 = vld [vmem:[#allocation2 + $0x8] sm:$0xff] }
   0xb   :  { %228 = vmatpush3.bf16.msra.mxu0 %v238_v3 }
   0xc   :  { %229 = vmatprep.subr.bf16.mxu0 %v239_v5 }
   0xf   :  { %230 = vmatpush3.bf16.msra.mxu0 %v239_v5 }
  0x12   :  { %232 = vmatmul.mubr.msk.bf16.vlgmr.msra.gmra.mrb[0].mxu0 %vm22_vm0, %v241_v6 }
  0xe5   :  { %v233_v9 = vpop.f32.mrb[0].mxu0 }
  0xe6   :  { %v135_v11 = vadd.f32 %v233_v9, %v29_v7  ;;  %v118_v12 = vpop.f32.mrb[1].mxu0 }
  0xe7   :  { %v133_v14 = vadd.f32 %v118_v12, %v27_v8  ;;  %v234_v15 = vpop.f32.mrb[2].mxu0 }
  0xe8   :  { %139 = vst.msk [vmem:[#allocation2 + $0x10] sm:$0xff] %vm22_vm0, %v135_v11  ;;  %v136_v16 = vadd.f32 %v234_v15, %v30_v10  ;;  %v121_v17 = vpop.f32.mrb[3].mxu0 }
  0xe9   :  { %137 = vst.msk [vmem:[#allocation2] sm:$0xff] %vm22_vm0, %v133_v14  ;;  %v134_v18 = vadd.f32 %v121_v17, %v28_v13 }
  0xea   :  { %140 = vst.msk [vmem:[#allocation2 + $0x18] sm:$0xff] %vm22_vm0, %v136_v16 }
  0xeb   :  { %138 = vst.msk [vmem:[#allocation2 + $0x8] sm:$0xff] %vm22_vm0, %v134_v18 }
  0xef   :  { %v146_v20 = vld [vmem:[#allocation2 + $0x10] sm:$0xff] }
  0xf0   :  { %v157_v22 = vmul.f32 %v207_v19, %v146_v20  ;;  %v144_v23 = vld [vmem:[#allocation2] sm:$0xff] }
  0xf1   :  { %v155_v24 = vmul.f32 %v207_v19, %v144_v23  ;;  %v147_v25 = vld [vmem:[#allocation2 + $0x18] sm:$0xff] }
  0xf2   :  { %v168_v26 = vadd.f32 %v208_v21, %v157_v22  ;;  %v158_v27 = vmul.f32 %v207_v19, %v147_v25  ;;  %v145_v28 = vld [vmem:[#allocation2 + $0x8] sm:$0xff] }
  0xf3   :  { %v166_v29 = vadd.f32 %v208_v21, %v155_v24  ;;  %v156_v30 = vmul.f32 %v207_v19, %v145_v28 }
  0xf4   :  { %v172_v31 = vmax.f32 %v168_v26, 0.0  ;;  %v169_v32 = vadd.f32 %v208_v21, %v158_v27 }
  0xf5   :  { %v170_v33 = vmax.f32 %v166_v29, 0.0  ;;  %v167_v34 = vadd.f32 %v208_v21, %v156_v30 }
  0xf6   :  { %v215_v35 = vpack.c.bf16 %v172_v31, %v172_v31  ;;  %v173_v36 = vmax.f32 %v169_v32, 0.0 }
  0xf7   :  { %v213_v37 = vpack.c.bf16 %v170_v33, %v170_v33  ;;  %v171_v38 = vmax.f32 %v167_v34, 0.0 }
  0xf8   :  { %193 = vst.msk [vmem:[%s318_s4 + $0x8] sm:$0xf] %vm190_vm1, %v215_v35  ;;  %v216_v39 = vpack.c.bf16 %v173_v36, %v173_v36 }
  0xf9   :  { %191 = vst.msk [vmem:[%s318_s4] sm:$0xf] %vm190_vm1, %v213_v37  ;;  %v214_v40 = vpack.c.bf16 %v171_v38, %v171_v38 }
  0xfa   :  { %194 = vst.msk [vmem:[%s318_s4 + $0xc] sm:$0xf] %vm190_vm1, %v216_v39 }
  0xfb   :  { %192 = vst.msk [vmem:[%s318_s4 + $0x4] sm:$0xf] %vm190_vm1, %v214_v40 }

// kernel: encoder_m_forward.48
= control target key start
LH: loop header
LB: loop body
LE: loop exit
PB: predicated region body
PF: predicated region fallthrough
CT: control target
= control target key end

     0   :  { %v302_v1 = vmov 0   ;;  %vm100_vm0 = vcmask 523264   ;;  %v189_v11 = vlaneseq  ;;  %s376_s1 = inlined_call_operand.vmem [shape: bf16[64,256], index: 1, kind: input, shape index: {}]   ;;  %s377_s0 = inlined_call_operand.vmem [shape: bf16[32,64], index: 0, kind: input, shape index: {}]   ;;  %s378_s2 = inlined_call_operand.vmem [shape: f32[1,256], index: 2, kind: input, shape index: {}]   ;;  %s379_s3 = inlined_call_operand.vmem [shape: f32[1,256], index: 3, kind: input, shape index: {}]   ;;  %s380_s4 = inlined_call_operand.vmem [shape: bf16[32,256], index: 4, kind: output, shape index: {}]  }
   0x1   :  { %v288_v0 = vld [vmem:[%s376_s1 + $0x4] ss:$8 sps:$4 sm:$0xff]   ;;  %139 = vmatprep.mubr.bf16.mxu0 %v302_v1  ;;  %149 = vmatprep.mubr.bf16.mxu1 %v302_v1  ;;  %v290_v2 = vld [vmem:[%s376_s1] ss:$8 sps:$4 sm:$0xff]   ;;  %v291_v3 = vld [vmem:[%s376_s1 + $0x14] ss:$8 sps:$4 sm:$0xff]  }
   0x2   :  { %107 = vmatprep.subr.bf16.mxu0 %v288_v0  ;;  %279 = vmatprep.subr.bf16.mxu1 %v288_v0  ;;  %v293_v4 = vld [vmem:[%s376_s1 + $0x10] ss:$8 sps:$4 sm:$0xff]   ;;  %v294_v5 = vld [vmem:[%s376_s1 + $0x24] ss:$8 sps:$4 sm:$0xff]   ;;  %v296_v6 = vld [vmem:[%s376_s1 + $0x20] ss:$8 sps:$4 sm:$0xff]  }
   0x3   :  { %108 = vmatpush1.bf16.msra.mxu0 %v290_v2  ;;  %283 = vmatpush1.bf16.msra.mxu1 %v290_v2  ;;  %v297_v7 = vld [vmem:[%s376_s1 + $0x34] ss:$8 sps:$4 sm:$0xff]   ;;  %v299_v8 = vld [vmem:[%s376_s1 + $0x30] ss:$8 sps:$4 sm:$0xff]   ;;  %v300_v9 = vld [vmem:[%s377_s0] sm:$0xff]   ;;  %v190_v12 = vshrl.u32 %v189_v11, 7 }
   0x4   :  { %109 = vmatprep.subr.bf16.mxu0 %v291_v3  ;;  %280 = vmatprep.subr.bf16.mxu1 %v291_v3  ;;  %v301_v10 = vld [vmem:[%s377_s0 + $0x8] sm:$0xff]   ;;  %v187_v14 = vld [vmem:[%s378_s2] sm:$0x3] }
   0x5   :  { %v191_v13 = vsub.s32 0, %v190_v12  ;;  %v195_v15 = vsub.s32 1, %v190_v12  ;;  %v207_v16 = vld [vmem:[%s379_s3] sm:$0x3] }
   0x7   :  { %110 = vmatpush1.bf16.msra.mxu0 %v293_v4  ;;  %284 = vmatpush1.bf16.msra.mxu1 %v293_v4  ;;  %v192_v17 = vrot.slane %v187_v14, %v191_v13  ;;  %v196_v18 = vrot.slane %v187_v14, %v195_v15  ;;  %v212_v19 = vrot.slane %v207_v16, %v191_v13 }
   0x8   :  { %111 = vmatprep.subr.bf16.mxu0 %v294_v5  ;;  %281 = vmatprep.subr.bf16.mxu1 %v294_v5  ;;  %v216_v22 = vrot.slane %v207_v16, %v195_v15 }
   0xb   :  { %112 = vmatpush1.bf16.msra.mxu0 %v296_v6  ;;  %285 = vmatpush1.bf16.msra.mxu1 %v296_v6 }
   0xc   :  { %113 = vmatprep.subr.bf16.mxu0 %v297_v7  ;;  %282 = vmatprep.subr.bf16.mxu1 %v297_v7 }
   0xf   :  { %114 = vmatpush1.bf16.msra.mxu0 %v299_v8  ;;  %286 = vmatpush1.bf16.msra.mxu1 %v299_v8 }
  0x12   :  { %269 = vmatmul.mubr.msk.bf16.vlgmr.msra.gmra.mrb[0].mxu0 %vm100_vm0, %v300_v9  ;;  %270 = vmatmul.mubr.msk.bf16.vlgmr.msra.gmra.mrb[0].mxu1 %vm100_vm0, %v301_v10 }
  0xe5   :  { %v141_v20 = vpop.f32.mrb[0].mxu0  ;;  %v151_v21 = vpop.f32.mrb[0].mxu1 }
  0xe6   :  { %v199_v23 = vmul.f32 %v192_v17, %v141_v20  ;;  %v203_v24 = vmul.f32 %v192_v17, %v151_v21  ;;  %v143_v25 = vpop.f32.mrb[1].mxu0  ;;  %v153_v26 = vpop.f32.mrb[1].mxu1 }
  0xe7   :  { %v200_v27 = vmul.f32 %v196_v18, %v143_v25  ;;  %v204_v28 = vmul.f32 %v196_v18, %v153_v26  ;;  %v145_v29 = vpop.f32.mrb[2].mxu0  ;;  %v155_v30 = vpop.f32.mrb[2].mxu1 }
  0xe8   :  { %v219_v31 = vadd.f32 %v212_v19, %v199_v23  ;;  %v223_v32 = vadd.f32 %v212_v19, %v203_v24  ;;  %v201_v33 = vmul.f32 %v192_v17, %v145_v29  ;;  %v205_v34 = vmul.f32 %v192_v17, %v155_v30  ;;  %v147_v35 = vpop.f32.mrb[3].mxu0  ;;  %v157_v36 = vpop.f32.mrb[3].mxu1 }
  0xe9   :  { %v220_v37 = vadd.f32 %v216_v22, %v200_v27  ;;  %v224_v38 = vadd.f32 %v216_v22, %v204_v28  ;;  %v202_v39 = vmul.f32 %v196_v18, %v147_v35  ;;  %v206_v40 = vmul.f32 %v196_v18, %v157_v36 }
  0xea   :  { %v221_v41 = vadd.f32 %v212_v19, %v201_v33  ;;  %v225_v42 = vadd.f32 %v212_v19, %v205_v34 }
  0xeb   :  { %v275_v43 = vpack.c.bf16 %v220_v37, %v219_v31  ;;  %v277_v44 = vpack.c.bf16 %v224_v38, %v223_v32  ;;  %v222_v45 = vadd.f32 %v216_v22, %v202_v39  ;;  %v226_v46 = vadd.f32 %v216_v22, %v206_v40 }
  0xed   :  { %251 = vst [vmem:[%s380_s4] sm:$0xff] %v275_v43  ;;  %253 = vst [vmem:[%s380_s4 + $0x10] sm:$0xff] %v277_v44  ;;  %v276_v47 = vpack.c.bf16 %v222_v45, %v221_v41  ;;  %v278_v48 = vpack.c.bf16 %v226_v46, %v225_v42 }
  0xef   :  { %252 = vst [vmem:[%s380_s4 + $0x8] sm:$0xff] %v276_v47  ;;  %254 = vst [vmem:[%s380_s4 + $0x18] sm:$0xff] %v278_v48 }

// kernel: encoder_m_forward.50
= control target key start
LH: loop header
LB: loop body
LE: loop exit
PB: predicated region body
PF: predicated region fallthrough
CT: control target
= control target key end

     0   :  { %vm22_vm0 = vcmask 523264   ;;  %v784_v46 = vmov 0.0   ;;  %vm592_vm1 = vcmask 519168   ;;  %s976_s1 = inlined_call_operand.vmem [shape: bf16[576,64], index: 1, kind: input, shape index: {}]   ;;  %s977_s0 = inlined_call_operand.vmem [shape: bf16[32,576], index: 0, kind: input, shape index: {}]   ;;  %s978_s2 = inlined_call_operand.vmem [shape: f32[1,64], index: 2, kind: input, shape index: {}]   ;;  %s979_s3 = inlined_call_operand.vmem [shape: f32[1,64], index: 3, kind: input, shape index: {}]   ;;  %s980_s4 = inlined_call_operand.vmem [shape: bf16[32,64], index: 4, kind: output, shape index: {}]  }
   0x1   :  { %v734_v0 = vld [vmem:[%s976_s1 + $0x40] sm:$0xff]   ;;  %v738_v4 = vld [vmem:[%s976_s1 + $0x48] sm:$0xff]   ;;  %v742_v8 = vld [vmem:[%s976_s1 + $0x50] sm:$0xff]   ;;  %25 = vst.msk [vmem:[#allocation2 + $0x10] sm:$0xff] %vm22_vm0, %v784_v46 }
   0x2   :  { %v735_v1 = vld [vmem:[%s976_s1 + $0xc0] sm:$0xff]   ;;  %659 = vmatprep.subr.bf16.mxu0 %v734_v0  ;;  %v739_v5 = vld [vmem:[%s976_s1 + $0xc8] sm:$0xff]   ;;  %v743_v9 = vld [vmem:[%s976_s1 + $0xd0] sm:$0xff]   ;;  %23 = vst.msk [vmem:[#allocation2] sm:$0xff] %vm22_vm0, %v784_v46 }
   0x3   :  { %v736_v2 = vld [vmem:[%s976_s1] sm:$0xff]   ;;  %687 = vmatprep.subr.bf16.mxu1 %v735_v1  ;;  %v740_v6 = vld [vmem:[%s976_s1 + $0x8] sm:$0xff]   ;;  %v744_v10 = vld [vmem:[%s976_s1 + $0x10] sm:$0xff]   ;;  %24 = vst.msk [vmem:[#allocation2 + $0x8] sm:$0xff] %vm22_vm0, %v784_v46 }
   0x4   :  { %v737_v3 = vld [vmem:[%s976_s1 + $0x80] sm:$0xff]   ;;  %660 = vmatpush3.bf16.msra.mxu0 %v736_v2  ;;  %v741_v7 = vld [vmem:[%s976_s1 + $0x88] sm:$0xff]   ;;  %v745_v11 = vld [vmem:[%s976_s1 + $0x90] sm:$0xff]   ;;  %26 = vst.msk [vmem:[#allocation2 + $0x18] sm:$0xff] %vm22_vm0, %v784_v46 }
   0x5   :  { %688 = vmatpush3.bf16.msra.mxu1 %v737_v3  ;;  %661 = vmatprep.subr.bf16.mxu0 %v738_v4  ;;  %v746_v12 = vld [vmem:[%s976_s1 + $0x58] sm:$0xff]   ;;  %v750_v16 = vld [vmem:[%s976_s1 + $0x60] sm:$0xff]   ;;  %v754_v20 = vld [vmem:[%s976_s1 + $0x68] sm:$0xff]  }
   0x6   :  { %689 = vmatprep.subr.bf16.mxu1 %v739_v5  ;;  %v747_v13 = vld [vmem:[%s976_s1 + $0xd8] sm:$0xff]   ;;  %v751_v17 = vld [vmem:[%s976_s1 + $0xe0] sm:$0xff]   ;;  %v755_v21 = vld [vmem:[%s976_s1 + $0xe8] sm:$0xff]  }
   0x7   :  { %v748_v14 = vld [vmem:[%s976_s1 + $0x18] sm:$0xff]   ;;  %v752_v18 = vld [vmem:[%s976_s1 + $0x20] sm:$0xff]   ;;  %v756_v22 = vld [vmem:[%s976_s1 + $0x28] sm:$0xff]  }
   0x8   :  { %662 = vmatpush3.bf16.msra.mxu0 %v740_v6  ;;  %v749_v15 = vld [vmem:[%s976_s1 + $0x98] sm:$0xff]   ;;  %v753_v19 = vld [vmem:[%s976_s1 + $0xa0] sm:$0xff]   ;;  %v757_v23 = vld [vmem:[%s976_s1 + $0xa8] sm:$0xff]  }
   0x9   :  { %690 = vmatpush3.bf16.msra.mxu1 %v741_v7  ;;  %663 = vmatprep.subr.bf16.mxu0 %v742_v8  ;;  %v758_v24 = vld [vmem:[%s976_s1 + $0x70] sm:$0xff]   ;;  %v762_v28 = vld [vmem:[%s976_s1 + $0x78] sm:$0xff]   ;;  %v771_v35 = vld [vmem:[%s977_s0 + $0xc] ss:$20 sps:$4 sm:$0xff]  }
   0xa   :  { %691 = vmatprep.subr.bf16.mxu1 %v743_v9  ;;  %v759_v25 = vld [vmem:[%s976_s1 + $0xf0] sm:$0xff]   ;;  %v763_v29 = vld [vmem:[%s976_s1 + $0xf8] sm:$0xff]   ;;  %v772_v36 = vld [vmem:[%s976_s1 + $0x100] sm:$0xff]   ;;  %469 = vmatprep.mubr.bf16.mxu1 %v771_v35 }
   0xb   :  { %v760_v26 = vld [vmem:[%s976_s1 + $0x30] sm:$0xff]   ;;  %v764_v30 = vld [vmem:[%s976_s1 + $0x38] sm:$0xff]   ;;  %v773_v37 = vld [vmem:[%s976_s1 + $0x108] sm:$0xff]  }
   0xc   :  { %664 = vmatpush3.bf16.msra.mxu0 %v744_v10  ;;  %v761_v27 = vld [vmem:[%s976_s1 + $0xb0] sm:$0xff]   ;;  %v765_v31 = vld [vmem:[%s976_s1 + $0xb8] sm:$0xff]   ;;  %v774_v38 = vld [vmem:[%s977_s0 + $0x2c] ss:$20 sps:$4 sm:$0xff]  }
   0xd   :  { %692 = vmatpush3.bf16.msra.mxu1 %v745_v11  ;;  %665 = vmatprep.subr.bf16.mxu0 %v746_v12  ;;  %v766_v32 = vld [vmem:[%s977_s0] ss:$20 sps:$4 sm:$0xff]   ;;  %v768_v33 = vld [vmem:[%s977_s0 + $0x4] ss:$20 sps:$4 sm:$0xff]   ;;  %v769_v34 = vld [vmem:[%s977_s0 + $0x8] ss:$20 sps:$4 sm:$0xff]  }
   0xe   :  { %693 = vmatprep.subr.bf16.mxu1 %v747_v13  ;;  %420 = vmatprep.mubr.bf16.mxu0 %v768_v33  ;;  %v776_v39 = vld [vmem:[%s977_s0 + $0x34] ss:$20 sps:$4 sm:$0xff]   ;;  %v779_v42 = vld [vmem:[%s977_s0 + $0x30] ss:$20 sps:$4 sm:$0xff]   ;;  %v781_v44 = vld [vmem:[%s976_s1 + $0x118] sm:$0xff]  }
   0xf   :  { %v778_v40 = vld [vmem:[%s977_s0 + $0x28] ss:$20 sps:$4 sm:$0xff]   ;;  %v780_v41 = vld [vmem:[%s976_s1 + $0x110] sm:$0xff]   ;;  %v783_v45 = vld [vmem:[%s977_s0 + $0x38] ss:$20 sps:$4 sm:$0xff]  }
  0x10   :  { %666 = vmatpush3.bf16.msra.mxu0 %v748_v14  ;;  %v782_v43 = vld [vmem:[%s977_s0 + $0x10] ss:$20 sps:$4 sm:$0xff]  }
  0x11   :  { %694 = vmatpush3.bf16.msra.mxu1 %v749_v15  ;;  %667 = vmatprep.subr.bf16.mxu0 %v750_v16  ;;  %v29_v11 = vld [vmem:[#allocation2 + $0x10] sm:$0xff]  ;;  %v27_v14 = vld [vmem:[#allocation2] sm:$0xff] }
  0x12   :  { %695 = vmatprep.subr.bf16.mxu1 %v751_v17  ;;  %v30_v17 = vld [vmem:[#allocation2 + $0x18] sm:$0xff] }
  0x14   :  { %668 = vmatpush3.bf16.msra.mxu0 %v752_v18 }
  0x15   :  { %696 = vmatpush3.bf16.msra.mxu1 %v753_v19  ;;  %669 = vmatprep.subr.bf16.mxu0 %v754_v20 }
  0x16   :  { %697 = vmatprep.subr.bf16.mxu1 %v755_v21  ;;  %v28_v21 = vld [vmem:[#allocation2 + $0x8] sm:$0xff] }
  0x18   :  { %670 = vmatpush3.bf16.msra.mxu0 %v756_v22 }
  0x19   :  { %698 = vmatpush3.bf16.msra.mxu1 %v757_v23  ;;  %671 = vmatprep.subr.bf16.mxu0 %v758_v24 }
  0x1a   :  { %699 = vmatprep.subr.bf16.mxu1 %v759_v25 }
  0x1c   :  { %672 = vmatpush3.bf16.msra.mxu0 %v760_v26 }
  0x1d   :  { %700 = vmatpush3.bf16.msra.mxu1 %v761_v27  ;;  %673 = vmatprep.subr.bf16.mxu0 %v762_v28  ;;  %v649_v27 = vld [vmem:[%s978_s2] ss:$0 sm:$0xff] }
  0x1e   :  { %701 = vmatprep.subr.bf16.mxu1 %v763_v29  ;;  %v650_v29 = vld [vmem:[%s979_s3] ss:$0 sm:$0xff] }
  0x20   :  { %674 = vmatpush3.bf16.msra.mxu0 %v764_v30 }
  0x21   :  { %702 = vmatpush3.bf16.msra.mxu1 %v765_v31  ;;  %721 = vmatprep.subr.bf16.mxu0 %v772_v36 }
  0x23   :  { %421 = vmatmul.mubr.bf16.vlgmr.msra.gmra.mrb[0].mxu0 %v766_v32 }
  0x24   :  { %470 = vmatmul.mubr.bf16.vlgmr.msra.gmra.mrb[0].mxu1 %v769_v34  ;;  %722 = vmatpush3.bf16.msra.mxu0 %v772_v36 }
  0x25   :  { %723 = vmatprep.subr.bf16.mxu0 %v773_v37  ;;  %428 = vmatprep.mubr.bf16.mxu0 %v774_v38 }
  0x26   :  { %477 = vmatprep.mubr.bf16.mxu1 %v776_v39 }
  0x28   :  { %724 = vmatpush3.bf16.msra.mxu0 %v773_v37 }
  0x29   :  { %725 = vmatprep.subr.bf16.mxu0 %v780_v41 }
  0x2b   :  { %429 = vmatmul.mubr.bf16.gmra.mrb[4].mxu0 %v778_v40 }
  0x2c   :  { %478 = vmatmul.mubr.bf16.gmra.mrb[4].mxu1 %v779_v42  ;;  %729 = vmatprep.mubr.msk.bf16.mxu0 %vm22_vm0, %v782_v43 }
  0x2d   :  { %726 = vmatpush3.bf16.msra.mxu0 %v780_v41 }
  0x2e   :  { %727 = vmatprep.subr.bf16.mxu0 %v781_v44 }
  0x31   :  { %728 = vmatpush3.bf16.msra.mxu0 %v781_v44 }
  0x34   :  { %730 = vmatmul.mubr.msk.bf16.vlgmr.msra.gmra.mrb[8].mxu0 %vm22_vm0, %v783_v45 }
  0xf6   :  { %v675_v47 = vpop.f32.mrb[0].mxu0 }
  0xf7   :  { %v703_v48 = vpop.f32.mrb[0].mxu1  ;;  %v676_v49 = vpop.f32.mrb[1].mxu0 }
  0xf8   :  { %v677_v50 = vadd.f32 %v676_v49, %v675_v47  ;;  %v704_v51 = vpop.f32.mrb[1].mxu1  ;;  %v678_v52 = vpop.f32.mrb[2].mxu0 }
  0xf9   :  { %v705_v53 = vadd.f32 %v704_v51, %v703_v48  ;;  %v706_v54 = vpop.f32.mrb[2].mxu1  ;;  %v679_v55 = vpop.f32.mrb[3].mxu0 }
  0xfa   :  { %v680_v56 = vadd.f32 %v679_v55, %v678_v52  ;;  %v707_v57 = vpop.f32.mrb[3].mxu1 }
  0xfb   :  { %v708_v58 = vadd.f32 %v707_v57, %v706_v54  ;;  %v472_v59 = vadd.f32 %v705_v53, %v677_v50 }
  0xfd   :  { %v475_v60 = vadd.f32 %v708_v58, %v680_v56 }
  0xfe   :  { %v681_v61 = vpop.f32.mrb[4].mxu0 }
  0xff   :  { %v709_v62 = vpop.f32.mrb[4].mxu1  ;;  %v682_v63 = vpop.f32.mrb[5].mxu0 }
 0x100   :  { %v683_v0 = vadd.f32 %v682_v63, %v681_v61  ;;  %v710_v1 = vpop.f32.mrb[5].mxu1  ;;  %v684_v2 = vpop.f32.mrb[6].mxu0 }
 0x101   :  { %v711_v3 = vadd.f32 %v710_v1, %v709_v62  ;;  %v712_v4 = vpop.f32.mrb[6].mxu1  ;;  %v685_v5 = vpop.f32.mrb[7].mxu0 }
 0x102   :  { %v686_v6 = vadd.f32 %v685_v5, %v684_v2  ;;  %v713_v7 = vpop.f32.mrb[7].mxu1 }
 0x103   :  { %v714_v8 = vadd.f32 %v713_v7, %v712_v4  ;;  %v480_v9 = vadd.f32 %v711_v3, %v683_v0 }
 0x105   :  { %v483_v10 = vadd.f32 %v714_v8, %v686_v6 }
 0x107   :  { %v731_v12 = vpop.f32.mrb[8].mxu0 }
 0x108   :  { %v529_v13 = vadd.f32 %v731_v12, %v480_v9  ;;  %v520_v15 = vpop.f32.mrb[9].mxu0 }
 0x109   :  { %v521_v16 = vadd.f32 %v520_v15, %v472_v59  ;;  %v732_v18 = vpop.f32.mrb[10].mxu0 }
 0x10a   :  { %v537_v19 = vadd.f32 %v529_v13, %v29_v11  ;;  %v532_v20 = vadd.f32 %v732_v18, %v483_v10  ;;  %v523_v22 = vpop.f32.mrb[11].mxu0 }
 0x10b   :  { %v535_v23 = vadd.f32 %v521_v16, %v27_v14  ;;  %v524_v24 = vadd.f32 %v523_v22, %v475_v60 }
 0x10c   :  { %541 = vst.msk [vmem:[#allocation2 + $0x10] sm:$0xff] %vm22_vm0, %v537_v19  ;;  %v538_v25 = vadd.f32 %v532_v20, %v30_v17 }
 0x10d   :  { %539 = vst.msk [vmem:[#allocation2] sm:$0xff] %vm22_vm0, %v535_v23  ;;  %v536_v26 = vadd.f32 %v524_v24, %v28_v21 }
 0x10e   :  { %542 = vst.msk [vmem:[#allocation2 + $0x18] sm:$0xff] %vm22_vm0, %v538_v25 }
 0x10f   :  { %540 = vst.msk [vmem:[#allocation2 + $0x8] sm:$0xff] %vm22_vm0, %v536_v26 }
 0x113   :  { %v548_v28 = vld [vmem:[#allocation2 + $0x10] sm:$0xff] }
 0x114   :  { %v559_v30 = vmul.f32 %v649_v27, %v548_v28  ;;  %v546_v31 = vld [vmem:[#allocation2] sm:$0xff] }
 0x115   :  { %v557_v32 = vmul.f32 %v649_v27, %v546_v31  ;;  %v549_v33 = vld [vmem:[#allocation2 + $0x18] sm:$0xff] }
 0x116   :  { %v570_v34 = vadd.f32 %v650_v29, %v559_v30  ;;  %v560_v35 = vmul.f32 %v649_v27, %v549_v33  ;;  %v547_v36 = vld [vmem:[#allocation2 + $0x8] sm:$0xff] }
 0x117   :  { %v568_v37 = vadd.f32 %v650_v29, %v557_v32  ;;  %v558_v38 = vmul.f32 %v649_v27, %v547_v36 }
 0x118   :  { %v574_v39 = vmax.f32 %v570_v34, 0.0  ;;  %v571_v40 = vadd.f32 %v650_v29, %v560_v35 }
 0x119   :  { %v572_v41 = vmax.f32 %v568_v37, 0.0  ;;  %v569_v42 = vadd.f32 %v650_v29, %v558_v38 }
 0x11a   :  { %v657_v43 = vpack.c.bf16 %v574_v39, %v574_v39  ;;  %v575_v44 = vmax.f32 %v571_v40, 0.0 }
 0x11b   :  { %v655_v45 = vpack.c.bf16 %v572_v41, %v572_v41  ;;  %v573_v46 = vmax.f32 %v569_v42, 0.0 }
 0x11c   :  { %595 = vst.msk [vmem:[%s980_s4 + $0x8] sm:$0xf] %vm592_vm1, %v657_v43  ;;  %v658_v47 = vpack.c.bf16 %v575_v44, %v575_v44 }
 0x11d   :  { %593 = vst.msk [vmem:[%s980_s4] sm:$0xf] %vm592_vm1, %v655_v45  ;;  %v656_v48 = vpack.c.bf16 %v573_v46, %v573_v46 }
 0x11e   :  { %596 = vst.msk [vmem:[%s980_s4 + $0xc] sm:$0xf] %vm592_vm1, %v658_v47 }
 0x11f   :  { %594 = vst.msk [vmem:[%s980_s4 + $0x4] sm:$0xf] %vm592_vm1, %v656_v48 }

// kernel: encoder_m_forward.51
= control target key start
LH: loop header
LB: loop body
LE: loop exit
PB: predicated region body
PF: predicated region fallthrough
CT: control target
= control target key end

     0   :  { %v333_v1 = vmov 0   ;;  %vm103_vm0 = vcmask 523264   ;;  %v192_v11 = vlaneseq  ;;  %s424_s1 = inlined_call_operand.vmem [shape: bf16[64,256], index: 1, kind: input, shape index: {}]   ;;  %s425_s0 = inlined_call_operand.vmem [shape: bf16[32,64], index: 0, kind: input, shape index: {}]   ;;  %s426_s2 = inlined_call_operand.vmem [shape: f32[1,256], index: 2, kind: input, shape index: {}]   ;;  %s427_s3 = inlined_call_operand.vmem [shape: f32[1,256], index: 3, kind: input, shape index: {}]   ;;  %s428_s4 = inlined_call_operand.vmem [shape: bf16[32,256], index: 4, kind: input, shape index: {}]   ;;  %s429_s5 = inlined_call_operand.vmem [shape: bf16[32,256], index: 5, kind: output, shape index: {}]  }
   0x1   :  { %v319_v0 = vld [vmem:[%s424_s1 + $0x4] ss:$8 sps:$4 sm:$0xff]   ;;  %142 = vmatprep.mubr.bf16.mxu0 %v333_v1  ;;  %152 = vmatprep.mubr.bf16.mxu1 %v333_v1  ;;  %v321_v2 = vld [vmem:[%s424_s1] ss:$8 sps:$4 sm:$0xff]   ;;  %v322_v3 = vld [vmem:[%s424_s1 + $0x14] ss:$8 sps:$4 sm:$0xff]  }
   0x2   :  { %110 = vmatprep.subr.bf16.mxu0 %v319_v0  ;;  %310 = vmatprep.subr.bf16.mxu1 %v319_v0  ;;  %v324_v4 = vld [vmem:[%s424_s1 + $0x10] ss:$8 sps:$4 sm:$0xff]   ;;  %v325_v5 = vld [vmem:[%s424_s1 + $0x24] ss:$8 sps:$4 sm:$0xff]   ;;  %v327_v6 = vld [vmem:[%s424_s1 + $0x20] ss:$8 sps:$4 sm:$0xff]  }
   0x3   :  { %111 = vmatpush1.bf16.msra.mxu0 %v321_v2  ;;  %314 = vmatpush1.bf16.msra.mxu1 %v321_v2  ;;  %v328_v7 = vld [vmem:[%s424_s1 + $0x34] ss:$8 sps:$4 sm:$0xff]   ;;  %v330_v8 = vld [vmem:[%s424_s1 + $0x30] ss:$8 sps:$4 sm:$0xff]   ;;  %v331_v9 = vld [vmem:[%s425_s0] sm:$0xff]   ;;  %v193_v12 = vshrl.u32 %v192_v11, 7 }
   0x4   :  { %112 = vmatprep.subr.bf16.mxu0 %v322_v3  ;;  %311 = vmatprep.subr.bf16.mxu1 %v322_v3  ;;  %v332_v10 = vld [vmem:[%s425_s0 + $0x8] sm:$0xff]   ;;  %v190_v14 = vld [vmem:[%s426_s2] sm:$0x3]  ;;  %v232_v19 = vld [vmem:[%s428_s4 + $0x10] sm:$0xff] }
   0x5   :  { %v194_v13 = vsub.s32 0, %v193_v12  ;;  %v198_v15 = vsub.s32 1, %v193_v12  ;;  %v210_v16 = vld [vmem:[%s427_s3] sm:$0x3]  ;;  %v231_v21 = vld [vmem:[%s428_s4 + $0x8] sm:$0xff]  ;;  %v233_v22 = vld [vmem:[%s428_s4 + $0x18] sm:$0xff]  ;;  %v238_v28 = vunpack.c.l.bf16 %v232_v19  ;;  %v239_v30 = vunpack.c.h.bf16 %v232_v19 }
   0x6   :  { %v230_v18 = vld [vmem:[%s428_s4] sm:$0xff]  ;;  %v236_v35 = vunpack.c.l.bf16 %v231_v21  ;;  %v240_v36 = vunpack.c.l.bf16 %v233_v22  ;;  %v237_v41 = vunpack.c.h.bf16 %v231_v21  ;;  %v241_v42 = vunpack.c.h.bf16 %v233_v22 }
   0x7   :  { %113 = vmatpush1.bf16.msra.mxu0 %v324_v4  ;;  %315 = vmatpush1.bf16.msra.mxu1 %v324_v4  ;;  %v195_v17 = vrot.slane %v190_v14, %v194_v13  ;;  %v199_v20 = vrot.slane %v190_v14, %v198_v15  ;;  %v215_v23 = vrot.slane %v210_v16, %v194_v13  ;;  %v234_v26 = vunpack.c.l.bf16 %v230_v18 }
   0x8   :  { %114 = vmatprep.subr.bf16.mxu0 %v325_v5  ;;  %312 = vmatprep.subr.bf16.mxu1 %v325_v5  ;;  %v219_v24 = vrot.slane %v210_v16, %v198_v15  ;;  %v235_v29 = vunpack.c.h.bf16 %v230_v18 }
   0xb   :  { %115 = vmatpush1.bf16.msra.mxu0 %v327_v6  ;;  %316 = vmatpush1.bf16.msra.mxu1 %v327_v6 }
   0xc   :  { %116 = vmatprep.subr.bf16.mxu0 %v328_v7  ;;  %313 = vmatprep.subr.bf16.mxu1 %v328_v7 }
   0xf   :  { %117 = vmatpush1.bf16.msra.mxu0 %v330_v8  ;;  %317 = vmatpush1.bf16.msra.mxu1 %v330_v8 }
  0x12   :  { %300 = vmatmul.mubr.msk.bf16.vlgmr.msra.gmra.mrb[0].mxu0 %vm103_vm0, %v331_v9  ;;  %301 = vmatmul.mubr.msk.bf16.vlgmr.msra.gmra.mrb[0].mxu1 %vm103_vm0, %v332_v10 }
  0xe5   :  { %v144_v25 = vpop.f32.mrb[0].mxu0  ;;  %v154_v27 = vpop.f32.mrb[0].mxu1 }
  0xe6   :  { %v202_v31 = vmul.f32 %v195_v17, %v144_v25  ;;  %v206_v32 = vmul.f32 %v195_v17, %v154_v27  ;;  %v146_v33 = vpop.f32.mrb[1].mxu0  ;;  %v156_v34 = vpop.f32.mrb[1].mxu1 }
  0xe7   :  { %v203_v37 = vmul.f32 %v199_v20, %v146_v33  ;;  %v207_v38 = vmul.f32 %v199_v20, %v156_v34  ;;  %v148_v39 = vpop.f32.mrb[2].mxu0  ;;  %v158_v40 = vpop.f32.mrb[2].mxu1 }
  0xe8   :  { %v222_v43 = vadd.f32 %v215_v23, %v202_v31  ;;  %v226_v44 = vadd.f32 %v215_v23, %v206_v32  ;;  %v204_v45 = vmul.f32 %v195_v17, %v148_v39  ;;  %v208_v46 = vmul.f32 %v195_v17, %v158_v40  ;;  %v150_v47 = vpop.f32.mrb[3].mxu0  ;;  %v160_v48 = vpop.f32.mrb[3].mxu1 }
  0xe9   :  { %v223_v49 = vadd.f32 %v219_v24, %v203_v37  ;;  %v227_v50 = vadd.f32 %v219_v24, %v207_v38  ;;  %v205_v51 = vmul.f32 %v199_v20, %v150_v47  ;;  %v209_v52 = vmul.f32 %v199_v20, %v160_v48 }
  0xea   :  { %v242_v53 = vadd.f32 %v234_v26, %v222_v43  ;;  %v246_v54 = vadd.f32 %v238_v28, %v226_v44  ;;  %v224_v55 = vadd.f32 %v215_v23, %v204_v45  ;;  %v228_v56 = vadd.f32 %v215_v23, %v208_v46 }
  0xeb   :  { %v243_v57 = vadd.f32 %v235_v29, %v223_v49  ;;  %v247_v58 = vadd.f32 %v239_v30, %v227_v50  ;;  %v225_v59 = vadd.f32 %v219_v24, %v205_v51  ;;  %v229_v60 = vadd.f32 %v219_v24, %v209_v52 }
  0xec   :  { %v250_v61 = vmax.f32 %v242_v53, 0.0  ;;  %v254_v62 = vmax.f32 %v246_v54, 0.0  ;;  %v244_v63 = vadd.f32 %v236_v35, %v224_v55  ;;  %v248_v0 = vadd.f32 %v240_v36, %v228_v56 }
  0xed   :  { %v251_v1 = vmax.f32 %v243_v57, 0.0  ;;  %v255_v2 = vmax.f32 %v247_v58, 0.0  ;;  %v245_v3 = vadd.f32 %v237_v41, %v225_v59  ;;  %v249_v4 = vadd.f32 %v241_v42, %v229_v60 }
  0xee   :  { %v252_v5 = vmax.f32 %v244_v63, 0.0  ;;  %v256_v6 = vmax.f32 %v248_v0, 0.0 }
  0xef   :  { %v306_v7 = vpack.c.bf16 %v251_v1, %v250_v61  ;;  %v308_v8 = vpack.c.bf16 %v255_v2, %v254_v62  ;;  %v253_v9 = vmax.f32 %v245_v3, 0.0  ;;  %v257_v10 = vmax.f32 %v249_v4, 0.0 }
  0xf1   :  { %282 = vst [vmem:[%s429_s5] sm:$0xff] %v306_v7  ;;  %284 = vst [vmem:[%s429_s5 + $0x10] sm:$0xff] %v308_v8  ;;  %v307_v11 = vpack.c.bf16 %v253_v9, %v252_v5  ;;  %v309_v12 = vpack.c.bf16 %v257_v10, %v256_v6 }
  0xf3   :  { %283 = vst [vmem:[%s429_s5 + $0x8] sm:$0xff] %v307_v11  ;;  %285 = vst [vmem:[%s429_s5 + $0x18] sm:$0xff] %v309_v12 }

// kernel: encoder_m_forward.52
= control target key start
LH: loop header
LB: loop body
LE: loop exit
PB: predicated region body
PF: predicated region fallthrough
CT: control target
= control target key end

     0   :  { %vm22_vm0 = vcmask 523264   ;;  %v396_v20 = vmov 0.0   ;;  %vm290_vm1 = vcmask 519168   ;;  %s508_s1 = inlined_call_operand.vmem [shape: bf16[256,64], index: 1, kind: input, shape index: {}]   ;;  %s509_s0 = inlined_call_operand.vmem [shape: bf16[32,256], index: 0, kind: input, shape index: {}]   ;;  %s510_s2 = inlined_call_operand.vmem [shape: f32[1,64], index: 2, kind: input, shape index: {}]   ;;  %s511_s3 = inlined_call_operand.vmem [shape: f32[1,64], index: 3, kind: input, shape index: {}]   ;;  %s512_s4 = inlined_call_operand.vmem [shape: bf16[32,64], index: 4, kind: output, shape index: {}]  }
   0x1   :  { %v374_v0 = vld [vmem:[%s508_s1 + $0x40] sm:$0xff]   ;;  %v376_v2 = vld [vmem:[%s508_s1 + $0x48] sm:$0xff]   ;;  %v378_v4 = vld [vmem:[%s508_s1 + $0x50] sm:$0xff]   ;;  %23 = vst.msk [vmem:[#allocation2] sm:$0xff] %vm22_vm0, %v396_v20 }
   0x2   :  { %v375_v1 = vld [vmem:[%s508_s1] sm:$0xff]   ;;  %329 = vmatprep.subr.bf16.mxu0 %v374_v0  ;;  %357 = vmatprep.subr.bf16.mxu1 %v374_v0  ;;  %v377_v3 = vld [vmem:[%s508_s1 + $0x8] sm:$0xff]   ;;  %v379_v5 = vld [vmem:[%s508_s1 + $0x10] sm:$0xff]   ;;  %24 = vst.msk [vmem:[#allocation2 + $0x8] sm:$0xff] %vm22_vm0, %v396_v20 }
   0x3   :  { %330 = vmatpush3.bf16.msra.mxu0 %v375_v1  ;;  %365 = vmatpush3.bf16.msra.mxu1 %v375_v1  ;;  %v380_v6 = vld [vmem:[%s508_s1 + $0x58] sm:$0xff]   ;;  %v382_v8 = vld [vmem:[%s508_s1 + $0x60] sm:$0xff]   ;;  %v384_v10 = vld [vmem:[%s508_s1 + $0x68] sm:$0xff]   ;;  %25 = vst.msk [vmem:[#allocation2 + $0x10] sm:$0xff] %vm22_vm0, %v396_v20 }
   0x4   :  { %331 = vmatprep.subr.bf16.mxu0 %v376_v2  ;;  %358 = vmatprep.subr.bf16.mxu1 %v376_v2  ;;  %v381_v7 = vld [vmem:[%s508_s1 + $0x18] sm:$0xff]   ;;  %v383_v9 = vld [vmem:[%s508_s1 + $0x20] sm:$0xff]   ;;  %v385_v13 = vld [vmem:[%s508_s1 + $0x28] sm:$0xff]   ;;  %26 = vst.msk [vmem:[#allocation2 + $0x18] sm:$0xff] %vm22_vm0, %v396_v20 }
   0x5   :  { %v392_v11 = vld [vmem:[%s509_s0 + $0x4] ss:$8 sps:$4 sm:$0xff]   ;;  %v395_v12 = vld [vmem:[%s509_s0 + $0x14] ss:$8 sps:$4 sm:$0xff]   ;;  %v390_v18 = vld [vmem:[%s509_s0] ss:$8 sps:$4 sm:$0xff]  }
   0x6   :  { %v386_v14 = vld [vmem:[%s508_s1 + $0x70] sm:$0xff]   ;;  %215 = vmatprep.mubr.bf16.mxu0 %v392_v11  ;;  %223 = vmatprep.mubr.bf16.mxu1 %v395_v12  ;;  %v388_v16 = vld [vmem:[%s508_s1 + $0x78] sm:$0xff]   ;;  %v319_v41 = vld [vmem:[%s510_s2] ss:$0 sm:$0xff] }
   0x7   :  { %332 = vmatpush3.bf16.msra.mxu0 %v377_v3  ;;  %366 = vmatpush3.bf16.msra.mxu1 %v377_v3  ;;  %v387_v15 = vld [vmem:[%s508_s1 + $0x30] sm:$0xff]   ;;  %v389_v17 = vld [vmem:[%s508_s1 + $0x38] sm:$0xff]   ;;  %v320_v43 = vld [vmem:[%s511_s3] ss:$0 sm:$0xff] }
   0x8   :  { %333 = vmatprep.subr.bf16.mxu0 %v378_v4  ;;  %359 = vmatprep.subr.bf16.mxu1 %v378_v4  ;;  %v393_v19 = vld [vmem:[%s509_s0 + $0x10] ss:$8 sps:$4 sm:$0xff]   ;;  %v27_v23 = vld [vmem:[#allocation2] sm:$0xff] }
   0x9   :  { %v28_v31 = vld [vmem:[#allocation2 + $0x8] sm:$0xff] }
   0xa   :  { %v29_v25 = vld [vmem:[#allocation2 + $0x10] sm:$0xff] }
   0xb   :  { %334 = vmatpush3.bf16.msra.mxu0 %v379_v5  ;;  %367 = vmatpush3.bf16.msra.mxu1 %v379_v5  ;;  %v30_v33 = vld [vmem:[#allocation2 + $0x18] sm:$0xff] }
   0xc   :  { %335 = vmatprep.subr.bf16.mxu0 %v380_v6  ;;  %360 = vmatprep.subr.bf16.mxu1 %v380_v6 }
   0xf   :  { %336 = vmatpush3.bf16.msra.mxu0 %v381_v7  ;;  %368 = vmatpush3.bf16.msra.mxu1 %v381_v7 }
  0x10   :  { %337 = vmatprep.subr.bf16.mxu0 %v382_v8  ;;  %361 = vmatprep.subr.bf16.mxu1 %v382_v8 }
  0x13   :  { %338 = vmatpush3.bf16.msra.mxu0 %v383_v9  ;;  %369 = vmatpush3.bf16.msra.mxu1 %v383_v9 }
  0x14   :  { %339 = vmatprep.subr.bf16.mxu0 %v384_v10  ;;  %362 = vmatprep.subr.bf16.mxu1 %v384_v10 }
  0x17   :  { %340 = vmatpush3.bf16.msra.mxu0 %v385_v13  ;;  %370 = vmatpush3.bf16.msra.mxu1 %v385_v13 }
  0x18   :  { %341 = vmatprep.subr.bf16.mxu0 %v386_v14  ;;  %363 = vmatprep.subr.bf16.mxu1 %v386_v14 }
  0x1b   :  { %342 = vmatpush3.bf16.msra.mxu0 %v387_v15  ;;  %371 = vmatpush3.bf16.msra.mxu1 %v387_v15 }
  0x1c   :  { %343 = vmatprep.subr.bf16.mxu0 %v388_v16  ;;  %364 = vmatprep.subr.bf16.mxu1 %v388_v16 }
  0x1f   :  { %344 = vmatpush3.bf16.msra.mxu0 %v389_v17  ;;  %372 = vmatpush3.bf16.msra.mxu1 %v389_v17 }
  0x22   :  { %216 = vmatmul.mubr.bf16.vlgmr.msra.gmra.mrb[0].mxu0 %v390_v18  ;;  %224 = vmatmul.mubr.bf16.vlgmr.msra.gmra.mrb[0].mxu1 %v393_v19 }
  0xf5   :  { %v345_v21 = vpop.f32.mrb[0].mxu0  ;;  %v351_v22 = vpop.f32.mrb[0].mxu1 }
  0xf6   :  { %v346_v24 = vpop.f32.mrb[1].mxu0  ;;  %v352_v26 = vpop.f32.mrb[1].mxu1 }
  0xf7   :  { %v347_v27 = vadd.f32 %v346_v24, %v345_v21  ;;  %v353_v28 = vadd.f32 %v352_v26, %v351_v22  ;;  %v348_v29 = vpop.f32.mrb[2].mxu0  ;;  %v354_v30 = vpop.f32.mrb[2].mxu1 }
  0xf8   :  { %v349_v32 = vpop.f32.mrb[3].mxu0  ;;  %v355_v34 = vpop.f32.mrb[3].mxu1 }
  0xf9   :  { %v232_v35 = vadd.f32 %v347_v27, %v27_v23  ;;  %v234_v36 = vadd.f32 %v353_v28, %v29_v25  ;;  %v350_v37 = vadd.f32 %v349_v32, %v348_v29  ;;  %v356_v38 = vadd.f32 %v355_v34, %v354_v30 }
  0xfb   :  { %237 = vst.msk [vmem:[#allocation2] sm:$0xff] %vm22_vm0, %v232_v35  ;;  %239 = vst.msk [vmem:[#allocation2 + $0x10] sm:$0xff] %vm22_vm0, %v234_v36  ;;  %v233_v39 = vadd.f32 %v350_v37, %v28_v31  ;;  %v235_v40 = vadd.f32 %v356_v38, %v30_v33 }
  0xfd   :  { %238 = vst.msk [vmem:[#allocation2 + $0x8] sm:$0xff] %vm22_vm0, %v233_v39  ;;  %240 = vst.msk [vmem:[#allocation2 + $0x18] sm:$0xff] %vm22_vm0, %v235_v40 }
 0x102   :  { %v244_v42 = vld [vmem:[#allocation2] sm:$0xff]  ;;  %v246_v44 = vld [vmem:[#allocation2 + $0x10] sm:$0xff] }
 0x103   :  { %v255_v45 = vmul.f32 %v319_v41, %v244_v42  ;;  %v257_v46 = vmul.f32 %v319_v41, %v246_v44 }
 0x104   :  { %v245_v47 = vld [vmem:[#allocation2 + $0x8] sm:$0xff]  ;;  %v247_v48 = vld [vmem:[#allocation2 + $0x18] sm:$0xff] }
 0x105   :  { %v266_v49 = vadd.f32 %v320_v43, %v255_v45  ;;  %v268_v50 = vadd.f32 %v320_v43, %v257_v46  ;;  %v256_v51 = vmul.f32 %v319_v41, %v245_v47  ;;  %v258_v52 = vmul.f32 %v319_v41, %v247_v48 }
 0x107   :  { %v270_v53 = vmax.f32 %v266_v49, 0.0  ;;  %v272_v54 = vmax.f32 %v268_v50, 0.0  ;;  %v267_v55 = vadd.f32 %v320_v43, %v256_v51  ;;  %v269_v56 = vadd.f32 %v320_v43, %v258_v52 }
 0x109   :  { %v325_v57 = vpack.c.bf16 %v270_v53, %v270_v53  ;;  %v327_v58 = vpack.c.bf16 %v272_v54, %v272_v54  ;;  %v271_v59 = vmax.f32 %v267_v55, 0.0  ;;  %v273_v60 = vmax.f32 %v269_v56, 0.0 }
 0x10b   :  { %291 = vst.msk [vmem:[%s512_s4] sm:$0xf] %vm290_vm1, %v325_v57  ;;  %293 = vst.msk [vmem:[%s512_s4 + $0x8] sm:$0xf] %vm290_vm1, %v327_v58  ;;  %v326_v61 = vpack.c.bf16 %v271_v59, %v271_v59  ;;  %v328_v62 = vpack.c.bf16 %v273_v60, %v273_v60 }
 0x10d   :  { %292 = vst.msk [vmem:[%s512_s4 + $0x4] sm:$0xf] %vm290_vm1, %v326_v61  ;;  %294 = vst.msk [vmem:[%s512_s4 + $0xc] sm:$0xf] %vm290_vm1, %v328_v62 }

// kernel: encoder_m_forward.59
= control target key start
LH: loop header
LB: loop body
LE: loop exit
PB: predicated region body
PF: predicated region fallthrough
CT: control target
= control target key end

     0   :  { %s500_s1 = inlined_call_operand.vmem [shape: bf16[256,128], index: 1, kind: input, shape index: {}]   ;;  %s501_s0 = inlined_call_operand.vmem [shape: bf16[32,256], index: 0, kind: input, shape index: {}]   ;;  %s502_s2 = inlined_call_operand.vmem [shape: f32[1,128], index: 2, kind: input, shape index: {}]   ;;  %s503_s3 = inlined_call_operand.vmem [shape: f32[1,128], index: 3, kind: input, shape index: {}]   ;;  %s504_s4 = inlined_call_operand.vmem [shape: bf16[32,128], index: 4, kind: output, shape index: {}]  }
   0x1   :  { %v381_v0 = vld [vmem:[%s500_s1 + $0x40] sm:$0xff]   ;;  %v383_v2 = vld [vmem:[%s500_s1 + $0x48] sm:$0xff]   ;;  %v385_v4 = vld [vmem:[%s500_s1 + $0x50] sm:$0xff]  }
   0x2   :  { %v382_v1 = vld [vmem:[%s500_s1] sm:$0xff]   ;;  %337 = vmatprep.subr.bf16.mxu0 %v381_v0  ;;  %365 = vmatprep.subr.bf16.mxu1 %v381_v0  ;;  %v384_v3 = vld [vmem:[%s500_s1 + $0x8] sm:$0xff]   ;;  %v386_v5 = vld [vmem:[%s500_s1 + $0x10] sm:$0xff]  }
   0x3   :  { %338 = vmatpush3.bf16.msra.mxu0 %v382_v1  ;;  %373 = vmatpush3.bf16.msra.mxu1 %v382_v1  ;;  %v387_v6 = vld [vmem:[%s500_s1 + $0x58] sm:$0xff]   ;;  %v389_v8 = vld [vmem:[%s500_s1 + $0x60] sm:$0xff]   ;;  %v391_v10 = vld [vmem:[%s500_s1 + $0x68] sm:$0xff]  }
   0x4   :  { %339 = vmatprep.subr.bf16.mxu0 %v383_v2  ;;  %366 = vmatprep.subr.bf16.mxu1 %v383_v2  ;;  %v388_v7 = vld [vmem:[%s500_s1 + $0x18] sm:$0xff]   ;;  %v390_v9 = vld [vmem:[%s500_s1 + $0x20] sm:$0xff]   ;;  %v392_v13 = vld [vmem:[%s500_s1 + $0x28] sm:$0xff]  }
   0x5   :  { %v399_v11 = vld [vmem:[%s501_s0 + $0x4] ss:$8 sps:$4 sm:$0xff]   ;;  %v402_v12 = vld [vmem:[%s501_s0 + $0x14] ss:$8 sps:$4 sm:$0xff]   ;;  %v397_v18 = vld [vmem:[%s501_s0] ss:$8 sps:$4 sm:$0xff]  }
   0x6   :  { %v393_v14 = vld [vmem:[%s500_s1 + $0x70] sm:$0xff]   ;;  %214 = vmatprep.mubr.bf16.mxu0 %v399_v11  ;;  %222 = vmatprep.mubr.bf16.mxu1 %v402_v12  ;;  %v395_v16 = vld [vmem:[%s500_s1 + $0x78] sm:$0xff]   ;;  %v316_v23 = vld [vmem:[%s502_s2] ss:$0 sm:$0xff] }
   0x7   :  { %340 = vmatpush3.bf16.msra.mxu0 %v384_v3  ;;  %374 = vmatpush3.bf16.msra.mxu1 %v384_v3  ;;  %v394_v15 = vld [vmem:[%s500_s1 + $0x30] sm:$0xff]   ;;  %v396_v17 = vld [vmem:[%s500_s1 + $0x38] sm:$0xff]   ;;  %v317_v29 = vld [vmem:[%s503_s3] ss:$0 sm:$0xff] }
   0x8   :  { %341 = vmatprep.subr.bf16.mxu0 %v385_v4  ;;  %367 = vmatprep.subr.bf16.mxu1 %v385_v4  ;;  %v400_v19 = vld [vmem:[%s501_s0 + $0x10] ss:$8 sps:$4 sm:$0xff]  }
   0xb   :  { %342 = vmatpush3.bf16.msra.mxu0 %v386_v5  ;;  %375 = vmatpush3.bf16.msra.mxu1 %v386_v5 }
   0xc   :  { %343 = vmatprep.subr.bf16.mxu0 %v387_v6  ;;  %368 = vmatprep.subr.bf16.mxu1 %v387_v6 }
   0xf   :  { %344 = vmatpush3.bf16.msra.mxu0 %v388_v7  ;;  %376 = vmatpush3.bf16.msra.mxu1 %v388_v7 }
  0x10   :  { %345 = vmatprep.subr.bf16.mxu0 %v389_v8  ;;  %369 = vmatprep.subr.bf16.mxu1 %v389_v8 }
  0x13   :  { %346 = vmatpush3.bf16.msra.mxu0 %v390_v9  ;;  %377 = vmatpush3.bf16.msra.mxu1 %v390_v9 }
  0x14   :  { %347 = vmatprep.subr.bf16.mxu0 %v391_v10  ;;  %370 = vmatprep.subr.bf16.mxu1 %v391_v10 }
  0x17   :  { %348 = vmatpush3.bf16.msra.mxu0 %v392_v13  ;;  %378 = vmatpush3.bf16.msra.mxu1 %v392_v13 }
  0x18   :  { %349 = vmatprep.subr.bf16.mxu0 %v393_v14  ;;  %371 = vmatprep.subr.bf16.mxu1 %v393_v14 }
  0x1b   :  { %350 = vmatpush3.bf16.msra.mxu0 %v394_v15  ;;  %379 = vmatpush3.bf16.msra.mxu1 %v394_v15 }
  0x1c   :  { %351 = vmatprep.subr.bf16.mxu0 %v395_v16  ;;  %372 = vmatprep.subr.bf16.mxu1 %v395_v16 }
  0x1f   :  { %352 = vmatpush3.bf16.msra.mxu0 %v396_v17  ;;  %380 = vmatpush3.bf16.msra.mxu1 %v396_v17 }
  0x22   :  { %215 = vmatmul.mubr.bf16.vlgmr.msra.gmra.mrb[0].mxu0 %v397_v18  ;;  %223 = vmatmul.mubr.bf16.vlgmr.msra.gmra.mrb[0].mxu1 %v400_v19 }
  0xf5   :  { %v353_v20 = vpop.f32.mrb[0].mxu0  ;;  %v359_v21 = vpop.f32.mrb[0].mxu1 }
  0xf6   :  { %v354_v22 = vpop.f32.mrb[1].mxu0  ;;  %v360_v24 = vpop.f32.mrb[1].mxu1 }
  0xf7   :  { %v355_v25 = vadd.f32 %v354_v22, %v353_v20  ;;  %v361_v26 = vadd.f32 %v360_v24, %v359_v21  ;;  %v356_v27 = vpop.f32.mrb[2].mxu0  ;;  %v362_v28 = vpop.f32.mrb[2].mxu1 }
  0xf8   :  { %v357_v30 = vpop.f32.mrb[3].mxu0  ;;  %v363_v31 = vpop.f32.mrb[3].mxu1 }
  0xf9   :  { %v253_v32 = vmul.f32 %v355_v25, %v316_v23  ;;  %v255_v33 = vmul.f32 %v361_v26, %v316_v23  ;;  %v358_v34 = vadd.f32 %v357_v30, %v356_v27  ;;  %v364_v35 = vadd.f32 %v363_v31, %v362_v28 }
  0xfb   :  { %v264_v36 = vadd.f32 %v317_v29, %v253_v32  ;;  %v266_v37 = vadd.f32 %v317_v29, %v255_v33  ;;  %v254_v38 = vmul.f32 %v358_v34, %v316_v23  ;;  %v256_v39 = vmul.f32 %v364_v35, %v316_v23 }
  0xfd   :  { %v265_v40 = vadd.f32 %v317_v29, %v254_v38  ;;  %v267_v41 = vadd.f32 %v317_v29, %v256_v39  ;;  %v268_v42 = vmax.f32 %v264_v36, 0.0  ;;  %v270_v43 = vmax.f32 %v266_v37, 0.0 }
  0xff   :  { %v269_v44 = vmax.f32 %v265_v40, 0.0  ;;  %v271_v45 = vmax.f32 %v267_v41, 0.0 }
 0x101   :  { %v329_v46 = vpack.c.bf16 %v269_v44, %v268_v42  ;;  %v334_v47 = vpack.c.bf16 %v271_v45, %v270_v43 }
 0x103   :  { %330 = vst [vmem:[%s504_s4] sm:$0xff] %v329_v46   ;;  %336 = vst [vmem:[%s504_s4 + $0x8] sm:$0xff] %v334_v47  }

// kernel: encoder_m_forward.60
= control target key start
LH: loop header
LB: loop body
LE: loop exit
PB: predicated region body
PF: predicated region fallthrough
CT: control target
= control target key end

     0   :  { %s934_s15 = smov 0   ;;  %s936_s16 = smov 0   ;;  %s1012_s0 = inlined_call_operand.vmem [shape: bf16[8,1152], index: 0, kind: input, shape index: {}]   ;;  %s1013_s1 = inlined_call_operand.vmem [shape: bf16[1152,128], index: 1, kind: input, shape index: {}]   ;;  %s1014_s2 = inlined_call_operand.vmem [shape: f32[1,128], index: 2, kind: input, shape index: {}]   ;;  %s1015_s3 = inlined_call_operand.vmem [shape: f32[1,128], index: 3, kind: input, shape index: {}]   ;;  %s1016_s4 = inlined_call_operand.vmem [shape: bf16[8,128], index: 4, kind: output, shape index: {}]  }
   0x1   :  { %s938_s17 = smov 0  }
   0x2 LB: > { %s26_s18 = sadd.s32 1, %s900_s16  ;;  %p740_p0 = scmp.ge.s32.totalorder %s904_s17, 1  ;;  %s904_s17 = sphi %s938_s17, %s14_s17   ;;  %s900_s16 = sphi %s936_s16, %s1018_s16   ;;  %s896_s15 = sphi %s934_s15, %s1017_s15  }
   0x3   : > { %p27_p1 = scmp.ge.s32.totalorder %s26_s18, 3  ;;  %p222_p2 = scmp.lt.s32.totalorder %s904_s17, 4 }
   0x5   : > { %s1020_s18 = smov (%p27_p1, %s26_s18), 0  ;;  %p223_p3 = pnand %p740_p0, %p222_p2 }
   0x6   : > { %s268_s19 = smul.u32 (!%p223_p3), 3, %s896_s15  ;;  %p743_p6 = scmp.ne.s32.totalorder (!%p223_p3), %s896_s15, 0 }
   0x7   : > { %226 = sbr.rel (%p223_p3) target bundleno = 293 (0x125), region = 36 }
   0x8   : > { %s278_s20 = smul.u32 (!%p223_p3), 48, %s896_s15  ;;  %p271_p4 = scmp.lt.s32.totalorder (!%p223_p3), %s268_s19, 8 }
   0xa   : > { %p279_p5 = scmp.lt.s32.totalorder (!%p223_p3), %s278_s20, 143 }
   0xe   : > { %s1022_s19 = smov (!%p271_p4, %s268_s19), 8  ;;  %s1024_s20 = smov (!%p279_p5, %s278_s20), 143 }
   0xf   : > { %s741_s21 = sshll.u32 %s1022_s19, 2  ;;  %s742_s25 = sshll.u32 %s1024_s20, 2  ;;  %v906_v0 = vmov (!%p743_p6), 0.0  }
  0x10   : > { %s959_s24 = scalar_lea.vmem %s1012_s0, %s741_s21  ;;  %s964_s28 = scalar_lea.vmem %s1013_s1, %s742_s25  ;;  %305 = vst [vmem:[#allocation2] sm:$0xff] (!%p743_p6), %v906_v0 }
  0x11   : > { %304 = sbr.rel (%p743_p6) target bundleno = 24 (0x18), region = 40 }
  0x18 PF: > { %v855_v1 = vld [vmem:[%s964_s28 + $0x40] sm:$0xff]   ;;  %v907_v2 = vmov 0.0   ;;  %vm908_vm0 = vmmov 0   ;;  %v858_v5 = vld [vmem:[%s964_s28 + $0x48] sm:$0xff]   ;;  %v861_v8 = vld [vmem:[%s964_s28 + $0x50] sm:$0xff]   ;;  %p771_p7 = scmp.ne.s32.totalorder %s896_s15, 2 }
  0x19   : > { %808 = vmatprep.subr.bf16.mxu1 %v907_v2  ;;  %v856_v3 = vld [vmem:[%s964_s28] sm:$0xff]   ;;  %777 = vmatprep.subr.bf16.mxu0 %v855_v1  ;;  %v859_v6 = vld [vmem:[%s964_s28 + $0x8] sm:$0xff]   ;;  %v862_v9 = vld [vmem:[%s964_s28 + $0x10] sm:$0xff]  }
  0x1a   : > { %v857_v4 = vld [vmem:[%s964_s28 + $0x80] sm:$0xff]   ;;  %824 = vmatprep.mubr.msk.bf16.mxu1 %vm908_vm0, %v907_v2  ;;  %778 = vmatpush3.bf16.msra.mxu0 %v856_v3  ;;  %v860_v7 = vld [vmem:[%s964_s28 + $0x88] sm:$0xff]   ;;  %v863_v10 = vld [vmem:[%s964_s28 + $0x90] sm:$0xff]  }
  0x1b   : > { %809 = vmatpush3.bf16.msra.mxu1 %v857_v4  ;;  %779 = vmatprep.subr.bf16.mxu0 %v858_v5  ;;  %v864_v11 = vld [vmem:[%s964_s28 + $0x58] sm:$0xff]   ;;  %v867_v14 = vld [vmem:[%s964_s28 + $0x60] sm:$0xff]   ;;  %v870_v17 = vld [vmem:[%s964_s28 + $0x68] sm:$0xff]  }
  0x1c   : > { %810 = vmatprep.subr.bf16.mxu1 %v907_v2  ;;  %v865_v12 = vld [vmem:[%s964_s28 + $0x18] sm:$0xff]   ;;  %v868_v15 = vld [vmem:[%s964_s28 + $0x20] sm:$0xff]   ;;  %v871_v18 = vld [vmem:[%s964_s28 + $0x28] sm:$0xff]  }
  0x1d   : > { %v866_v13 = vld [vmem:[%s964_s28 + $0x98] sm:$0xff]   ;;  %v869_v16 = vld [vmem:[%s964_s28 + $0xa0] sm:$0xff]   ;;  %v872_v19 = vld [vmem:[%s964_s28 + $0xa8] sm:$0xff]  }
  0x1e   : > { %780 = vmatpush3.bf16.msra.mxu0 %v859_v6  ;;  %v873_v20 = vld [vmem:[%s964_s28 + $0x70] sm:$0xff]   ;;  %v876_v23 = vld [vmem:[%s964_s28 + $0x78] sm:$0xff]   ;;  %v307_v24 = vld [vmem:[%s959_s24] sm:$0xff] }
  0x1f   : > { %811 = vmatpush3.bf16.msra.mxu1 %v860_v7  ;;  %781 = vmatprep.subr.bf16.mxu0 %v861_v8  ;;  %v874_v21 = vld [vmem:[%s964_s28 + $0x30] sm:$0xff]   ;;  %v745_v25 = vcombine.high %v307_v24, %v307_v24  ;;  %v877_v26 = vld [vmem:[%s964_s28 + $0x38] sm:$0xff]   ;;  %v744_v28 = vcombine.low %v307_v24, %v307_v24  ;;  %v881_v29 = vld [vmem:[%s959_s24 + $0x8] ss:$0 sps:$4 sm:$0xff]  }
  0x20   : > { %812 = vmatprep.subr.bf16.mxu1 %v907_v2  ;;  %v875_v22 = vld [vmem:[%s964_s28 + $0xb0] sm:$0xff]   ;;  %v878_v27 = vld [vmem:[%s964_s28 + $0xb8] sm:$0xff]   ;;  %v306_v36 = vld [vmem:[#allocation2] sm:$0xff] }
  0x21   : > { %544 = vmatprep.mubr.bf16.mxu0 %v745_v25  ;;  %v772_v43 = vld [vmem:[%s1014_s2] ss:$0 sm:$0xff] (!%p771_p7) }
  0x22   : > { %782 = vmatpush3.bf16.msra.mxu0 %v862_v9  ;;  %v773_v44 = vld [vmem:[%s1015_s3] ss:$0 sm:$0xff] (!%p771_p7) }
  0x23   : > { %813 = vmatpush3.bf16.msra.mxu1 %v863_v10  ;;  %783 = vmatprep.subr.bf16.mxu0 %v864_v11 }
  0x24   : > { %814 = vmatprep.subr.bf16.mxu1 %v907_v2 }
  0x26   : > { %784 = vmatpush3.bf16.msra.mxu0 %v865_v12 }
  0x27   : > { %815 = vmatpush3.bf16.msra.mxu1 %v866_v13  ;;  %785 = vmatprep.subr.bf16.mxu0 %v867_v14 }
  0x28   : > { %816 = vmatprep.subr.bf16.mxu1 %v907_v2 }
  0x2a   : > { %786 = vmatpush3.bf16.msra.mxu0 %v868_v15 }
  0x2b   : > { %817 = vmatpush3.bf16.msra.mxu1 %v869_v16  ;;  %787 = vmatprep.subr.bf16.mxu0 %v870_v17 }
  0x2c   : > { %818 = vmatprep.subr.bf16.mxu1 %v907_v2 }
  0x2e   : > { %788 = vmatpush3.bf16.msra.mxu0 %v871_v18 }
  0x2f   : > { %819 = vmatpush3.bf16.msra.mxu1 %v872_v19  ;;  %789 = vmatprep.subr.bf16.mxu0 %v873_v20 }
  0x30   : > { %820 = vmatprep.subr.bf16.mxu1 %v907_v2 }
  0x32   : > { %790 = vmatpush3.bf16.msra.mxu0 %v874_v21 }
  0x33   : > { %821 = vmatpush3.bf16.msra.mxu1 %v875_v22  ;;  %791 = vmatprep.subr.bf16.mxu0 %v876_v23 }
  0x34   : > { %822 = vmatprep.subr.bf16.mxu1 %v907_v2 }
  0x36   : > { %792 = vmatpush3.bf16.msra.mxu0 %v877_v26 }
  0x37   : > { %823 = vmatpush3.bf16.msra.mxu1 %v878_v27 }
  0x39   : > { %545 = vmatmul.mubr.bf16.vlgmr.msra.gmra.mrb[0].mxu0 %v744_v28 }
  0x3a   : > { %825 = vmatmul.mubr.bf16.vlgmr.msra.gmra.mrb[0].mxu1 %v881_v29 }
 0x10c   : > { %v793_v30 = vpop.f32.mrb[0].mxu0 }
 0x10d   : > { %v586_v31 = vpop.f32.mrb[0].mxu1  ;;  %v794_v32 = vpop.f32.mrb[1].mxu0 }
 0x10e   : > { %v795_v33 = vadd.f32 %v794_v32, %v793_v30  ;;  %v826_v34 = vpop.f32.mrb[1].mxu1  ;;  %v796_v35 = vpop.f32.mrb[2].mxu0  ;;  %597 = sbr.rel (%p771_p7) target bundleno = 293 (0x125), region = 44 }
 0x10f   : > { %v589_v37 = vpop.f32.mrb[2].mxu1  ;;  %v797_v38 = vpop.f32.mrb[3].mxu0 }
 0x110   : > { %v587_v39 = vadd.f32 %v795_v33, %v586_v31  ;;  %v827_v40 = vpop.f32.mrb[3].mxu1 }
 0x112   : > { %v592_v41 = vadd.f32 %v587_v39, %v306_v36 }
 0x114   : > { %593 = vst [vmem:[#allocation2] sm:$0xff] %v592_v41 }
 0x11b   : > { %v598_v42 = vld [vmem:[#allocation2] sm:$0xff] }
 0x11c   : > { %v606_v45 = vmul.f32 %v772_v43, %v598_v42 }
 0x11e   : > { %v614_v46 = vadd.f32 %v773_v44, %v606_v45 }
 0x120   : > { %v615_v47 = vmax.f32 %v614_v46, 0.0 }
 0x122   : > { %v616_v48 = vpack.c.bf16 %v615_v47, %v615_v47 }
 0x124   : > { %617 = vst [vmem:[%s1016_s4] sm:$0xf] %v616_v48 }
 0x125 PF: > { %s14_s17 = sadd.s32 1, %s904_s17   ;;  %s1017_s15 = smov %s900_s16 }
 0x126   : > { %p11_p8 = scmp.ge.s32.totalorder %s14_s17, 5   ;;  %s1018_s16 = smov %s1020_s18 }
 0x128   :  { %13 = sbr.rel (!%p11_p8) target bundleno = 2 (0x2), region = 83 }

// kernel: encoder_m_forward.61
= control target key start
LH: loop header
LB: loop body
LE: loop exit
PB: predicated region body
PF: predicated region fallthrough
CT: control target
= control target key end

     0   :  { %s979_s18 = smov 0   ;;  %s981_s19 = smov 0   ;;  %s1079_s0 = inlined_call_operand.vmem [shape: bf16[8,128], index: 0, kind: input, shape index: {}]   ;;  %s1080_s1 = inlined_call_operand.vmem [shape: bf16[128,512], index: 1, kind: input, shape index: {}]   ;;  %s1081_s2 = inlined_call_operand.vmem [shape: f32[1,512], index: 2, kind: input, shape index: {}]   ;;  %s1082_s3 = inlined_call_operand.vmem [shape: f32[1,512], index: 3, kind: input, shape index: {}]   ;;  %s1083_s4 = inlined_call_operand.vmem [shape: bf16[8,512], index: 4, kind: input, shape index: {}]   ;;  %s1084_s5 = inlined_call_operand.vmem [shape: bf16[8,512], index: 5, kind: output, shape index: {}]  }
   0x1   :  { %s983_s20 = smov 0   ;;  %s985_s21 = smov 0  }
   0x2   :  { %s987_s22 = smov 0  }
   0x3 LB: > { %s30_s23 = sadd.s32 1, %s942_s21  ;;  %p78_p1 = scmp.ne.s32.totalorder %s934_s19, %s930_s18  ;;  %s946_s22 = sphi %s987_s22, %s15_s22   ;;  %s942_s21 = sphi %s985_s21, %s1088_s21   ;;  %s938_s20 = sphi %s983_s20, %s1087_s20   ;;  %s934_s19 = sphi %s981_s19, %s1086_s19   ;;  %s930_s18 = sphi %s979_s18, %s1085_s18  }
   0x4   : > { %p32_p0 = scmp.ge.s32.totalorder %s30_s23, 2  ;;  %p79_p2 = scmp.eq.s32.totalorder %s946_s22, 0 }
   0x5   : > { %s71_s25 = sadd.s32 1, %s934_s19  ;;  %p810_p5 = scmp.ge.s32.totalorder %s946_s22, 2 }
   0x6   : > { %s1090_s23 = smov (%p32_p0, %s30_s23), 0  ;;  %p80_p3 = por %p79_p2, %p78_p1 }
   0x7   : > { %s67_s24 = ssub.s32 %s942_s21, %s1090_s23  ;;  %222 = sbr.rel (%p810_p5) target bundleno = 26 (0x1a), region = 20 }
   0x8   : > { %p69_p4 = scmp.eq.s32.totalorder %s67_s24, 0 }
   0xa   : > { %s1014_s26 = scalar_select %p69_p4, %s934_s19, %s71_s25  }
   0xe   : > { %225 = sbr.rel (!%p80_p3) target bundleno = 26 (0x1a), region = 24  ;;  %s227_s27 = sand.u32 (%p80_p3), 1, %s934_s19  }
   0xf   : > { %s841_s28 = sshll.u32 (%p80_p3), %s942_s21, 3  ;;  %s811_s29 = sshll.u32 (%p80_p3), %s227_s27, 7 }
  0x10   : > { %s1022_s7 = scalar_lea.vmem (%p80_p3), %s1080_s1, %s841_s28  ;;  %s229_s8 = scalar_lea.vmem (%p80_p3), [#allocation3], %s811_s29 }
  0x11   : > { %v293_v0 = vld [vmem:[%s1022_s7] sm:$0xff] (%p80_p3)  ;;  %v295_v1 = vld [vmem:[%s1022_s7 + $0x10] sm:$0xff] (%p80_p3) }
  0x12   : > { %v297_v2 = vld [vmem:[%s1022_s7 + $0x20] sm:$0xff] (%p80_p3)  ;;  %294 = vst [vmem:[%s229_s8] sm:$0xff] (%p80_p3), %v293_v0  ;;  %296 = vst [vmem:[%s229_s8 + $0x8] sm:$0xff] (%p80_p3), %v295_v1  ;;  %v299_v3 = vld [vmem:[%s1022_s7 + $0x30] sm:$0xff] (%p80_p3) }
  0x13   : > { %298 = vst [vmem:[%s229_s8 + $0x10] sm:$0xff] (%p80_p3), %v297_v2  ;;  %v301_v4 = vld [vmem:[%s1022_s7 + $0x40] sm:$0xff] (%p80_p3)  ;;  %v303_v5 = vld [vmem:[%s1022_s7 + $0x50] sm:$0xff] (%p80_p3)  ;;  %300 = vst [vmem:[%s229_s8 + $0x18] sm:$0xff] (%p80_p3), %v299_v3 }
  0x14   : > { %302 = vst [vmem:[%s229_s8 + $0x20] sm:$0xff] (%p80_p3), %v301_v4  ;;  %304 = vst [vmem:[%s229_s8 + $0x28] sm:$0xff] (%p80_p3), %v303_v5  ;;  %v305_v6 = vld [vmem:[%s1022_s7 + $0x60] sm:$0xff] (%p80_p3)  ;;  %v307_v7 = vld [vmem:[%s1022_s7 + $0x70] sm:$0xff] (%p80_p3) }
  0x15   : > { %v309_v8 = vld [vmem:[%s1022_s7 + $0x80] sm:$0xff]  ;;  %306 = vst [vmem:[%s229_s8 + $0x30] sm:$0xff] %v305_v6  ;;  %308 = vst [vmem:[%s229_s8 + $0x38] sm:$0xff] %v307_v7  ;;  %v311_v9 = vld [vmem:[%s1022_s7 + $0x90] sm:$0xff] }
  0x16   : > { %310 = vst [vmem:[%s229_s8 + $0x40] sm:$0xff] %v309_v8  ;;  %v313_v10 = vld [vmem:[%s1022_s7 + $0xa0] sm:$0xff]  ;;  %v315_v11 = vld [vmem:[%s1022_s7 + $0xb0] sm:$0xff]  ;;  %312 = vst [vmem:[%s229_s8 + $0x48] sm:$0xff] %v311_v9 }
  0x17   : > { %314 = vst [vmem:[%s229_s8 + $0x50] sm:$0xff] %v313_v10  ;;  %316 = vst [vmem:[%s229_s8 + $0x58] sm:$0xff] %v315_v11  ;;  %v317_v12 = vld [vmem:[%s1022_s7 + $0xc0] sm:$0xff]  ;;  %v319_v13 = vld [vmem:[%s1022_s7 + $0xd0] sm:$0xff] }
  0x18   : > { %v321_v14 = vld [vmem:[%s1022_s7 + $0xe0] sm:$0xff]  ;;  %318 = vst [vmem:[%s229_s8 + $0x60] sm:$0xff] %v317_v12  ;;  %320 = vst [vmem:[%s229_s8 + $0x68] sm:$0xff] %v319_v13  ;;  %v323_v15 = vld [vmem:[%s1022_s7 + $0xf0] sm:$0xff] }
  0x19   : > { %322 = vst [vmem:[%s229_s8 + $0x70] sm:$0xff] %v321_v14  ;;  %324 = vst [vmem:[%s229_s8 + $0x78] sm:$0xff] %v323_v15 }
  0x1a PF: > { %p814_p6 = scmp.ge.s32.totalorder %s946_s22, 1  ;;  %p358_p7 = scmp.lt.s32.totalorder %s946_s22, 3 }
  0x1c   : > { %p359_p8 = pnand %p814_p6, %p358_p7 }
  0x1d   : > { %s365_s9 = sand.u32 (!%p359_p8), 1, %s930_s18   ;;  %v948_v16 = vmov (!%p359_p8), 0   ;;  %v468_v33 = vld [vmem:[%s1079_s0] sm:$0xf] (!%p359_p8)  ;;  %s816_s14 = sshll.u32 (!%p359_p8), %s938_s20, 1  ;;  %v617_v34 = vlaneseq (!%p359_p8) }
  0x1e   : > { %362 = sbr.rel (%p359_p8) target bundleno = 289 (0x121), region = 74  ;;  %s815_s10 = sshll.u32 (!%p359_p8), %s365_s9, 7  ;;  %597 = vmatprep.mubr.bf16.mxu0 (!%p359_p8), %v948_v16 }
  0x1f   : > { %s367_s11 = scalar_lea.vmem (!%p359_p8), [#allocation3], %s815_s10  ;;  %p430_p9 = scmp.lt.s32.totalorder (!%p359_p8), %s816_s14, 3  ;;  %v618_v35 = vshrl.u32 (!%p359_p8), %v617_v34, 7 }
  0x20   : > { %v884_v17 = vld [vmem:[%s367_s11 + $0x4] ss:$8 sps:$4 sm:$0xff] (!%p359_p8)   ;;  %v886_v18 = vld [vmem:[%s367_s11] ss:$8 sps:$4 sm:$0xff] (!%p359_p8)   ;;  %v887_v19 = vld [vmem:[%s367_s11 + $0x14] ss:$8 sps:$4 sm:$0xff] (!%p359_p8)  }
  0x21   : > { %565 = vmatprep.subr.bf16.mxu0 (!%p359_p8), %v884_v17  ;;  %v889_v20 = vld [vmem:[%s367_s11 + $0x10] ss:$8 sps:$4 sm:$0xff] (!%p359_p8)   ;;  %v890_v21 = vld [vmem:[%s367_s11 + $0x24] ss:$8 sps:$4 sm:$0xff] (!%p359_p8)   ;;  %v892_v22 = vld [vmem:[%s367_s11 + $0x20] ss:$8 sps:$4 sm:$0xff] (!%p359_p8)  }
  0x22   : > { %566 = vmatpush1.bf16.msra.mxu0 (!%p359_p8), %v886_v18  ;;  %v893_v23 = vld [vmem:[%s367_s11 + $0x34] ss:$8 sps:$4 sm:$0xff] (!%p359_p8)   ;;  %v895_v24 = vld [vmem:[%s367_s11 + $0x30] ss:$8 sps:$4 sm:$0xff] (!%p359_p8)   ;;  %v896_v25 = vld [vmem:[%s367_s11 + $0x44] ss:$8 sps:$4 sm:$0xff] (!%p359_p8)  }
  0x23   : > { %567 = vmatprep.subr.bf16.mxu0 (!%p359_p8), %v887_v19  ;;  %v898_v26 = vld [vmem:[%s367_s11 + $0x40] ss:$8 sps:$4 sm:$0xff] (!%p359_p8)   ;;  %v899_v27 = vld [vmem:[%s367_s11 + $0x54] ss:$8 sps:$4 sm:$0xff] (!%p359_p8)   ;;  %v901_v28 = vld [vmem:[%s367_s11 + $0x50] ss:$8 sps:$4 sm:$0xff] (!%p359_p8)  }
  0x24   : > { %v902_v29 = vld [vmem:[%s367_s11 + $0x64] ss:$8 sps:$4 sm:$0xff] (!%p359_p8)   ;;  %v904_v30 = vld [vmem:[%s367_s11 + $0x60] ss:$8 sps:$4 sm:$0xff] (!%p359_p8)   ;;  %v905_v31 = vld [vmem:[%s367_s11 + $0x74] ss:$8 sps:$4 sm:$0xff] (!%p359_p8)  }
  0x25   : > { %v907_v32 = vld [vmem:[%s367_s11 + $0x70] ss:$8 sps:$4 sm:$0xff]   ;;  %s1092_s14 = smov (!%p430_p9, %s816_s14), 3  ;;  %v619_v36 = vsub.s32 0, %v618_v35  ;;  %v623_v38 = vsub.s32 1, %v618_v35 }
  0x26   : > { %568 = vmatpush1.bf16.msra.mxu0 %v889_v20  ;;  %s432_s17 = scalar_lea.vmem %s1081_s2, %s1092_s14  ;;  %s819_s18 = sshll.u32 %s1092_s14, 2 }
  0x27   : > { %569 = vmatprep.subr.bf16.mxu0 %v890_v21  ;;  %s437_s27 = scalar_lea.vmem %s1082_s3, %s1092_s14  ;;  %v615_v37 = vld [vmem:[%s432_s17] sm:$0x3]  ;;  %s447_s29 = scalar_lea.vmem %s1083_s4, %s819_s18 }
  0x28   : > { %v629_v39 = vld [vmem:[%s437_s27] sm:$0x3]  ;;  %v620_v40 = vrot.slane %v615_v37, %v619_v36  ;;  %v624_v42 = vrot.slane %v615_v37, %v623_v38  ;;  %s457_s7 = scalar_lea.vmem %s1084_s5, %s819_s18 }
  0x29   : > { %v643_v41 = vld [vmem:[%s447_s29] sm:$0xff]  ;;  %v634_v43 = vrot.slane %v629_v39, %v619_v36  ;;  %v638_v45 = vrot.slane %v629_v39, %v623_v38 }
  0x2a   : > { %570 = vmatpush1.bf16.msra.mxu0 %v892_v22  ;;  %v644_v47 = vunpack.c.l.bf16 %v643_v41  ;;  %v645_v50 = vunpack.c.h.bf16 %v643_v41 }
  0x2b   : > { %571 = vmatprep.subr.bf16.mxu0 %v893_v23 }
  0x2e   : > { %572 = vmatpush1.bf16.msra.mxu0 %v895_v24 }
  0x2f   : > { %573 = vmatprep.subr.bf16.mxu0 %v896_v25 }
  0x32   : > { %574 = vmatpush1.bf16.msra.mxu0 %v898_v26 }
  0x33   : > { %575 = vmatprep.subr.bf16.mxu0 %v899_v27 }
  0x36   : > { %576 = vmatpush1.bf16.msra.mxu0 %v901_v28 }
  0x37   : > { %577 = vmatprep.subr.bf16.mxu0 %v902_v29 }
  0x3a   : > { %578 = vmatpush1.bf16.msra.mxu0 %v904_v30 }
  0x3b   : > { %579 = vmatprep.subr.bf16.mxu0 %v905_v31 }
  0x3e   : > { %580 = vmatpush1.bf16.msra.mxu0 %v907_v32 }
  0x41   : > { %598 = vmatmul.mubr.bf16.vlgmr.msra.gmra.mrb[0].mxu0 %v468_v33 }
 0x114   : > { %v599_v44 = vpop.f32.mrb[0].mxu0 }
 0x115   : > { %v627_v46 = vmul.f32 %v620_v40, %v599_v44  ;;  %v601_v48 = vpop.f32.mrb[1].mxu0 }
 0x116   : > { %v628_v49 = vmul.f32 %v624_v42, %v601_v48  ;;  %v603_v51 = vpop.f32.mrb[2].mxu0 }
 0x117   : > { %v641_v52 = vadd.f32 %v634_v43, %v627_v46  ;;  %v604_v53 = vpop.f32.mrb[3].mxu0 }
 0x118   : > { %v642_v54 = vadd.f32 %v638_v45, %v628_v49 }
 0x119   : > { %v646_v55 = vadd.f32 %v644_v47, %v641_v52 }
 0x11a   : > { %v647_v56 = vadd.f32 %v645_v50, %v642_v54 }
 0x11b   : > { %v648_v57 = vmax.f32 %v646_v55, 0.0 }
 0x11c   : > { %v649_v58 = vmax.f32 %v647_v56, 0.0 }
 0x11e   : > { %v842_v59 = vpack.c.bf16 %v649_v58, %v648_v57 }
 0x120   : > { %658 = vst [vmem:[%s457_s7] sm:$0xff] %v842_v59 }
 0x121 PF: > { %s15_s22 = sadd.s32 1, %s946_s22   ;;  %s1085_s18 = smov %s934_s19 }
 0x122   : > { %p12_p10 = scmp.ge.s32.totalorder %s15_s22, 4   ;;  %s1086_s19 = smov %s1014_s26 }
 0x123   : > { %s1087_s20 = smov %s942_s21  ;;  %s1088_s21 = smov %s1090_s23 }
 0x124   :  { %14 = sbr.rel (!%p12_p10) target bundleno = 3 (0x3), region = 133 }

// kernel: encoder_m_forward.58
= control target key start
LH: loop header
LB: loop body
LE: loop exit
PB: predicated region body
PF: predicated region fallthrough
CT: control target
= control target key end

     0   :  { %s1103_s15 = smov 0   ;;  %s1105_s16 = smov 0   ;;  %s1285_s0 = inlined_call_operand.vmem [shape: bf16[8,256], index: 0, kind: input, shape index: {}]   ;;  %s1286_s1 = inlined_call_operand.vmem [shape: bf16[256,512], index: 1, kind: input, shape index: {}]   ;;  %s1287_s2 = inlined_call_operand.vmem [shape: f32[1,512], index: 2, kind: input, shape index: {}]   ;;  %s1288_s3 = inlined_call_operand.vmem [shape: f32[1,512], index: 3, kind: input, shape index: {}]   ;;  %s1289_s4 = inlined_call_operand.vmem [shape: bf16[8,512], index: 4, kind: output, shape index: {}]  }
   0x1   :  { %s1107_s17 = smov 0   ;;  %s1109_s18 = smov 0  }
   0x2   :  { %s1111_s19 = smov 0  }
   0x3 LB: > { %s29_s20 = sadd.s32 1, %s1072_s18  ;;  %p77_p1 = scmp.ne.s32.totalorder %s1064_s16, %s1060_s15  ;;  %s1076_s19 = sphi %s1111_s19, %s14_s19   ;;  %s1072_s18 = sphi %s1109_s18, %s1293_s18   ;;  %s1068_s17 = sphi %s1107_s17, %s1292_s17   ;;  %s1064_s16 = sphi %s1105_s16, %s1291_s16   ;;  %s1060_s15 = sphi %s1103_s15, %s1290_s15  }
   0x4   : > { %p31_p0 = scmp.ge.s32.totalorder %s29_s20, 2  ;;  %p78_p2 = scmp.eq.s32.totalorder %s1076_s19, 0 }
   0x5   : > { %s70_s22 = sadd.s32 1, %s1064_s16  ;;  %p899_p5 = scmp.ge.s32.totalorder %s1076_s19, 2 }
   0x6   : > { %s1295_s20 = smov (%p31_p0, %s29_s20), 0  ;;  %p79_p3 = por %p78_p2, %p77_p1 }
   0x7   : > { %s66_s21 = ssub.s32 %s1072_s18, %s1295_s20  ;;  %196 = sbr.rel (%p899_p5) target bundleno = 34 (0x22), region = 20 }
   0x8   : > { %p68_p4 = scmp.eq.s32.totalorder %s66_s21, 0 }
   0xa   : > { %s1138_s23 = scalar_select %p68_p4, %s1064_s16, %s70_s22  }
   0xe   : > { %199 = sbr.rel (!%p79_p3) target bundleno = 34 (0x22), region = 24  ;;  %s201_s24 = sand.u32 (%p79_p3), 1, %s1064_s16  }
   0xf   : > { %s946_s25 = sshll.u32 (%p79_p3), %s1072_s18, 3  ;;  %s900_s26 = sshll.u32 (%p79_p3), %s201_s24, 8 }
  0x10   : > { %s1146_s29 = scalar_lea.vmem (%p79_p3), %s1286_s1, %s946_s25  ;;  %s1151_s30 = scalar_lea.vmem (%p79_p3), [#allocation3], %s900_s26 }
  0x11   : > { %v299_v0 = vld [vmem:[%s1146_s29] sm:$0xff] (%p79_p3)  ;;  %v301_v1 = vld [vmem:[%s1146_s29 + $0x10] sm:$0xff] (%p79_p3) }
  0x12   : > { %v303_v2 = vld [vmem:[%s1146_s29 + $0x20] sm:$0xff] (%p79_p3)  ;;  %300 = vst [vmem:[%s1151_s30] sm:$0xff] (%p79_p3), %v299_v0  ;;  %302 = vst [vmem:[%s1151_s30 + $0x8] sm:$0xff] (%p79_p3), %v301_v1  ;;  %v305_v3 = vld [vmem:[%s1146_s29 + $0x30] sm:$0xff] (%p79_p3) }
  0x13   : > { %304 = vst [vmem:[%s1151_s30 + $0x10] sm:$0xff] (%p79_p3), %v303_v2  ;;  %v307_v4 = vld [vmem:[%s1146_s29 + $0x40] sm:$0xff] (%p79_p3)  ;;  %v309_v5 = vld [vmem:[%s1146_s29 + $0x50] sm:$0xff] (%p79_p3)  ;;  %306 = vst [vmem:[%s1151_s30 + $0x18] sm:$0xff] (%p79_p3), %v305_v3 }
  0x14   : > { %308 = vst [vmem:[%s1151_s30 + $0x20] sm:$0xff] (%p79_p3), %v307_v4  ;;  %310 = vst [vmem:[%s1151_s30 + $0x28] sm:$0xff] (%p79_p3), %v309_v5  ;;  %v311_v6 = vld [vmem:[%s1146_s29 + $0x60] sm:$0xff] (%p79_p3)  ;;  %v313_v7 = vld [vmem:[%s1146_s29 + $0x70] sm:$0xff] (%p79_p3) }
  0x15   : > { %v315_v8 = vld [vmem:[%s1146_s29 + $0x80] sm:$0xff]  ;;  %312 = vst [vmem:[%s1151_s30 + $0x30] sm:$0xff] %v311_v6  ;;  %314 = vst [vmem:[%s1151_s30 + $0x38] sm:$0xff] %v313_v7  ;;  %v317_v9 = vld [vmem:[%s1146_s29 + $0x90] sm:$0xff] }
  0x16   : > { %316 = vst [vmem:[%s1151_s30 + $0x40] sm:$0xff] %v315_v8  ;;  %v319_v10 = vld [vmem:[%s1146_s29 + $0xa0] sm:$0xff]  ;;  %v321_v11 = vld [vmem:[%s1146_s29 + $0xb0] sm:$0xff]  ;;  %318 = vst [vmem:[%s1151_s30 + $0x48] sm:$0xff] %v317_v9 }
  0x17   : > { %320 = vst [vmem:[%s1151_s30 + $0x50] sm:$0xff] %v319_v10  ;;  %322 = vst [vmem:[%s1151_s30 + $0x58] sm:$0xff] %v321_v11  ;;  %v323_v12 = vld [vmem:[%s1146_s29 + $0xc0] sm:$0xff]  ;;  %v325_v13 = vld [vmem:[%s1146_s29 + $0xd0] sm:$0xff] }
  0x18   : > { %v327_v14 = vld [vmem:[%s1146_s29 + $0xe0] sm:$0xff]  ;;  %324 = vst [vmem:[%s1151_s30 + $0x60] sm:$0xff] %v323_v12  ;;  %326 = vst [vmem:[%s1151_s30 + $0x68] sm:$0xff] %v325_v13  ;;  %v329_v15 = vld [vmem:[%s1146_s29 + $0xf0] sm:$0xff] }
  0x19   : > { %328 = vst [vmem:[%s1151_s30 + $0x70] sm:$0xff] %v327_v14  ;;  %v331_v16 = vld [vmem:[%s1146_s29 + $0x100] sm:$0xff]  ;;  %v333_v17 = vld [vmem:[%s1146_s29 + $0x110] sm:$0xff]  ;;  %330 = vst [vmem:[%s1151_s30 + $0x78] sm:$0xff] %v329_v15 }
  0x1a   : > { %332 = vst [vmem:[%s1151_s30 + $0x80] sm:$0xff] %v331_v16  ;;  %334 = vst [vmem:[%s1151_s30 + $0x88] sm:$0xff] %v333_v17  ;;  %v335_v18 = vld [vmem:[%s1146_s29 + $0x120] sm:$0xff]  ;;  %v337_v19 = vld [vmem:[%s1146_s29 + $0x130] sm:$0xff] }
  0x1b   : > { %v339_v20 = vld [vmem:[%s1146_s29 + $0x140] sm:$0xff]  ;;  %336 = vst [vmem:[%s1151_s30 + $0x90] sm:$0xff] %v335_v18  ;;  %338 = vst [vmem:[%s1151_s30 + $0x98] sm:$0xff] %v337_v19  ;;  %v341_v21 = vld [vmem:[%s1146_s29 + $0x150] sm:$0xff] }
  0x1c   : > { %340 = vst [vmem:[%s1151_s30 + $0xa0] sm:$0xff] %v339_v20  ;;  %v343_v22 = vld [vmem:[%s1146_s29 + $0x160] sm:$0xff]  ;;  %v345_v23 = vld [vmem:[%s1146_s29 + $0x170] sm:$0xff]  ;;  %342 = vst [vmem:[%s1151_s30 + $0xa8] sm:$0xff] %v341_v21 }
  0x1d   : > { %344 = vst [vmem:[%s1151_s30 + $0xb0] sm:$0xff] %v343_v22  ;;  %346 = vst [vmem:[%s1151_s30 + $0xb8] sm:$0xff] %v345_v23  ;;  %v347_v24 = vld [vmem:[%s1146_s29 + $0x180] sm:$0xff]  ;;  %v349_v25 = vld [vmem:[%s1146_s29 + $0x190] sm:$0xff] }
  0x1e   : > { %v351_v26 = vld [vmem:[%s1146_s29 + $0x1a0] sm:$0xff]  ;;  %348 = vst [vmem:[%s1151_s30 + $0xc0] sm:$0xff] %v347_v24  ;;  %350 = vst [vmem:[%s1151_s30 + $0xc8] sm:$0xff] %v349_v25  ;;  %v353_v27 = vld [vmem:[%s1146_s29 + $0x1b0] sm:$0xff] }
  0x1f   : > { %352 = vst [vmem:[%s1151_s30 + $0xd0] sm:$0xff] %v351_v26  ;;  %v355_v28 = vld [vmem:[%s1146_s29 + $0x1c0] sm:$0xff]  ;;  %v357_v29 = vld [vmem:[%s1146_s29 + $0x1d0] sm:$0xff]  ;;  %354 = vst [vmem:[%s1151_s30 + $0xd8] sm:$0xff] %v353_v27 }
  0x20   : > { %356 = vst [vmem:[%s1151_s30 + $0xe0] sm:$0xff] %v355_v28  ;;  %358 = vst [vmem:[%s1151_s30 + $0xe8] sm:$0xff] %v357_v29  ;;  %v359_v30 = vld [vmem:[%s1146_s29 + $0x1e0] sm:$0xff]  ;;  %v361_v31 = vld [vmem:[%s1146_s29 + $0x1f0] sm:$0xff] }
  0x21   : > { %360 = vst [vmem:[%s1151_s30 + $0xf0] sm:$0xff] %v359_v30  ;;  %362 = vst [vmem:[%s1151_s30 + $0xf8] sm:$0xff] %v361_v31 }
  0x22 PF: > { %p903_p6 = scmp.ge.s32.totalorder %s1076_s19, 1  ;;  %p383_p7 = scmp.lt.s32.totalorder %s1076_s19, 3 }
  0x24   : > { %p384_p8 = pnand %p903_p6, %p383_p7 }
  0x25   : > { %s390_s5 = sand.u32 (!%p384_p8), 1, %s1060_s15   ;;  %v1220_v32 = vld [vmem:[%s1285_s0] sm:$0xff] (!%p384_p8)  ;;  %s905_s10 = sshll.u32 (!%p384_p8), %s1068_s17, 1  ;;  %v728_v3 = vlaneseq (!%p384_p8) }
  0x26   : > { %387 = sbr.rel (%p384_p8) target bundleno = 325 (0x145), region = 70  ;;  %s904_s8 = sshll.u32 (!%p384_p8), %s390_s5, 8  ;;  %v910_v33 = vcombine.high (!%p384_p8), %v1220_v32, %v1220_v32  ;;  %v909_v2 = vcombine.low (!%p384_p8), %v1220_v32, %v1220_v32 }
  0x27   : > { %s1224_s9 = scalar_lea.vmem (!%p384_p8), [#allocation3], %s904_s8  ;;  %p449_p9 = scmp.lt.s32.totalorder (!%p384_p8), %s905_s10, 3  ;;  %v729_v4 = vshrl.u32 (!%p384_p8), %v728_v3, 7 }
  0x28   : > { %v988_v34 = vld [vmem:[%s1224_s9 + $0x4] ss:$8 sps:$4 sm:$0xff] (!%p384_p8)   ;;  %708 = vmatprep.mubr.bf16.mxu0 (!%p384_p8), %v910_v33  ;;  %v990_v35 = vld [vmem:[%s1224_s9] ss:$8 sps:$4 sm:$0xff] (!%p384_p8)   ;;  %v991_v36 = vld [vmem:[%s1224_s9 + $0x14] ss:$8 sps:$4 sm:$0xff] (!%p384_p8)  }
  0x29   : > { %676 = vmatprep.subr.bf16.mxu0 (!%p384_p8), %v988_v34  ;;  %v993_v37 = vld [vmem:[%s1224_s9 + $0x10] ss:$8 sps:$4 sm:$0xff] (!%p384_p8)   ;;  %v994_v38 = vld [vmem:[%s1224_s9 + $0x24] ss:$8 sps:$4 sm:$0xff] (!%p384_p8)   ;;  %v996_v39 = vld [vmem:[%s1224_s9 + $0x20] ss:$8 sps:$4 sm:$0xff] (!%p384_p8)  }
  0x2a   : > { %677 = vmatpush1.bf16.msra.mxu0 (!%p384_p8), %v990_v35  ;;  %v997_v40 = vld [vmem:[%s1224_s9 + $0x34] ss:$8 sps:$4 sm:$0xff] (!%p384_p8)   ;;  %v999_v41 = vld [vmem:[%s1224_s9 + $0x30] ss:$8 sps:$4 sm:$0xff] (!%p384_p8)   ;;  %v1000_v42 = vld [vmem:[%s1224_s9 + $0x44] ss:$8 sps:$4 sm:$0xff] (!%p384_p8)  }
  0x2b   : > { %678 = vmatprep.subr.bf16.mxu0 (!%p384_p8), %v991_v36  ;;  %v1002_v43 = vld [vmem:[%s1224_s9 + $0x40] ss:$8 sps:$4 sm:$0xff] (!%p384_p8)   ;;  %v1003_v44 = vld [vmem:[%s1224_s9 + $0x54] ss:$8 sps:$4 sm:$0xff] (!%p384_p8)   ;;  %v1005_v45 = vld [vmem:[%s1224_s9 + $0x50] ss:$8 sps:$4 sm:$0xff] (!%p384_p8)  }
  0x2c   : > { %v1006_v46 = vld [vmem:[%s1224_s9 + $0x64] ss:$8 sps:$4 sm:$0xff] (!%p384_p8)   ;;  %v1008_v47 = vld [vmem:[%s1224_s9 + $0x60] ss:$8 sps:$4 sm:$0xff] (!%p384_p8)   ;;  %v1009_v48 = vld [vmem:[%s1224_s9 + $0x74] ss:$8 sps:$4 sm:$0xff] (!%p384_p8)  }
  0x2d   : > { %v1011_v49 = vld [vmem:[%s1224_s9 + $0x70] ss:$8 sps:$4 sm:$0xff]   ;;  %v1012_v50 = vld [vmem:[%s1224_s9 + $0x84] ss:$8 sps:$4 sm:$0xff]   ;;  %v1014_v51 = vld [vmem:[%s1224_s9 + $0x80] ss:$8 sps:$4 sm:$0xff]  }
  0x2e   : > { %679 = vmatpush1.bf16.msra.mxu0 %v993_v37  ;;  %v1015_v52 = vld [vmem:[%s1224_s9 + $0x94] ss:$8 sps:$4 sm:$0xff]   ;;  %v1017_v53 = vld [vmem:[%s1224_s9 + $0x90] ss:$8 sps:$4 sm:$0xff]   ;;  %v1018_v54 = vld [vmem:[%s1224_s9 + $0xa4] ss:$8 sps:$4 sm:$0xff]  }
  0x2f   : > { %680 = vmatprep.subr.bf16.mxu0 %v994_v38  ;;  %v1020_v55 = vld [vmem:[%s1224_s9 + $0xa0] ss:$8 sps:$4 sm:$0xff]   ;;  %v1021_v56 = vld [vmem:[%s1224_s9 + $0xb4] ss:$8 sps:$4 sm:$0xff]   ;;  %v1023_v57 = vld [vmem:[%s1224_s9 + $0xb0] ss:$8 sps:$4 sm:$0xff]  }
  0x30   : > { %v1024_v58 = vld [vmem:[%s1224_s9 + $0xc4] ss:$8 sps:$4 sm:$0xff]   ;;  %v1026_v59 = vld [vmem:[%s1224_s9 + $0xc0] ss:$8 sps:$4 sm:$0xff]   ;;  %v1027_v60 = vld [vmem:[%s1224_s9 + $0xd4] ss:$8 sps:$4 sm:$0xff]  }
  0x31   : > { %v1029_v61 = vld [vmem:[%s1224_s9 + $0xd0] ss:$8 sps:$4 sm:$0xff]   ;;  %v1030_v62 = vld [vmem:[%s1224_s9 + $0xe4] ss:$8 sps:$4 sm:$0xff]   ;;  %v1032_v63 = vld [vmem:[%s1224_s9 + $0xe0] ss:$8 sps:$4 sm:$0xff]  }
  0x32   : > { %681 = vmatpush1.bf16.msra.mxu0 %v996_v39  ;;  %v1033_v0 = vld [vmem:[%s1224_s9 + $0xf4] ss:$8 sps:$4 sm:$0xff]   ;;  %v1035_v1 = vld [vmem:[%s1224_s9 + $0xf0] ss:$8 sps:$4 sm:$0xff]   ;;  %s1297_s10 = smov (!%p449_p9, %s905_s10), 3  ;;  %v730_v5 = vsub.s32 0, %v729_v4 }
  0x33   : > { %682 = vmatprep.subr.bf16.mxu0 %v997_v40  ;;  %s451_s13 = scalar_lea.vmem %s1287_s2, %s1297_s10  ;;  %s456_s21 = scalar_lea.vmem %s1288_s3, %s1297_s10  ;;  %v734_v7 = vsub.s32 1, %v729_v4 }
  0x34   : > { %v726_v6 = vld [vmem:[%s451_s13] sm:$0x3]  ;;  %s908_s17 = sshll.u32 %s1297_s10, 2 }
  0x35   : > { %v740_v8 = vld [vmem:[%s456_s21] sm:$0x3]  ;;  %v731_v9 = vrot.slane %v726_v6, %v730_v5  ;;  %v735_v10 = vrot.slane %v726_v6, %v734_v7  ;;  %s466_s25 = scalar_lea.vmem %s1289_s4, %s908_s17 }
  0x36   : > { %683 = vmatpush1.bf16.msra.mxu0 %v999_v41  ;;  %v745_v11 = vrot.slane %v740_v8, %v730_v5  ;;  %v749_v13 = vrot.slane %v740_v8, %v734_v7 }
  0x37   : > { %684 = vmatprep.subr.bf16.mxu0 %v1000_v42 }
  0x3a   : > { %685 = vmatpush1.bf16.msra.mxu0 %v1002_v43 }
  0x3b   : > { %686 = vmatprep.subr.bf16.mxu0 %v1003_v44 }
  0x3e   : > { %687 = vmatpush1.bf16.msra.mxu0 %v1005_v45 }
  0x3f   : > { %688 = vmatprep.subr.bf16.mxu0 %v1006_v46 }
  0x42   : > { %689 = vmatpush1.bf16.msra.mxu0 %v1008_v47 }
  0x43   : > { %690 = vmatprep.subr.bf16.mxu0 %v1009_v48 }
  0x46   : > { %691 = vmatpush1.bf16.msra.mxu0 %v1011_v49 }
  0x47   : > { %692 = vmatprep.subr.bf16.mxu0 %v1012_v50 }
  0x4a   : > { %693 = vmatpush1.bf16.msra.mxu0 %v1014_v51 }
  0x4b   : > { %694 = vmatprep.subr.bf16.mxu0 %v1015_v52 }
  0x4e   : > { %695 = vmatpush1.bf16.msra.mxu0 %v1017_v53 }
  0x4f   : > { %696 = vmatprep.subr.bf16.mxu0 %v1018_v54 }
  0x52   : > { %697 = vmatpush1.bf16.msra.mxu0 %v1020_v55 }
  0x53   : > { %698 = vmatprep.subr.bf16.mxu0 %v1021_v56 }
  0x56   : > { %699 = vmatpush1.bf16.msra.mxu0 %v1023_v57 }
  0x57   : > { %700 = vmatprep.subr.bf16.mxu0 %v1024_v58 }
  0x5a   : > { %701 = vmatpush1.bf16.msra.mxu0 %v1026_v59 }
  0x5b   : > { %702 = vmatprep.subr.bf16.mxu0 %v1027_v60 }
  0x5e   : > { %703 = vmatpush1.bf16.msra.mxu0 %v1029_v61 }
  0x5f   : > { %704 = vmatprep.subr.bf16.mxu0 %v1030_v62 }
  0x62   : > { %705 = vmatpush1.bf16.msra.mxu0 %v1032_v63 }
  0x63   : > { %706 = vmatprep.subr.bf16.mxu0 %v1033_v0 }
  0x66   : > { %707 = vmatpush1.bf16.msra.mxu0 %v1035_v1 }
  0x69   : > { %709 = vmatmul.mubr.bf16.vlgmr.msra.gmra.mrb[0].mxu0 %v909_v2 }
 0x13c   : > { %v710_v12 = vpop.f32.mrb[0].mxu0 }
 0x13d   : > { %v738_v14 = vmul.f32 %v731_v9, %v710_v12  ;;  %v712_v15 = vpop.f32.mrb[1].mxu0 }
 0x13e   : > { %v739_v16 = vmul.f32 %v735_v10, %v712_v15  ;;  %v714_v17 = vpop.f32.mrb[2].mxu0 }
 0x13f   : > { %v752_v18 = vadd.f32 %v745_v11, %v738_v14  ;;  %v715_v19 = vpop.f32.mrb[3].mxu0 }
 0x140   : > { %v753_v20 = vadd.f32 %v749_v13, %v739_v16 }
 0x142   : > { %v947_v21 = vpack.c.bf16 %v753_v20, %v752_v18 }
 0x144   : > { %762 = vst [vmem:[%s466_s25] sm:$0xff] %v947_v21 }
 0x145 PF: > { %s14_s19 = sadd.s32 1, %s1076_s19   ;;  %s1290_s15 = smov %s1064_s16 }
 0x146   : > { %p11_p10 = scmp.ge.s32.totalorder %s14_s19, 4   ;;  %s1291_s16 = smov %s1138_s23 }
 0x147   : > { %s1292_s17 = smov %s1072_s18  ;;  %s1293_s18 = smov %s1295_s20 }
 0x148   :  { %13 = sbr.rel (!%p11_p10) target bundleno = 3 (0x3), region = 126 }

// kernel: encoder_m_forward.62
= control target key start
LH: loop header
LB: loop body
LE: loop exit
PB: predicated region body
PF: predicated region fallthrough
CT: control target
= control target key end

     0   :  { %s659_s1 = inlined_call_operand.vmem [shape: bf16[512,128], index: 1, kind: input, shape index: {}]   ;;  %s660_s0 = inlined_call_operand.vmem [shape: bf16[8,512], index: 0, kind: input, shape index: {}]   ;;  %s661_s2 = inlined_call_operand.vmem [shape: f32[1,128], index: 2, kind: input, shape index: {}]   ;;  %s662_s3 = inlined_call_operand.vmem [shape: f32[1,128], index: 3, kind: input, shape index: {}]   ;;  %s663_s4 = inlined_call_operand.vmem [shape: bf16[8,128], index: 4, kind: output, shape index: {}]  }
   0x1   :  { %v487_v0 = vld [vmem:[%s659_s1 + $0x40] sm:$0xff]   ;;  %v491_v4 = vld [vmem:[%s659_s1 + $0x48] sm:$0xff]   ;;  %v495_v8 = vld [vmem:[%s659_s1 + $0x50] sm:$0xff]  }
   0x2   :  { %v488_v1 = vld [vmem:[%s659_s1 + $0xc0] sm:$0xff]   ;;  %443 = vmatprep.subr.bf16.mxu0 %v487_v0  ;;  %v492_v5 = vld [vmem:[%s659_s1 + $0xc8] sm:$0xff]   ;;  %v496_v9 = vld [vmem:[%s659_s1 + $0xd0] sm:$0xff]  }
   0x3   :  { %v489_v2 = vld [vmem:[%s659_s1] sm:$0xff]   ;;  %465 = vmatprep.subr.bf16.mxu1 %v488_v1  ;;  %v493_v6 = vld [vmem:[%s659_s1 + $0x8] sm:$0xff]   ;;  %v497_v10 = vld [vmem:[%s659_s1 + $0x10] sm:$0xff]  }
   0x4   :  { %v490_v3 = vld [vmem:[%s659_s1 + $0x80] sm:$0xff]   ;;  %444 = vmatpush3.bf16.msra.mxu0 %v489_v2  ;;  %v494_v7 = vld [vmem:[%s659_s1 + $0x88] sm:$0xff]   ;;  %v498_v11 = vld [vmem:[%s659_s1 + $0x90] sm:$0xff]  }
   0x5   :  { %466 = vmatpush3.bf16.msra.mxu1 %v490_v3  ;;  %445 = vmatprep.subr.bf16.mxu0 %v491_v4  ;;  %v499_v12 = vld [vmem:[%s659_s1 + $0x58] sm:$0xff]   ;;  %v503_v16 = vld [vmem:[%s659_s1 + $0x60] sm:$0xff]   ;;  %v507_v20 = vld [vmem:[%s659_s1 + $0x68] sm:$0xff]  }
   0x6   :  { %467 = vmatprep.subr.bf16.mxu1 %v492_v5  ;;  %v500_v13 = vld [vmem:[%s659_s1 + $0xd8] sm:$0xff]   ;;  %v504_v17 = vld [vmem:[%s659_s1 + $0xe0] sm:$0xff]   ;;  %v508_v21 = vld [vmem:[%s659_s1 + $0xe8] sm:$0xff]  }
   0x7   :  { %v501_v14 = vld [vmem:[%s659_s1 + $0x18] sm:$0xff]   ;;  %v505_v18 = vld [vmem:[%s659_s1 + $0x20] sm:$0xff]   ;;  %v509_v22 = vld [vmem:[%s659_s1 + $0x28] sm:$0xff]  }
   0x8   :  { %446 = vmatpush3.bf16.msra.mxu0 %v493_v6  ;;  %v502_v15 = vld [vmem:[%s659_s1 + $0x98] sm:$0xff]   ;;  %v506_v19 = vld [vmem:[%s659_s1 + $0xa0] sm:$0xff]   ;;  %v510_v23 = vld [vmem:[%s659_s1 + $0xa8] sm:$0xff]  }
   0x9   :  { %468 = vmatpush3.bf16.msra.mxu1 %v494_v7  ;;  %447 = vmatprep.subr.bf16.mxu0 %v495_v8  ;;  %v511_v24 = vld [vmem:[%s659_s1 + $0x70] sm:$0xff]   ;;  %v515_v28 = vld [vmem:[%s659_s1 + $0x78] sm:$0xff]   ;;  %v24_v32 = vld [vmem:[%s660_s0] sm:$0xff] }
   0xa   :  { %469 = vmatprep.subr.bf16.mxu1 %v496_v9  ;;  %v512_v25 = vld [vmem:[%s659_s1 + $0xf0] sm:$0xff]   ;;  %v516_v29 = vld [vmem:[%s659_s1 + $0xf8] sm:$0xff]   ;;  %v25_v33 = vld [vmem:[%s660_s0 + $0x8] sm:$0xff]  ;;  %v405_v34 = vcombine.low %v24_v32, %v24_v32  ;;  %v406_v35 = vcombine.high %v24_v32, %v24_v32 }
   0xb   :  { %v513_v26 = vld [vmem:[%s659_s1 + $0x30] sm:$0xff]   ;;  %v517_v30 = vld [vmem:[%s659_s1 + $0x38] sm:$0xff]   ;;  %v407_v36 = vcombine.low %v25_v33, %v25_v33  ;;  %v408_v37 = vcombine.high %v25_v33, %v25_v33  ;;  %v441_v46 = vld [vmem:[%s661_s2] ss:$0 sm:$0xff] }
   0xc   :  { %448 = vmatpush3.bf16.msra.mxu0 %v497_v10  ;;  %v514_v27 = vld [vmem:[%s659_s1 + $0xb0] sm:$0xff]   ;;  %v518_v31 = vld [vmem:[%s659_s1 + $0xb8] sm:$0xff]   ;;  %328 = vmatprep.mubr.bf16.mxu0 %v406_v35  ;;  %v442_v50 = vld [vmem:[%s662_s3] ss:$0 sm:$0xff] }
   0xd   :  { %470 = vmatpush3.bf16.msra.mxu1 %v498_v11  ;;  %449 = vmatprep.subr.bf16.mxu0 %v499_v12 }
   0xe   :  { %471 = vmatprep.subr.bf16.mxu1 %v500_v13  ;;  %368 = vmatprep.mubr.bf16.mxu1 %v408_v37 }
  0x10   :  { %450 = vmatpush3.bf16.msra.mxu0 %v501_v14 }
  0x11   :  { %472 = vmatpush3.bf16.msra.mxu1 %v502_v15  ;;  %451 = vmatprep.subr.bf16.mxu0 %v503_v16 }
  0x12   :  { %473 = vmatprep.subr.bf16.mxu1 %v504_v17 }
  0x14   :  { %452 = vmatpush3.bf16.msra.mxu0 %v505_v18 }
  0x15   :  { %474 = vmatpush3.bf16.msra.mxu1 %v506_v19  ;;  %453 = vmatprep.subr.bf16.mxu0 %v507_v20 }
  0x16   :  { %475 = vmatprep.subr.bf16.mxu1 %v508_v21 }
  0x18   :  { %454 = vmatpush3.bf16.msra.mxu0 %v509_v22 }
  0x19   :  { %476 = vmatpush3.bf16.msra.mxu1 %v510_v23  ;;  %455 = vmatprep.subr.bf16.mxu0 %v511_v24 }
  0x1a   :  { %477 = vmatprep.subr.bf16.mxu1 %v512_v25 }
  0x1c   :  { %456 = vmatpush3.bf16.msra.mxu0 %v513_v26 }
  0x1d   :  { %478 = vmatpush3.bf16.msra.mxu1 %v514_v27  ;;  %457 = vmatprep.subr.bf16.mxu0 %v515_v28 }
  0x1e   :  { %479 = vmatprep.subr.bf16.mxu1 %v516_v29 }
  0x20   :  { %458 = vmatpush3.bf16.msra.mxu0 %v517_v30 }
  0x21   :  { %480 = vmatpush3.bf16.msra.mxu1 %v518_v31 }
  0x23   :  { %329 = vmatmul.mubr.bf16.vlgmr.msra.gmra.mrb[0].mxu0 %v405_v34 }
  0x24   :  { %369 = vmatmul.mubr.bf16.vlgmr.msra.gmra.mrb[0].mxu1 %v407_v36 }
  0xf6   :  { %v459_v38 = vpop.f32.mrb[0].mxu0 }
  0xf7   :  { %v481_v39 = vpop.f32.mrb[0].mxu1  ;;  %v460_v40 = vpop.f32.mrb[1].mxu0 }
  0xf8   :  { %v482_v41 = vpop.f32.mrb[1].mxu1  ;;  %v461_v42 = vadd.f32 %v460_v40, %v459_v38  ;;  %v462_v44 = vpop.f32.mrb[2].mxu0 }
  0xf9   :  { %v483_v43 = vadd.f32 %v482_v41, %v481_v39  ;;  %v484_v45 = vpop.f32.mrb[2].mxu1  ;;  %v463_v47 = vpop.f32.mrb[3].mxu0 }
  0xfa   :  { %v485_v48 = vpop.f32.mrb[3].mxu1 }
  0xfb   :  { %v371_v49 = vadd.f32 %v483_v43, %v461_v42 }
  0xfd   :  { %v389_v51 = vmul.f32 %v441_v46, %v371_v49 }
  0xff   :  { %v397_v52 = vadd.f32 %v442_v50, %v389_v51 }
 0x101   :  { %v398_v53 = vmax.f32 %v397_v52, 0.0 }
 0x103   :  { %v399_v54 = vpack.c.bf16 %v398_v53, %v398_v53 }
 0x105   :  { %400 = vst [vmem:[%s663_s4] sm:$0xf] %v399_v54 }

// kernel: encoder_m_forward.72
= control target key start
LH: loop header
LB: loop body
LE: loop exit
PB: predicated region body
PF: predicated region fallthrough
CT: control target
= control target key end

     0   :  { %s963_s1 = inlined_call_operand.vmem [shape: bf16[512,256], index: 1, kind: input, shape index: {}]   ;;  %s964_s0 = inlined_call_operand.vmem [shape: bf16[8,512], index: 0, kind: input, shape index: {}]   ;;  %s965_s2 = inlined_call_operand.vmem [shape: f32[1,256], index: 2, kind: input, shape index: {}]   ;;  %s966_s3 = inlined_call_operand.vmem [shape: f32[1,256], index: 3, kind: input, shape index: {}]   ;;  %s967_s4 = inlined_call_operand.vmem [shape: bf16[8,256], index: 4, kind: output, shape index: {}]  }
   0x1   :  { %v631_v0 = vld [vmem:[%s963_s1 + $0x4] ss:$8 sps:$4 sm:$0xff]   ;;  %v635_v2 = vld [vmem:[%s963_s1] ss:$8 sps:$4 sm:$0xff]   ;;  %v637_v4 = vld [vmem:[%s963_s1 + $0x14] ss:$8 sps:$4 sm:$0xff]  }
   0x2   :  { %v633_v1 = vld [vmem:[%s963_s1 + $0x104] ss:$8 sps:$4 sm:$0xff]   ;;  %425 = vmatprep.subr.bf16.mxu1 %v631_v0  ;;  %v636_v3 = vld [vmem:[%s963_s1 + $0x100] ss:$8 sps:$4 sm:$0xff]   ;;  %v639_v5 = vld [vmem:[%s963_s1 + $0x114] ss:$8 sps:$4 sm:$0xff]  }
   0x3   :  { %466 = vmatprep.subr.bf16.mxu0 %v633_v1  ;;  %426 = vmatpush1.bf16.msra.mxu1 %v635_v2  ;;  %v641_v6 = vld [vmem:[%s963_s1 + $0x10] ss:$8 sps:$4 sm:$0xff]   ;;  %v643_v8 = vld [vmem:[%s963_s1 + $0x24] ss:$8 sps:$4 sm:$0xff]   ;;  %v647_v10 = vld [vmem:[%s963_s1 + $0x20] ss:$8 sps:$4 sm:$0xff]  }
   0x4   :  { %467 = vmatpush1.bf16.msra.mxu0 %v636_v3  ;;  %427 = vmatprep.subr.bf16.mxu1 %v637_v4  ;;  %v642_v7 = vld [vmem:[%s963_s1 + $0x110] ss:$8 sps:$4 sm:$0xff]   ;;  %v645_v9 = vld [vmem:[%s963_s1 + $0x124] ss:$8 sps:$4 sm:$0xff]   ;;  %v648_v11 = vld [vmem:[%s963_s1 + $0x120] ss:$8 sps:$4 sm:$0xff]  }
   0x5   :  { %468 = vmatprep.subr.bf16.mxu0 %v639_v5  ;;  %v649_v12 = vld [vmem:[%s963_s1 + $0x34] ss:$8 sps:$4 sm:$0xff]   ;;  %v653_v14 = vld [vmem:[%s963_s1 + $0x30] ss:$8 sps:$4 sm:$0xff]   ;;  %v655_v16 = vld [vmem:[%s963_s1 + $0x44] ss:$8 sps:$4 sm:$0xff]  }
   0x6   :  { %v651_v13 = vld [vmem:[%s963_s1 + $0x134] ss:$8 sps:$4 sm:$0xff]   ;;  %v654_v15 = vld [vmem:[%s963_s1 + $0x130] ss:$8 sps:$4 sm:$0xff]   ;;  %v657_v17 = vld [vmem:[%s963_s1 + $0x144] ss:$8 sps:$4 sm:$0xff]  }
   0x7   :  { %428 = vmatpush1.bf16.msra.mxu1 %v641_v6  ;;  %v659_v18 = vld [vmem:[%s963_s1 + $0x40] ss:$8 sps:$4 sm:$0xff]   ;;  %v661_v20 = vld [vmem:[%s963_s1 + $0x54] ss:$8 sps:$4 sm:$0xff]   ;;  %v665_v22 = vld [vmem:[%s963_s1 + $0x50] ss:$8 sps:$4 sm:$0xff]   ;;  %v518_v6 = vlaneseq }
   0x8   :  { %469 = vmatpush1.bf16.msra.mxu0 %v642_v7  ;;  %429 = vmatprep.subr.bf16.mxu1 %v643_v8  ;;  %v660_v19 = vld [vmem:[%s963_s1 + $0x140] ss:$8 sps:$4 sm:$0xff]   ;;  %v663_v21 = vld [vmem:[%s963_s1 + $0x154] ss:$8 sps:$4 sm:$0xff]   ;;  %v666_v23 = vld [vmem:[%s963_s1 + $0x150] ss:$8 sps:$4 sm:$0xff]  }
   0x9   :  { %470 = vmatprep.subr.bf16.mxu0 %v645_v9  ;;  %v667_v24 = vld [vmem:[%s963_s1 + $0x64] ss:$8 sps:$4 sm:$0xff]   ;;  %v671_v26 = vld [vmem:[%s963_s1 + $0x60] ss:$8 sps:$4 sm:$0xff]   ;;  %v673_v28 = vld [vmem:[%s963_s1 + $0x74] ss:$8 sps:$4 sm:$0xff]  }
   0xa   :  { %v669_v25 = vld [vmem:[%s963_s1 + $0x164] ss:$8 sps:$4 sm:$0xff]   ;;  %v672_v27 = vld [vmem:[%s963_s1 + $0x160] ss:$8 sps:$4 sm:$0xff]   ;;  %v675_v29 = vld [vmem:[%s963_s1 + $0x174] ss:$8 sps:$4 sm:$0xff]  }
   0xb   :  { %430 = vmatpush1.bf16.msra.mxu1 %v647_v10  ;;  %v677_v30 = vld [vmem:[%s963_s1 + $0x70] ss:$8 sps:$4 sm:$0xff]   ;;  %v679_v32 = vld [vmem:[%s963_s1 + $0x84] ss:$8 sps:$4 sm:$0xff]   ;;  %v683_v34 = vld [vmem:[%s963_s1 + $0x80] ss:$8 sps:$4 sm:$0xff]  }
   0xc   :  { %471 = vmatpush1.bf16.msra.mxu0 %v648_v11  ;;  %431 = vmatprep.subr.bf16.mxu1 %v649_v12  ;;  %v678_v31 = vld [vmem:[%s963_s1 + $0x170] ss:$8 sps:$4 sm:$0xff]   ;;  %v681_v33 = vld [vmem:[%s963_s1 + $0x184] ss:$8 sps:$4 sm:$0xff]   ;;  %v684_v35 = vld [vmem:[%s963_s1 + $0x180] ss:$8 sps:$4 sm:$0xff]  }
   0xd   :  { %472 = vmatprep.subr.bf16.mxu0 %v651_v13  ;;  %v685_v36 = vld [vmem:[%s963_s1 + $0x94] ss:$8 sps:$4 sm:$0xff]   ;;  %v689_v38 = vld [vmem:[%s963_s1 + $0x90] ss:$8 sps:$4 sm:$0xff]   ;;  %v691_v40 = vld [vmem:[%s963_s1 + $0xa4] ss:$8 sps:$4 sm:$0xff]  }
   0xe   :  { %v687_v37 = vld [vmem:[%s963_s1 + $0x194] ss:$8 sps:$4 sm:$0xff]   ;;  %v690_v39 = vld [vmem:[%s963_s1 + $0x190] ss:$8 sps:$4 sm:$0xff]   ;;  %v693_v41 = vld [vmem:[%s963_s1 + $0x1a4] ss:$8 sps:$4 sm:$0xff]  }
   0xf   :  { %432 = vmatpush1.bf16.msra.mxu1 %v653_v14  ;;  %v695_v42 = vld [vmem:[%s963_s1 + $0xa0] ss:$8 sps:$4 sm:$0xff]   ;;  %v697_v44 = vld [vmem:[%s963_s1 + $0xb4] ss:$8 sps:$4 sm:$0xff]   ;;  %v701_v49 = vld [vmem:[%s963_s1 + $0xb0] ss:$8 sps:$4 sm:$0xff]  }
  0x10   :  { %473 = vmatpush1.bf16.msra.mxu0 %v654_v15  ;;  %433 = vmatprep.subr.bf16.mxu1 %v655_v16  ;;  %v696_v43 = vld [vmem:[%s963_s1 + $0x1a0] ss:$8 sps:$4 sm:$0xff]   ;;  %v699_v45 = vld [vmem:[%s963_s1 + $0x1b4] ss:$8 sps:$4 sm:$0xff]   ;;  %v702_v50 = vld [vmem:[%s963_s1 + $0x1b0] ss:$8 sps:$4 sm:$0xff]  }
  0x11   :  { %474 = vmatprep.subr.bf16.mxu0 %v657_v17  ;;  %v25_v46 = vld [vmem:[%s964_s0] sm:$0xff]  ;;  %v26_v48 = vld [vmem:[%s964_s0 + $0x8] sm:$0xff]  ;;  %v709_v56 = vld [vmem:[%s963_s1 + $0xd4] ss:$8 sps:$4 sm:$0xff]   ;;  %v519_v7 = vshrl.u32 %v518_v6, 7 }
  0x12   :  { %v560_v47 = vcombine.high %v25_v46, %v25_v46  ;;  %v562_v51 = vcombine.high %v26_v48, %v26_v48  ;;  %v703_v52 = vld [vmem:[%s963_s1 + $0xc4] ss:$8 sps:$4 sm:$0xff]   ;;  %v707_v54 = vld [vmem:[%s963_s1 + $0xc0] ss:$8 sps:$4 sm:$0xff]   ;;  %v711_v57 = vld [vmem:[%s963_s1 + $0x1d4] ss:$8 sps:$4 sm:$0xff]   ;;  %v559_v4 = vcombine.low %v25_v46, %v25_v46  ;;  %v561_v5 = vcombine.low %v26_v48, %v26_v48 }
  0x13   :  { %434 = vmatpush1.bf16.msra.mxu1 %v659_v18  ;;  %v705_v53 = vld [vmem:[%s963_s1 + $0x1c4] ss:$8 sps:$4 sm:$0xff]   ;;  %v708_v55 = vld [vmem:[%s963_s1 + $0x1c0] ss:$8 sps:$4 sm:$0xff]   ;;  %v713_v58 = vld [vmem:[%s963_s1 + $0xd0] ss:$8 sps:$4 sm:$0xff]  }
  0x14   :  { %475 = vmatpush1.bf16.msra.mxu0 %v660_v19  ;;  %435 = vmatprep.subr.bf16.mxu1 %v661_v20  ;;  %v714_v59 = vld [vmem:[%s963_s1 + $0x1d0] ss:$8 sps:$4 sm:$0xff]   ;;  %v715_v60 = vld [vmem:[%s963_s1 + $0xe4] ss:$8 sps:$4 sm:$0xff]   ;;  %v719_v62 = vld [vmem:[%s963_s1 + $0xe0] ss:$8 sps:$4 sm:$0xff]  }
  0x15   :  { %476 = vmatprep.subr.bf16.mxu0 %v663_v21  ;;  %457 = vmatprep.mubr.bf16.mxu1 %v560_v47  ;;  %v717_v61 = vld [vmem:[%s963_s1 + $0x1e4] ss:$8 sps:$4 sm:$0xff]   ;;  %v720_v63 = vld [vmem:[%s963_s1 + $0x1e0] ss:$8 sps:$4 sm:$0xff]   ;;  %v721_v0 = vld [vmem:[%s963_s1 + $0xf4] ss:$8 sps:$4 sm:$0xff]  }
  0x16   :  { %498 = vmatprep.mubr.bf16.mxu0 %v562_v51  ;;  %v723_v1 = vld [vmem:[%s963_s1 + $0x1f4] ss:$8 sps:$4 sm:$0xff]   ;;  %v725_v2 = vld [vmem:[%s963_s1 + $0xf0] ss:$8 sps:$4 sm:$0xff]   ;;  %v520_v8 = vsub.s32 0, %v519_v7  ;;  %v524_v10 = vsub.s32 1, %v519_v7 }
  0x17   :  { %436 = vmatpush1.bf16.msra.mxu1 %v665_v22  ;;  %v726_v3 = vld [vmem:[%s963_s1 + $0x1f0] ss:$8 sps:$4 sm:$0xff]   ;;  %v516_v9 = vld [vmem:[%s965_s2] sm:$0x3] }
  0x18   :  { %477 = vmatpush1.bf16.msra.mxu0 %v666_v23  ;;  %437 = vmatprep.subr.bf16.mxu1 %v667_v24  ;;  %v530_v11 = vld [vmem:[%s966_s3] sm:$0x3]  ;;  %v521_v12 = vrot.slane %v516_v9, %v520_v8  ;;  %v525_v15 = vrot.slane %v516_v9, %v524_v10 }
  0x19   :  { %478 = vmatprep.subr.bf16.mxu0 %v669_v25  ;;  %v535_v17 = vrot.slane %v530_v11, %v520_v8  ;;  %v539_v21 = vrot.slane %v530_v11, %v524_v10 }
  0x1b   :  { %438 = vmatpush1.bf16.msra.mxu1 %v671_v26 }
  0x1c   :  { %479 = vmatpush1.bf16.msra.mxu0 %v672_v27  ;;  %439 = vmatprep.subr.bf16.mxu1 %v673_v28 }
  0x1d   :  { %480 = vmatprep.subr.bf16.mxu0 %v675_v29 }
  0x1f   :  { %440 = vmatpush1.bf16.msra.mxu1 %v677_v30 }
  0x20   :  { %481 = vmatpush1.bf16.msra.mxu0 %v678_v31  ;;  %441 = vmatprep.subr.bf16.mxu1 %v679_v32 }
  0x21   :  { %482 = vmatprep.subr.bf16.mxu0 %v681_v33 }
  0x23   :  { %442 = vmatpush1.bf16.msra.mxu1 %v683_v34 }
  0x24   :  { %483 = vmatpush1.bf16.msra.mxu0 %v684_v35  ;;  %443 = vmatprep.subr.bf16.mxu1 %v685_v36 }
  0x25   :  { %484 = vmatprep.subr.bf16.mxu0 %v687_v37 }
  0x27   :  { %444 = vmatpush1.bf16.msra.mxu1 %v689_v38 }
  0x28   :  { %485 = vmatpush1.bf16.msra.mxu0 %v690_v39  ;;  %445 = vmatprep.subr.bf16.mxu1 %v691_v40 }
  0x29   :  { %486 = vmatprep.subr.bf16.mxu0 %v693_v41 }
  0x2b   :  { %446 = vmatpush1.bf16.msra.mxu1 %v695_v42 }
  0x2c   :  { %487 = vmatpush1.bf16.msra.mxu0 %v696_v43  ;;  %447 = vmatprep.subr.bf16.mxu1 %v697_v44 }
  0x2d   :  { %488 = vmatprep.subr.bf16.mxu0 %v699_v45 }
  0x2f   :  { %448 = vmatpush1.bf16.msra.mxu1 %v701_v49 }
  0x30   :  { %489 = vmatpush1.bf16.msra.mxu0 %v702_v50  ;;  %449 = vmatprep.subr.bf16.mxu1 %v703_v52 }
  0x31   :  { %490 = vmatprep.subr.bf16.mxu0 %v705_v53 }
  0x33   :  { %450 = vmatpush1.bf16.msra.mxu1 %v707_v54 }
  0x34   :  { %491 = vmatpush1.bf16.msra.mxu0 %v708_v55  ;;  %451 = vmatprep.subr.bf16.mxu1 %v709_v56 }
  0x35   :  { %492 = vmatprep.subr.bf16.mxu0 %v711_v57 }
  0x37   :  { %452 = vmatpush1.bf16.msra.mxu1 %v713_v58 }
  0x38   :  { %493 = vmatpush1.bf16.msra.mxu0 %v714_v59  ;;  %453 = vmatprep.subr.bf16.mxu1 %v715_v60 }
  0x39   :  { %494 = vmatprep.subr.bf16.mxu0 %v717_v61 }
  0x3b   :  { %454 = vmatpush1.bf16.msra.mxu1 %v719_v62 }
  0x3c   :  { %495 = vmatpush1.bf16.msra.mxu0 %v720_v63  ;;  %455 = vmatprep.subr.bf16.mxu1 %v721_v0 }
  0x3d   :  { %496 = vmatprep.subr.bf16.mxu0 %v723_v1 }
  0x3f   :  { %456 = vmatpush1.bf16.msra.mxu1 %v725_v2 }
  0x40   :  { %497 = vmatpush1.bf16.msra.mxu0 %v726_v3 }
  0x42   :  { %458 = vmatmul.mubr.bf16.vlgmr.msra.gmra.mrb[0].mxu1 %v559_v4 }
  0x43   :  { %499 = vmatmul.mubr.bf16.vlgmr.msra.gmra.mrb[0].mxu0 %v561_v5 }
 0x115   :  { %v459_v13 = vpop.f32.mrb[0].mxu1 }
 0x116   :  { %v500_v14 = vpop.f32.mrb[0].mxu0  ;;  %v461_v18 = vpop.f32.mrb[1].mxu1 }
 0x117   :  { %v501_v16 = vadd.f32 %v500_v14, %v459_v13  ;;  %v502_v19 = vpop.f32.mrb[1].mxu0  ;;  %v463_v22 = vpop.f32.mrb[2].mxu1 }
 0x118   :  { %v503_v20 = vadd.f32 %v502_v19, %v461_v18  ;;  %v504_v23 = vpop.f32.mrb[2].mxu0  ;;  %v464_v25 = vpop.f32.mrb[3].mxu1 }
 0x119   :  { %v528_v24 = vmul.f32 %v521_v12, %v501_v16  ;;  %v505_v26 = vpop.f32.mrb[3].mxu0 }
 0x11a   :  { %v529_v27 = vmul.f32 %v525_v15, %v503_v20 }
 0x11b   :  { %v542_v28 = vadd.f32 %v535_v17, %v528_v24 }
 0x11c   :  { %v543_v29 = vadd.f32 %v539_v21, %v529_v27 }
 0x11d   :  { %v544_v30 = vmax.f32 %v542_v28, 0.0 }
 0x11e   :  { %v545_v31 = vmax.f32 %v543_v29, 0.0 }
 0x120   :  { %v628_v32 = vpack.c.bf16 %v545_v31, %v544_v30 }
 0x122   :  { %554 = vst [vmem:[%s967_s4] sm:$0xff] %v628_v32 }

// kernel: encoder_m_forward.73
= control target key start
LH: loop header
LB: loop body
LE: loop exit
PB: predicated region body
PF: predicated region fallthrough
CT: control target
= control target key end

     0   :  { %s1155_s15 = smov 0   ;;  %s1157_s16 = smov 0   ;;  %s1272_s0 = inlined_call_operand.vmem [shape: bf16[2,2304], index: 0, kind: input, shape index: {}]   ;;  %s1273_s1 = inlined_call_operand.vmem [shape: bf16[2304,256], index: 1, kind: input, shape index: {}]   ;;  %s1274_s2 = inlined_call_operand.vmem [shape: f32[1,256], index: 2, kind: input, shape index: {}]   ;;  %s1275_s3 = inlined_call_operand.vmem [shape: f32[1,256], index: 3, kind: input, shape index: {}]   ;;  %s1276_s4 = inlined_call_operand.vmem [shape: bf16[2,256], index: 4, kind: output, shape index: {}]  }
   0x1   :  { %s1159_s17 = smov 0  }
   0x2 LB: > { %s26_s18 = sadd.s32 1, %s1120_s16  ;;  %p939_p0 = scmp.ge.s32.totalorder %s1124_s17, 1  ;;  %s1124_s17 = sphi %s1159_s17, %s14_s17   ;;  %s1120_s16 = sphi %s1157_s16, %s1278_s16   ;;  %s1116_s15 = sphi %s1155_s15, %s1277_s15  }
   0x3   : > { %p27_p1 = scmp.ge.s32.totalorder %s26_s18, 6  ;;  %p228_p2 = scmp.lt.s32.totalorder %s1124_s17, 7 }
   0x5   : > { %s1280_s18 = smov (%p27_p1, %s26_s18), 0  ;;  %p229_p3 = pnand %p939_p0, %p228_p2 }
   0x6   : > { %s278_s19 = smul.u32 (!%p229_p3), 3, %s1116_s15  ;;  %p942_p6 = scmp.ne.s32.totalorder (!%p229_p3), %s1116_s15, 0 }
   0x7   : > { %232 = sbr.rel (%p229_p3) target bundleno = 332 (0x14c), region = 36 }
   0x8   : > { %s287_s20 = smul.u32 (!%p229_p3), 48, %s1116_s15  ;;  %p281_p4 = scmp.lt.s32.totalorder (!%p229_p3), %s278_s19, 17 }
   0xa   : > { %p289_p5 = scmp.lt.s32.totalorder (!%p229_p3), %s287_s20, 287 }
   0xe   : > { %s1282_s19 = smov (!%p281_p4, %s278_s19), 17  ;;  %s1284_s20 = smov (!%p289_p5, %s287_s20), 287 }
   0xf   : > { %s285_s23 = scalar_lea.vmem %s1272_s0, %s1282_s19  ;;  %s999_s24 = sshll.u32 %s1284_s20, 3  ;;  %v1126_v0 = vmov (!%p942_p6), 0.0  }
  0x10   : > { %s1186_s27 = scalar_lea.vmem %s1273_s1, %s999_s24  ;;  %322 = sbr.rel (%p942_p6) target bundleno = 23 (0x17), region = 40  ;;  %323 = vst [vmem:[#allocation2] sm:$0xf] (!%p942_p6), %v1126_v0 }
  0x17 PF: > { %v1030_v1 = vld [vmem:[%s1186_s27 + $0x4] ss:$8 sps:$4 sm:$0xff]   ;;  %v1032_v2 = vld [vmem:[%s1186_s27] ss:$8 sps:$4 sm:$0xff]   ;;  %v1127_v3 = vmov 0   ;;  %v386_v28 = vlaneseq  ;;  %p992_p7 = scmp.ne.s32.totalorder %s1116_s15, 5 }
  0x18   : > { %714 = vmatprep.mubr.bf16.mxu0 %v1127_v3  ;;  %641 = vmatprep.subr.bf16.mxu1 %v1030_v1  ;;  %v1033_v4 = vld [vmem:[%s1186_s27 + $0x14] ss:$8 sps:$4 sm:$0xff]   ;;  %v1035_v5 = vld [vmem:[%s1186_s27 + $0x10] ss:$8 sps:$4 sm:$0xff]   ;;  %v1036_v6 = vld [vmem:[%s1186_s27 + $0x24] ss:$8 sps:$4 sm:$0xff]  }
  0x19   : > { %642 = vmatpush1.bf16.msra.mxu1 %v1032_v2  ;;  %v1038_v7 = vld [vmem:[%s1186_s27 + $0x20] ss:$8 sps:$4 sm:$0xff]   ;;  %v1039_v8 = vld [vmem:[%s1186_s27 + $0x34] ss:$8 sps:$4 sm:$0xff]   ;;  %v1041_v9 = vld [vmem:[%s1186_s27 + $0x30] ss:$8 sps:$4 sm:$0xff]  }
  0x1a   : > { %643 = vmatprep.subr.bf16.mxu1 %v1033_v4  ;;  %v1054_v10 = vld [vmem:[%s1186_s27 + $0x104] ss:$8 sps:$4 sm:$0xff]   ;;  %v1056_v11 = vld [vmem:[%s1186_s27 + $0x100] ss:$8 sps:$4 sm:$0xff]   ;;  %v1060_v13 = vld [vmem:[%s1186_s27 + $0x114] ss:$8 sps:$4 sm:$0xff]  }
  0x1b   : > { %v1042_v12 = vld [vmem:[%s1186_s27 + $0x44] ss:$8 sps:$4 sm:$0xff]   ;;  %682 = vmatprep.subr.bf16.mxu0 %v1054_v10  ;;  %v1062_v14 = vld [vmem:[%s1186_s27 + $0x110] ss:$8 sps:$4 sm:$0xff]   ;;  %v1044_v15 = vld [vmem:[%s1186_s27 + $0x40] ss:$8 sps:$4 sm:$0xff]  }
  0x1c   : > { %683 = vmatpush1.bf16.msra.mxu0 %v1056_v11  ;;  %v1045_v16 = vld [vmem:[%s1186_s27 + $0x54] ss:$8 sps:$4 sm:$0xff]   ;;  %v1066_v17 = vld [vmem:[%s1186_s27 + $0x124] ss:$8 sps:$4 sm:$0xff]   ;;  %v1068_v18 = vld [vmem:[%s1186_s27 + $0x120] ss:$8 sps:$4 sm:$0xff]  }
  0x1d   : > { %644 = vmatpush1.bf16.msra.mxu1 %v1035_v5  ;;  %684 = vmatprep.subr.bf16.mxu0 %v1060_v13  ;;  %v1047_v19 = vld [vmem:[%s1186_s27 + $0x50] ss:$8 sps:$4 sm:$0xff]   ;;  %v1072_v20 = vld [vmem:[%s1186_s27 + $0x134] ss:$8 sps:$4 sm:$0xff]   ;;  %v1048_v21 = vld [vmem:[%s1186_s27 + $0x64] ss:$8 sps:$4 sm:$0xff]  }
  0x1e   : > { %645 = vmatprep.subr.bf16.mxu1 %v1036_v6  ;;  %v1074_v22 = vld [vmem:[%s1186_s27 + $0x130] ss:$8 sps:$4 sm:$0xff]   ;;  %v1050_v23 = vld [vmem:[%s1186_s27 + $0x60] ss:$8 sps:$4 sm:$0xff]   ;;  %v1078_v24 = vld [vmem:[%s1186_s27 + $0x144] ss:$8 sps:$4 sm:$0xff]  }
  0x1f   : > { %v1051_v25 = vld [vmem:[%s1186_s27 + $0x74] ss:$8 sps:$4 sm:$0xff]   ;;  %v1128_v26 = vmov 1966171168   ;;  %v1080_v29 = vld [vmem:[%s1186_s27 + $0x140] ss:$8 sps:$4 sm:$0xff]  }
  0x20   : > { %685 = vmatpush1.bf16.msra.mxu0 %v1062_v14  ;;  %v384_v27 = vunpack.c.l.s4 %v1128_v26  ;;  %v1053_v30 = vld [vmem:[%s1186_s27 + $0x70] ss:$8 sps:$4 sm:$0xff]   ;;  %v1084_v31 = vld [vmem:[%s1186_s27 + $0x154] ss:$8 sps:$4 sm:$0xff]   ;;  %v1057_v32 = vld [vmem:[%s1186_s27 + $0x84] ss:$8 sps:$4 sm:$0xff]  }
  0x21   : > { %646 = vmatpush1.bf16.msra.mxu1 %v1038_v7  ;;  %686 = vmatprep.subr.bf16.mxu0 %v1066_v17  ;;  %v1217_v34 = vshrl.u32 %v386_v28, 7  ;;  %v1086_v35 = vld [vmem:[%s1186_s27 + $0x150] ss:$8 sps:$4 sm:$0xff]   ;;  %v1059_v36 = vld [vmem:[%s1186_s27 + $0x80] ss:$8 sps:$4 sm:$0xff]  }
  0x22   : > { %647 = vmatprep.subr.bf16.mxu1 %v1039_v8  ;;  %v385_v33 = vunpack.c.0.s8 %v384_v27  ;;  %v1090_v37 = vld [vmem:[%s1186_s27 + $0x164] ss:$8 sps:$4 sm:$0xff]   ;;  %v1063_v38 = vld [vmem:[%s1186_s27 + $0x94] ss:$8 sps:$4 sm:$0xff]   ;;  %v1092_v42 = vld [vmem:[%s1186_s27 + $0x160] ss:$8 sps:$4 sm:$0xff]  }
  0x23   : > { %v943_v39 = vld.sshfl [vmem:[%s285_s23] sm:$0x13 pattern:$0x75316420]  ;;  %v1065_v43 = vld [vmem:[%s1186_s27 + $0x90] ss:$8 sps:$4 sm:$0xff]  }
  0x24   : > { %687 = vmatpush1.bf16.msra.mxu0 %v1068_v18  ;;  %v1229_v40 = vsub.s32 %v385_v33, %v1217_v34  ;;  %v382_v41 = vcombine.high %v943_v39, %v943_v39  ;;  %v1096_v44 = vld [vmem:[%s1186_s27 + $0x174] ss:$8 sps:$4 sm:$0xff]   ;;  %v1069_v46 = vld [vmem:[%s1186_s27 + $0xa4] ss:$8 sps:$4 sm:$0xff]   ;;  %v1098_v48 = vld [vmem:[%s1186_s27 + $0x170] ss:$8 sps:$4 sm:$0xff]  }
  0x25   : > { %648 = vmatpush1.bf16.msra.mxu1 %v1041_v9  ;;  %688 = vmatprep.subr.bf16.mxu0 %v1072_v20  ;;  %v1071_v49 = vld [vmem:[%s1186_s27 + $0xa0] ss:$8 sps:$4 sm:$0xff]   ;;  %v1075_v50 = vld [vmem:[%s1186_s27 + $0xb4] ss:$8 sps:$4 sm:$0xff]   ;;  %v1077_v52 = vld [vmem:[%s1186_s27 + $0xb0] ss:$8 sps:$4 sm:$0xff]  }
  0x26   : > { %649 = vmatprep.subr.bf16.mxu1 %v1042_v12  ;;  %v396_v45 = vrot.slane %v382_v41, %v1229_v40  ;;  %v389_v47 = vrot.slane %v943_v39, %v1229_v40  ;;  %v1081_v53 = vld [vmem:[%s1186_s27 + $0xc4] ss:$8 sps:$4 sm:$0xff]   ;;  %v1083_v54 = vld [vmem:[%s1186_s27 + $0xc0] ss:$8 sps:$4 sm:$0xff]   ;;  %v1087_v55 = vld [vmem:[%s1186_s27 + $0xd4] ss:$8 sps:$4 sm:$0xff]  }
  0x27   : > { %v1089_v56 = vld [vmem:[%s1186_s27 + $0xd0] ss:$8 sps:$4 sm:$0xff]   ;;  %v1093_v57 = vld [vmem:[%s1186_s27 + $0xe4] ss:$8 sps:$4 sm:$0xff]   ;;  %v1095_v58 = vld [vmem:[%s1186_s27 + $0xe0] ss:$8 sps:$4 sm:$0xff]  }
  0x28   : > { %689 = vmatpush1.bf16.msra.mxu0 %v1074_v22  ;;  %673 = vmatprep.mubr.bf16.mxu1 %v396_v45  ;;  %v397_v51 = vcombine.high %v389_v47, %v389_v47  ;;  %v1099_v59 = vld [vmem:[%s1186_s27 + $0xf4] ss:$8 sps:$4 sm:$0xff]   ;;  %v1101_v60 = vld [vmem:[%s1186_s27 + $0xf0] ss:$8 sps:$4 sm:$0xff]   ;;  %v1129_v1 = vmov 1983009808  }
  0x29   : > { %650 = vmatpush1.bf16.msra.mxu1 %v1044_v15  ;;  %690 = vmatprep.subr.bf16.mxu0 %v1078_v24  ;;  %v727_v2 = vunpack.c.l.s4 %v1129_v1  ;;  %v324_v12 = vld [vmem:[#allocation2] sm:$0xf]  ;;  %v749_v17 = vsub.s32 (!%p992_p7), 1, %v1217_v34 }
  0x2a   : > { %651 = vmatprep.subr.bf16.mxu1 %v1045_v16  ;;  %v741_v15 = vld [vmem:[%s1274_s2] sm:$0x3] (!%p992_p7)  ;;  %v745_v16 = vsub.s32 (!%p992_p7), 0, %v1217_v34 }
  0x2b   : > { %v728_v3 = vunpack.c.0.s8 %v727_v2  ;;  %v761_v18 = vld [vmem:[%s1275_s3] sm:$0x3] (!%p992_p7)  ;;  %v750_v20 = vrot.slane (!%p992_p7), %v741_v15, %v749_v17 }
  0x2c   : > { %691 = vmatpush1.bf16.msra.mxu0 %v1080_v29  ;;  %v770_v22 = vrot.slane (!%p992_p7), %v761_v18, %v749_v17 }
  0x2d   : > { %652 = vmatpush1.bf16.msra.mxu1 %v1047_v19  ;;  %692 = vmatprep.subr.bf16.mxu0 %v1084_v31  ;;  %v731_v8 = vsub.s32 %v728_v3, %v1217_v34  ;;  %v746_v19 = vrot.slane (!%p992_p7), %v741_v15, %v745_v16 }
  0x2e   : > { %653 = vmatprep.subr.bf16.mxu1 %v1048_v21  ;;  %v766_v21 = vrot.slane (!%p992_p7), %v761_v18, %v745_v16 }
  0x30   : > { %693 = vmatpush1.bf16.msra.mxu0 %v1086_v35  ;;  %v771_v24 = vcombine.low (!%p992_p7), %v766_v21, %v770_v22 }
  0x31   : > { %654 = vmatpush1.bf16.msra.mxu1 %v1050_v23  ;;  %694 = vmatprep.subr.bf16.mxu0 %v1090_v37  ;;  %v751_v23 = vcombine.low (!%p992_p7), %v746_v19, %v750_v20 }
  0x32   : > { %655 = vmatprep.subr.bf16.mxu1 %v1051_v25  ;;  %v778_v27 = vrot.slane (!%p992_p7), %v771_v24, %v731_v8 }
  0x33   : > { %v758_v26 = vrot.slane (!%p992_p7), %v751_v23, %v731_v8 }
  0x34   : > { %695 = vmatpush1.bf16.msra.mxu0 %v1092_v42 }
  0x35   : > { %656 = vmatpush1.bf16.msra.mxu1 %v1053_v30  ;;  %696 = vmatprep.subr.bf16.mxu0 %v1096_v44 }
  0x36   : > { %657 = vmatprep.subr.bf16.mxu1 %v1057_v32 }
  0x38   : > { %697 = vmatpush1.bf16.msra.mxu0 %v1098_v48 }
  0x39   : > { %658 = vmatpush1.bf16.msra.mxu1 %v1059_v36 }
  0x3a   : > { %659 = vmatprep.subr.bf16.mxu1 %v1063_v38 }
  0x3b   : > { %715 = vmatmul.mubr.bf16.vlgmr.msra.gmra.mrb[0].mxu0 %v397_v51 }
  0x3d   : > { %660 = vmatpush1.bf16.msra.mxu1 %v1065_v43 }
  0x3e   : > { %661 = vmatprep.subr.bf16.mxu1 %v1069_v46 }
  0x41   : > { %662 = vmatpush1.bf16.msra.mxu1 %v1071_v49 }
  0x42   : > { %663 = vmatprep.subr.bf16.mxu1 %v1075_v50 }
  0x45   : > { %664 = vmatpush1.bf16.msra.mxu1 %v1077_v52 }
  0x46   : > { %665 = vmatprep.subr.bf16.mxu1 %v1081_v53 }
  0x49   : > { %666 = vmatpush1.bf16.msra.mxu1 %v1083_v54 }
  0x4a   : > { %667 = vmatprep.subr.bf16.mxu1 %v1087_v55 }
  0x4d   : > { %668 = vmatpush1.bf16.msra.mxu1 %v1089_v56 }
  0x4e   : > { %669 = vmatprep.subr.bf16.mxu1 %v1093_v57 }
  0x51   : > { %670 = vmatpush1.bf16.msra.mxu1 %v1095_v58 }
  0x52   : > { %671 = vmatprep.subr.bf16.mxu1 %v1099_v59 }
  0x55   : > { %672 = vmatpush1.bf16.msra.mxu1 %v1101_v60 }
  0x58   : > { %674 = vmatmul.mubr.bf16.vlgmr.msra.gmra.mrb[0].mxu1 %v389_v47 }
 0x10e   : > { %v716_v61 = vpop.f32.mrb[0].mxu0 }
 0x10f   : > { %v718_v62 = vpop.f32.mrb[1].mxu0 }
 0x110   : > { %v720_v63 = vpop.f32.mrb[2].mxu0 }
 0x111   : > { %v721_v0 = vpop.f32.mrb[3].mxu0 }
 0x12b   : > { %v675_v4 = vpop.f32.mrb[0].mxu1 }
 0x12c   : > { %v717_v5 = vadd.f32 %v716_v61, %v675_v4  ;;  %v677_v6 = vpop.f32.mrb[1].mxu1 }
 0x12d   : > { %v719_v7 = vadd.f32 %v718_v62, %v677_v6  ;;  %v679_v9 = vpop.f32.mrb[2].mxu1 }
 0x12e   : > { %v680_v10 = vpop.f32.mrb[3].mxu1 }
 0x12f   : > { %v725_v11 = vcombine.low %v717_v5, %v719_v7  ;;  %739 = sbr.rel (%p992_p7) target bundleno = 332 (0x14c), region = 44 }
 0x131   : > { %v732_v13 = vrot.slane %v725_v11, %v731_v8 }
 0x133   : > { %v734_v14 = vadd.f32 %v732_v13, %v324_v12 }
 0x135   : > { %735 = vst [vmem:[#allocation2] sm:$0xf] %v734_v14 }
 0x13c   : > { %v740_v25 = vld [vmem:[#allocation2] sm:$0xf] }
 0x13d   : > { %v760_v28 = vmul.f32 %v758_v26, %v740_v25 }
 0x13f   : > { %v780_v29 = vadd.f32 %v778_v27, %v760_v28 }
 0x141   : > { %v781_v30 = vmax.f32 %v780_v29, 0.0 }
 0x143   : > { %v789_v31 = vrot.slane %v781_v30, %v731_v8 }
 0x145   : > { %v790_v32 = vcombine.high %v789_v31, %v789_v31 }
 0x147   : > { %v993_v33 = vpack.c.bf16 %v790_v32, %v789_v31 }
 0x149   : > { %v804_v34 = vrot.slane %v993_v33, %v1229_v40 }
 0x14b   : > { %994 = vst.sshfl [vmem:[%s1276_s4] sm:$0x5 pattern:$0x73625140] %v804_v34 }
 0x14c PF: > { %s14_s17 = sadd.s32 1, %s1124_s17   ;;  %s1277_s15 = smov %s1120_s16 }
 0x14d   : > { %p11_p8 = scmp.ge.s32.totalorder %s14_s17, 8   ;;  %s1278_s16 = smov %s1280_s18 }
 0x14f   :  { %13 = sbr.rel (!%p11_p8) target bundleno = 2 (0x2), region = 83 }

// kernel: encoder_m_forward.71
= control target key start
LH: loop header
LB: loop body
LE: loop exit
PB: predicated region body
PF: predicated region fallthrough
CT: control target
= control target key end

     0   :  { %s1597_s15 = smov 0   ;;  %s1599_s16 = smov 0   ;;  %s1890_s0 = inlined_call_operand.vmem [shape: bf16[2,512], index: 0, kind: input, shape index: {}]   ;;  %s1891_s1 = inlined_call_operand.vmem [shape: bf16[512,1024], index: 1, kind: input, shape index: {}]   ;;  %s1892_s2 = inlined_call_operand.vmem [shape: f32[1,1024], index: 2, kind: input, shape index: {}]   ;;  %s1893_s3 = inlined_call_operand.vmem [shape: f32[1,1024], index: 3, kind: input, shape index: {}]   ;;  %s1894_s4 = inlined_call_operand.vmem [shape: bf16[2,1024], index: 4, kind: output, shape index: {}]  }
   0x1   :  { %s1601_s17 = smov 0   ;;  %s1603_s18 = smov 0  }
   0x2   :  { %s1605_s19 = smov 0  }
   0x3 LB: > { %s29_s20 = sadd.s32 1, %s1563_s18  ;;  %p77_p1 = scmp.ne.s32.totalorder %s1555_s16, %s1551_s15  ;;  %s1567_s19 = sphi %s1605_s19, %s14_s19   ;;  %s1563_s18 = sphi %s1603_s18, %s1898_s18   ;;  %s1559_s17 = sphi %s1601_s17, %s1897_s17   ;;  %s1555_s16 = sphi %s1599_s16, %s1896_s16   ;;  %s1551_s15 = sphi %s1597_s15, %s1895_s15  }
   0x4   : > { %p31_p0 = scmp.ge.s32.totalorder %s29_s20, 4  ;;  %p78_p2 = scmp.eq.s32.totalorder %s1567_s19, 0 }
   0x5   : > { %s70_s22 = sadd.s32 1, %s1555_s16  ;;  %p1309_p5 = scmp.ge.s32.totalorder %s1567_s19, 4 }
   0x6   : > { %s1900_s20 = smov (%p31_p0, %s29_s20), 0  ;;  %p79_p3 = por %p78_p2, %p77_p1 }
   0x7   : > { %s66_s21 = ssub.s32 %s1563_s18, %s1900_s20  ;;  %195 = sbr.rel (%p1309_p5) target bundleno = 82 (0x52), region = 20 }
   0x8   : > { %p68_p4 = scmp.eq.s32.totalorder %s66_s21, 0 }
   0xa   : > { %s1632_s23 = scalar_select %p68_p4, %s1555_s16, %s70_s22  }
   0xe   : > { %198 = sbr.rel (!%p79_p3) target bundleno = 82 (0x52), region = 24  ;;  %s200_s24 = sand.u32 (%p79_p3), 1, %s1555_s16  }
   0xf   : > { %s1387_s25 = sshll.u32 (%p79_p3), %s1563_s18, 3  ;;  %s1310_s26 = sshll.u32 (%p79_p3), %s200_s24, 9 }
  0x10   : > { %s1640_s29 = scalar_lea.vmem (%p79_p3), %s1891_s1, %s1387_s25  ;;  %s1645_s30 = scalar_lea.vmem (%p79_p3), [#allocation3], %s1310_s26 }
  0x11   : > { %v362_v0 = vld [vmem:[%s1640_s29] sm:$0xff] (%p79_p3) }
  0x12   : > { %v364_v1 = vld [vmem:[%s1640_s29 + $0x20] sm:$0xff] (%p79_p3)  ;;  %363 = vst [vmem:[%s1645_s30] sm:$0xff] (%p79_p3), %v362_v0 }
  0x13   : > { %v366_v2 = vld [vmem:[%s1640_s29 + $0x40] sm:$0xff] (%p79_p3)  ;;  %365 = vst [vmem:[%s1645_s30 + $0x8] sm:$0xff] (%p79_p3), %v364_v1 }
  0x14   : > { %367 = vst [vmem:[%s1645_s30 + $0x10] sm:$0xff] (%p79_p3), %v366_v2  ;;  %v368_v3 = vld [vmem:[%s1640_s29 + $0x60] sm:$0xff] (%p79_p3) }
  0x15   : > { %v370_v4 = vld [vmem:[%s1640_s29 + $0x80] sm:$0xff]  ;;  %369 = vst [vmem:[%s1645_s30 + $0x18] sm:$0xff] %v368_v3 }
  0x16   : > { %v372_v5 = vld [vmem:[%s1640_s29 + $0xa0] sm:$0xff]  ;;  %371 = vst [vmem:[%s1645_s30 + $0x20] sm:$0xff] %v370_v4 }
  0x17   : > { %373 = vst [vmem:[%s1645_s30 + $0x28] sm:$0xff] %v372_v5  ;;  %v374_v6 = vld [vmem:[%s1640_s29 + $0xc0] sm:$0xff] }
  0x18   : > { %v376_v7 = vld [vmem:[%s1640_s29 + $0xe0] sm:$0xff]  ;;  %375 = vst [vmem:[%s1645_s30 + $0x30] sm:$0xff] %v374_v6 }
  0x19   : > { %v378_v8 = vld [vmem:[%s1640_s29 + $0x100] sm:$0xff]  ;;  %377 = vst [vmem:[%s1645_s30 + $0x38] sm:$0xff] %v376_v7 }
  0x1a   : > { %379 = vst [vmem:[%s1645_s30 + $0x40] sm:$0xff] %v378_v8  ;;  %v380_v9 = vld [vmem:[%s1640_s29 + $0x120] sm:$0xff] }
  0x1b   : > { %v382_v10 = vld [vmem:[%s1640_s29 + $0x140] sm:$0xff]  ;;  %381 = vst [vmem:[%s1645_s30 + $0x48] sm:$0xff] %v380_v9 }
  0x1c   : > { %v384_v11 = vld [vmem:[%s1640_s29 + $0x160] sm:$0xff]  ;;  %383 = vst [vmem:[%s1645_s30 + $0x50] sm:$0xff] %v382_v10 }
  0x1d   : > { %385 = vst [vmem:[%s1645_s30 + $0x58] sm:$0xff] %v384_v11  ;;  %v386_v12 = vld [vmem:[%s1640_s29 + $0x180] sm:$0xff] }
  0x1e   : > { %v388_v13 = vld [vmem:[%s1640_s29 + $0x1a0] sm:$0xff]  ;;  %387 = vst [vmem:[%s1645_s30 + $0x60] sm:$0xff] %v386_v12 }
  0x1f   : > { %v390_v14 = vld [vmem:[%s1640_s29 + $0x1c0] sm:$0xff]  ;;  %389 = vst [vmem:[%s1645_s30 + $0x68] sm:$0xff] %v388_v13 }
  0x20   : > { %391 = vst [vmem:[%s1645_s30 + $0x70] sm:$0xff] %v390_v14  ;;  %v392_v15 = vld [vmem:[%s1640_s29 + $0x1e0] sm:$0xff] }
  0x21   : > { %v394_v16 = vld [vmem:[%s1640_s29 + $0x200] sm:$0xff]  ;;  %393 = vst [vmem:[%s1645_s30 + $0x78] sm:$0xff] %v392_v15 }
  0x22   : > { %v396_v17 = vld [vmem:[%s1640_s29 + $0x220] sm:$0xff]  ;;  %395 = vst [vmem:[%s1645_s30 + $0x80] sm:$0xff] %v394_v16 }
  0x23   : > { %397 = vst [vmem:[%s1645_s30 + $0x88] sm:$0xff] %v396_v17  ;;  %v398_v18 = vld [vmem:[%s1640_s29 + $0x240] sm:$0xff] }
  0x24   : > { %v400_v19 = vld [vmem:[%s1640_s29 + $0x260] sm:$0xff]  ;;  %399 = vst [vmem:[%s1645_s30 + $0x90] sm:$0xff] %v398_v18 }
  0x25   : > { %v402_v20 = vld [vmem:[%s1640_s29 + $0x280] sm:$0xff]  ;;  %401 = vst [vmem:[%s1645_s30 + $0x98] sm:$0xff] %v400_v19 }
  0x26   : > { %403 = vst [vmem:[%s1645_s30 + $0xa0] sm:$0xff] %v402_v20  ;;  %v404_v21 = vld [vmem:[%s1640_s29 + $0x2a0] sm:$0xff] }
  0x27   : > { %v406_v22 = vld [vmem:[%s1640_s29 + $0x2c0] sm:$0xff]  ;;  %405 = vst [vmem:[%s1645_s30 + $0xa8] sm:$0xff] %v404_v21 }
  0x28   : > { %v408_v23 = vld [vmem:[%s1640_s29 + $0x2e0] sm:$0xff]  ;;  %407 = vst [vmem:[%s1645_s30 + $0xb0] sm:$0xff] %v406_v22 }
  0x29   : > { %409 = vst [vmem:[%s1645_s30 + $0xb8] sm:$0xff] %v408_v23  ;;  %v410_v24 = vld [vmem:[%s1640_s29 + $0x300] sm:$0xff] }
  0x2a   : > { %v412_v25 = vld [vmem:[%s1640_s29 + $0x320] sm:$0xff]  ;;  %411 = vst [vmem:[%s1645_s30 + $0xc0] sm:$0xff] %v410_v24 }
  0x2b   : > { %v414_v26 = vld [vmem:[%s1640_s29 + $0x340] sm:$0xff]  ;;  %413 = vst [vmem:[%s1645_s30 + $0xc8] sm:$0xff] %v412_v25 }
  0x2c   : > { %415 = vst [vmem:[%s1645_s30 + $0xd0] sm:$0xff] %v414_v26  ;;  %v416_v27 = vld [vmem:[%s1640_s29 + $0x360] sm:$0xff] }
  0x2d   : > { %v418_v28 = vld [vmem:[%s1640_s29 + $0x380] sm:$0xff]  ;;  %417 = vst [vmem:[%s1645_s30 + $0xd8] sm:$0xff] %v416_v27 }
  0x2e   : > { %v420_v29 = vld [vmem:[%s1640_s29 + $0x3a0] sm:$0xff]  ;;  %419 = vst [vmem:[%s1645_s30 + $0xe0] sm:$0xff] %v418_v28 }
  0x2f   : > { %421 = vst [vmem:[%s1645_s30 + $0xe8] sm:$0xff] %v420_v29  ;;  %v422_v30 = vld [vmem:[%s1640_s29 + $0x3c0] sm:$0xff] }
  0x30   : > { %v424_v31 = vld [vmem:[%s1640_s29 + $0x3e0] sm:$0xff]  ;;  %423 = vst [vmem:[%s1645_s30 + $0xf0] sm:$0xff] %v422_v30 }
  0x31   : > { %v426_v32 = vld [vmem:[%s1640_s29 + $0x400] sm:$0xff]  ;;  %425 = vst [vmem:[%s1645_s30 + $0xf8] sm:$0xff] %v424_v31 }
  0x32   : > { %427 = vst [vmem:[%s1645_s30 + $0x100] sm:$0xff] %v426_v32  ;;  %v428_v33 = vld [vmem:[%s1640_s29 + $0x420] sm:$0xff] }
  0x33   : > { %v430_v34 = vld [vmem:[%s1640_s29 + $0x440] sm:$0xff]  ;;  %429 = vst [vmem:[%s1645_s30 + $0x108] sm:$0xff] %v428_v33 }
  0x34   : > { %v432_v35 = vld [vmem:[%s1640_s29 + $0x460] sm:$0xff]  ;;  %431 = vst [vmem:[%s1645_s30 + $0x110] sm:$0xff] %v430_v34 }
  0x35   : > { %433 = vst [vmem:[%s1645_s30 + $0x118] sm:$0xff] %v432_v35  ;;  %v434_v36 = vld [vmem:[%s1640_s29 + $0x480] sm:$0xff] }
  0x36   : > { %v436_v37 = vld [vmem:[%s1640_s29 + $0x4a0] sm:$0xff]  ;;  %435 = vst [vmem:[%s1645_s30 + $0x120] sm:$0xff] %v434_v36 }
  0x37   : > { %v438_v38 = vld [vmem:[%s1640_s29 + $0x4c0] sm:$0xff]  ;;  %437 = vst [vmem:[%s1645_s30 + $0x128] sm:$0xff] %v436_v37 }
  0x38   : > { %439 = vst [vmem:[%s1645_s30 + $0x130] sm:$0xff] %v438_v38  ;;  %v440_v39 = vld [vmem:[%s1640_s29 + $0x4e0] sm:$0xff] }
  0x39   : > { %v442_v40 = vld [vmem:[%s1640_s29 + $0x500] sm:$0xff]  ;;  %441 = vst [vmem:[%s1645_s30 + $0x138] sm:$0xff] %v440_v39 }
  0x3a   : > { %v444_v41 = vld [vmem:[%s1640_s29 + $0x520] sm:$0xff]  ;;  %443 = vst [vmem:[%s1645_s30 + $0x140] sm:$0xff] %v442_v40 }
  0x3b   : > { %445 = vst [vmem:[%s1645_s30 + $0x148] sm:$0xff] %v444_v41  ;;  %v446_v42 = vld [vmem:[%s1640_s29 + $0x540] sm:$0xff] }
  0x3c   : > { %v448_v43 = vld [vmem:[%s1640_s29 + $0x560] sm:$0xff]  ;;  %447 = vst [vmem:[%s1645_s30 + $0x150] sm:$0xff] %v446_v42 }
  0x3d   : > { %v450_v44 = vld [vmem:[%s1640_s29 + $0x580] sm:$0xff]  ;;  %449 = vst [vmem:[%s1645_s30 + $0x158] sm:$0xff] %v448_v43 }
  0x3e   : > { %451 = vst [vmem:[%s1645_s30 + $0x160] sm:$0xff] %v450_v44  ;;  %v452_v45 = vld [vmem:[%s1640_s29 + $0x5a0] sm:$0xff] }
  0x3f   : > { %v454_v46 = vld [vmem:[%s1640_s29 + $0x5c0] sm:$0xff]  ;;  %453 = vst [vmem:[%s1645_s30 + $0x168] sm:$0xff] %v452_v45 }
  0x40   : > { %v456_v47 = vld [vmem:[%s1640_s29 + $0x5e0] sm:$0xff]  ;;  %455 = vst [vmem:[%s1645_s30 + $0x170] sm:$0xff] %v454_v46 }
  0x41   : > { %457 = vst [vmem:[%s1645_s30 + $0x178] sm:$0xff] %v456_v47  ;;  %v458_v48 = vld [vmem:[%s1640_s29 + $0x600] sm:$0xff] }
  0x42   : > { %v460_v49 = vld [vmem:[%s1640_s29 + $0x620] sm:$0xff]  ;;  %459 = vst [vmem:[%s1645_s30 + $0x180] sm:$0xff] %v458_v48 }
  0x43   : > { %v462_v50 = vld [vmem:[%s1640_s29 + $0x640] sm:$0xff]  ;;  %461 = vst [vmem:[%s1645_s30 + $0x188] sm:$0xff] %v460_v49 }
  0x44   : > { %463 = vst [vmem:[%s1645_s30 + $0x190] sm:$0xff] %v462_v50  ;;  %v464_v51 = vld [vmem:[%s1640_s29 + $0x660] sm:$0xff] }
  0x45   : > { %v466_v52 = vld [vmem:[%s1640_s29 + $0x680] sm:$0xff]  ;;  %465 = vst [vmem:[%s1645_s30 + $0x198] sm:$0xff] %v464_v51 }
  0x46   : > { %v468_v53 = vld [vmem:[%s1640_s29 + $0x6a0] sm:$0xff]  ;;  %467 = vst [vmem:[%s1645_s30 + $0x1a0] sm:$0xff] %v466_v52 }
  0x47   : > { %469 = vst [vmem:[%s1645_s30 + $0x1a8] sm:$0xff] %v468_v53  ;;  %v470_v54 = vld [vmem:[%s1640_s29 + $0x6c0] sm:$0xff] }
  0x48   : > { %v472_v55 = vld [vmem:[%s1640_s29 + $0x6e0] sm:$0xff]  ;;  %471 = vst [vmem:[%s1645_s30 + $0x1b0] sm:$0xff] %v470_v54 }
  0x49   : > { %v474_v56 = vld [vmem:[%s1640_s29 + $0x700] sm:$0xff]  ;;  %473 = vst [vmem:[%s1645_s30 + $0x1b8] sm:$0xff] %v472_v55 }
  0x4a   : > { %475 = vst [vmem:[%s1645_s30 + $0x1c0] sm:$0xff] %v474_v56  ;;  %v476_v57 = vld [vmem:[%s1640_s29 + $0x720] sm:$0xff] }
  0x4b   : > { %v478_v58 = vld [vmem:[%s1640_s29 + $0x740] sm:$0xff]  ;;  %477 = vst [vmem:[%s1645_s30 + $0x1c8] sm:$0xff] %v476_v57 }
  0x4c   : > { %v480_v59 = vld [vmem:[%s1640_s29 + $0x760] sm:$0xff]  ;;  %479 = vst [vmem:[%s1645_s30 + $0x1d0] sm:$0xff] %v478_v58 }
  0x4d   : > { %481 = vst [vmem:[%s1645_s30 + $0x1d8] sm:$0xff] %v480_v59  ;;  %v482_v60 = vld [vmem:[%s1640_s29 + $0x780] sm:$0xff] }
  0x4e   : > { %v484_v61 = vld [vmem:[%s1640_s29 + $0x7a0] sm:$0xff]  ;;  %483 = vst [vmem:[%s1645_s30 + $0x1e0] sm:$0xff] %v482_v60 }
  0x4f   : > { %v486_v62 = vld [vmem:[%s1640_s29 + $0x7c0] sm:$0xff]  ;;  %485 = vst [vmem:[%s1645_s30 + $0x1e8] sm:$0xff] %v484_v61 }
  0x50   : > { %487 = vst [vmem:[%s1645_s30 + $0x1f0] sm:$0xff] %v486_v62  ;;  %v488_v63 = vld [vmem:[%s1640_s29 + $0x7e0] sm:$0xff] }
  0x51   : > { %489 = vst [vmem:[%s1645_s30 + $0x1f8] sm:$0xff] %v488_v63 }
  0x52 PF: > { %p1313_p6 = scmp.ge.s32.totalorder %s1567_s19, 1  ;;  %p510_p7 = scmp.lt.s32.totalorder %s1567_s19, 5 }
  0x54   : > { %p511_p8 = pnand %p1313_p6, %p510_p7 }
  0x55   : > { %s517_s5 = sand.u32 (!%p511_p8), 1, %s1551_s15   ;;  %v1778_v0 = vld.sshfl [vmem:[%s1890_s0] sm:$0x33 pattern:$0x75316420] (!%p511_p8)  ;;  %v674_v1 = vlaneseq (!%p511_p8)  ;;  %s1315_s10 = sshll.u32 (!%p511_p8), %s1559_s17, 1 }
  0x56   : > { %514 = sbr.rel (%p511_p8) target bundleno = 396 (0x18c), region = 70  ;;  %s1314_s8 = sshll.u32 (!%p511_p8), %s517_s5, 9  ;;  %v1569_v2 = vmov (!%p511_p8), 1966171168   ;;  %v670_v7 = vcombine.high (!%p511_p8), %v1778_v0, %v1778_v0 }
  0x57   : > { %v672_v3 = vunpack.c.l.s4 (!%p511_p8), %v1569_v2  ;;  %v1780_v4 = vshrl.u32 (!%p511_p8), %v674_v1, 7  ;;  %s1782_s9 = scalar_lea.vmem (!%p511_p8), [#allocation3], %s1314_s8  ;;  %p573_p9 = scmp.lt.s32.totalorder (!%p511_p8), %s1315_s10, 7 }
  0x58   : > { %v1433_v5 = vld [vmem:[%s1782_s9 + $0x4] ss:$8 sps:$4 sm:$0xff] (!%p511_p8)   ;;  %v1437_v9 = vld [vmem:[%s1782_s9] ss:$8 sps:$4 sm:$0xff] (!%p511_p8)   ;;  %v1439_v11 = vld [vmem:[%s1782_s9 + $0x14] ss:$8 sps:$4 sm:$0xff] (!%p511_p8)  }
  0x59   : > { %v1435_v6 = vld [vmem:[%s1782_s9 + $0x104] ss:$8 sps:$4 sm:$0xff] (!%p511_p8)   ;;  %v673_v8 = vunpack.c.0.s8 (!%p511_p8), %v672_v3  ;;  %1011 = vmatprep.subr.bf16.mxu1 (!%p511_p8), %v1433_v5  ;;  %v1438_v10 = vld [vmem:[%s1782_s9 + $0x100] ss:$8 sps:$4 sm:$0xff] (!%p511_p8)   ;;  %v1441_v13 = vld [vmem:[%s1782_s9 + $0x114] ss:$8 sps:$4 sm:$0xff] (!%p511_p8)  }
  0x5a   : > { %1052 = vmatprep.subr.bf16.mxu0 (!%p511_p8), %v1435_v6  ;;  %1012 = vmatpush1.bf16.msra.mxu1 (!%p511_p8), %v1437_v9  ;;  %v1443_v14 = vld [vmem:[%s1782_s9 + $0x10] ss:$8 sps:$4 sm:$0xff] (!%p511_p8)   ;;  %v1445_v17 = vld [vmem:[%s1782_s9 + $0x24] ss:$8 sps:$4 sm:$0xff] (!%p511_p8)   ;;  %v1449_v19 = vld [vmem:[%s1782_s9 + $0x20] ss:$8 sps:$4 sm:$0xff] (!%p511_p8)  }
  0x5b   : > { %v1792_v12 = vsub.s32 (!%p511_p8), %v673_v8, %v1780_v4  ;;  %1053 = vmatpush1.bf16.msra.mxu0 (!%p511_p8), %v1438_v10  ;;  %1013 = vmatprep.subr.bf16.mxu1 (!%p511_p8), %v1439_v11  ;;  %v1444_v15 = vld [vmem:[%s1782_s9 + $0x110] ss:$8 sps:$4 sm:$0xff] (!%p511_p8)   ;;  %v1447_v18 = vld [vmem:[%s1782_s9 + $0x124] ss:$8 sps:$4 sm:$0xff] (!%p511_p8)   ;;  %v1450_v20 = vld [vmem:[%s1782_s9 + $0x120] ss:$8 sps:$4 sm:$0xff] (!%p511_p8)  }
  0x5c   : > { %1054 = vmatprep.subr.bf16.mxu0 (!%p511_p8), %v1441_v13  ;;  %v1451_v22 = vld [vmem:[%s1782_s9 + $0x34] ss:$8 sps:$4 sm:$0xff] (!%p511_p8)   ;;  %v1455_v24 = vld [vmem:[%s1782_s9 + $0x30] ss:$8 sps:$4 sm:$0xff] (!%p511_p8)   ;;  %v1457_v26 = vld [vmem:[%s1782_s9 + $0x44] ss:$8 sps:$4 sm:$0xff] (!%p511_p8)  }
  0x5d   : > { %v684_v16 = vrot.slane %v670_v7, %v1792_v12  ;;  %v1453_v23 = vld [vmem:[%s1782_s9 + $0x134] ss:$8 sps:$4 sm:$0xff]   ;;  %v1456_v25 = vld [vmem:[%s1782_s9 + $0x130] ss:$8 sps:$4 sm:$0xff]   ;;  %v1459_v27 = vld [vmem:[%s1782_s9 + $0x144] ss:$8 sps:$4 sm:$0xff]   ;;  %v677_v10 = vrot.slane %v1778_v0, %v1792_v12 }
  0x5e   : > { %1014 = vmatpush1.bf16.msra.mxu1 %v1443_v14  ;;  %v1461_v28 = vld [vmem:[%s1782_s9 + $0x40] ss:$8 sps:$4 sm:$0xff]   ;;  %v1463_v30 = vld [vmem:[%s1782_s9 + $0x54] ss:$8 sps:$4 sm:$0xff]   ;;  %v1467_v32 = vld [vmem:[%s1782_s9 + $0x50] ss:$8 sps:$4 sm:$0xff]  }
  0x5f   : > { %1043 = vmatprep.mubr.bf16.mxu1 %v684_v16  ;;  %v686_v21 = vcombine.high %v684_v16, %v684_v16  ;;  %1055 = vmatpush1.bf16.msra.mxu0 %v1444_v15  ;;  %v1462_v29 = vld [vmem:[%s1782_s9 + $0x140] ss:$8 sps:$4 sm:$0xff]   ;;  %v1465_v31 = vld [vmem:[%s1782_s9 + $0x154] ss:$8 sps:$4 sm:$0xff]   ;;  %v1468_v33 = vld [vmem:[%s1782_s9 + $0x150] ss:$8 sps:$4 sm:$0xff]   ;;  %v685_v14 = vcombine.high %v677_v10, %v677_v10 }
  0x60   : > { %1015 = vmatprep.subr.bf16.mxu1 %v1445_v17  ;;  %1056 = vmatprep.subr.bf16.mxu0 %v1447_v18  ;;  %v1469_v34 = vld [vmem:[%s1782_s9 + $0x64] ss:$8 sps:$4 sm:$0xff]   ;;  %v1473_v36 = vld [vmem:[%s1782_s9 + $0x60] ss:$8 sps:$4 sm:$0xff]   ;;  %v1475_v38 = vld [vmem:[%s1782_s9 + $0x74] ss:$8 sps:$4 sm:$0xff]  }
  0x61   : > { %1084 = vmatprep.mubr.bf16.mxu0 %v686_v21  ;;  %v1471_v35 = vld [vmem:[%s1782_s9 + $0x164] ss:$8 sps:$4 sm:$0xff]   ;;  %v1474_v37 = vld [vmem:[%s1782_s9 + $0x160] ss:$8 sps:$4 sm:$0xff]   ;;  %v1477_v39 = vld [vmem:[%s1782_s9 + $0x174] ss:$8 sps:$4 sm:$0xff]  }
  0x62   : > { %1016 = vmatpush1.bf16.msra.mxu1 %v1449_v19  ;;  %v1479_v40 = vld [vmem:[%s1782_s9 + $0x70] ss:$8 sps:$4 sm:$0xff]   ;;  %v1481_v42 = vld [vmem:[%s1782_s9 + $0x84] ss:$8 sps:$4 sm:$0xff]   ;;  %v1485_v44 = vld [vmem:[%s1782_s9 + $0x80] ss:$8 sps:$4 sm:$0xff]  }
  0x63   : > { %1057 = vmatpush1.bf16.msra.mxu0 %v1450_v20  ;;  %1017 = vmatprep.subr.bf16.mxu1 %v1451_v22  ;;  %v1480_v41 = vld [vmem:[%s1782_s9 + $0x170] ss:$8 sps:$4 sm:$0xff]   ;;  %v1483_v43 = vld [vmem:[%s1782_s9 + $0x184] ss:$8 sps:$4 sm:$0xff]   ;;  %v1486_v45 = vld [vmem:[%s1782_s9 + $0x180] ss:$8 sps:$4 sm:$0xff]  }
  0x64   : > { %1058 = vmatprep.subr.bf16.mxu0 %v1453_v23  ;;  %v1487_v46 = vld [vmem:[%s1782_s9 + $0x94] ss:$8 sps:$4 sm:$0xff]   ;;  %v1491_v48 = vld [vmem:[%s1782_s9 + $0x90] ss:$8 sps:$4 sm:$0xff]   ;;  %v1493_v50 = vld [vmem:[%s1782_s9 + $0xa4] ss:$8 sps:$4 sm:$0xff]  }
  0x65   : > { %v1489_v47 = vld [vmem:[%s1782_s9 + $0x194] ss:$8 sps:$4 sm:$0xff]   ;;  %v1492_v49 = vld [vmem:[%s1782_s9 + $0x190] ss:$8 sps:$4 sm:$0xff]   ;;  %v1495_v51 = vld [vmem:[%s1782_s9 + $0x1a4] ss:$8 sps:$4 sm:$0xff]  }
  0x66   : > { %1018 = vmatpush1.bf16.msra.mxu1 %v1455_v24  ;;  %v1497_v52 = vld [vmem:[%s1782_s9 + $0xa0] ss:$8 sps:$4 sm:$0xff]   ;;  %v1499_v54 = vld [vmem:[%s1782_s9 + $0xb4] ss:$8 sps:$4 sm:$0xff]   ;;  %v1503_v56 = vld [vmem:[%s1782_s9 + $0xb0] ss:$8 sps:$4 sm:$0xff]  }
  0x67   : > { %1059 = vmatpush1.bf16.msra.mxu0 %v1456_v25  ;;  %1019 = vmatprep.subr.bf16.mxu1 %v1457_v26  ;;  %v1498_v53 = vld [vmem:[%s1782_s9 + $0x1a0] ss:$8 sps:$4 sm:$0xff]   ;;  %v1501_v55 = vld [vmem:[%s1782_s9 + $0x1b4] ss:$8 sps:$4 sm:$0xff]   ;;  %v1504_v57 = vld [vmem:[%s1782_s9 + $0x1b0] ss:$8 sps:$4 sm:$0xff]  }
  0x68   : > { %1060 = vmatprep.subr.bf16.mxu0 %v1459_v27  ;;  %v1505_v58 = vld [vmem:[%s1782_s9 + $0xc4] ss:$8 sps:$4 sm:$0xff]   ;;  %v1509_v60 = vld [vmem:[%s1782_s9 + $0xc0] ss:$8 sps:$4 sm:$0xff]   ;;  %v1511_v62 = vld [vmem:[%s1782_s9 + $0xd4] ss:$8 sps:$4 sm:$0xff]  }
  0x69   : > { %v1507_v59 = vld [vmem:[%s1782_s9 + $0x1c4] ss:$8 sps:$4 sm:$0xff]   ;;  %v1510_v61 = vld [vmem:[%s1782_s9 + $0x1c0] ss:$8 sps:$4 sm:$0xff]   ;;  %v1513_v63 = vld [vmem:[%s1782_s9 + $0x1d4] ss:$8 sps:$4 sm:$0xff]  }
  0x6a   : > { %1020 = vmatpush1.bf16.msra.mxu1 %v1461_v28  ;;  %v1515_v1 = vld [vmem:[%s1782_s9 + $0xd0] ss:$8 sps:$4 sm:$0xff]   ;;  %v1517_v3 = vld [vmem:[%s1782_s9 + $0xe4] ss:$8 sps:$4 sm:$0xff]   ;;  %v1521_v6 = vld [vmem:[%s1782_s9 + $0xe0] ss:$8 sps:$4 sm:$0xff]  }
  0x6b   : > { %1061 = vmatpush1.bf16.msra.mxu0 %v1462_v29  ;;  %1021 = vmatprep.subr.bf16.mxu1 %v1463_v30  ;;  %v1516_v2 = vld [vmem:[%s1782_s9 + $0x1d0] ss:$8 sps:$4 sm:$0xff]   ;;  %v1519_v5 = vld [vmem:[%s1782_s9 + $0x1e4] ss:$8 sps:$4 sm:$0xff]   ;;  %v1522_v7 = vld [vmem:[%s1782_s9 + $0x1e0] ss:$8 sps:$4 sm:$0xff]  }
  0x6c   : > { %1062 = vmatprep.subr.bf16.mxu0 %v1465_v31  ;;  %v1523_v8 = vld [vmem:[%s1782_s9 + $0xf4] ss:$8 sps:$4 sm:$0xff]   ;;  %v1527_v11 = vld [vmem:[%s1782_s9 + $0xf0] ss:$8 sps:$4 sm:$0xff]   ;;  %v1570_v15 = vmov 0.0   ;;  %s1902_s10 = smov (!%p573_p9, %s1315_s10), 7 }
  0x6d   : > { %v1525_v9 = vld [vmem:[%s1782_s9 + $0x1f4] ss:$8 sps:$4 sm:$0xff]   ;;  %v1528_v13 = vld [vmem:[%s1782_s9 + $0x1f0] ss:$8 sps:$4 sm:$0xff]   ;;  %595 = vst [vmem:[#allocation2] sm:$0xf] %v1570_v15  ;;  %s575_s13 = scalar_lea.vmem %s1892_s2, %s1902_s10  ;;  %s580_s17 = scalar_lea.vmem %s1893_s3, %s1902_s10 }
  0x6e   : > { %1022 = vmatpush1.bf16.msra.mxu1 %v1467_v32  ;;  %v1571_v16 = vmov 1983009808   ;;  %v1114_v23 = vsub.s32 0, %v1780_v4  ;;  %v1118_v24 = vsub.s32 1, %v1780_v4  ;;  %v1110_v29 = vld [vmem:[%s575_s13] sm:$0x3]  ;;  %s589_s24 = scalar_lea.vmem %s1894_s4, %s1902_s10 }
  0x6f   : > { %1063 = vmatpush1.bf16.msra.mxu0 %v1468_v33  ;;  %1023 = vmatprep.subr.bf16.mxu1 %v1469_v34  ;;  %v1097_v17 = vunpack.c.l.s4 %v1571_v16  ;;  %v1130_v33 = vld [vmem:[%s580_s17] sm:$0x3] }
  0x70   : > { %1064 = vmatprep.subr.bf16.mxu0 %v1471_v35  ;;  %v1115_v35 = vrot.slane %v1110_v29, %v1114_v23 }
  0x71   : > { %v1098_v0 = vunpack.c.0.s8 %v1097_v17 }
  0x72   : > { %1024 = vmatpush1.bf16.msra.mxu1 %v1473_v36  ;;  %v1119_v36 = vrot.slane %v1110_v29, %v1118_v24 }
  0x73   : > { %1065 = vmatpush1.bf16.msra.mxu0 %v1474_v37  ;;  %1025 = vmatprep.subr.bf16.mxu1 %v1475_v38  ;;  %v1101_v26 = vsub.s32 %v1098_v0, %v1780_v4  ;;  %v1135_v38 = vrot.slane %v1130_v33, %v1114_v23 }
  0x74   : > { %1066 = vmatprep.subr.bf16.mxu0 %v1477_v39  ;;  %v596_v34 = vld [vmem:[#allocation2] sm:$0xf]  ;;  %v1139_v39 = vrot.slane %v1130_v33, %v1118_v24 }
  0x76   : > { %1026 = vmatpush1.bf16.msra.mxu1 %v1479_v40 }
  0x77   : > { %1067 = vmatpush1.bf16.msra.mxu0 %v1480_v41  ;;  %1027 = vmatprep.subr.bf16.mxu1 %v1481_v42  ;;  %v1120_v41 = vcombine.low %v1115_v35, %v1119_v36  ;;  %v1140_v42 = vcombine.low %v1135_v38, %v1139_v39 }
  0x78   : > { %1068 = vmatprep.subr.bf16.mxu0 %v1483_v43 }
  0x79   : > { %v1127_v43 = vrot.slane %v1120_v41, %v1101_v26  ;;  %v1147_v4 = vrot.slane %v1140_v42, %v1101_v26 }
  0x7a   : > { %1028 = vmatpush1.bf16.msra.mxu1 %v1485_v44 }
  0x7b   : > { %1069 = vmatpush1.bf16.msra.mxu0 %v1486_v45  ;;  %1029 = vmatprep.subr.bf16.mxu1 %v1487_v46 }
  0x7c   : > { %1070 = vmatprep.subr.bf16.mxu0 %v1489_v47 }
  0x7e   : > { %1030 = vmatpush1.bf16.msra.mxu1 %v1491_v48 }
  0x7f   : > { %1071 = vmatpush1.bf16.msra.mxu0 %v1492_v49  ;;  %1031 = vmatprep.subr.bf16.mxu1 %v1493_v50 }
  0x80   : > { %1072 = vmatprep.subr.bf16.mxu0 %v1495_v51 }
  0x82   : > { %1032 = vmatpush1.bf16.msra.mxu1 %v1497_v52 }
  0x83   : > { %1073 = vmatpush1.bf16.msra.mxu0 %v1498_v53  ;;  %1033 = vmatprep.subr.bf16.mxu1 %v1499_v54 }
  0x84   : > { %1074 = vmatprep.subr.bf16.mxu0 %v1501_v55 }
  0x86   : > { %1034 = vmatpush1.bf16.msra.mxu1 %v1503_v56 }
  0x87   : > { %1075 = vmatpush1.bf16.msra.mxu0 %v1504_v57  ;;  %1035 = vmatprep.subr.bf16.mxu1 %v1505_v58 }
  0x88   : > { %1076 = vmatprep.subr.bf16.mxu0 %v1507_v59 }
  0x8a   : > { %1036 = vmatpush1.bf16.msra.mxu1 %v1509_v60 }
  0x8b   : > { %1077 = vmatpush1.bf16.msra.mxu0 %v1510_v61  ;;  %1037 = vmatprep.subr.bf16.mxu1 %v1511_v62 }
  0x8c   : > { %1078 = vmatprep.subr.bf16.mxu0 %v1513_v63 }
  0x8e   : > { %1038 = vmatpush1.bf16.msra.mxu1 %v1515_v1 }
  0x8f   : > { %1079 = vmatpush1.bf16.msra.mxu0 %v1516_v2  ;;  %1039 = vmatprep.subr.bf16.mxu1 %v1517_v3 }
  0x90   : > { %1080 = vmatprep.subr.bf16.mxu0 %v1519_v5 }
  0x92   : > { %1040 = vmatpush1.bf16.msra.mxu1 %v1521_v6 }
  0x93   : > { %1081 = vmatpush1.bf16.msra.mxu0 %v1522_v7  ;;  %1041 = vmatprep.subr.bf16.mxu1 %v1523_v8 }
  0x94   : > { %1082 = vmatprep.subr.bf16.mxu0 %v1525_v9 }
  0x96   : > { %1042 = vmatpush1.bf16.msra.mxu1 %v1527_v11 }
  0x97   : > { %1083 = vmatpush1.bf16.msra.mxu0 %v1528_v13 }
  0x99   : > { %1044 = vmatmul.mubr.bf16.vlgmr.msra.gmra.mrb[0].mxu1 %v677_v10 }
  0x9a   : > { %1085 = vmatmul.mubr.bf16.vlgmr.msra.gmra.mrb[0].mxu0 %v685_v14 }
 0x16c   : > { %v1045_v18 = vpop.f32.mrb[0].mxu1 }
 0x16d   : > { %v1086_v19 = vpop.f32.mrb[0].mxu0  ;;  %v1047_v21 = vpop.f32.mrb[1].mxu1 }
 0x16e   : > { %v1087_v20 = vadd.f32 %v1086_v19, %v1045_v18  ;;  %v1088_v22 = vpop.f32.mrb[1].mxu0  ;;  %v1049_v27 = vpop.f32.mrb[2].mxu1 }
 0x16f   : > { %v1089_v25 = vadd.f32 %v1088_v22, %v1047_v21  ;;  %v1090_v28 = vpop.f32.mrb[2].mxu0  ;;  %v1050_v30 = vpop.f32.mrb[3].mxu1 }
 0x170   : > { %v1091_v31 = vpop.f32.mrb[3].mxu0 }
 0x171   : > { %v1095_v32 = vcombine.low %v1087_v20, %v1089_v25 }
 0x173   : > { %v1102_v37 = vrot.slane %v1095_v32, %v1101_v26 }
 0x175   : > { %v1104_v40 = vadd.f32 %v1102_v37, %v596_v34 }
 0x177   : > { %1105 = vst [vmem:[#allocation2] sm:$0xf] %v1104_v40 }
 0x17e   : > { %v1109_v44 = vld [vmem:[#allocation2] sm:$0xf] }
 0x17f   : > { %v1129_v45 = vmul.f32 %v1127_v43, %v1109_v44 }
 0x181   : > { %v1149_v46 = vadd.f32 %v1147_v4, %v1129_v45 }
 0x183   : > { %v1157_v47 = vrot.slane %v1149_v46, %v1101_v26 }
 0x185   : > { %v1158_v48 = vcombine.high %v1157_v47, %v1157_v47 }
 0x187   : > { %v1383_v49 = vpack.c.bf16 %v1158_v48, %v1157_v47 }
 0x189   : > { %v1172_v50 = vrot.slane %v1383_v49, %v1792_v12 }
 0x18b   : > { %1384 = vst.sshfl [vmem:[%s589_s24] sm:$0x5 pattern:$0x73625140] %v1172_v50 }
 0x18c PF: > { %s14_s19 = sadd.s32 1, %s1567_s19   ;;  %s1895_s15 = smov %s1555_s16 }
 0x18d   : > { %p11_p10 = scmp.ge.s32.totalorder %s14_s19, 6   ;;  %s1896_s16 = smov %s1632_s23 }
 0x18e   : > { %s1897_s17 = smov %s1563_s18  ;;  %s1898_s18 = smov %s1900_s20 }
 0x18f   :  { %13 = sbr.rel (!%p11_p10) target bundleno = 3 (0x3), region = 126 }

// kernel: encoder_m_forward.74
= control target key start
LH: loop header
LB: loop body
LE: loop exit
PB: predicated region body
PF: predicated region fallthrough
CT: control target
= control target key end

     0   :  { %s1235_s18 = smov 0   ;;  %s1237_s19 = smov 0   ;;  %s1436_s0 = inlined_call_operand.vmem [shape: bf16[2,256], index: 0, kind: input, shape index: {}]   ;;  %s1437_s1 = inlined_call_operand.vmem [shape: bf16[256,1024], index: 1, kind: input, shape index: {}]   ;;  %s1438_s2 = inlined_call_operand.vmem [shape: f32[1,1024], index: 2, kind: input, shape index: {}]   ;;  %s1439_s3 = inlined_call_operand.vmem [shape: f32[1,1024], index: 3, kind: input, shape index: {}]   ;;  %s1440_s4 = inlined_call_operand.vmem [shape: bf16[2,1024], index: 4, kind: input, shape index: {}]   ;;  %s1441_s5 = inlined_call_operand.vmem [shape: bf16[2,1024], index: 5, kind: output, shape index: {}]  }
   0x1   :  { %s1239_s20 = smov 0   ;;  %s1241_s21 = smov 0  }
   0x2   :  { %s1243_s22 = smov 0  }
   0x3 LB: > { %s30_s23 = sadd.s32 1, %s1196_s21  ;;  %p78_p1 = scmp.ne.s32.totalorder %s1188_s19, %s1184_s18  ;;  %s1200_s22 = sphi %s1243_s22, %s15_s22   ;;  %s1196_s21 = sphi %s1241_s21, %s1445_s21   ;;  %s1192_s20 = sphi %s1239_s20, %s1444_s20   ;;  %s1188_s19 = sphi %s1237_s19, %s1443_s19   ;;  %s1184_s18 = sphi %s1235_s18, %s1442_s18  }
   0x4   : > { %p32_p0 = scmp.ge.s32.totalorder %s30_s23, 4  ;;  %p79_p2 = scmp.eq.s32.totalorder %s1200_s22, 0 }
   0x5   : > { %s71_s25 = sadd.s32 1, %s1188_s19  ;;  %p1023_p5 = scmp.ge.s32.totalorder %s1200_s22, 4 }
   0x6   : > { %s1447_s23 = smov (%p32_p0, %s30_s23), 0  ;;  %p80_p3 = por %p79_p2, %p78_p1 }
   0x7   : > { %s67_s24 = ssub.s32 %s1196_s21, %s1447_s23  ;;  %224 = sbr.rel (%p1023_p5) target bundleno = 50 (0x32), region = 20 }
   0x8   : > { %p69_p4 = scmp.eq.s32.totalorder %s67_s24, 0 }
   0xa   : > { %s1270_s26 = scalar_select %p69_p4, %s1188_s19, %s71_s25  }
   0xe   : > { %227 = sbr.rel (!%p80_p3) target bundleno = 50 (0x32), region = 24  ;;  %s229_s27 = sand.u32 (%p80_p3), 1, %s1188_s19  }
   0xf   : > { %s1070_s28 = sshll.u32 (%p80_p3), %s1196_s21, 3  ;;  %s1024_s29 = sshll.u32 (%p80_p3), %s229_s27, 8 }
  0x10   : > { %s1278_s7 = scalar_lea.vmem (%p80_p3), %s1437_s1, %s1070_s28  ;;  %s1283_s8 = scalar_lea.vmem (%p80_p3), [#allocation3], %s1024_s29 }
  0x11   : > { %v327_v0 = vld [vmem:[%s1278_s7] sm:$0xff] (%p80_p3) }
  0x12   : > { %v329_v1 = vld [vmem:[%s1278_s7 + $0x20] sm:$0xff] (%p80_p3)  ;;  %328 = vst [vmem:[%s1283_s8] sm:$0xff] (%p80_p3), %v327_v0 }
  0x13   : > { %v331_v2 = vld [vmem:[%s1278_s7 + $0x40] sm:$0xff] (%p80_p3)  ;;  %330 = vst [vmem:[%s1283_s8 + $0x8] sm:$0xff] (%p80_p3), %v329_v1 }
  0x14   : > { %332 = vst [vmem:[%s1283_s8 + $0x10] sm:$0xff] (%p80_p3), %v331_v2  ;;  %v333_v3 = vld [vmem:[%s1278_s7 + $0x60] sm:$0xff] (%p80_p3) }
  0x15   : > { %v335_v4 = vld [vmem:[%s1278_s7 + $0x80] sm:$0xff]  ;;  %334 = vst [vmem:[%s1283_s8 + $0x18] sm:$0xff] %v333_v3 }
  0x16   : > { %v337_v5 = vld [vmem:[%s1278_s7 + $0xa0] sm:$0xff]  ;;  %336 = vst [vmem:[%s1283_s8 + $0x20] sm:$0xff] %v335_v4 }
  0x17   : > { %338 = vst [vmem:[%s1283_s8 + $0x28] sm:$0xff] %v337_v5  ;;  %v339_v6 = vld [vmem:[%s1278_s7 + $0xc0] sm:$0xff] }
  0x18   : > { %v341_v7 = vld [vmem:[%s1278_s7 + $0xe0] sm:$0xff]  ;;  %340 = vst [vmem:[%s1283_s8 + $0x30] sm:$0xff] %v339_v6 }
  0x19   : > { %v343_v8 = vld [vmem:[%s1278_s7 + $0x100] sm:$0xff]  ;;  %342 = vst [vmem:[%s1283_s8 + $0x38] sm:$0xff] %v341_v7 }
  0x1a   : > { %344 = vst [vmem:[%s1283_s8 + $0x40] sm:$0xff] %v343_v8  ;;  %v345_v9 = vld [vmem:[%s1278_s7 + $0x120] sm:$0xff] }
  0x1b   : > { %v347_v10 = vld [vmem:[%s1278_s7 + $0x140] sm:$0xff]  ;;  %346 = vst [vmem:[%s1283_s8 + $0x48] sm:$0xff] %v345_v9 }
  0x1c   : > { %v349_v11 = vld [vmem:[%s1278_s7 + $0x160] sm:$0xff]  ;;  %348 = vst [vmem:[%s1283_s8 + $0x50] sm:$0xff] %v347_v10 }
  0x1d   : > { %350 = vst [vmem:[%s1283_s8 + $0x58] sm:$0xff] %v349_v11  ;;  %v351_v12 = vld [vmem:[%s1278_s7 + $0x180] sm:$0xff] }
  0x1e   : > { %v353_v13 = vld [vmem:[%s1278_s7 + $0x1a0] sm:$0xff]  ;;  %352 = vst [vmem:[%s1283_s8 + $0x60] sm:$0xff] %v351_v12 }
  0x1f   : > { %v355_v14 = vld [vmem:[%s1278_s7 + $0x1c0] sm:$0xff]  ;;  %354 = vst [vmem:[%s1283_s8 + $0x68] sm:$0xff] %v353_v13 }
  0x20   : > { %356 = vst [vmem:[%s1283_s8 + $0x70] sm:$0xff] %v355_v14  ;;  %v357_v15 = vld [vmem:[%s1278_s7 + $0x1e0] sm:$0xff] }
  0x21   : > { %v359_v16 = vld [vmem:[%s1278_s7 + $0x200] sm:$0xff]  ;;  %358 = vst [vmem:[%s1283_s8 + $0x78] sm:$0xff] %v357_v15 }
  0x22   : > { %v361_v17 = vld [vmem:[%s1278_s7 + $0x220] sm:$0xff]  ;;  %360 = vst [vmem:[%s1283_s8 + $0x80] sm:$0xff] %v359_v16 }
  0x23   : > { %362 = vst [vmem:[%s1283_s8 + $0x88] sm:$0xff] %v361_v17  ;;  %v363_v18 = vld [vmem:[%s1278_s7 + $0x240] sm:$0xff] }
  0x24   : > { %v365_v19 = vld [vmem:[%s1278_s7 + $0x260] sm:$0xff]  ;;  %364 = vst [vmem:[%s1283_s8 + $0x90] sm:$0xff] %v363_v18 }
  0x25   : > { %v367_v20 = vld [vmem:[%s1278_s7 + $0x280] sm:$0xff]  ;;  %366 = vst [vmem:[%s1283_s8 + $0x98] sm:$0xff] %v365_v19 }
  0x26   : > { %368 = vst [vmem:[%s1283_s8 + $0xa0] sm:$0xff] %v367_v20  ;;  %v369_v21 = vld [vmem:[%s1278_s7 + $0x2a0] sm:$0xff] }
  0x27   : > { %v371_v22 = vld [vmem:[%s1278_s7 + $0x2c0] sm:$0xff]  ;;  %370 = vst [vmem:[%s1283_s8 + $0xa8] sm:$0xff] %v369_v21 }
  0x28   : > { %v373_v23 = vld [vmem:[%s1278_s7 + $0x2e0] sm:$0xff]  ;;  %372 = vst [vmem:[%s1283_s8 + $0xb0] sm:$0xff] %v371_v22 }
  0x29   : > { %374 = vst [vmem:[%s1283_s8 + $0xb8] sm:$0xff] %v373_v23  ;;  %v375_v24 = vld [vmem:[%s1278_s7 + $0x300] sm:$0xff] }
  0x2a   : > { %v377_v25 = vld [vmem:[%s1278_s7 + $0x320] sm:$0xff]  ;;  %376 = vst [vmem:[%s1283_s8 + $0xc0] sm:$0xff] %v375_v24 }
  0x2b   : > { %v379_v26 = vld [vmem:[%s1278_s7 + $0x340] sm:$0xff]  ;;  %378 = vst [vmem:[%s1283_s8 + $0xc8] sm:$0xff] %v377_v25 }
  0x2c   : > { %380 = vst [vmem:[%s1283_s8 + $0xd0] sm:$0xff] %v379_v26  ;;  %v381_v27 = vld [vmem:[%s1278_s7 + $0x360] sm:$0xff] }
  0x2d   : > { %v383_v28 = vld [vmem:[%s1278_s7 + $0x380] sm:$0xff]  ;;  %382 = vst [vmem:[%s1283_s8 + $0xd8] sm:$0xff] %v381_v27 }
  0x2e   : > { %v385_v29 = vld [vmem:[%s1278_s7 + $0x3a0] sm:$0xff]  ;;  %384 = vst [vmem:[%s1283_s8 + $0xe0] sm:$0xff] %v383_v28 }
  0x2f   : > { %386 = vst [vmem:[%s1283_s8 + $0xe8] sm:$0xff] %v385_v29  ;;  %v387_v30 = vld [vmem:[%s1278_s7 + $0x3c0] sm:$0xff] }
  0x30   : > { %v389_v31 = vld [vmem:[%s1278_s7 + $0x3e0] sm:$0xff]  ;;  %388 = vst [vmem:[%s1283_s8 + $0xf0] sm:$0xff] %v387_v30 }
  0x31   : > { %390 = vst [vmem:[%s1283_s8 + $0xf8] sm:$0xff] %v389_v31 }
  0x32 PF: > { %p1027_p6 = scmp.ge.s32.totalorder %s1200_s22, 1  ;;  %p423_p7 = scmp.lt.s32.totalorder %s1200_s22, 5 }
  0x34   : > { %p424_p8 = pnand %p1027_p6, %p423_p7 }
  0x35   : > { %s430_s9 = sand.u32 (!%p424_p8), 1, %s1184_s18   ;;  %v1352_v32 = vld.sshfl [vmem:[%s1436_s0] sm:$0x11 pattern:$0x75316420] (!%p424_p8)  ;;  %v574_v33 = vlaneseq (!%p424_p8)  ;;  %v1203_v10 = vmov (!%p424_p8), 0.0  }
  0x36   : > { %427 = sbr.rel (%p424_p8) target bundleno = 365 (0x16d), region = 74  ;;  %s1028_s12 = sshll.u32 (!%p424_p8), %s430_s9, 8  ;;  %v1202_v34 = vmov (!%p424_p8), 1966171168   ;;  %v570_v39 = vcombine.high (!%p424_p8), %v1352_v32, %v1352_v32  ;;  %527 = vst [vmem:[#allocation2] sm:$0xf] (!%p424_p8), %v1203_v10 }
  0x37   : > { %v572_v35 = vunpack.c.l.s4 (!%p424_p8), %v1202_v34  ;;  %v1354_v36 = vshrl.u32 (!%p424_p8), %v574_v33, 7  ;;  %s1356_s13 = scalar_lea.vmem (!%p424_p8), [#allocation3], %s1028_s12  ;;  %s1029_s14 = sshll.u32 (!%p424_p8), %s1192_s20, 1  ;;  %v1204_v11 = vmov (!%p424_p8), 1983009808  }
  0x38   : > { %v1114_v37 = vld [vmem:[%s1356_s13 + $0x4] ss:$8 sps:$4 sm:$0xff] (!%p424_p8)   ;;  %v1116_v38 = vld [vmem:[%s1356_s13] ss:$8 sps:$4 sm:$0xff] (!%p424_p8)   ;;  %v1117_v41 = vld [vmem:[%s1356_s13 + $0x14] ss:$8 sps:$4 sm:$0xff] (!%p424_p8)   ;;  %v792_v12 = vunpack.c.l.s4 (!%p424_p8), %v1204_v11 }
  0x39   : > { %v573_v40 = vunpack.c.0.s8 (!%p424_p8), %v572_v35  ;;  %747 = vmatprep.subr.bf16.mxu0 (!%p424_p8), %v1114_v37  ;;  %v1119_v42 = vld [vmem:[%s1356_s13 + $0x10] ss:$8 sps:$4 sm:$0xff] (!%p424_p8)   ;;  %v1120_v44 = vld [vmem:[%s1356_s13 + $0x24] ss:$8 sps:$4 sm:$0xff] (!%p424_p8)   ;;  %v1122_v46 = vld [vmem:[%s1356_s13 + $0x20] ss:$8 sps:$4 sm:$0xff] (!%p424_p8)  }
  0x3a   : > { %748 = vmatpush1.bf16.msra.mxu0 (!%p424_p8), %v1116_v38  ;;  %v1123_v47 = vld [vmem:[%s1356_s13 + $0x34] ss:$8 sps:$4 sm:$0xff] (!%p424_p8)   ;;  %v1125_v48 = vld [vmem:[%s1356_s13 + $0x30] ss:$8 sps:$4 sm:$0xff] (!%p424_p8)   ;;  %v1126_v49 = vld [vmem:[%s1356_s13 + $0x44] ss:$8 sps:$4 sm:$0xff] (!%p424_p8)   ;;  %v793_v13 = vunpack.c.0.s8 (!%p424_p8), %v792_v12 }
  0x3b   : > { %v1365_v43 = vsub.s32 (!%p424_p8), %v573_v40, %v1354_v36  ;;  %749 = vmatprep.subr.bf16.mxu0 (!%p424_p8), %v1117_v41  ;;  %v1128_v50 = vld [vmem:[%s1356_s13 + $0x40] ss:$8 sps:$4 sm:$0xff] (!%p424_p8)   ;;  %v1129_v51 = vld [vmem:[%s1356_s13 + $0x54] ss:$8 sps:$4 sm:$0xff] (!%p424_p8)   ;;  %v1131_v52 = vld [vmem:[%s1356_s13 + $0x50] ss:$8 sps:$4 sm:$0xff] (!%p424_p8)  }
  0x3c   : > { %v1132_v53 = vld [vmem:[%s1356_s13 + $0x64] ss:$8 sps:$4 sm:$0xff] (!%p424_p8)   ;;  %v1134_v54 = vld [vmem:[%s1356_s13 + $0x60] ss:$8 sps:$4 sm:$0xff] (!%p424_p8)   ;;  %v1135_v55 = vld [vmem:[%s1356_s13 + $0x74] ss:$8 sps:$4 sm:$0xff] (!%p424_p8)   ;;  %v796_v17 = vsub.s32 (!%p424_p8), %v793_v13, %v1354_v36 }
  0x3d   : > { %v584_v45 = vrot.slane %v570_v39, %v1365_v43  ;;  %v1137_v56 = vld [vmem:[%s1356_s13 + $0x70] ss:$8 sps:$4 sm:$0xff]   ;;  %v1138_v57 = vld [vmem:[%s1356_s13 + $0x84] ss:$8 sps:$4 sm:$0xff]   ;;  %v1140_v58 = vld [vmem:[%s1356_s13 + $0x80] ss:$8 sps:$4 sm:$0xff]   ;;  %v577_v9 = vrot.slane %v1352_v32, %v1365_v43 }
  0x3e   : > { %750 = vmatpush1.bf16.msra.mxu0 %v1119_v42  ;;  %v1141_v59 = vld [vmem:[%s1356_s13 + $0x94] ss:$8 sps:$4 sm:$0xff]   ;;  %v1143_v60 = vld [vmem:[%s1356_s13 + $0x90] ss:$8 sps:$4 sm:$0xff]   ;;  %v1144_v61 = vld [vmem:[%s1356_s13 + $0xa4] ss:$8 sps:$4 sm:$0xff]  }
  0x3f   : > { %779 = vmatprep.mubr.bf16.mxu0 %v584_v45  ;;  %751 = vmatprep.subr.bf16.mxu0 %v1120_v44  ;;  %v1146_v62 = vld [vmem:[%s1356_s13 + $0xa0] ss:$8 sps:$4 sm:$0xff]   ;;  %v1147_v63 = vld [vmem:[%s1356_s13 + $0xb4] ss:$8 sps:$4 sm:$0xff]   ;;  %v1149_v0 = vld [vmem:[%s1356_s13 + $0xb0] ss:$8 sps:$4 sm:$0xff]  }
  0x40   : > { %v1150_v1 = vld [vmem:[%s1356_s13 + $0xc4] ss:$8 sps:$4 sm:$0xff]   ;;  %v1152_v2 = vld [vmem:[%s1356_s13 + $0xc0] ss:$8 sps:$4 sm:$0xff]   ;;  %v1153_v3 = vld [vmem:[%s1356_s13 + $0xd4] ss:$8 sps:$4 sm:$0xff]  }
  0x41   : > { %v1155_v4 = vld [vmem:[%s1356_s13 + $0xd0] ss:$8 sps:$4 sm:$0xff]   ;;  %v1156_v5 = vld [vmem:[%s1356_s13 + $0xe4] ss:$8 sps:$4 sm:$0xff]   ;;  %v1158_v6 = vld [vmem:[%s1356_s13 + $0xe0] ss:$8 sps:$4 sm:$0xff]  }
  0x42   : > { %752 = vmatpush1.bf16.msra.mxu0 %v1122_v46  ;;  %v1159_v7 = vld [vmem:[%s1356_s13 + $0xf4] ss:$8 sps:$4 sm:$0xff]   ;;  %v1161_v8 = vld [vmem:[%s1356_s13 + $0xf0] ss:$8 sps:$4 sm:$0xff]   ;;  %p496_p9 = scmp.lt.s32.totalorder %s1029_s14, 7  ;;  %v809_v14 = vsub.s32 0, %v1354_v36 }
  0x43   : > { %753 = vmatprep.subr.bf16.mxu0 %v1123_v47  ;;  %v813_v15 = vsub.s32 1, %v1354_v36  ;;  %v528_v22 = vld [vmem:[#allocation2] sm:$0xf] }
  0x44   : > { %s1449_s14 = smov (!%p496_p9, %s1029_s14), 7 }
  0x45   : > { %s498_s17 = scalar_lea.vmem %s1438_s2, %s1449_s14  ;;  %s503_s20 = scalar_lea.vmem %s1439_s3, %s1449_s14 }
  0x46   : > { %754 = vmatpush1.bf16.msra.mxu0 %v1125_v48  ;;  %v805_v19 = vld [vmem:[%s498_s17] sm:$0x3]  ;;  %s512_s28 = scalar_lea.vmem %s1440_s4, %s1449_s14  ;;  %s521_s6 = scalar_lea.vmem %s1441_s5, %s1449_s14 }
  0x47   : > { %755 = vmatprep.subr.bf16.mxu0 %v1126_v49  ;;  %v825_v23 = vld [vmem:[%s503_s20] sm:$0x3]  ;;  %v810_v26 = vrot.slane %v805_v19, %v809_v14  ;;  %v814_v27 = vrot.slane %v805_v19, %v813_v15 }
  0x48   : > { %v830_v29 = vrot.slane %v825_v23, %v809_v14  ;;  %v834_v30 = vrot.slane %v825_v23, %v813_v15  ;;  %v845_v34 = vld [vmem:[%s512_s28] sm:$0x3] }
  0x49   : > { %v815_v31 = vcombine.low %v810_v26, %v814_v27  ;;  %v846_v38 = vunpack.c.l.bf16 %v845_v34 }
  0x4a   : > { %756 = vmatpush1.bf16.msra.mxu0 %v1128_v50  ;;  %v835_v32 = vcombine.low %v830_v29, %v834_v30 }
  0x4b   : > { %757 = vmatprep.subr.bf16.mxu0 %v1129_v51  ;;  %v822_v33 = vrot.slane %v815_v31, %v796_v17 }
  0x4c   : > { %v842_v35 = vrot.slane %v835_v32, %v796_v17 }
  0x4e   : > { %758 = vmatpush1.bf16.msra.mxu0 %v1131_v52 }
  0x4f   : > { %759 = vmatprep.subr.bf16.mxu0 %v1132_v53 }
  0x52   : > { %760 = vmatpush1.bf16.msra.mxu0 %v1134_v54 }
  0x53   : > { %761 = vmatprep.subr.bf16.mxu0 %v1135_v55 }
  0x56   : > { %762 = vmatpush1.bf16.msra.mxu0 %v1137_v56 }
  0x57   : > { %763 = vmatprep.subr.bf16.mxu0 %v1138_v57 }
  0x5a   : > { %764 = vmatpush1.bf16.msra.mxu0 %v1140_v58 }
  0x5b   : > { %765 = vmatprep.subr.bf16.mxu0 %v1141_v59 }
  0x5e   : > { %766 = vmatpush1.bf16.msra.mxu0 %v1143_v60 }
  0x5f   : > { %767 = vmatprep.subr.bf16.mxu0 %v1144_v61 }
  0x62   : > { %768 = vmatpush1.bf16.msra.mxu0 %v1146_v62 }
  0x63   : > { %769 = vmatprep.subr.bf16.mxu0 %v1147_v63 }
  0x66   : > { %770 = vmatpush1.bf16.msra.mxu0 %v1149_v0 }
  0x67   : > { %771 = vmatprep.subr.bf16.mxu0 %v1150_v1 }
  0x6a   : > { %772 = vmatpush1.bf16.msra.mxu0 %v1152_v2 }
  0x6b   : > { %773 = vmatprep.subr.bf16.mxu0 %v1153_v3 }
  0x6e   : > { %774 = vmatpush1.bf16.msra.mxu0 %v1155_v4 }
  0x6f   : > { %775 = vmatprep.subr.bf16.mxu0 %v1156_v5 }
  0x72   : > { %776 = vmatpush1.bf16.msra.mxu0 %v1158_v6 }
  0x73   : > { %777 = vmatprep.subr.bf16.mxu0 %v1159_v7 }
  0x76   : > { %778 = vmatpush1.bf16.msra.mxu0 %v1161_v8 }
  0x79   : > { %780 = vmatmul.mubr.bf16.vlgmr.msra.gmra.mrb[0].mxu0 %v577_v9 }
 0x14c   : > { %v781_v16 = vpop.f32.mrb[0].mxu0 }
 0x14d   : > { %v783_v18 = vpop.f32.mrb[1].mxu0 }
 0x14e   : > { %v790_v20 = vcombine.low %v781_v16, %v783_v18  ;;  %v785_v21 = vpop.f32.mrb[2].mxu0 }
 0x14f   : > { %v786_v24 = vpop.f32.mrb[3].mxu0 }
 0x150   : > { %v797_v25 = vrot.slane %v790_v20, %v796_v17 }
 0x152   : > { %v799_v28 = vadd.f32 %v797_v25, %v528_v22 }
 0x154   : > { %800 = vst [vmem:[#allocation2] sm:$0xf] %v799_v28 }
 0x15b   : > { %v804_v36 = vld [vmem:[#allocation2] sm:$0xf] }
 0x15c   : > { %v824_v37 = vmul.f32 %v822_v33, %v804_v36 }
 0x15e   : > { %v844_v39 = vadd.f32 %v842_v35, %v824_v37 }
 0x160   : > { %v847_v40 = vadd.f32 %v846_v38, %v844_v39 }
 0x162   : > { %v848_v41 = vmax.f32 %v847_v40, 0.0 }
 0x164   : > { %v856_v42 = vrot.slane %v848_v41, %v796_v17 }
 0x166   : > { %v857_v44 = vcombine.high %v856_v42, %v856_v42 }
 0x168   : > { %v1066_v45 = vpack.c.bf16 %v857_v44, %v856_v42 }
 0x16a   : > { %v871_v46 = vrot.slane %v1066_v45, %v1365_v43 }
 0x16c   : > { %1067 = vst.sshfl [vmem:[%s521_s6] sm:$0x5 pattern:$0x73625140] %v871_v46 }
 0x16d PF: > { %s15_s22 = sadd.s32 1, %s1200_s22   ;;  %s1442_s18 = smov %s1188_s19 }
 0x16e   : > { %p12_p10 = scmp.ge.s32.totalorder %s15_s22, 6   ;;  %s1443_s19 = smov %s1270_s26 }
 0x16f   : > { %s1444_s20 = smov %s1196_s21  ;;  %s1445_s21 = smov %s1447_s23 }
 0x170   :  { %14 = sbr.rel (!%p12_p10) target bundleno = 3 (0x3), region = 133 }

// kernel: encoder_m_forward.75
= control target key start
LH: loop header
LB: loop body
LE: loop exit
PB: predicated region body
PF: predicated region fallthrough
CT: control target
= control target key end

     0   :  { %s1292_s15 = smov 0   ;;  %s1294_s16 = smov 0   ;;  %s1425_s0 = inlined_call_operand.vmem [shape: bf16[2,1024], index: 0, kind: input, shape index: {}]   ;;  %s1426_s1 = inlined_call_operand.vmem [shape: bf16[1024,256], index: 1, kind: input, shape index: {}]   ;;  %s1427_s2 = inlined_call_operand.vmem [shape: f32[1,256], index: 2, kind: input, shape index: {}]   ;;  %s1428_s3 = inlined_call_operand.vmem [shape: f32[1,256], index: 3, kind: input, shape index: {}]   ;;  %s1429_s4 = inlined_call_operand.vmem [shape: bf16[2,256], index: 4, kind: output, shape index: {}]  }
   0x1   :  { %s1296_s17 = smov 0  }
   0x2 LB: > { %s26_s18 = sadd.s32 1, %s1258_s16  ;;  %p1036_p0 = scmp.ge.s32.totalorder %s1262_s17, 1  ;;  %s1262_s17 = sphi %s1296_s17, %s14_s17   ;;  %s1258_s16 = sphi %s1294_s16, %s1431_s16   ;;  %s1254_s15 = sphi %s1292_s15, %s1430_s15  }
   0x3   : > { %p27_p1 = scmp.ge.s32.totalorder %s26_s18, 2  ;;  %p228_p2 = scmp.lt.s32.totalorder %s1262_s17, 3 }
   0x5   : > { %s1433_s18 = smov (%p27_p1, %s26_s18), 0  ;;  %p229_p3 = pnand %p1036_p0, %p228_p2 }
   0x6   : > { %s1037_s19 = sshll.u32 (!%p229_p3), %s1254_s15, 2  ;;  %s1038_s20 = sshll.u32 (!%p229_p3), %s1254_s15, 6 }
   0x7   : > { %232 = sbr.rel (%p229_p3) target bundleno = 333 (0x14d), region = 36  ;;  %p281_p4 = scmp.lt.s32.totalorder (!%p229_p3), %s1037_s19, 7 }
   0x8   : > { %p289_p5 = scmp.lt.s32.totalorder (!%p229_p3), %s1038_s20, 127  ;;  %p1041_p6 = scmp.ne.s32.totalorder (!%p229_p3), %s1254_s15, 0 }
   0xe   : > { %s1435_s19 = smov (!%p281_p4, %s1037_s19), 7  ;;  %s1437_s20 = smov (!%p289_p5, %s1038_s20), 127 }
   0xf   : > { %s285_s23 = scalar_lea.vmem %s1425_s0, %s1435_s19  ;;  %s1114_s24 = sshll.u32 %s1437_s20, 3  ;;  %v1264_v0 = vmov (!%p1041_p6), 0.0  }
  0x10   : > { %s1323_s27 = scalar_lea.vmem %s1426_s1, %s1114_s24  ;;  %321 = sbr.rel (%p1041_p6) target bundleno = 23 (0x17), region = 40  ;;  %322 = vst [vmem:[#allocation2] sm:$0xf] (!%p1041_p6), %v1264_v0 }
  0x17 PF: > { %v1144_v1 = vld [vmem:[%s1323_s27 + $0x4] ss:$8 sps:$4 sm:$0xff]   ;;  %v1148_v3 = vld [vmem:[%s1323_s27] ss:$8 sps:$4 sm:$0xff]   ;;  %v1150_v5 = vld [vmem:[%s1323_s27 + $0x14] ss:$8 sps:$4 sm:$0xff]   ;;  %v401_v41 = vlaneseq }
  0x18   : > { %v1146_v2 = vld [vmem:[%s1323_s27 + $0x104] ss:$8 sps:$4 sm:$0xff]   ;;  %738 = vmatprep.subr.bf16.mxu1 %v1144_v1  ;;  %v1149_v4 = vld [vmem:[%s1323_s27 + $0x100] ss:$8 sps:$4 sm:$0xff]   ;;  %v1152_v6 = vld [vmem:[%s1323_s27 + $0x114] ss:$8 sps:$4 sm:$0xff]  }
  0x19   : > { %779 = vmatprep.subr.bf16.mxu0 %v1146_v2  ;;  %739 = vmatpush1.bf16.msra.mxu1 %v1148_v3  ;;  %v1154_v7 = vld [vmem:[%s1323_s27 + $0x10] ss:$8 sps:$4 sm:$0xff]   ;;  %v1156_v9 = vld [vmem:[%s1323_s27 + $0x24] ss:$8 sps:$4 sm:$0xff]   ;;  %v1160_v11 = vld [vmem:[%s1323_s27 + $0x20] ss:$8 sps:$4 sm:$0xff]  }
  0x1a   : > { %780 = vmatpush1.bf16.msra.mxu0 %v1149_v4  ;;  %740 = vmatprep.subr.bf16.mxu1 %v1150_v5  ;;  %v1155_v8 = vld [vmem:[%s1323_s27 + $0x110] ss:$8 sps:$4 sm:$0xff]   ;;  %v1158_v10 = vld [vmem:[%s1323_s27 + $0x124] ss:$8 sps:$4 sm:$0xff]   ;;  %v1161_v12 = vld [vmem:[%s1323_s27 + $0x120] ss:$8 sps:$4 sm:$0xff]  }
  0x1b   : > { %781 = vmatprep.subr.bf16.mxu0 %v1152_v6  ;;  %v1162_v13 = vld [vmem:[%s1323_s27 + $0x34] ss:$8 sps:$4 sm:$0xff]   ;;  %v1166_v15 = vld [vmem:[%s1323_s27 + $0x30] ss:$8 sps:$4 sm:$0xff]   ;;  %v1168_v17 = vld [vmem:[%s1323_s27 + $0x44] ss:$8 sps:$4 sm:$0xff]  }
  0x1c   : > { %v1164_v14 = vld [vmem:[%s1323_s27 + $0x134] ss:$8 sps:$4 sm:$0xff]   ;;  %v1167_v16 = vld [vmem:[%s1323_s27 + $0x130] ss:$8 sps:$4 sm:$0xff]   ;;  %v1170_v18 = vld [vmem:[%s1323_s27 + $0x144] ss:$8 sps:$4 sm:$0xff]  }
  0x1d   : > { %741 = vmatpush1.bf16.msra.mxu1 %v1154_v7  ;;  %v1172_v19 = vld [vmem:[%s1323_s27 + $0x40] ss:$8 sps:$4 sm:$0xff]   ;;  %v1174_v21 = vld [vmem:[%s1323_s27 + $0x54] ss:$8 sps:$4 sm:$0xff]   ;;  %v1178_v23 = vld [vmem:[%s1323_s27 + $0x50] ss:$8 sps:$4 sm:$0xff]  }
  0x1e   : > { %782 = vmatpush1.bf16.msra.mxu0 %v1155_v8  ;;  %742 = vmatprep.subr.bf16.mxu1 %v1156_v9  ;;  %v1173_v20 = vld [vmem:[%s1323_s27 + $0x140] ss:$8 sps:$4 sm:$0xff]   ;;  %v1176_v22 = vld [vmem:[%s1323_s27 + $0x154] ss:$8 sps:$4 sm:$0xff]   ;;  %v1179_v24 = vld [vmem:[%s1323_s27 + $0x150] ss:$8 sps:$4 sm:$0xff]  }
  0x1f   : > { %783 = vmatprep.subr.bf16.mxu0 %v1158_v10  ;;  %v1180_v25 = vld [vmem:[%s1323_s27 + $0x64] ss:$8 sps:$4 sm:$0xff]   ;;  %v1184_v27 = vld [vmem:[%s1323_s27 + $0x60] ss:$8 sps:$4 sm:$0xff]   ;;  %v1186_v29 = vld [vmem:[%s1323_s27 + $0x74] ss:$8 sps:$4 sm:$0xff]  }
  0x20   : > { %v1182_v26 = vld [vmem:[%s1323_s27 + $0x164] ss:$8 sps:$4 sm:$0xff]   ;;  %v1185_v28 = vld [vmem:[%s1323_s27 + $0x160] ss:$8 sps:$4 sm:$0xff]   ;;  %v1188_v30 = vld [vmem:[%s1323_s27 + $0x174] ss:$8 sps:$4 sm:$0xff]  }
  0x21   : > { %743 = vmatpush1.bf16.msra.mxu1 %v1160_v11  ;;  %v1190_v31 = vld [vmem:[%s1323_s27 + $0x70] ss:$8 sps:$4 sm:$0xff]   ;;  %v1192_v33 = vld [vmem:[%s1323_s27 + $0x84] ss:$8 sps:$4 sm:$0xff]   ;;  %v1196_v35 = vld [vmem:[%s1323_s27 + $0x80] ss:$8 sps:$4 sm:$0xff]  }
  0x22   : > { %784 = vmatpush1.bf16.msra.mxu0 %v1161_v12  ;;  %744 = vmatprep.subr.bf16.mxu1 %v1162_v13  ;;  %v1191_v32 = vld [vmem:[%s1323_s27 + $0x170] ss:$8 sps:$4 sm:$0xff]   ;;  %v1194_v34 = vld [vmem:[%s1323_s27 + $0x184] ss:$8 sps:$4 sm:$0xff]   ;;  %v1197_v36 = vld [vmem:[%s1323_s27 + $0x180] ss:$8 sps:$4 sm:$0xff]  }
  0x23   : > { %785 = vmatprep.subr.bf16.mxu0 %v1164_v14  ;;  %v1198_v37 = vld [vmem:[%s1323_s27 + $0x94] ss:$8 sps:$4 sm:$0xff]   ;;  %v1265_v39 = vmov 1966171168   ;;  %v1202_v42 = vld [vmem:[%s1323_s27 + $0x90] ss:$8 sps:$4 sm:$0xff]  }
  0x24   : > { %v1200_v38 = vld [vmem:[%s1323_s27 + $0x194] ss:$8 sps:$4 sm:$0xff]   ;;  %v399_v40 = vunpack.c.l.s4 %v1265_v39  ;;  %v1203_v43 = vld [vmem:[%s1323_s27 + $0x190] ss:$8 sps:$4 sm:$0xff]   ;;  %v1204_v44 = vld [vmem:[%s1323_s27 + $0xa4] ss:$8 sps:$4 sm:$0xff]  }
  0x25   : > { %745 = vmatpush1.bf16.msra.mxu1 %v1166_v15  ;;  %v1206_v45 = vld [vmem:[%s1323_s27 + $0x1a4] ss:$8 sps:$4 sm:$0xff]   ;;  %v1368_v47 = vshrl.u32 %v401_v41, 7  ;;  %v1208_v48 = vld [vmem:[%s1323_s27 + $0xa0] ss:$8 sps:$4 sm:$0xff]   ;;  %p1107_p7 = scmp.ne.s32.totalorder %s1254_s15, 1 }
  0x26   : > { %786 = vmatpush1.bf16.msra.mxu0 %v1167_v16  ;;  %746 = vmatprep.subr.bf16.mxu1 %v1168_v17  ;;  %v400_v46 = vunpack.c.0.s8 %v399_v40  ;;  %v1209_v49 = vld [vmem:[%s1323_s27 + $0x1a0] ss:$8 sps:$4 sm:$0xff]   ;;  %v1210_v50 = vld [vmem:[%s1323_s27 + $0xb4] ss:$8 sps:$4 sm:$0xff]   ;;  %v1214_v54 = vld [vmem:[%s1323_s27 + $0xb0] ss:$8 sps:$4 sm:$0xff]  }
  0x27   : > { %787 = vmatprep.subr.bf16.mxu0 %v1170_v18  ;;  %v1212_v51 = vld [vmem:[%s1323_s27 + $0x1b4] ss:$8 sps:$4 sm:$0xff]   ;;  %v1042_v53 = vld.sshfl [vmem:[%s285_s23] sm:$0x33 pattern:$0x75316420] }
  0x28   : > { %v1375_v52 = vsub.s32 %v400_v46, %v1368_v47  ;;  %v1215_v55 = vld [vmem:[%s1323_s27 + $0x1b0] ss:$8 sps:$4 sm:$0xff]   ;;  %v397_v56 = vcombine.high %v1042_v53, %v1042_v53  ;;  %v1216_v57 = vld [vmem:[%s1323_s27 + $0xc4] ss:$8 sps:$4 sm:$0xff]   ;;  %v1220_v60 = vld [vmem:[%s1323_s27 + $0xc0] ss:$8 sps:$4 sm:$0xff]  }
  0x29   : > { %747 = vmatpush1.bf16.msra.mxu1 %v1172_v19  ;;  %v1218_v58 = vld [vmem:[%s1323_s27 + $0x1c4] ss:$8 sps:$4 sm:$0xff]   ;;  %v1221_v61 = vld [vmem:[%s1323_s27 + $0x1c0] ss:$8 sps:$4 sm:$0xff]   ;;  %v1222_v63 = vld [vmem:[%s1323_s27 + $0xd4] ss:$8 sps:$4 sm:$0xff]  }
  0x2a   : > { %788 = vmatpush1.bf16.msra.mxu0 %v1173_v20  ;;  %748 = vmatprep.subr.bf16.mxu1 %v1174_v21  ;;  %v411_v59 = vrot.slane %v397_v56, %v1375_v52  ;;  %v1224_v0 = vld [vmem:[%s1323_s27 + $0x1d4] ss:$8 sps:$4 sm:$0xff]   ;;  %v1226_v1 = vld [vmem:[%s1323_s27 + $0xd0] ss:$8 sps:$4 sm:$0xff]   ;;  %v1228_v3 = vld [vmem:[%s1323_s27 + $0xe4] ss:$8 sps:$4 sm:$0xff]   ;;  %v404_v9 = vrot.slane %v1042_v53, %v1375_v52 }
  0x2b   : > { %789 = vmatprep.subr.bf16.mxu0 %v1176_v22  ;;  %v1227_v2 = vld [vmem:[%s1323_s27 + $0x1d0] ss:$8 sps:$4 sm:$0xff]   ;;  %v1230_v4 = vld [vmem:[%s1323_s27 + $0x1e4] ss:$8 sps:$4 sm:$0xff]   ;;  %v1232_v5 = vld [vmem:[%s1323_s27 + $0xe0] ss:$8 sps:$4 sm:$0xff]  }
  0x2c   : > { %v413_v62 = vcombine.high %v411_v59, %v411_v59  ;;  %770 = vmatprep.mubr.bf16.mxu1 %v411_v59  ;;  %v1233_v6 = vld [vmem:[%s1323_s27 + $0x1e0] ss:$8 sps:$4 sm:$0xff]   ;;  %v1234_v7 = vld [vmem:[%s1323_s27 + $0xf4] ss:$8 sps:$4 sm:$0xff]   ;;  %v1238_v10 = vld [vmem:[%s1323_s27 + $0xf0] ss:$8 sps:$4 sm:$0xff]   ;;  %v412_v12 = vcombine.high %v404_v9, %v404_v9 }
  0x2d   : > { %749 = vmatpush1.bf16.msra.mxu1 %v1178_v23  ;;  %v1236_v8 = vld [vmem:[%s1323_s27 + $0x1f4] ss:$8 sps:$4 sm:$0xff]   ;;  %v1239_v11 = vld [vmem:[%s1323_s27 + $0x1f0] ss:$8 sps:$4 sm:$0xff]   ;;  %v1266_v13 = vmov 1983009808  }
  0x2e   : > { %790 = vmatpush1.bf16.msra.mxu0 %v1179_v24  ;;  %750 = vmatprep.subr.bf16.mxu1 %v1180_v25  ;;  %v824_v14 = vunpack.c.l.s4 %v1266_v13 }
  0x2f   : > { %791 = vmatprep.subr.bf16.mxu0 %v1182_v26  ;;  %811 = vmatprep.mubr.bf16.mxu0 %v413_v62 }
  0x30   : > { %v825_v15 = vunpack.c.0.s8 %v824_v14 }
  0x31   : > { %751 = vmatpush1.bf16.msra.mxu1 %v1184_v27 }
  0x32   : > { %792 = vmatpush1.bf16.msra.mxu0 %v1185_v28  ;;  %752 = vmatprep.subr.bf16.mxu1 %v1186_v29  ;;  %v828_v22 = vsub.s32 %v825_v15, %v1368_v47  ;;  %v323_v28 = vld [vmem:[#allocation2] sm:$0xf] }
  0x33   : > { %793 = vmatprep.subr.bf16.mxu0 %v1188_v30 }
  0x35   : > { %753 = vmatpush1.bf16.msra.mxu1 %v1190_v31  ;;  %v838_v31 = vld [vmem:[%s1427_s2] sm:$0x3] (!%p1107_p7) }
  0x36   : > { %794 = vmatpush1.bf16.msra.mxu0 %v1191_v32  ;;  %754 = vmatprep.subr.bf16.mxu1 %v1192_v33  ;;  %v842_v32 = vsub.s32 (!%p1107_p7), 0, %v1368_v47  ;;  %v846_v33 = vsub.s32 (!%p1107_p7), 1, %v1368_v47 }
  0x37   : > { %795 = vmatprep.subr.bf16.mxu0 %v1194_v34  ;;  %v858_v34 = vld [vmem:[%s1428_s3] sm:$0x3] (!%p1107_p7) }
  0x39   : > { %755 = vmatpush1.bf16.msra.mxu1 %v1196_v35  ;;  %v843_v35 = vrot.slane (!%p1107_p7), %v838_v31, %v842_v32 }
  0x3a   : > { %796 = vmatpush1.bf16.msra.mxu0 %v1197_v36  ;;  %756 = vmatprep.subr.bf16.mxu1 %v1198_v37  ;;  %v847_v36 = vrot.slane (!%p1107_p7), %v838_v31, %v846_v33  ;;  %v863_v37 = vrot.slane (!%p1107_p7), %v858_v34, %v842_v32 }
  0x3b   : > { %797 = vmatprep.subr.bf16.mxu0 %v1200_v38  ;;  %v867_v38 = vrot.slane (!%p1107_p7), %v858_v34, %v846_v33 }
  0x3c   : > { %v848_v39 = vcombine.low (!%p1107_p7), %v843_v35, %v847_v36 }
  0x3d   : > { %757 = vmatpush1.bf16.msra.mxu1 %v1202_v42  ;;  %v868_v40 = vcombine.low (!%p1107_p7), %v863_v37, %v867_v38 }
  0x3e   : > { %798 = vmatpush1.bf16.msra.mxu0 %v1203_v43  ;;  %758 = vmatprep.subr.bf16.mxu1 %v1204_v44  ;;  %v855_v42 = vrot.slane (!%p1107_p7), %v848_v39, %v828_v22 }
  0x3f   : > { %799 = vmatprep.subr.bf16.mxu0 %v1206_v45  ;;  %v875_v43 = vrot.slane (!%p1107_p7), %v868_v40, %v828_v22 }
  0x41   : > { %759 = vmatpush1.bf16.msra.mxu1 %v1208_v48 }
  0x42   : > { %800 = vmatpush1.bf16.msra.mxu0 %v1209_v49  ;;  %760 = vmatprep.subr.bf16.mxu1 %v1210_v50 }
  0x43   : > { %801 = vmatprep.subr.bf16.mxu0 %v1212_v51 }
  0x45   : > { %761 = vmatpush1.bf16.msra.mxu1 %v1214_v54 }
  0x46   : > { %802 = vmatpush1.bf16.msra.mxu0 %v1215_v55  ;;  %762 = vmatprep.subr.bf16.mxu1 %v1216_v57 }
  0x47   : > { %803 = vmatprep.subr.bf16.mxu0 %v1218_v58 }
  0x49   : > { %763 = vmatpush1.bf16.msra.mxu1 %v1220_v60 }
  0x4a   : > { %804 = vmatpush1.bf16.msra.mxu0 %v1221_v61  ;;  %764 = vmatprep.subr.bf16.mxu1 %v1222_v63 }
  0x4b   : > { %805 = vmatprep.subr.bf16.mxu0 %v1224_v0 }
  0x4d   : > { %765 = vmatpush1.bf16.msra.mxu1 %v1226_v1 }
  0x4e   : > { %806 = vmatpush1.bf16.msra.mxu0 %v1227_v2  ;;  %766 = vmatprep.subr.bf16.mxu1 %v1228_v3 }
  0x4f   : > { %807 = vmatprep.subr.bf16.mxu0 %v1230_v4 }
  0x51   : > { %767 = vmatpush1.bf16.msra.mxu1 %v1232_v5 }
  0x52   : > { %808 = vmatpush1.bf16.msra.mxu0 %v1233_v6  ;;  %768 = vmatprep.subr.bf16.mxu1 %v1234_v7 }
  0x53   : > { %809 = vmatprep.subr.bf16.mxu0 %v1236_v8 }
  0x55   : > { %769 = vmatpush1.bf16.msra.mxu1 %v1238_v10 }
  0x56   : > { %810 = vmatpush1.bf16.msra.mxu0 %v1239_v11 }
  0x58   : > { %771 = vmatmul.mubr.bf16.vlgmr.msra.gmra.mrb[0].mxu1 %v404_v9 }
  0x59   : > { %812 = vmatmul.mubr.bf16.vlgmr.msra.gmra.mrb[0].mxu0 %v412_v12 }
 0x12b   : > { %v772_v16 = vpop.f32.mrb[0].mxu1 }
 0x12c   : > { %v813_v17 = vpop.f32.mrb[0].mxu0  ;;  %v774_v19 = vpop.f32.mrb[1].mxu1 }
 0x12d   : > { %v814_v18 = vadd.f32 %v813_v17, %v772_v16  ;;  %v815_v20 = vpop.f32.mrb[1].mxu0  ;;  %v776_v23 = vpop.f32.mrb[2].mxu1 }
 0x12e   : > { %v816_v21 = vadd.f32 %v815_v20, %v774_v19  ;;  %v817_v24 = vpop.f32.mrb[2].mxu0  ;;  %v777_v25 = vpop.f32.mrb[3].mxu1 }
 0x12f   : > { %v818_v26 = vpop.f32.mrb[3].mxu0 }
 0x130   : > { %v822_v27 = vcombine.low %v814_v18, %v816_v21  ;;  %836 = sbr.rel (%p1107_p7) target bundleno = 333 (0x14d), region = 44 }
 0x132   : > { %v829_v29 = vrot.slane %v822_v27, %v828_v22 }
 0x134   : > { %v831_v30 = vadd.f32 %v829_v29, %v323_v28 }
 0x136   : > { %832 = vst [vmem:[#allocation2] sm:$0xf] %v831_v30 }
 0x13d   : > { %v837_v41 = vld [vmem:[#allocation2] sm:$0xf] }
 0x13e   : > { %v857_v44 = vmul.f32 %v855_v42, %v837_v41 }
 0x140   : > { %v877_v45 = vadd.f32 %v875_v43, %v857_v44 }
 0x142   : > { %v878_v46 = vmax.f32 %v877_v45, 0.0 }
 0x144   : > { %v886_v48 = vrot.slane %v878_v46, %v828_v22 }
 0x146   : > { %v887_v49 = vcombine.high %v886_v48, %v886_v48 }
 0x148   : > { %v1108_v50 = vpack.c.bf16 %v887_v49, %v886_v48 }
 0x14a   : > { %v901_v47 = vrot.slane %v1108_v50, %v1375_v52 }
 0x14c   : > { %1109 = vst.sshfl [vmem:[%s1429_s4] sm:$0x5 pattern:$0x73625140] %v901_v47 }
 0x14d PF: > { %s14_s17 = sadd.s32 1, %s1262_s17   ;;  %s1430_s15 = smov %s1258_s16 }
 0x14e   : > { %p11_p8 = scmp.ge.s32.totalorder %s14_s17, 4   ;;  %s1431_s16 = smov %s1433_s18 }
 0x150   :  { %13 = sbr.rel (!%p11_p8) target bundleno = 2 (0x2), region = 83 }

</bundles_post_ra>
